<compile_context>
chip_gen: v7x
topology: tpu7x:2x2x1
jax: 0.10.0
libtpu: 0.0.40
codegen_flags: <defaults>
</compile_context>

<pallas_src>
import functools

import numpy as np
import jax
import jax.numpy as jnp
from jax.experimental import pallas as pl
from jax.experimental.pallas import tpu as pltpu

_BN_EPS = 1e-5
_VMEM = pl.BlockSpec(memory_space=pltpu.MemorySpace.VMEM)
_CPARAMS = pltpu.CompilerParams(vmem_limit_bytes=32 * 1024 * 1024)


# ----------------------------- Pallas kernels ------------------------------ #

def _mm_bias_relu_t_kernel(w_ref, p_ref, b_ref, o_ref):
    # (Cout, K) @ (K, M) -> (Cout, M); large M lives on the 128-lane axis.
    y = jnp.dot(w_ref[...], p_ref[...], preferred_element_type=jnp.float32)
    o_ref[...] = jnp.maximum(y + b_ref[...], 0.0)


def _mm_bn_relu_t_kernel(w_ref, p_ref, g_ref, beta_ref, o_ref, *, eps):
    # conv (bias dropped: exactly cancelled by BN mean subtraction) +
    # train-mode BatchNorm2d (per-batch biased variance, like the PyTorch
    # module) + ReLU.  One-pass statistics keep the f32 slab hot in vregs.
    y = jnp.dot(w_ref[...], p_ref[...], preferred_element_type=jnp.float32)
    m = y.shape[1]
    inv_m = jnp.float32(1.0 / m)
    mean = jnp.sum(y, axis=1, keepdims=True) * inv_m
    var = jnp.maximum(jnp.sum(y * y, axis=1, keepdims=True) * inv_m - mean * mean, 0.0)
    y = (y - mean) * jax.lax.rsqrt(var + eps) * g_ref[...] + beta_ref[...]
    o_ref[...] = jnp.maximum(y, 0.0)


def _tail_kernel(p5_ref, w5_ref, b5_ref, w6_ref, b6_ref, wl_ref, bl_ref, o_ref,
                 *, n_batch):
    # conv5 + ReLU as one matmul: (8N, 800) @ (800, 32).  Rows are tap-major
    # (row = tap*N + batch) so every conv6 tap is a contiguous (N, 32) slab.
    x5 = jnp.dot(p5_ref[...], w5_ref[...], preferred_element_type=jnp.float32)
    x5 = jnp.maximum(x5 + b5_ref[...], 0.0)                        # (8N, 32)

    # conv6: its (4,2) kernel covers conv5's whole 4x2 output -> 8 taps, each a
    # batched (N,32)@(32,32) matmul (statically unrolled, batched over N).
    acc = jnp.dot(x5[0:n_batch, :], w6_ref[0],
                  preferred_element_type=jnp.float32)
    for p in range(1, 8):
        acc = acc + jnp.dot(x5[p * n_batch:(p + 1) * n_batch, :], w6_ref[p],
                            preferred_element_type=jnp.float32)
    x6 = jnp.maximum(acc + b6_ref[...], 0.0)                       # (N, 32)

    # linear head + softmax, batched over all rows, single store.
    logits = jnp.dot(x6, wl_ref[...],
                     preferred_element_type=jnp.float32) + bl_ref[...]
    mx = jnp.max(logits, axis=1, keepdims=True)
    e = jnp.exp(logits - mx)
    o_ref[...] = e / jnp.sum(e, axis=1, keepdims=True)


# ------------------------------ layer wrappers ------------------------------ #

def _im2col_t(x_cnhw, kh, kw, sh, sw):
    """Channel-major im2col: (C,N,H,W) -> (K = C*kh*kw, M = N*Ho*Wo) in f32."""
    c, n, h, w = x_cnhw.shape
    ho = (h - kh) // sh + 1
    wo = (w - kw) // sw + 1
    slabs = []
    for i in range(kh):
        for j in range(kw):
            slabs.append(x_cnhw[:, :, i:i + sh * (ho - 1) + 1:sh,
                                j:j + sw * (wo - 1) + 1:sw])
    p = jnp.stack(slabs, axis=1)                       # (C, kh*kw, N, Ho, Wo)
    p = p.reshape(c * kh * kw, n * ho * wo)
    return p, (n, ho, wo)


def _conv_relu_t(p_t, w2d, b_col):
    cout = w2d.shape[0]
    m = p_t.shape[1]
    return pl.pallas_call(
        _mm_bias_relu_t_kernel,
        out_shape=jax.ShapeDtypeStruct((cout, m), jnp.float32),
        in_specs=[_VMEM] * 3,
        out_specs=_VMEM,
        compiler_params=_CPARAMS,
    )(w2d, p_t, b_col)


def _conv_bn_relu_t(p_t, w2d, g_col, beta_col):
    cout = w2d.shape[0]
    m = p_t.shape[1]
    return pl.pallas_call(
        functools.partial(_mm_bn_relu_t_kernel, eps=_BN_EPS),
        out_shape=jax.ShapeDtypeStruct((cout, m), jnp.float32),
        in_specs=[_VMEM] * 4,
        out_specs=_VMEM,
        compiler_params=_CPARAMS,
    )(w2d, p_t, g_col, beta_col)


def _tail(p5_rows, pp, n_batch):
    return pl.pallas_call(
        functools.partial(_tail_kernel, n_batch=n_batch),
        out_shape=jax.ShapeDtypeStruct((n_batch, 7), jnp.float32),
        in_specs=[_VMEM] * 7,
        out_specs=_VMEM,
        compiler_params=_CPARAMS,
    )(p5_rows, pp["w5"], pp["b5"], pp["w6"], pp["b6"], pp["wl"], pp["bl"])


# ------------------------------ parameters ---------------------------------- #

def init_params(key):
    """PyTorch-layout parameters (Conv2d weight = (Cout, Cin, kh, kw))."""
    ks = jax.random.split(key, 18)

    def cw(k, cout, cin, kh, kw):
        return 0.05 * jax.random.normal(k, (cout, cin, kh, kw), jnp.float32)

    def vec(k, n, scale=0.05):
        return scale * jax.random.normal(k, (n,), jnp.float32)

    return {
        "conv1_w": cw(ks[0], 8, 3, 3, 3),    "conv1_b": vec(ks[1], 8),
        "conv2_w": cw(ks[2], 16, 8, 3, 3),   "conv2_b": vec(ks[3], 16),  # cancelled by bn1
        "bn1_g": 1.0 + 0.1 * jax.random.normal(ks[4], (16,), jnp.float32),
        "bn1_b": vec(ks[5], 16, 0.1),
        "conv3_w": cw(ks[6], 32, 16, 3, 3),  "conv3_b": vec(ks[7], 32),
        "conv4_w": cw(ks[8], 32, 32, 3, 3),  "conv4_b": vec(ks[9], 32),  # cancelled by bn2
        "bn2_g": 1.0 + 0.1 * jax.random.normal(ks[10], (32,), jnp.float32),
        "bn2_b": vec(ks[11], 32, 0.1),
        "conv5_w": cw(ks[12], 32, 32, 5, 5), "conv5_b": vec(ks[13], 32),
        "conv6_w": cw(ks[14], 32, 32, 4, 2), "conv6_b": vec(ks[15], 32),
        "lin_w": 0.1 * jax.random.normal(ks[16], (7, 32), jnp.float32),
        "lin_b": 0.1 * jax.random.normal(ks[17], (7,), jnp.float32),
    }


def prepare_params(params):
    """One-time layout transform into kernel-ready operands (outside the
    per-step path; no per-forward reshape/transpose/cast ops)."""
    f32 = jnp.float32
    return {
        "w1": params["conv1_w"].reshape(8, 27).astype(f32),
        "b1": params["conv1_b"].reshape(8, 1).astype(f32),
        "w2": params["conv2_w"].reshape(16, 72).astype(f32),
        "g1": params["bn1_g"].reshape(16, 1).astype(f32),
        "be1": params["bn1_b"].reshape(16, 1).astype(f32),
        "w3": params["conv3_w"].reshape(32, 144).astype(f32),
        "b3": params["conv3_b"].reshape(32, 1).astype(f32),
        "w4": params["conv4_w"].reshape(32, 288).astype(f32),
        "g2": params["bn2_g"].reshape(32, 1).astype(f32),
        "be2": params["bn2_b"].reshape(32, 1).astype(f32),
        "w5": params["conv5_w"].reshape(32, 800).T.astype(f32),            # (800, 32)
        "b5": params["conv5_b"].reshape(1, 32).astype(f32),
        # conv6 weights as (tap = i*2+j, Cin, Cout):
        "w6": jnp.transpose(params["conv6_w"], (2, 3, 1, 0)).reshape(8, 32, 32).astype(f32),
        "b6": params["conv6_b"].reshape(1, 32).astype(f32),
        "wl": params["lin_w"].T.astype(f32),                               # (32, 7)
        "bl": params["lin_b"].reshape(1, 7).astype(f32),
    }


# ------------------------------ forward pass -------------------------------- #

@jax.jit
def _forward_probs(pp, x_nchw):
    x = jnp.transpose(x_nchw.astype(jnp.float32), (1, 0, 2, 3))     # (C,N,H,W)
    n = x.shape[1]

    p, (_, h, w) = _im2col_t(x, 3, 3, 2, 2)
    x = _conv_relu_t(p, pp["w1"], pp["b1"]).reshape(8, n, h, w)

    p, (_, h, w) = _im2col_t(x, 3, 3, 2, 2)
    x = _conv_bn_relu_t(p, pp["w2"], pp["g1"], pp["be1"]).reshape(16, n, h, w)

    p, (_, h, w) = _im2col_t(x, 3, 3, 2, 2)
    x = _conv_relu_t(p, pp["w3"], pp["b3"]).reshape(32, n, h, w)

    p, (_, h, w) = _im2col_t(x, 3, 3, 2, 2)
    x = _conv_bn_relu_t(p, pp["w4"], pp["g2"], pp["be2"]).reshape(32, n, h, w)

    p5_t, (_, h5, w5) = _im2col_t(x, 5, 5, 3, 3)
    # layer6.view(d1, 32) in the PyTorch module requires conv5's output to be
    # exactly 4x2 so conv6's (4,2) kernel collapses it to 1x1.
    assert (h5, w5) == (4, 2), "input spatial size must collapse to 4x2 at conv5"
    # reorder patch columns (n, tap) -> tap-major rows (tap*N + n, K) for the
    # fused tail kernel.
    p5_rows = p5_t.reshape(800, n, 8).transpose(2, 1, 0).reshape(8 * n, 800)
    return _tail(p5_rows, pp, n)                                     # (N, 7)


@jax.jit
def _sample_actions(probs, key):
    # categorical sampling on-device (Gumbel-max via jax.random.categorical).
    return jax.random.categorical(key, jnp.log(probs + 1e-30), axis=-1)


def assault_policy_forward(prepared_params, x_nchw, get_action=True, rng_key=None):
    probs = _forward_probs(prepared_params, x_nchw)
    if not get_action:
        return probs
    # TODO(synk): the PyTorch module samples via the host-side global
    # np.random.choice; sampling here is on-device with an explicit key.
    if rng_key is None:
        rng_key = jax.random.PRNGKey(0)
    actions = _sample_actions(probs, rng_key)
    return probs, actions


if __name__ == "__main__":
    key = jax.random.PRNGKey(0)
    pkey, xkey, akey = jax.random.split(key, 3)
    params = init_params(pkey)
    prepared = prepare_params(params)   # one-time weight layout transform
    # smallest NCHW input whose conv stack collapses to 1x1x32 (so view(d1, 32) works)
    x = jax.random.normal(xkey, (2, 3, 239, 143), dtype=jnp.float32)
    probs, actions = assault_policy_forward(prepared, x, get_action=True, rng_key=akey)
    probs = jax.block_until_ready(probs)
    actions = jax.block_until_ready(actions)
    assert probs.shape == (2, 7)
    assert actions.shape == (2,)
    p_np = np.asarray(probs, dtype=np.float64)
    assert np.allclose(p_np.sum(axis=1), 1.0, atol=1e-5)
    assert np.all(p_np >= 0.0)
    a_np = np.asarray(actions)
    assert np.all((a_np >= 0) & (a_np < 7))
    print("KERNEL_OK")
</pallas_src>

<mosaic_0001>
module attributes {stable_mosaic.version = 11 : i64} {
  func.func @_mm_bias_relu_t_kernel(%arg0: memref<8x27xf32, #tpu.memory_space<vmem>>, %arg1: memref<27x16898xf32, #tpu.memory_space<vmem>>, %arg2: memref<8x1xf32, #tpu.memory_space<vmem>>, %arg3: memref<8x16898xf32, #tpu.memory_space<vmem>>) attributes {dimension_semantics = [], scalar_prefetch = 0 : i64, scratch_operands = 0 : i64, tpu.core_type = #tpu.core_type<tc>} {
    %c0 = arith.constant 0 : index
    %c0_0 = arith.constant 0 : index
    %0 = vector.load %arg0[%c0, %c0_0] : memref<8x27xf32, #tpu.memory_space<vmem>>, vector<8x27xf32>
    %c0_1 = arith.constant 0 : index
    %c0_2 = arith.constant 0 : index
    %1 = vector.load %arg1[%c0_1, %c0_2] : memref<27x16898xf32, #tpu.memory_space<vmem>>, vector<27x16898xf32>
    %cst = arith.constant dense<0.000000e+00> : vector<8x16898xf32>
    %2 = tpu.matmul %0, %1, %cst {dimension_numbers = #tpu.dot_dimension_numbers<[1], [0], [0], [1], [0, 0, 1, 1], [], []>} : vector<8x27xf32>, vector<27x16898xf32>, vector<8x16898xf32> -> vector<8x16898xf32>
    %c0_3 = arith.constant 0 : index
    %c0_4 = arith.constant 0 : index
    %3 = vector.load %arg2[%c0_3, %c0_4] : memref<8x1xf32, #tpu.memory_space<vmem>>, vector<8x1xf32>
    %4 = vector.broadcast %3 : vector<8x1xf32> to vector<8x16898xf32>
    %5 = arith.addf %2, %4 : vector<8x16898xf32>
    %cst_5 = arith.constant 0.000000e+00 : f32
    %6 = vector.broadcast %cst_5 : f32 to vector<8x16898xf32>
    %7 = arith.maximumf %5, %6 : vector<8x16898xf32>
    %c0_6 = arith.constant 0 : index
    %c0_7 = arith.constant 0 : index
    %8 = vector.load %arg3[%c0_6, %c0_7] : memref<8x16898xf32, #tpu.memory_space<vmem>>, vector<8x16898xf32>
    tpu.vector_store %arg3[%c0_6, %c0_7], %7 {strides = array<i32>} : memref<8x16898xf32, #tpu.memory_space<vmem>>, vector<8x16898xf32>,
    return
  }
}

module attributes {stable_mosaic.version = 11 : i64} {
  func.func @_mm_bn_relu_t_kernel(%arg0: memref<16x72xf32, #tpu.memory_space<vmem>>, %arg1: memref<72x4130xf32, #tpu.memory_space<vmem>>, %arg2: memref<16x1xf32, #tpu.memory_space<vmem>>, %arg3: memref<16x1xf32, #tpu.memory_space<vmem>>, %arg4: memref<16x4130xf32, #tpu.memory_space<vmem>>) attributes {dimension_semantics = [], scalar_prefetch = 0 : i64, scratch_operands = 0 : i64, tpu.core_type = #tpu.core_type<tc>} {
    %c0 = arith.constant 0 : index
    %c0_0 = arith.constant 0 : index
    %0 = vector.load %arg0[%c0, %c0_0] : memref<16x72xf32, #tpu.memory_space<vmem>>, vector<16x72xf32>
    %c0_1 = arith.constant 0 : index
    %c0_2 = arith.constant 0 : index
    %1 = vector.load %arg1[%c0_1, %c0_2] : memref<72x4130xf32, #tpu.memory_space<vmem>>, vector<72x4130xf32>
    %cst = arith.constant dense<0.000000e+00> : vector<16x4130xf32>
    %2 = tpu.matmul %0, %1, %cst {dimension_numbers = #tpu.dot_dimension_numbers<[1], [0], [0], [1], [0, 0, 1, 1], [], []>} : vector<16x72xf32>, vector<72x4130xf32>, vector<16x4130xf32> -> vector<16x4130xf32>
    %cst_3 = arith.constant dense<0.000000e+00> : vector<16xf32>
    %3 = vector.multi_reduction <add>, %2, %cst_3 [1] : vector<16x4130xf32> to vector<16xf32>
    %4 = vector.shape_cast %3 : vector<16xf32> to vector<16x1xf32>
    %cst_4 = arith.constant 2.42130744E-4 : f32
    %5 = vector.broadcast %cst_4 : f32 to vector<16x1xf32>
    %6 = arith.mulf %4, %5 : vector<16x1xf32>
    %7 = arith.mulf %2, %2 : vector<16x4130xf32>
    %cst_5 = arith.constant dense<0.000000e+00> : vector<16xf32>
    %8 = vector.multi_reduction <add>, %7, %cst_5 [1] : vector<16x4130xf32> to vector<16xf32>
    %9 = vector.shape_cast %8 : vector<16xf32> to vector<16x1xf32>
    %cst_6 = arith.constant 2.42130744E-4 : f32
    %10 = vector.broadcast %cst_6 : f32 to vector<16x1xf32>
    %11 = arith.mulf %9, %10 : vector<16x1xf32>
    %12 = arith.mulf %6, %6 : vector<16x1xf32>
    %13 = arith.subf %11, %12 : vector<16x1xf32>
    %cst_7 = arith.constant 0.000000e+00 : f32
    %14 = vector.broadcast %cst_7 : f32 to vector<16x1xf32>
    %15 = arith.maximumf %13, %14 : vector<16x1xf32>
    %16 = vector.broadcast %6 : vector<16x1xf32> to vector<16x4130xf32>
    %17 = arith.subf %2, %16 : vector<16x4130xf32>
    %cst_8 = arith.constant 9.99999974E-6 : f32
    %18 = vector.broadcast %cst_8 : f32 to vector<16x1xf32>
    %19 = arith.addf %15, %18 : vector<16x1xf32>
    %20 = math.rsqrt %19 : vector<16x1xf32>
    %21 = vector.broadcast %20 : vector<16x1xf32> to vector<16x4130xf32>
    %22 = arith.mulf %17, %21 : vector<16x4130xf32>
    %c0_9 = arith.constant 0 : index
    %c0_10 = arith.constant 0 : index
    %23 = vector.load %arg2[%c0_9, %c0_10] : memref<16x1xf32, #tpu.memory_space<vmem>>, vector<16x1xf32>
    %24 = vector.broadcast %23 : vector<16x1xf32> to vector<16x4130xf32>
    %25 = arith.mulf %22, %24 : vector<16x4130xf32>
    %c0_11 = arith.constant 0 : index
    %c0_12 = arith.constant 0 : index
    %26 = vector.load %arg3[%c0_11, %c0_12] : memref<16x1xf32, #tpu.memory_space<vmem>>, vector<16x1xf32>
    %27 = vector.broadcast %26 : vector<16x1xf32> to vector<16x4130xf32>
    %28 = arith.addf %25, %27 : vector<16x4130xf32>
    %cst_13 = arith.constant 0.000000e+00 : f32
    %29 = vector.broadcast %cst_13 : f32 to vector<16x4130xf32>
    %30 = arith.maximumf %28, %29 : vector<16x4130xf32>
    %c0_14 = arith.constant 0 : index
    %c0_15 = arith.constant 0 : index
    %31 = vector.load %arg4[%c0_14, %c0_15] : memref<16x4130xf32, #tpu.memory_space<vmem>>, vector<16x4130xf32>
    tpu.vector_store %arg4[%c0_14, %c0_15], %30 {strides = array<i32>} : memref<16x4130xf32, #tpu.memory_space<vmem>>, vector<16x4130xf32>,
    return
  }
}

module attributes {stable_mosaic.version = 11 : i64} {
  func.func @_mm_bias_relu_t_kernel(%arg0: memref<32x144xf32, #tpu.memory_space<vmem>>, %arg1: memref<144x986xf32, #tpu.memory_space<vmem>>, %arg2: memref<32x1xf32, #tpu.memory_space<vmem>>, %arg3: memref<32x986xf32, #tpu.memory_space<vmem>>) attributes {dimension_semantics = [], scalar_prefetch = 0 : i64, scratch_operands = 0 : i64, tpu.core_type = #tpu.core_type<tc>} {
    %c0 = arith.constant 0 : index
    %c0_0 = arith.constant 0 : index
    %0 = vector.load %arg0[%c0, %c0_0] : memref<32x144xf32, #tpu.memory_space<vmem>>, vector<32x144xf32>
    %c0_1 = arith.constant 0 : index
    %c0_2 = arith.constant 0 : index
    %1 = vector.load %arg1[%c0_1, %c0_2] : memref<144x986xf32, #tpu.memory_space<vmem>>, vector<144x986xf32>
    %cst = arith.constant dense<0.000000e+00> : vector<32x986xf32>
    %2 = tpu.matmul %0, %1, %cst {dimension_numbers = #tpu.dot_dimension_numbers<[1], [0], [0], [1], [0, 0, 1, 1], [], []>} : vector<32x144xf32>, vector<144x986xf32>, vector<32x986xf32> -> vector<32x986xf32>
    %c0_3 = arith.constant 0 : index
    %c0_4 = arith.constant 0 : index
    %3 = vector.load %arg2[%c0_3, %c0_4] : memref<32x1xf32, #tpu.memory_space<vmem>>, vector<32x1xf32>
    %4 = vector.broadcast %3 : vector<32x1xf32> to vector<32x986xf32>
    %5 = arith.addf %2, %4 : vector<32x986xf32>
    %cst_5 = arith.constant 0.000000e+00 : f32
    %6 = vector.broadcast %cst_5 : f32 to vector<32x986xf32>
    %7 = arith.maximumf %5, %6 : vector<32x986xf32>
    %c0_6 = arith.constant 0 : index
    %c0_7 = arith.constant 0 : index
    %8 = vector.load %arg3[%c0_6, %c0_7] : memref<32x986xf32, #tpu.memory_space<vmem>>, vector<32x986xf32>
    tpu.vector_store %arg3[%c0_6, %c0_7], %7 {strides = array<i32>} : memref<32x986xf32, #tpu.memory_space<vmem>>, vector<32x986xf32>,
    return
  }
}

module attributes {stable_mosaic.version = 11 : i64} {
  func.func @_mm_bn_relu_t_kernel(%arg0: memref<32x288xf32, #tpu.memory_space<vmem>>, %arg1: memref<288x224xf32, #tpu.memory_space<vmem>>, %arg2: memref<32x1xf32, #tpu.memory_space<vmem>>, %arg3: memref<32x1xf32, #tpu.memory_space<vmem>>, %arg4: memref<32x224xf32, #tpu.memory_space<vmem>>) attributes {dimension_semantics = [], scalar_prefetch = 0 : i64, scratch_operands = 0 : i64, tpu.core_type = #tpu.core_type<tc>} {
    %c0 = arith.constant 0 : index
    %c0_0 = arith.constant 0 : index
    %0 = vector.load %arg0[%c0, %c0_0] : memref<32x288xf32, #tpu.memory_space<vmem>>, vector<32x288xf32>
    %c0_1 = arith.constant 0 : index
    %c0_2 = arith.constant 0 : index
    %1 = vector.load %arg1[%c0_1, %c0_2] : memref<288x224xf32, #tpu.memory_space<vmem>>, vector<288x224xf32>
    %cst = arith.constant dense<0.000000e+00> : vector<32x224xf32>
    %2 = tpu.matmul %0, %1, %cst {dimension_numbers = #tpu.dot_dimension_numbers<[1], [0], [0], [1], [0, 0, 1, 1], [], []>} : vector<32x288xf32>, vector<288x224xf32>, vector<32x224xf32> -> vector<32x224xf32>
    %cst_3 = arith.constant dense<0.000000e+00> : vector<32xf32>
    %3 = vector.multi_reduction <add>, %2, %cst_3 [1] : vector<32x224xf32> to vector<32xf32>
    %4 = vector.shape_cast %3 : vector<32xf32> to vector<32x1xf32>
    %cst_4 = arith.constant 0.00446428591 : f32
    %5 = vector.broadcast %cst_4 : f32 to vector<32x1xf32>
    %6 = arith.mulf %4, %5 : vector<32x1xf32>
    %7 = arith.mulf %2, %2 : vector<32x224xf32>
    %cst_5 = arith.constant dense<0.000000e+00> : vector<32xf32>
    %8 = vector.multi_reduction <add>, %7, %cst_5 [1] : vector<32x224xf32> to vector<32xf32>
    %9 = vector.shape_cast %8 : vector<32xf32> to vector<32x1xf32>
    %cst_6 = arith.constant 0.00446428591 : f32
    %10 = vector.broadcast %cst_6 : f32 to vector<32x1xf32>
    %11 = arith.mulf %9, %10 : vector<32x1xf32>
    %12 = arith.mulf %6, %6 : vector<32x1xf32>
    %13 = arith.subf %11, %12 : vector<32x1xf32>
    %cst_7 = arith.constant 0.000000e+00 : f32
    %14 = vector.broadcast %cst_7 : f32 to vector<32x1xf32>
    %15 = arith.maximumf %13, %14 : vector<32x1xf32>
    %16 = vector.broadcast %6 : vector<32x1xf32> to vector<32x224xf32>
    %17 = arith.subf %2, %16 : vector<32x224xf32>
    %cst_8 = arith.constant 9.99999974E-6 : f32
    %18 = vector.broadcast %cst_8 : f32 to vector<32x1xf32>
    %19 = arith.addf %15, %18 : vector<32x1xf32>
    %20 = math.rsqrt %19 : vector<32x1xf32>
    %21 = vector.broadcast %20 : vector<32x1xf32> to vector<32x224xf32>
    %22 = arith.mulf %17, %21 : vector<32x224xf32>
    %c0_9 = arith.constant 0 : index
    %c0_10 = arith.constant 0 : index
    %23 = vector.load %arg2[%c0_9, %c0_10] : memref<32x1xf32, #tpu.memory_space<vmem>>, vector<32x1xf32>
    %24 = vector.broadcast %23 : vector<32x1xf32> to vector<32x224xf32>
    %25 = arith.mulf %22, %24 : vector<32x224xf32>
    %c0_11 = arith.constant 0 : index
    %c0_12 = arith.constant 0 : index
    %26 = vector.load %arg3[%c0_11, %c0_12] : memref<32x1xf32, #tpu.memory_space<vmem>>, vector<32x1xf32>
    %27 = vector.broadcast %26 : vector<32x1xf32> to vector<32x224xf32>
    %28 = arith.addf %25, %27 : vector<32x224xf32>
    %cst_13 = arith.constant 0.000000e+00 : f32
    %29 = vector.broadcast %cst_13 : f32 to vector<32x224xf32>
    %30 = arith.maximumf %28, %29 : vector<32x224xf32>
    %c0_14 = arith.constant 0 : index
    %c0_15 = arith.constant 0 : index
    %31 = vector.load %arg4[%c0_14, %c0_15] : memref<32x224xf32, #tpu.memory_space<vmem>>, vector<32x224xf32>
    tpu.vector_store %arg4[%c0_14, %c0_15], %30 {strides = array<i32>} : memref<32x224xf32, #tpu.memory_space<vmem>>, vector<32x224xf32>,
    return
  }
}

module attributes {stable_mosaic.version = 11 : i64} {
  func.func @_tail_kernel(%arg0: memref<16x800xf32, #tpu.memory_space<vmem>>, %arg1: memref<800x32xf32, #tpu.memory_space<vmem>>, %arg2: memref<1x32xf32, #tpu.memory_space<vmem>>, %arg3: memref<8x32x32xf32, #tpu.memory_space<vmem>>, %arg4: memref<1x32xf32, #tpu.memory_space<vmem>>, %arg5: memref<32x7xf32, #tpu.memory_space<vmem>>, %arg6: memref<1x7xf32, #tpu.memory_space<vmem>>, %arg7: memref<2x7xf32, #tpu.memory_space<vmem>>) attributes {dimension_semantics = [], scalar_prefetch = 0 : i64, scratch_operands = 0 : i64, tpu.core_type = #tpu.core_type<tc>} {
    %c0 = arith.constant 0 : index
    %c0_0 = arith.constant 0 : index
    %0 = vector.load %arg0[%c0, %c0_0] : memref<16x800xf32, #tpu.memory_space<vmem>>, vector<16x800xf32>
    %c0_1 = arith.constant 0 : index
    %c0_2 = arith.constant 0 : index
    %1 = vector.load %arg1[%c0_1, %c0_2] : memref<800x32xf32, #tpu.memory_space<vmem>>, vector<800x32xf32>
    %cst = arith.constant dense<0.000000e+00> : vector<16x32xf32>
    %2 = tpu.matmul %0, %1, %cst {dimension_numbers = #tpu.dot_dimension_numbers<[1], [0], [0], [1], [0, 0, 1, 1], [], []>} : vector<16x800xf32>, vector<800x32xf32>, vector<16x32xf32> -> vector<16x32xf32>
    %c0_3 = arith.constant 0 : index
    %c0_4 = arith.constant 0 : index
    %3 = vector.load %arg2[%c0_3, %c0_4] : memref<1x32xf32, #tpu.memory_space<vmem>>, vector<1x32xf32>
    %4 = vector.broadcast %3 : vector<1x32xf32> to vector<16x32xf32>
    %5 = arith.addf %2, %4 : vector<16x32xf32>
    %cst_5 = arith.constant 0.000000e+00 : f32
    %6 = vector.broadcast %cst_5 : f32 to vector<16x32xf32>
    %7 = arith.maximumf %5, %6 : vector<16x32xf32>
    %8 = vector.extract_strided_slice %7 {offsets = [0, 0], sizes = [2, 32], strides = [1, 1]} : vector<16x32xf32> to vector<2x32xf32>
    %c0_6 = arith.constant 0 : index
    %c0_7 = arith.constant 0 : index
    %c0_8 = arith.constant 0 : index
    %9 = vector.load %arg3[%c0_6, %c0_7, %c0_8] : memref<8x32x32xf32, #tpu.memory_space<vmem>>, vector<1x32x32xf32>
    %10 = vector.shape_cast %9 : vector<1x32x32xf32> to vector<32x32xf32>
    %cst_9 = arith.constant dense<0.000000e+00> : vector<2x32xf32>
    %11 = tpu.matmul %8, %10, %cst_9 {dimension_numbers = #tpu.dot_dimension_numbers<[1], [0], [0], [1], [0, 0, 1, 1], [], []>} : vector<2x32xf32>, vector<32x32xf32>, vector<2x32xf32> -> vector<2x32xf32>
    %12 = vector.extract_strided_slice %7 {offsets = [2, 0], sizes = [2, 32], strides = [1, 1]} : vector<16x32xf32> to vector<2x32xf32>
    %c1 = arith.constant 1 : index
    %c0_10 = arith.constant 0 : index
    %c0_11 = arith.constant 0 : index
    %13 = vector.load %arg3[%c1, %c0_10, %c0_11] : memref<8x32x32xf32, #tpu.memory_space<vmem>>, vector<1x32x32xf32>
    %14 = vector.shape_cast %13 : vector<1x32x32xf32> to vector<32x32xf32>
    %cst_12 = arith.constant dense<0.000000e+00> : vector<2x32xf32>
    %15 = tpu.matmul %12, %14, %cst_12 {dimension_numbers = #tpu.dot_dimension_numbers<[1], [0], [0], [1], [0, 0, 1, 1], [], []>} : vector<2x32xf32>, vector<32x32xf32>, vector<2x32xf32> -> vector<2x32xf32>
    %16 = arith.addf %11, %15 : vector<2x32xf32>
    %17 = vector.extract_strided_slice %7 {offsets = [4, 0], sizes = [2, 32], strides = [1, 1]} : vector<16x32xf32> to vector<2x32xf32>
    %c2 = arith.constant 2 : index
    %c0_13 = arith.constant 0 : index
    %c0_14 = arith.constant 0 : index
    %18 = vector.load %arg3[%c2, %c0_13, %c0_14] : memref<8x32x32xf32, #tpu.memory_space<vmem>>, vector<1x32x32xf32>
    %19 = vector.shape_cast %18 : vector<1x32x32xf32> to vector<32x32xf32>
    %cst_15 = arith.constant dense<0.000000e+00> : vector<2x32xf32>
    %20 = tpu.matmul %17, %19, %cst_15 {dimension_numbers = #tpu.dot_dimension_numbers<[1], [0], [0], [1], [0, 0, 1, 1], [], []>} : vector<2x32xf32>, vector<32x32xf32>, vector<2x32xf32> -> vector<2x32xf32>
    %21 = arith.addf %16, %20 : vector<2x32xf32>
    %22 = vector.extract_strided_slice %7 {offsets = [6, 0], sizes = [2, 32], strides = [1, 1]} : vector<16x32xf32> to vector<2x32xf32>
    %c3 = arith.constant 3 : index
    %c0_16 = arith.constant 0 : index
    %c0_17 = arith.constant 0 : index
    %23 = vector.load %arg3[%c3, %c0_16, %c0_17] : memref<8x32x32xf32, #tpu.memory_space<vmem>>, vector<1x32x32xf32>
    %24 = vector.shape_cast %23 : vector<1x32x32xf32> to vector<32x32xf32>
    %cst_18 = arith.constant dense<0.000000e+00> : vector<2x32xf32>
    %25 = tpu.matmul %22, %24, %cst_18 {dimension_numbers = #tpu.dot_dimension_numbers<[1], [0], [0], [1], [0, 0, 1, 1], [], []>} : vector<2x32xf32>, vector<32x32xf32>, vector<2x32xf32> -> vector<2x32xf32>
    %26 = arith.addf %21, %25 : vector<2x32xf32>
    %27 = vector.extract_strided_slice %7 {offsets = [8, 0], sizes = [2, 32], strides = [1, 1]} : vector<16x32xf32> to vector<2x32xf32>
    %c4 = arith.constant 4 : index
    %c0_19 = arith.constant 0 : index
    %c0_20 = arith.constant 0 : index
    %28 = vector.load %arg3[%c4, %c0_19, %c0_20] : memref<8x32x32xf32, #tpu.memory_space<vmem>>, vector<1x32x32xf32>
    %29 = vector.shape_cast %28 : vector<1x32x32xf32> to vector<32x32xf32>
    %cst_21 = arith.constant dense<0.000000e+00> : vector<2x32xf32>
    %30 = tpu.matmul %27, %29, %cst_21 {dimension_numbers = #tpu.dot_dimension_numbers<[1], [0], [0], [1], [0, 0, 1, 1], [], []>} : vector<2x32xf32>, vector<32x32xf32>, vector<2x32xf32> -> vector<2x32xf32>
    %31 = arith.addf %26, %30 : vector<2x32xf32>
    %32 = vector.extract_strided_slice %7 {offsets = [10, 0], sizes = [2, 32], strides = [1, 1]} : vector<16x32xf32> to vector<2x32xf32>
    %c5 = arith.constant 5 : index
    %c0_22 = arith.constant 0 : index
    %c0_23 = arith.constant 0 : index
    %33 = vector.load %arg3[%c5, %c0_22, %c0_23] : memref<8x32x32xf32, #tpu.memory_space<vmem>>, vector<1x32x32xf32>
    %34 = vector.shape_cast %33 : vector<1x32x32xf32> to vector<32x32xf32>
    %cst_24 = arith.constant dense<0.000000e+00> : vector<2x32xf32>
    %35 = tpu.matmul %32, %34, %cst_24 {dimension_numbers = #tpu.dot_dimension_numbers<[1], [0], [0], [1], [0, 0, 1, 1], [], []>} : vector<2x32xf32>, vector<32x32xf32>, vector<2x32xf32> -> vector<2x32xf32>
    %36 = arith.addf %31, %35 : vector<2x32xf32>
    %37 = vector.extract_strided_slice %7 {offsets = [12, 0], sizes = [2, 32], strides = [1, 1]} : vector<16x32xf32> to vector<2x32xf32>
    %c6 = arith.constant 6 : index
    %c0_25 = arith.constant 0 : index
    %c0_26 = arith.constant 0 : index
    %38 = vector.load %arg3[%c6, %c0_25, %c0_26] : memref<8x32x32xf32, #tpu.memory_space<vmem>>, vector<1x32x32xf32>
    %39 = vector.shape_cast %38 : vector<1x32x32xf32> to vector<32x32xf32>
    %cst_27 = arith.constant dense<0.000000e+00> : vector<2x32xf32>
    %40 = tpu.matmul %37, %39, %cst_27 {dimension_numbers = #tpu.dot_dimension_numbers<[1], [0], [0], [1], [0, 0, 1, 1], [], []>} : vector<2x32xf32>, vector<32x32xf32>, vector<2x32xf32> -> vector<2x32xf32>
    %41 = arith.addf %36, %40 : vector<2x32xf32>
    %42 = vector.extract_strided_slice %7 {offsets = [14, 0], sizes = [2, 32], strides = [1, 1]} : vector<16x32xf32> to vector<2x32xf32>
    %c7 = arith.constant 7 : index
    %c0_28 = arith.constant 0 : index
    %c0_29 = arith.constant 0 : index
    %43 = vector.load %arg3[%c7, %c0_28, %c0_29] : memref<8x32x32xf32, #tpu.memory_space<vmem>>, vector<1x32x32xf32>
    %44 = vector.shape_cast %43 : vector<1x32x32xf32> to vector<32x32xf32>
    %cst_30 = arith.constant dense<0.000000e+00> : vector<2x32xf32>
    %45 = tpu.matmul %42, %44, %cst_30 {dimension_numbers = #tpu.dot_dimension_numbers<[1], [0], [0], [1], [0, 0, 1, 1], [], []>} : vector<2x32xf32>, vector<32x32xf32>, vector<2x32xf32> -> vector<2x32xf32>
    %46 = arith.addf %41, %45 : vector<2x32xf32>
    %c0_31 = arith.constant 0 : index
    %c0_32 = arith.constant 0 : index
    %47 = vector.load %arg4[%c0_31, %c0_32] : memref<1x32xf32, #tpu.memory_space<vmem>>, vector<1x32xf32>
    %48 = vector.broadcast %47 : vector<1x32xf32> to vector<2x32xf32>
    %49 = arith.addf %46, %48 : vector<2x32xf32>
    %cst_33 = arith.constant 0.000000e+00 : f32
    %50 = vector.broadcast %cst_33 : f32 to vector<2x32xf32>
    %51 = arith.maximumf %49, %50 : vector<2x32xf32>
    %c0_34 = arith.constant 0 : index
    %c0_35 = arith.constant 0 : index
    %52 = vector.load %arg5[%c0_34, %c0_35] : memref<32x7xf32, #tpu.memory_space<vmem>>, vector<32x7xf32>
    %cst_36 = arith.constant dense<0.000000e+00> : vector<2x7xf32>
    %53 = tpu.matmul %51, %52, %cst_36 {dimension_numbers = #tpu.dot_dimension_numbers<[1], [0], [0], [1], [0, 0, 1, 1], [], []>} : vector<2x32xf32>, vector<32x7xf32>, vector<2x7xf32> -> vector<2x7xf32>
    %c0_37 = arith.constant 0 : index
    %c0_38 = arith.constant 0 : index
    %54 = vector.load %arg6[%c0_37, %c0_38] : memref<1x7xf32, #tpu.memory_space<vmem>>, vector<1x7xf32>
    %55 = vector.broadcast %54 : vector<1x7xf32> to vector<2x7xf32>
    %56 = arith.addf %53, %55 : vector<2x7xf32>
    %cst_39 = arith.constant dense<0xFF800000> : vector<2xf32>
    %57 = vector.multi_reduction <maximumf>, %56, %cst_39 [1] : vector<2x7xf32> to vector<2xf32>
    %58 = vector.shape_cast %57 : vector<2xf32> to vector<2x1xf32>
    %59 = vector.broadcast %58 : vector<2x1xf32> to vector<2x7xf32>
    %60 = arith.subf %56, %59 : vector<2x7xf32>
    %61 = math.exp %60 : vector<2x7xf32>
    %cst_40 = arith.constant dense<0.000000e+00> : vector<2xf32>
    %62 = vector.multi_reduction <add>, %61, %cst_40 [1] : vector<2x7xf32> to vector<2xf32>
    %63 = vector.shape_cast %62 : vector<2xf32> to vector<2x1xf32>
    %64 = vector.broadcast %63 : vector<2x1xf32> to vector<2x7xf32>
    %65 = arith.divf %61, %64 : vector<2x7xf32>
    %c0_41 = arith.constant 0 : index
    %c0_42 = arith.constant 0 : index
    %66 = vector.load %arg7[%c0_41, %c0_42] : memref<2x7xf32, #tpu.memory_space<vmem>>, vector<2x7xf32>
    tpu.vector_store %arg7[%c0_41, %c0_42], %65 {strides = array<i32>} : memref<2x7xf32, #tpu.memory_space<vmem>>, vector<2x7xf32>,
    return
  }
}

</mosaic_0001>

<bundles_post_ra>
// kernel: _forward_probs.5
= control target key start
LH: loop header
LB: loop body
LE: loop exit
PB: predicated region body
PF: predicated region fallthrough
CT: control target
= control target key end

     0   :  { %vm557_vm0 = vcmask 1042432   ;;  %v6875_v3 = vmov 0.0   ;;  %v6876_v8 = vmov 0   ;;  %vm6877_vm1 = vmmov 1   ;;  %s9520_s1 = inlined_call_operand.vmem [shape: f32[27,16898], index: 1, kind: input, shape index: {}]   ;;  %s9521_s0 = inlined_call_operand.vmem [shape: f32[8,27], index: 0, kind: input, shape index: {}]   ;;  %s9522_s2 = inlined_call_operand.vmem [shape: f32[8,1], index: 2, kind: input, shape index: {}]   ;;  %s9523_s3 = inlined_call_operand.vmem [shape: f32[8,16898], index: 3, kind: output, shape index: {}]  }
   0x1   :  { %v16_v0 = vld [vmem:[%s9520_s1 + $0x8] sm:$0xff]  ;;  %v149_v1 = vld [vmem:[%s9520_s1 + $0x430] sm:$0xff]  ;;  %v15_v2 = vld [vmem:[%s9520_s1] sm:$0xff]  ;;  %1021 = vmatprep.mubr.f32.mxu0 %v6875_v3  ;;  %1092 = vmatprep.mubr.f32.mxu1 %v6875_v3  ;;  %vm553_vm3 = vcmask 220160   ;;  %vm6879_vm4 = vmmov 0   ;;  %vm5978_vm5 = vcmask 15360  }
   0x2   :  { %v6200_v4 = vpack.c.bf16 %v149_v1, %v16_v0  ;;  %v148_v5 = vld [vmem:[%s9520_s1 + $0x428] sm:$0xff]  ;;  %v282_v6 = vld [vmem:[%s9520_s1 + $0x858] sm:$0xff]  ;;  %v415_v7 = vld [vmem:[%s9520_s1 + $0xc80] sm:$0x7]  ;;  %6872 = vset.pattern.permute.xlu0 %v6876_v8 }
   0x3   :  { %v6202_v9 = vpack.c.bf16 %v148_v5, %v15_v2  ;;  %v6204_v10 = vpack.c.bf16 %v415_v7, %v282_v6  ;;  %vm6921_vm2 = vmpackc.low %vm557_vm0, %vm6877_vm1  ;;  %v281_v12 = vld [vmem:[%s9520_s1 + $0x850] sm:$0xff]  ;;  %v414_v13 = vld [vmem:[%s9520_s1 + $0xc78] sm:$0x7] }
   0x4   :  { %6201 = vmatprep.subr.bf16.mxu0 %v6200_v4  ;;  %v18_v14 = vld [vmem:[%s9520_s1 + $0x18] sm:$0xff]  ;;  %v151_v15 = vld [vmem:[%s9520_s1 + $0x440] sm:$0xff]  ;;  %v17_v16 = vld [vmem:[%s9520_s1 + $0x10] sm:$0xff]  ;;  %v6207_v17 = vpack.c.bf16 %v414_v13, %v281_v12 }
   0x5   :  { %6203 = vmatpush1.bf16.msra.mxu0 %v6202_v9  ;;  %v6210_v18 = vpack.c.bf16 %v151_v15, %v18_v14  ;;  %v150_v19 = vld [vmem:[%s9520_s1 + $0x438] sm:$0xff]  ;;  %v20_v20 = vld [vmem:[%s9520_s1 + $0x28] sm:$0xff]  ;;  %v153_v22 = vld [vmem:[%s9520_s1 + $0x450] sm:$0xff] }
   0x6   :  { %6206 = vmatprep.subr.msk.bf16.mxu0 %vm6921_vm2, %v6204_v10  ;;  %v6212_v21 = vpack.c.bf16 %v150_v19, %v17_v16  ;;  %v19_v23 = vld [vmem:[%s9520_s1 + $0x20] sm:$0xff]  ;;  %v152_v24 = vld [vmem:[%s9520_s1 + $0x448] sm:$0xff]  ;;  %v6220_v26 = vpack.c.bf16 %v153_v22, %v20_v20  ;;  %v417_v28 = vld [vmem:[%s9520_s1 + $0xc90] sm:$0x7] }
   0x7   :  { %6211 = vmatprep.subr.bf16.mxu1 %v6210_v18  ;;  %v6960_v25 = vld [vmem:[%s9521_s0] sm:$0xff]  ;;  %v284_v27 = vld [vmem:[%s9520_s1 + $0x868] sm:$0xff]  ;;  %v286_v32 = vld [vmem:[%s9520_s1 + $0x878] sm:$0xff]  ;;  %v6222_v34 = vpack.c.bf16 %v152_v24, %v19_v23 }
   0x8   :  { %v283_v29 = vld [vmem:[%s9520_s1 + $0x860] sm:$0xff]  ;;  %6213 = vmatpush1.bf16.msra.mxu1 %v6212_v21  ;;  %v6214_v30 = vpack.c.bf16 %v417_v28, %v284_v27  ;;  %v416_v31 = vld [vmem:[%s9520_s1 + $0xc88] sm:$0x7]  ;;  %v285_v36 = vld [vmem:[%s9520_s1 + $0x870] sm:$0xff] }
   0x9   :  { %v419_v33 = vld [vmem:[%s9520_s1 + $0xca0] sm:$0x7]  ;;  %6209 = vmatpush1.bf16.msk.msra.mxu0 %vm6921_vm2, %v6207_v17  ;;  %v6217_v35 = vpack.c.bf16 %v416_v31, %v283_v29  ;;  %v418_v37 = vld [vmem:[%s9520_s1 + $0xc98] sm:$0x7]  ;;  %v21_v41 = vld [vmem:[%s9520_s1 + $0x30] sm:$0xff] }
   0xa   :  { %v22_v38 = vld [vmem:[%s9520_s1 + $0x38] sm:$0xff]  ;;  %6221 = vmatprep.subr.bf16.mxu0 %v6220_v26  ;;  %6216 = vmatprep.subr.msk.bf16.mxu1 %vm6921_vm2, %v6214_v30  ;;  %v6224_v39 = vpack.c.bf16 %v419_v33, %v286_v32  ;;  %v155_v40 = vld [vmem:[%s9520_s1 + $0x460] sm:$0xff]  ;;  %v24_v44 = vld [vmem:[%s9520_s1 + $0x48] sm:$0xff]  ;;  %v6227_v49 = vpack.c.bf16 %v418_v37, %v285_v36 }
   0xb   :  { %v154_v42 = vld [vmem:[%s9520_s1 + $0x458] sm:$0xff]  ;;  %v6230_v43 = vpack.c.bf16 %v155_v40, %v22_v38  ;;  %v157_v45 = vld [vmem:[%s9520_s1 + $0x470] sm:$0xff]  ;;  %v288_v47 = vld [vmem:[%s9520_s1 + $0x888] sm:$0xff] }
   0xc   :  { %5986 = vmatmul.mubr.msk.f32.vlgmr.msra.gmra.mrb[0].mxu0 %vm553_vm3, %v6960_v25  ;;  %6219 = vmatpush1.bf16.msk.msra.mxu1 %vm6921_vm2, %v6217_v35  ;;  %v6232_v46 = vpack.c.bf16 %v154_v42, %v21_v41  ;;  %v421_v48 = vld [vmem:[%s9520_s1 + $0xcb0] sm:$0x7]  ;;  %v287_v51 = vld [vmem:[%s9520_s1 + $0x880] sm:$0xff]  ;;  %v420_v52 = vld [vmem:[%s9520_s1 + $0xca8] sm:$0x7]  ;;  %v6240_v53 = vpack.c.bf16 %v157_v45, %v24_v44 }
   0xd   :  { %6223 = vmatpush1.bf16.msra.mxu0 %v6222_v34  ;;  %6231 = vmatprep.subr.bf16.mxu1 %v6230_v43  ;;  %v6234_v50 = vpack.c.bf16 %v421_v48, %v288_v47  ;;  %v23_v54 = vld [vmem:[%s9520_s1 + $0x40] sm:$0xff]  ;;  %v156_v55 = vld [vmem:[%s9520_s1 + $0x468] sm:$0xff]  ;;  %v290_v56 = vld [vmem:[%s9520_s1 + $0x898] sm:$0xff]  ;;  %v6237_v60 = vpack.c.bf16 %v420_v52, %v287_v51 }
   0xe   :  { %6226 = vmatprep.subr.msk.bf16.mxu0 %vm6921_vm2, %v6224_v39  ;;  %1163 = vmatprep.mubr.f32.mxu0 %v6875_v3  ;;  %v423_v57 = vld [vmem:[%s9520_s1 + $0xcc0] sm:$0x7]  ;;  %v26_v58 = vld [vmem:[%s9520_s1 + $0x58] sm:$0xff]  ;;  %v6242_v61 = vpack.c.bf16 %v156_v55, %v23_v54  ;;  %v289_v62 = vld [vmem:[%s9520_s1 + $0x890] sm:$0xff] }
   0xf   :  { %5989 = vmatmul.mubr.msk.f32.vlgmr.msra.gmra.mrb[0].mxu1 %vm553_vm3, %v6960_v25  ;;  %v159_v59 = vld [vmem:[%s9520_s1 + $0x480] sm:$0xff]  ;;  %v25_v0 = vld [vmem:[%s9520_s1 + $0x50] sm:$0xff]  ;;  %v158_v1 = vld [vmem:[%s9520_s1 + $0x478] sm:$0xff]  ;;  %v6244_v2 = vpack.c.bf16 %v423_v57, %v290_v56 }
  0x10   :  { %6233 = vmatpush1.bf16.msra.mxu1 %v6232_v46  ;;  %1234 = vmatprep.mubr.f32.mxu1 %v6875_v3  ;;  %v6250_v63 = vpack.c.bf16 %v159_v59, %v26_v58  ;;  %v422_v4 = vld [vmem:[%s9520_s1 + $0xcb8] sm:$0x7]  ;;  %v292_v5 = vld [vmem:[%s9520_s1 + $0x8a8] sm:$0xff]  ;;  %v425_v6 = vld [vmem:[%s9520_s1 + $0xcd0] sm:$0x7]  ;;  %v6252_v9 = vpack.c.bf16 %v158_v1, %v25_v0 }
  0x11   :  { %6229 = vmatpush1.bf16.msk.msra.mxu0 %vm6921_vm2, %v6227_v49  ;;  %6236 = vmatprep.subr.msk.bf16.mxu1 %vm6921_vm2, %v6234_v50  ;;  %v28_v7 = vld [vmem:[%s9520_s1 + $0x68] sm:$0xff]  ;;  %v161_v8 = vld [vmem:[%s9520_s1 + $0x490] sm:$0xff]  ;;  %v6247_v10 = vpack.c.bf16 %v422_v4, %v289_v62  ;;  %v27_v12 = vld [vmem:[%s9520_s1 + $0x60] sm:$0xff]  ;;  %v6254_v13 = vpack.c.bf16 %v425_v6, %v292_v5 }
  0x12   :  { %6241 = vmatprep.subr.bf16.mxu0 %v6240_v53  ;;  %v291_v14 = vld [vmem:[%s9520_s1 + $0x8a0] sm:$0xff]  ;;  %v424_v15 = vld [vmem:[%s9520_s1 + $0xcc8] sm:$0x7]  ;;  %v6260_v16 = vpack.c.bf16 %v161_v8, %v28_v7  ;;  %v30_v18 = vld [vmem:[%s9520_s1 + $0x78] sm:$0xff] }
  0x13   :  { %v160_v17 = vld [vmem:[%s9520_s1 + $0x488] sm:$0xff]  ;;  %v163_v19 = vld [vmem:[%s9520_s1 + $0x4a0] sm:$0xff]  ;;  %v294_v20 = vld [vmem:[%s9520_s1 + $0x8b8] sm:$0xff]  ;;  %v6257_v22 = vpack.c.bf16 %v424_v15, %v291_v14 }
  0x14   :  { %5992 = vmatmul.mubr.msk.f32.vlgmr.msra.gmra.mrb[2].mxu0 %vm553_vm3, %v6960_v25  ;;  %6239 = vmatpush1.bf16.msk.msra.mxu1 %vm6921_vm2, %v6237_v60  ;;  %v427_v21 = vld [vmem:[%s9520_s1 + $0xce0] sm:$0x7]  ;;  %v6262_v23 = vpack.c.bf16 %v160_v17, %v27_v12  ;;  %v293_v24 = vld [vmem:[%s9520_s1 + $0x8b0] sm:$0xff]  ;;  %v6270_v26 = vpack.c.bf16 %v163_v19, %v30_v18  ;;  %v162_v28 = vld [vmem:[%s9520_s1 + $0x498] sm:$0xff] }
  0x15   :  { %6243 = vmatpush1.bf16.msra.mxu0 %v6242_v61  ;;  %6251 = vmatprep.subr.bf16.mxu1 %v6250_v63  ;;  %v29_v27 = vld [vmem:[%s9520_s1 + $0x70] sm:$0xff]  ;;  %v6264_v29 = vpack.c.bf16 %v427_v21, %v294_v20  ;;  %v426_v30 = vld [vmem:[%s9520_s1 + $0xcd8] sm:$0x7]  ;;  %v296_v31 = vld [vmem:[%s9520_s1 + $0x8c8] sm:$0xff] }
  0x16   :  { %6246 = vmatprep.subr.msk.bf16.mxu0 %vm6921_vm2, %v6244_v2  ;;  %1305 = vmatprep.mubr.f32.mxu0 %v6875_v3  ;;  %v429_v32 = vld [vmem:[%s9520_s1 + $0xcf0] sm:$0x7]  ;;  %v32_v33 = vld [vmem:[%s9520_s1 + $0x88] sm:$0xff]  ;;  %v6272_v35 = vpack.c.bf16 %v162_v28, %v29_v27  ;;  %v6267_v36 = vpack.c.bf16 %v426_v30, %v293_v24  ;;  %v31_v37 = vld [vmem:[%s9520_s1 + $0x80] sm:$0xff] }
  0x17   :  { %5995 = vmatmul.mubr.msk.f32.vlgmr.msra.gmra.mrb[2].mxu1 %vm553_vm3, %v6960_v25  ;;  %v165_v34 = vld [vmem:[%s9520_s1 + $0x4b0] sm:$0xff]  ;;  %v6274_v38 = vpack.c.bf16 %v429_v32, %v296_v31  ;;  %v295_v39 = vld [vmem:[%s9520_s1 + $0x8c0] sm:$0xff]  ;;  %v428_v40 = vld [vmem:[%s9520_s1 + $0xce8] sm:$0x7] }
  0x18   :  { %6253 = vmatpush1.bf16.msra.mxu1 %v6252_v9  ;;  %1376 = vmatprep.mubr.f32.mxu1 %v6875_v3  ;;  %v6280_v41 = vpack.c.bf16 %v165_v34, %v32_v33  ;;  %v164_v42 = vld [vmem:[%s9520_s1 + $0x4a8] sm:$0xff]  ;;  %v34_v43 = vld [vmem:[%s9520_s1 + $0x98] sm:$0xff]  ;;  %v167_v44 = vld [vmem:[%s9520_s1 + $0x4c0] sm:$0xff]  ;;  %v6277_v47 = vpack.c.bf16 %v428_v40, %v295_v39 }
  0x19   :  { %6249 = vmatpush1.bf16.msk.msra.mxu0 %vm6921_vm2, %v6247_v10  ;;  %6256 = vmatprep.subr.msk.bf16.mxu1 %vm6921_vm2, %v6254_v13  ;;  %v298_v45 = vld [vmem:[%s9520_s1 + $0x8d8] sm:$0xff]  ;;  %v431_v46 = vld [vmem:[%s9520_s1 + $0xd00] sm:$0x7]  ;;  %v6282_v48 = vpack.c.bf16 %v164_v42, %v31_v37  ;;  %v297_v49 = vld [vmem:[%s9520_s1 + $0x8d0] sm:$0xff]  ;;  %v6290_v50 = vpack.c.bf16 %v167_v44, %v34_v43 }
  0x1a   :  { %6261 = vmatprep.subr.bf16.mxu0 %v6260_v16  ;;  %v33_v51 = vld [vmem:[%s9520_s1 + $0x90] sm:$0xff]  ;;  %v166_v52 = vld [vmem:[%s9520_s1 + $0x4b8] sm:$0xff]  ;;  %v6284_v53 = vpack.c.bf16 %v431_v46, %v298_v45  ;;  %v300_v55 = vld [vmem:[%s9520_s1 + $0x8e8] sm:$0xff] }
  0x1b   :  { %v430_v54 = vld [vmem:[%s9520_s1 + $0xcf8] sm:$0x7]  ;;  %v433_v56 = vld [vmem:[%s9520_s1 + $0xd10] sm:$0x7]  ;;  %v36_v57 = vld [vmem:[%s9520_s1 + $0xa8] sm:$0xff]  ;;  %v6292_v59 = vpack.c.bf16 %v166_v52, %v33_v51 }
  0x1c   :  { %5998 = vmatmul.mubr.msk.f32.vlgmr.msra.gmra.mrb[4].mxu0 %vm553_vm3, %v6960_v25  ;;  %6259 = vmatpush1.bf16.msk.msra.mxu1 %vm6921_vm2, %v6257_v22  ;;  %v169_v58 = vld [vmem:[%s9520_s1 + $0x4d0] sm:$0xff]  ;;  %v6287_v60 = vpack.c.bf16 %v430_v54, %v297_v49  ;;  %v35_v61 = vld [vmem:[%s9520_s1 + $0xa0] sm:$0xff]  ;;  %v6294_v62 = vpack.c.bf16 %v433_v56, %v300_v55  ;;  %v432_v0 = vld [vmem:[%s9520_s1 + $0xd08] sm:$0x7] }
  0x1d   :  { %6263 = vmatpush1.bf16.msra.mxu0 %v6262_v23  ;;  %6271 = vmatprep.subr.bf16.mxu1 %v6270_v26  ;;  %v299_v63 = vld [vmem:[%s9520_s1 + $0x8e0] sm:$0xff]  ;;  %v6300_v1 = vpack.c.bf16 %v169_v58, %v36_v57  ;;  %v168_v2 = vld [vmem:[%s9520_s1 + $0x4c8] sm:$0xff]  ;;  %v38_v4 = vld [vmem:[%s9520_s1 + $0xb8] sm:$0xff] }
  0x1e   :  { %6266 = vmatprep.subr.msk.bf16.mxu0 %vm6921_vm2, %v6264_v29  ;;  %1447 = vmatprep.mubr.f32.mxu0 %v6875_v3  ;;  %v171_v5 = vld [vmem:[%s9520_s1 + $0x4e0] sm:$0xff]  ;;  %v302_v6 = vld [vmem:[%s9520_s1 + $0x8f8] sm:$0xff]  ;;  %v6297_v8 = vpack.c.bf16 %v432_v0, %v299_v63  ;;  %v6302_v9 = vpack.c.bf16 %v168_v2, %v35_v61  ;;  %v301_v10 = vld [vmem:[%s9520_s1 + $0x8f0] sm:$0xff] }
  0x1f   :  { %6001 = vmatmul.mubr.msk.f32.vlgmr.msra.gmra.mrb[4].mxu1 %vm553_vm3, %v6960_v25  ;;  %v435_v7 = vld [vmem:[%s9520_s1 + $0xd20] sm:$0x7]  ;;  %v6310_v12 = vpack.c.bf16 %v171_v5, %v38_v4  ;;  %v37_v13 = vld [vmem:[%s9520_s1 + $0xb0] sm:$0xff]  ;;  %v170_v14 = vld [vmem:[%s9520_s1 + $0x4d8] sm:$0xff] }
  0x20   :  { %6273 = vmatpush1.bf16.msra.mxu1 %v6272_v35  ;;  %1518 = vmatprep.mubr.f32.mxu1 %v6875_v3  ;;  %v6304_v15 = vpack.c.bf16 %v435_v7, %v302_v6  ;;  %v434_v16 = vld [vmem:[%s9520_s1 + $0xd18] sm:$0x7]  ;;  %v304_v17 = vld [vmem:[%s9520_s1 + $0x908] sm:$0xff]  ;;  %v437_v18 = vld [vmem:[%s9520_s1 + $0xd30] sm:$0x7]  ;;  %v6312_v21 = vpack.c.bf16 %v170_v14, %v37_v13 }
  0x21   :  { %6269 = vmatpush1.bf16.msk.msra.mxu0 %vm6921_vm2, %v6267_v36  ;;  %6276 = vmatprep.subr.msk.bf16.mxu1 %vm6921_vm2, %v6274_v38  ;;  %v40_v19 = vld [vmem:[%s9520_s1 + $0xc8] sm:$0xff]  ;;  %v173_v20 = vld [vmem:[%s9520_s1 + $0x4f0] sm:$0xff]  ;;  %v6307_v22 = vpack.c.bf16 %v434_v16, %v301_v10  ;;  %v39_v23 = vld [vmem:[%s9520_s1 + $0xc0] sm:$0xff]  ;;  %v6314_v24 = vpack.c.bf16 %v437_v18, %v304_v17 }
  0x22   :  { %6281 = vmatprep.subr.bf16.mxu0 %v6280_v41  ;;  %v303_v26 = vld [vmem:[%s9520_s1 + $0x900] sm:$0xff]  ;;  %v436_v27 = vld [vmem:[%s9520_s1 + $0xd28] sm:$0x7]  ;;  %v6320_v28 = vpack.c.bf16 %v173_v20, %v40_v19  ;;  %v42_v30 = vld [vmem:[%s9520_s1 + $0xd8] sm:$0xff] }
  0x23   :  { %v172_v29 = vld [vmem:[%s9520_s1 + $0x4e8] sm:$0xff]  ;;  %v175_v31 = vld [vmem:[%s9520_s1 + $0x500] sm:$0xff]  ;;  %v306_v32 = vld [vmem:[%s9520_s1 + $0x918] sm:$0xff]  ;;  %v6317_v34 = vpack.c.bf16 %v436_v27, %v303_v26 }
  0x24   :  { %6004 = vmatmul.mubr.msk.f32.vlgmr.msra.gmra.mrb[6].mxu0 %vm553_vm3, %v6960_v25  ;;  %6279 = vmatpush1.bf16.msk.msra.mxu1 %vm6921_vm2, %v6277_v47  ;;  %v439_v33 = vld [vmem:[%s9520_s1 + $0xd40] sm:$0x7]  ;;  %v6322_v35 = vpack.c.bf16 %v172_v29, %v39_v23  ;;  %v305_v36 = vld [vmem:[%s9520_s1 + $0x910] sm:$0xff]  ;;  %v6330_v37 = vpack.c.bf16 %v175_v31, %v42_v30  ;;  %v174_v39 = vld [vmem:[%s9520_s1 + $0x4f8] sm:$0xff] }
  0x25   :  { %6283 = vmatpush1.bf16.msra.mxu0 %v6282_v48  ;;  %6291 = vmatprep.subr.bf16.mxu1 %v6290_v50  ;;  %v41_v38 = vld [vmem:[%s9520_s1 + $0xd0] sm:$0xff]  ;;  %v6324_v40 = vpack.c.bf16 %v439_v33, %v306_v32  ;;  %v438_v41 = vld [vmem:[%s9520_s1 + $0xd38] sm:$0x7]  ;;  %v308_v42 = vld [vmem:[%s9520_s1 + $0x928] sm:$0xff] }
  0x26   :  { %6286 = vmatprep.subr.msk.bf16.mxu0 %vm6921_vm2, %v6284_v53  ;;  %1589 = vmatprep.mubr.f32.mxu0 %v6875_v3  ;;  %v441_v43 = vld [vmem:[%s9520_s1 + $0xd50] sm:$0x7]  ;;  %v44_v44 = vld [vmem:[%s9520_s1 + $0xe8] sm:$0xff]  ;;  %v6332_v46 = vpack.c.bf16 %v174_v39, %v41_v38  ;;  %v6327_v47 = vpack.c.bf16 %v438_v41, %v305_v36  ;;  %v43_v48 = vld [vmem:[%s9520_s1 + $0xe0] sm:$0xff] }
  0x27   :  { %6007 = vmatmul.mubr.msk.f32.vlgmr.msra.gmra.mrb[6].mxu1 %vm553_vm3, %v6960_v25  ;;  %v177_v45 = vld [vmem:[%s9520_s1 + $0x510] sm:$0xff]  ;;  %v6334_v49 = vpack.c.bf16 %v441_v43, %v308_v42  ;;  %v307_v50 = vld [vmem:[%s9520_s1 + $0x920] sm:$0xff]  ;;  %v440_v51 = vld [vmem:[%s9520_s1 + $0xd48] sm:$0x7] }
  0x28   :  { %6293 = vmatpush1.bf16.msra.mxu1 %v6292_v59  ;;  %1660 = vmatprep.mubr.f32.mxu1 %v6875_v3  ;;  %v6340_v52 = vpack.c.bf16 %v177_v45, %v44_v44  ;;  %v176_v53 = vld [vmem:[%s9520_s1 + $0x508] sm:$0xff]  ;;  %v46_v54 = vld [vmem:[%s9520_s1 + $0xf8] sm:$0xff]  ;;  %v179_v55 = vld [vmem:[%s9520_s1 + $0x520] sm:$0xff]  ;;  %v6337_v58 = vpack.c.bf16 %v440_v51, %v307_v50 }
  0x29   :  { %6289 = vmatpush1.bf16.msk.msra.mxu0 %vm6921_vm2, %v6287_v60  ;;  %6296 = vmatprep.subr.msk.bf16.mxu1 %vm6921_vm2, %v6294_v62  ;;  %v310_v56 = vld [vmem:[%s9520_s1 + $0x938] sm:$0xff]  ;;  %v443_v57 = vld [vmem:[%s9520_s1 + $0xd60] sm:$0x7]  ;;  %v6342_v59 = vpack.c.bf16 %v176_v53, %v43_v48  ;;  %v309_v60 = vld [vmem:[%s9520_s1 + $0x930] sm:$0xff]  ;;  %v6350_v61 = vpack.c.bf16 %v179_v55, %v46_v54 }
  0x2a   :  { %6301 = vmatprep.subr.bf16.mxu0 %v6300_v1  ;;  %v45_v62 = vld [vmem:[%s9520_s1 + $0xf0] sm:$0xff]  ;;  %v178_v63 = vld [vmem:[%s9520_s1 + $0x518] sm:$0xff]  ;;  %v6344_v0 = vpack.c.bf16 %v443_v57, %v310_v56  ;;  %v312_v2 = vld [vmem:[%s9520_s1 + $0x948] sm:$0xff] }
  0x2b   :  { %v442_v1 = vld [vmem:[%s9520_s1 + $0xd58] sm:$0x7]  ;;  %v445_v4 = vld [vmem:[%s9520_s1 + $0xd70] sm:$0x7]  ;;  %v48_v5 = vld [vmem:[%s9520_s1 + $0x108] sm:$0xff]  ;;  %v6352_v7 = vpack.c.bf16 %v178_v63, %v45_v62 }
  0x2c   :  { %6010 = vmatmul.mubr.msk.f32.vlgmr.msra.gmra.mrb[8].mxu0 %vm553_vm3, %v6960_v25  ;;  %6299 = vmatpush1.bf16.msk.msra.mxu1 %vm6921_vm2, %v6297_v8  ;;  %v181_v6 = vld [vmem:[%s9520_s1 + $0x530] sm:$0xff]  ;;  %v47_v8 = vld [vmem:[%s9520_s1 + $0x100] sm:$0xff]  ;;  %v180_v10 = vld [vmem:[%s9520_s1 + $0x528] sm:$0xff] }
  0x2d   :  { %6303 = vmatpush1.bf16.msra.mxu0 %v6302_v9  ;;  %6311 = vmatprep.subr.bf16.mxu1 %v6310_v12  ;;  %v6347_v9 = vpack.c.bf16 %v442_v1, %v309_v60  ;;  %v6354_v12 = vpack.c.bf16 %v445_v4, %v312_v2  ;;  %v311_v13 = vld [vmem:[%s9520_s1 + $0x940] sm:$0xff]  ;;  %v444_v14 = vld [vmem:[%s9520_s1 + $0xd68] sm:$0x7]  ;;  %v50_v16 = vld [vmem:[%s9520_s1 + $0x118] sm:$0xff] }
  0x2e   :  { %6306 = vmatprep.subr.msk.bf16.mxu0 %vm6921_vm2, %v6304_v15  ;;  %1731 = vmatprep.mubr.f32.mxu0 %v6875_v3  ;;  %v6360_v15 = vpack.c.bf16 %v181_v6, %v48_v5  ;;  %v183_v17 = vld [vmem:[%s9520_s1 + $0x540] sm:$0xff]  ;;  %v314_v19 = vld [vmem:[%s9520_s1 + $0x958] sm:$0xff]  ;;  %v313_v23 = vld [vmem:[%s9520_s1 + $0x950] sm:$0xff] }
  0x2f   :  { %6013 = vmatmul.mubr.msk.f32.vlgmr.msra.gmra.mrb[8].mxu1 %vm553_vm3, %v6960_v25  ;;  %v547_v18 = vld [vmem:[%s9522_s2] sm:$0xff]  ;;  %v49_v26 = vld [vmem:[%s9520_s1 + $0x110] sm:$0xff]  ;;  %v182_v27 = vld [vmem:[%s9520_s1 + $0x538] sm:$0xff] }
  0x30   :  { %6313 = vmatpush1.bf16.msra.mxu1 %v6312_v21  ;;  %1802 = vmatprep.mubr.f32.mxu1 %v6875_v3  ;;  %v447_v20 = vld [vmem:[%s9520_s1 + $0xd80] sm:$0x7]  ;;  %v6357_v21 = vpack.c.bf16 %v444_v14, %v311_v13  ;;  %v446_v29 = vld [vmem:[%s9520_s1 + $0xd78] sm:$0x7]  ;;  %v316_v30 = vld [vmem:[%s9520_s1 + $0x968] sm:$0xff] }
  0x31   :  { %6309 = vmatpush1.bf16.msk.msra.mxu0 %vm6921_vm2, %v6307_v22  ;;  %6316 = vmatprep.subr.msk.bf16.mxu1 %vm6921_vm2, %v6314_v24  ;;  %v6362_v22 = vpack.c.bf16 %v180_v10, %v47_v8  ;;  %v6370_v24 = vpack.c.bf16 %v183_v17, %v50_v16  ;;  %v449_v31 = vld [vmem:[%s9520_s1 + $0xd90] sm:$0x7]  ;;  %v52_v32 = vld [vmem:[%s9520_s1 + $0x128] sm:$0xff]  ;;  %v51_v36 = vld [vmem:[%s9520_s1 + $0x120] sm:$0xff] }
  0x32   :  { %6321 = vmatprep.subr.bf16.mxu0 %v6320_v28  ;;  %550 = vperm.xlu0 %6872, %v547_v18   ;;  %v6364_v28 = vpack.c.bf16 %v447_v20, %v314_v19  ;;  %v185_v33 = vld [vmem:[%s9520_s1 + $0x550] sm:$0xff]  ;;  %v315_v38 = vld [vmem:[%s9520_s1 + $0x960] sm:$0xff]  ;;  %v448_v39 = vld [vmem:[%s9520_s1 + $0xd88] sm:$0x7] }
  0x33   :  { %v184_v41 = vld [vmem:[%s9520_s1 + $0x548] sm:$0xff]  ;;  %v54_v42 = vld [vmem:[%s9520_s1 + $0x138] sm:$0xff]  ;;  %v187_v43 = vld [vmem:[%s9520_s1 + $0x560] sm:$0xff] }
  0x34   :  { %6016 = vmatmul.mubr.msk.f32.vlgmr.msra.gmra.mrb[10].mxu0 %vm553_vm3, %v6960_v25  ;;  %6319 = vmatpush1.bf16.msk.msra.mxu1 %vm6921_vm2, %v6317_v34  ;;  %v6372_v34 = vpack.c.bf16 %v182_v27, %v49_v26  ;;  %v318_v44 = vld [vmem:[%s9520_s1 + $0x978] sm:$0xff]  ;;  %v451_v45 = vld [vmem:[%s9520_s1 + $0xda0] sm:$0x7]  ;;  %v317_v48 = vld [vmem:[%s9520_s1 + $0x970] sm:$0xff] }
  0x35   :  { %6323 = vmatpush1.bf16.msra.mxu0 %v6322_v35  ;;  %6331 = vmatprep.subr.bf16.mxu1 %v6330_v37  ;;  %v6367_v35 = vpack.c.bf16 %v446_v29, %v313_v23  ;;  %v6374_v37 = vpack.c.bf16 %v449_v31, %v316_v30  ;;  %v53_v50 = vld [vmem:[%s9520_s1 + $0x130] sm:$0xff]  ;;  %v186_v51 = vld [vmem:[%s9520_s1 + $0x558] sm:$0xff]  ;;  %v320_v54 = vld [vmem:[%s9520_s1 + $0x988] sm:$0xff] }
  0x36   :  { %6326 = vmatprep.subr.msk.bf16.mxu0 %vm6921_vm2, %v6324_v40  ;;  %1873 = vmatprep.mubr.f32.mxu0 %v6875_v3  ;;  %v6380_v40 = vpack.c.bf16 %v185_v33, %v52_v32  ;;  %v450_v53 = vld [vmem:[%s9520_s1 + $0xd98] sm:$0x7]  ;;  %v453_v55 = vld [vmem:[%s9520_s1 + $0xdb0] sm:$0x7]  ;;  %v56_v56 = vld [vmem:[%s9520_s1 + $0x148] sm:$0xff] }
  0x37   :  { %6019 = vmatmul.mubr.msk.f32.vlgmr.msra.gmra.mrb[10].mxu1 %vm553_vm3, %v6960_v25  ;;  %v189_v57 = vld [vmem:[%s9520_s1 + $0x570] sm:$0xff]  ;;  %v55_v60 = vld [vmem:[%s9520_s1 + $0x140] sm:$0xff]  ;;  %v452_v63 = vld [vmem:[%s9520_s1 + $0xda8] sm:$0x7] }
  0x38   :  { %6333 = vmatpush1.bf16.msra.mxu1 %v6332_v46  ;;  %1944 = vmatprep.mubr.f32.mxu1 %v6875_v3  ;;  %v6377_v46 = vpack.c.bf16 %v448_v39, %v315_v38  ;;  %v319_v62 = vld [vmem:[%s9520_s1 + $0x980] sm:$0xff]  ;;  %v188_v1 = vld [vmem:[%s9520_s1 + $0x568] sm:$0xff]  ;;  %v58_v2 = vld [vmem:[%s9520_s1 + $0x158] sm:$0xff] }
  0x39   :  { %6329 = vmatpush1.bf16.msk.msra.mxu0 %vm6921_vm2, %v6327_v47  ;;  %6336 = vmatprep.subr.msk.bf16.mxu1 %vm6921_vm2, %v6334_v49  ;;  %v6382_v47 = vpack.c.bf16 %v184_v41, %v51_v36  ;;  %v6390_v49 = vpack.c.bf16 %v187_v43, %v54_v42  ;;  %v191_v4 = vld [vmem:[%s9520_s1 + $0x580] sm:$0xff]  ;;  %v322_v5 = vld [vmem:[%s9520_s1 + $0x998] sm:$0xff]  ;;  %v6402_v8 = vpack.c.bf16 %v188_v1, %v55_v60  ;;  %v324_v16 = vld [vmem:[%s9520_s1 + $0x9a8] sm:$0xff] }
  0x3a   :  { %6341 = vmatprep.subr.bf16.mxu0 %v6340_v52  ;;  %v6384_v52 = vpack.c.bf16 %v451_v45, %v318_v44  ;;  %v455_v6 = vld [vmem:[%s9520_s1 + $0xdc0] sm:$0x7]  ;;  %v6410_v10 = vpack.c.bf16 %v191_v4, %v58_v2  ;;  %v190_v13 = vld [vmem:[%s9520_s1 + $0x578] sm:$0xff]  ;;  %v457_v17 = vld [vmem:[%s9520_s1 + $0xdd0] sm:$0x7] }
  0x3b   :  { %v6404_v14 = vpack.c.bf16 %v455_v6, %v322_v5  ;;  %v60_v18 = vld [vmem:[%s9520_s1 + $0x168] sm:$0xff]  ;;  %v193_v19 = vld [vmem:[%s9520_s1 + $0x590] sm:$0xff]  ;;  %v6414_v23 = vpack.c.bf16 %v457_v17, %v324_v16  ;;  %v62_v29 = vld [vmem:[%s9520_s1 + $0x178] sm:$0xff] }
  0x3c   :  { %6022 = vmatmul.mubr.msk.f32.vlgmr.msra.gmra.mrb[12].mxu0 %vm553_vm3, %v6960_v25  ;;  %6339 = vmatpush1.bf16.msk.msra.mxu1 %vm6921_vm2, %v6337_v58  ;;  %v6392_v58 = vpack.c.bf16 %v186_v51, %v53_v50  ;;  %v456_v26 = vld [vmem:[%s9520_s1 + $0xdc8] sm:$0x7]  ;;  %v6420_v27 = vpack.c.bf16 %v193_v19, %v60_v18  ;;  %v195_v30 = vld [vmem:[%s9520_s1 + $0x5a0] sm:$0xff]  ;;  %v326_v31 = vld [vmem:[%s9520_s1 + $0x9b8] sm:$0xff] }
  0x3d   :  { %6343 = vmatpush1.bf16.msra.mxu0 %v6342_v59  ;;  %6351 = vmatprep.subr.bf16.mxu1 %v6350_v61  ;;  %v6387_v59 = vpack.c.bf16 %v450_v53, %v317_v48  ;;  %v6394_v61 = vpack.c.bf16 %v453_v55, %v320_v54  ;;  %v459_v32 = vld [vmem:[%s9520_s1 + $0xde0] sm:$0x7]  ;;  %v6430_v36 = vpack.c.bf16 %v195_v30, %v62_v29  ;;  %v194_v38 = vld [vmem:[%s9520_s1 + $0x598] sm:$0xff]  ;;  %v328_v41 = vld [vmem:[%s9520_s1 + $0x9c8] sm:$0xff] }
  0x3e   :  { %6346 = vmatprep.subr.msk.bf16.mxu0 %vm6921_vm2, %v6344_v0  ;;  %2015 = vmatprep.mubr.f32.mxu0 %v6875_v3  ;;  %v6400_v0 = vpack.c.bf16 %v189_v57, %v56_v56  ;;  %v6424_v39 = vpack.c.bf16 %v459_v32, %v326_v31  ;;  %v461_v42 = vld [vmem:[%s9520_s1 + $0xdf0] sm:$0x7]  ;;  %v64_v43 = vld [vmem:[%s9520_s1 + $0x188] sm:$0xff]  ;;  %v66_v53 = vld [vmem:[%s9520_s1 + $0x198] sm:$0xff] }
  0x3f   :  { %6025 = vmatmul.mubr.msk.f32.vlgmr.msra.gmra.mrb[12].mxu1 %vm553_vm3, %v6960_v25  ;;  %v197_v44 = vld [vmem:[%s9520_s1 + $0x5b0] sm:$0xff]  ;;  %v6434_v48 = vpack.c.bf16 %v461_v42, %v328_v41  ;;  %v460_v50 = vld [vmem:[%s9520_s1 + $0xde8] sm:$0x7]  ;;  %v199_v54 = vld [vmem:[%s9520_s1 + $0x5c0] sm:$0xff] }
  0x40   :  { %6353 = vmatpush1.bf16.msra.mxu1 %v6352_v7  ;;  %2086 = vmatprep.mubr.f32.mxu1 %v6875_v3  ;;  %v6397_v7 = vpack.c.bf16 %v452_v63, %v319_v62  ;;  %v6440_v51 = vpack.c.bf16 %v197_v44, %v64_v43  ;;  %v330_v55 = vld [vmem:[%s9520_s1 + $0x9d8] sm:$0xff]  ;;  %v463_v56 = vld [vmem:[%s9520_s1 + $0xe00] sm:$0x7]  ;;  %v6450_v60 = vpack.c.bf16 %v199_v54, %v66_v53  ;;  %v332_v1 = vld [vmem:[%s9520_s1 + $0x9e8] sm:$0xff] }
  0x41   :  { %6349 = vmatpush1.bf16.msk.msra.mxu0 %vm6921_vm2, %v6347_v9  ;;  %6356 = vmatprep.subr.msk.bf16.mxu1 %vm6921_vm2, %v6354_v12  ;;  %v321_v9 = vld [vmem:[%s9520_s1 + $0x990] sm:$0xff]  ;;  %v198_v62 = vld [vmem:[%s9520_s1 + $0x5b8] sm:$0xff]  ;;  %v6444_v63 = vpack.c.bf16 %v463_v56, %v330_v55  ;;  %v68_v4 = vld [vmem:[%s9520_s1 + $0x1a8] sm:$0xff] }
  0x42   :  { %6361 = vmatprep.subr.bf16.mxu0 %v6360_v15  ;;  %v57_v12 = vld [vmem:[%s9520_s1 + $0x150] sm:$0xff]  ;;  %v454_v15 = vld [vmem:[%s9520_s1 + $0xdb8] sm:$0x7]  ;;  %v203_v16 = vld [vmem:[%s9520_s1 + $0x5e0] sm:$0xff] }
  0x43   :  { %v6412_v20 = vpack.c.bf16 %v190_v13, %v57_v12  ;;  %v465_v2 = vld [vmem:[%s9520_s1 + $0xe10] sm:$0x7]  ;;  %v464_v12 = vld [vmem:[%s9520_s1 + $0xe08] sm:$0x7]  ;;  %v334_v17 = vld [vmem:[%s9520_s1 + $0x9f8] sm:$0xff] }
  0x44   :  { %6028 = vmatmul.mubr.msk.f32.vlgmr.msra.gmra.mrb[14].mxu0 %vm553_vm3, %v6960_v25  ;;  %6359 = vmatpush1.bf16.msk.msra.mxu1 %vm6921_vm2, %v6357_v21  ;;  %v6407_v21 = vpack.c.bf16 %v454_v15, %v321_v9  ;;  %v201_v5 = vld [vmem:[%s9520_s1 + $0x5d0] sm:$0xff]  ;;  %v6454_v9 = vpack.c.bf16 %v465_v2, %v332_v1  ;;  %v70_v15 = vld [vmem:[%s9520_s1 + $0x1b8] sm:$0xff]  ;;  %v467_v18 = vld [vmem:[%s9520_s1 + $0xe20] sm:$0x7] }
  0x45   :  { %6363 = vmatpush1.bf16.msra.mxu0 %v6362_v22  ;;  %6371 = vmatprep.subr.bf16.mxu1 %v6370_v24  ;;  %v59_v22 = vld [vmem:[%s9520_s1 + $0x160] sm:$0xff]  ;;  %v6460_v13 = vpack.c.bf16 %v201_v5, %v68_v4  ;;  %v469_v29 = vld [vmem:[%s9520_s1 + $0xe30] sm:$0x7]  ;;  %v72_v30 = vld [vmem:[%s9520_s1 + $0x1c8] sm:$0xff] }
  0x46   :  { %6366 = vmatprep.subr.msk.bf16.mxu0 %vm6921_vm2, %v6364_v28  ;;  %2157 = vmatprep.mubr.f32.mxu0 %v6875_v3  ;;  %v323_v24 = vld [vmem:[%s9520_s1 + $0x9a0] sm:$0xff]  ;;  %v192_v28 = vld [vmem:[%s9520_s1 + $0x588] sm:$0xff]  ;;  %v205_v31 = vld [vmem:[%s9520_s1 + $0x5f0] sm:$0xff] }
  0x47   :  { %6031 = vmatmul.mubr.msk.f32.vlgmr.msra.gmra.mrb[14].mxu1 %vm553_vm3, %v6960_v25  ;;  %v6417_v33 = vpack.c.bf16 %v456_v26, %v323_v24  ;;  %v202_v24 = vld [vmem:[%s9520_s1 + $0x5d8] sm:$0xff]  ;;  %v6464_v26 = vpack.c.bf16 %v467_v18, %v334_v17  ;;  %v207_v41 = vld [vmem:[%s9520_s1 + $0x600] sm:$0xff]  ;;  %v473_v53 = vld [vmem:[%s9520_s1 + $0xe50] sm:$0x7] }
  0x48   :  { %6373 = vmatpush1.bf16.msra.mxu1 %v6372_v34  ;;  %2228 = vmatprep.mubr.f32.mxu1 %v6875_v3  ;;  %v6422_v34 = vpack.c.bf16 %v192_v28, %v59_v22  ;;  %v6470_v22 = vpack.c.bf16 %v203_v16, %v70_v15  ;;  %v336_v28 = vld [vmem:[%s9520_s1 + $0xa08] sm:$0xff]  ;;  %v338_v42 = vld [vmem:[%s9520_s1 + $0xa18] sm:$0xff]  ;;  %v471_v43 = vld [vmem:[%s9520_s1 + $0xe40] sm:$0x7] }
  0x49   :  { %6369 = vmatpush1.bf16.msk.msra.mxu0 %vm6921_vm2, %v6367_v35  ;;  %6376 = vmatprep.subr.msk.bf16.mxu1 %vm6921_vm2, %v6374_v37  ;;  %v325_v35 = vld [vmem:[%s9520_s1 + $0x9b0] sm:$0xff]  ;;  %v76_v54 = vld [vmem:[%s9520_s1 + $0x1e8] sm:$0xff]  ;;  %v7851_v1 = vld [vmem:[%s9521_s0] sm:$0xff] }
  0x4a   :  { %6381 = vmatprep.subr.bf16.mxu0 %v6380_v40  ;;  %v61_v37 = vld [vmem:[%s9520_s1 + $0x170] sm:$0xff]  ;;  %v458_v40 = vld [vmem:[%s9520_s1 + $0xdd8] sm:$0x7]  ;;  %v475_v4 = vld [vmem:[%s9520_s1 + $0xe60] sm:$0x7] }
  0x4b   :  { %v6432_v45 = vpack.c.bf16 %v194_v38, %v61_v37  ;;  %v468_v37 = vld [vmem:[%s9520_s1 + $0xe28] sm:$0x7]  ;;  %v6480_v38 = vpack.c.bf16 %v205_v31, %v72_v30  ;;  %v209_v55 = vld [vmem:[%s9520_s1 + $0x610] sm:$0xff]  ;;  %v342_v2 = vld [vmem:[%s9520_s1 + $0xa38] sm:$0xff] }
  0x4c   :  { %6034 = vmatmul.mubr.msk.f32.vlgmr.msra.gmra.mrb[16].mxu0 %vm553_vm3, %v6960_v25  ;;  %6379 = vmatpush1.bf16.msk.msra.mxu1 %vm6921_vm2, %v6377_v46  ;;  %v6427_v46 = vpack.c.bf16 %v458_v40, %v325_v35  ;;  %v6474_v35 = vpack.c.bf16 %v469_v29, %v336_v28  ;;  %v74_v40 = vld [vmem:[%s9520_s1 + $0x1d8] sm:$0xff]  ;;  %v477_v15 = vld [vmem:[%s9520_s1 + $0xe70] sm:$0x7]  ;;  %v80_v16 = vld [vmem:[%s9520_s1 + $0x208] sm:$0xff] }
  0x4d   :  { %6383 = vmatpush1.bf16.msra.mxu0 %v6382_v47  ;;  %6391 = vmatprep.subr.bf16.mxu1 %v6390_v49  ;;  %v63_v47 = vld [vmem:[%s9520_s1 + $0x180] sm:$0xff]  ;;  %v213_v17 = vld [vmem:[%s9520_s1 + $0x630] sm:$0xff]  ;;  %v346_v29 = vld [vmem:[%s9520_s1 + $0xa58] sm:$0xff] }
  0x4e   :  { %6386 = vmatprep.subr.msk.bf16.mxu0 %vm6921_vm2, %v6384_v52  ;;  %2299 = vmatprep.mubr.f32.mxu0 %v6875_v3  ;;  %v327_v49 = vld [vmem:[%s9520_s1 + $0x9c0] sm:$0xff]  ;;  %v196_v52 = vld [vmem:[%s9520_s1 + $0x5a8] sm:$0xff] }
  0x4f   :  { %6037 = vmatmul.mubr.msk.f32.vlgmr.msra.gmra.mrb[16].mxu1 %vm553_vm3, %v6960_v25  ;;  %v6437_v57 = vpack.c.bf16 %v460_v50, %v327_v49  ;;  %v206_v49 = vld [vmem:[%s9520_s1 + $0x5f8] sm:$0xff]  ;;  %v6484_v50 = vpack.c.bf16 %v471_v43, %v338_v42  ;;  %v215_v28 = vld [vmem:[%s9520_s1 + $0x640] sm:$0xff]  ;;  %v217_v42 = vld [vmem:[%s9520_s1 + $0x650] sm:$0xff] }
  0x50   :  { %6393 = vmatpush1.bf16.msra.mxu1 %v6392_v58  ;;  %2370 = vmatprep.mubr.f32.mxu1 %v6875_v3  ;;  %v6442_v58 = vpack.c.bf16 %v196_v52, %v63_v47  ;;  %v6490_v47 = vpack.c.bf16 %v207_v41, %v74_v40  ;;  %v340_v52 = vld [vmem:[%s9520_s1 + $0xa28] sm:$0xff]  ;;  %v479_v30 = vld [vmem:[%s9520_s1 + $0xe80] sm:$0x7]  ;;  %v481_v40 = vld [vmem:[%s9520_s1 + $0xe90] sm:$0x7] }
  0x51   :  { %6389 = vmatpush1.bf16.msk.msra.mxu0 %vm6921_vm2, %v6387_v59  ;;  %6396 = vmatprep.subr.msk.bf16.mxu1 %vm6921_vm2, %v6394_v61  ;;  %v329_v59 = vld [vmem:[%s9520_s1 + $0x9d0] sm:$0xff]  ;;  %v84_v41 = vld [vmem:[%s9520_s1 + $0x228] sm:$0xff] }
  0x52   :  { %6401 = vmatprep.subr.bf16.mxu0 %v6400_v0  ;;  %v65_v61 = vld [vmem:[%s9520_s1 + $0x190] sm:$0xff]  ;;  %v462_v0 = vld [vmem:[%s9520_s1 + $0xdf8] sm:$0x7] }
  0x53   :  { %v6452_v6 = vpack.c.bf16 %v198_v62, %v65_v61  ;;  %v6500_v61 = vpack.c.bf16 %v209_v55, %v76_v54  ;;  %v208_v62 = vld [vmem:[%s9520_s1 + $0x608] sm:$0xff]  ;;  %v483_v54 = vld [vmem:[%s9520_s1 + $0xea0] sm:$0x7] }
  0x54   :  { %6040 = vmatmul.mubr.msk.f32.vlgmr.msra.gmra.mrb[18].mxu0 %vm553_vm3, %v6960_v25  ;;  %6399 = vmatpush1.bf16.msk.msra.mxu1 %vm6921_vm2, %v6397_v7  ;;  %v6447_v7 = vpack.c.bf16 %v462_v0, %v329_v59  ;;  %v6494_v59 = vpack.c.bf16 %v473_v53, %v340_v52  ;;  %v211_v0 = vld [vmem:[%s9520_s1 + $0x620] sm:$0xff]  ;;  %v350_v53 = vld [vmem:[%s9520_s1 + $0xa78] sm:$0xff] }
  0x55   :  { %6403 = vmatpush1.bf16.msra.mxu0 %v6402_v8  ;;  %6411 = vmatprep.subr.bf16.mxu1 %v6410_v10  ;;  %v67_v8 = vld [vmem:[%s9520_s1 + $0x1a0] sm:$0xff] }
  0x56   :  { %6406 = vmatprep.subr.msk.bf16.mxu0 %vm6921_vm2, %v6404_v14  ;;  %2441 = vmatprep.mubr.f32.mxu0 %v6875_v3  ;;  %v331_v10 = vld [vmem:[%s9520_s1 + $0x9e0] sm:$0xff]  ;;  %v200_v14 = vld [vmem:[%s9520_s1 + $0x5c8] sm:$0xff] }
  0x57   :  { %6043 = vmatmul.mubr.msk.f32.vlgmr.msra.gmra.mrb[18].mxu1 %vm553_vm3, %v6960_v25  ;;  %v6457_v19 = vpack.c.bf16 %v464_v12, %v331_v10  ;;  %v210_v10 = vld [vmem:[%s9520_s1 + $0x618] sm:$0xff]  ;;  %v6504_v12 = vpack.c.bf16 %v475_v4, %v342_v2  ;;  %v219_v52 = vld [vmem:[%s9520_s1 + $0x660] sm:$0xff]  ;;  %v221_v2 = vld [vmem:[%s9520_s1 + $0x670] sm:$0xff] }
  0x58   :  { %6413 = vmatpush1.bf16.msra.mxu1 %v6412_v20  ;;  %2512 = vmatprep.mubr.f32.mxu1 %v6875_v3  ;;  %v6462_v20 = vpack.c.bf16 %v200_v14, %v67_v8  ;;  %v344_v14 = vld [vmem:[%s9520_s1 + $0xa48] sm:$0xff] }
  0x59   :  { %6409 = vmatpush1.bf16.msk.msra.mxu0 %vm6921_vm2, %v6407_v21  ;;  %6416 = vmatprep.subr.msk.bf16.mxu1 %vm6921_vm2, %v6414_v23  ;;  %v333_v21 = vld [vmem:[%s9520_s1 + $0x9f0] sm:$0xff] }
  0x5a   :  { %6421 = vmatprep.subr.bf16.mxu0 %v6420_v27  ;;  %v69_v23 = vld [vmem:[%s9520_s1 + $0x1b0] sm:$0xff]  ;;  %v466_v27 = vld [vmem:[%s9520_s1 + $0xe18] sm:$0x7] }
  0x5b   :  { %v6472_v32 = vpack.c.bf16 %v202_v24, %v69_v23  ;;  %v476_v23 = vld [vmem:[%s9520_s1 + $0xe68] sm:$0x7]  ;;  %v6520_v24 = vpack.c.bf16 %v213_v17, %v80_v16  ;;  %v487_v16 = vld [vmem:[%s9520_s1 + $0xec0] sm:$0x7] }
  0x5c   :  { %6046 = vmatmul.mubr.msk.f32.vlgmr.msra.gmra.mrb[20].mxu0 %vm553_vm3, %v6960_v25  ;;  %6419 = vmatpush1.bf16.msk.msra.mxu1 %vm6921_vm2, %v6417_v33  ;;  %v6467_v33 = vpack.c.bf16 %v466_v27, %v333_v21  ;;  %v6514_v21 = vpack.c.bf16 %v477_v15, %v344_v14  ;;  %v82_v27 = vld [vmem:[%s9520_s1 + $0x218] sm:$0xff]  ;;  %v223_v14 = vld [vmem:[%s9520_s1 + $0x680] sm:$0xff] }
  0x5d   :  { %6423 = vmatpush1.bf16.msra.mxu0 %v6422_v34  ;;  %6431 = vmatprep.subr.bf16.mxu1 %v6430_v36  ;;  %v71_v34 = vld [vmem:[%s9520_s1 + $0x1c0] sm:$0xff]  ;;  %v354_v15 = vld [vmem:[%s9520_s1 + $0xa98] sm:$0xff] }
  0x5e   :  { %6426 = vmatprep.subr.msk.bf16.mxu0 %vm6921_vm2, %v6424_v39  ;;  %2583 = vmatprep.mubr.f32.mxu0 %v6875_v3  ;;  %v335_v36 = vld [vmem:[%s9520_s1 + $0xa00] sm:$0xff]  ;;  %v204_v39 = vld [vmem:[%s9520_s1 + $0x5e8] sm:$0xff] }
  0x5f   :  { %6049 = vmatmul.mubr.msk.f32.vlgmr.msra.gmra.mrb[20].mxu1 %vm553_vm3, %v6960_v25  ;;  %v6477_v44 = vpack.c.bf16 %v468_v37, %v335_v36  ;;  %v214_v36 = vld [vmem:[%s9520_s1 + $0x638] sm:$0xff]  ;;  %v6524_v37 = vpack.c.bf16 %v479_v30, %v346_v29  ;;  %v225_v29 = vld [vmem:[%s9520_s1 + $0x690] sm:$0xff] }
  0x60   :  { %6433 = vmatpush1.bf16.msra.mxu1 %v6432_v45  ;;  %2654 = vmatprep.mubr.f32.mxu1 %v6875_v3  ;;  %v6482_v45 = vpack.c.bf16 %v204_v39, %v71_v34  ;;  %v6530_v34 = vpack.c.bf16 %v215_v28, %v82_v27  ;;  %v348_v39 = vld [vmem:[%s9520_s1 + $0xa68] sm:$0xff]  ;;  %v489_v27 = vld [vmem:[%s9520_s1 + $0xed0] sm:$0x7] }
  0x61   :  { %6429 = vmatpush1.bf16.msk.msra.mxu0 %vm6921_vm2, %v6427_v46  ;;  %6436 = vmatprep.subr.msk.bf16.mxu1 %vm6921_vm2, %v6434_v48  ;;  %v337_v46 = vld [vmem:[%s9520_s1 + $0xa10] sm:$0xff]  ;;  %v92_v28 = vld [vmem:[%s9520_s1 + $0x268] sm:$0xff] }
  0x62   :  { %6441 = vmatprep.subr.bf16.mxu0 %v6440_v51  ;;  %v73_v48 = vld [vmem:[%s9520_s1 + $0x1d0] sm:$0xff]  ;;  %v470_v51 = vld [vmem:[%s9520_s1 + $0xe38] sm:$0x7] }
  0x63   :  { %v6492_v56 = vpack.c.bf16 %v206_v49, %v73_v48  ;;  %v480_v48 = vld [vmem:[%s9520_s1 + $0xe88] sm:$0x7]  ;;  %v6540_v49 = vpack.c.bf16 %v217_v42, %v84_v41  ;;  %v491_v41 = vld [vmem:[%s9520_s1 + $0xee0] sm:$0x7] }
  0x64   :  { %6052 = vmatmul.mubr.msk.f32.vlgmr.msra.gmra.mrb[22].mxu0 %vm553_vm3, %v6960_v25  ;;  %6439 = vmatpush1.bf16.msk.msra.mxu1 %vm6921_vm2, %v6437_v57  ;;  %v6487_v57 = vpack.c.bf16 %v470_v51, %v337_v46  ;;  %v6534_v46 = vpack.c.bf16 %v481_v40, %v348_v39  ;;  %v86_v51 = vld [vmem:[%s9520_s1 + $0x238] sm:$0xff]  ;;  %v227_v39 = vld [vmem:[%s9520_s1 + $0x6a0] sm:$0xff] }
  0x65   :  { %6443 = vmatpush1.bf16.msra.mxu0 %v6442_v58  ;;  %6451 = vmatprep.subr.bf16.mxu1 %v6450_v60  ;;  %v75_v58 = vld [vmem:[%s9520_s1 + $0x1e0] sm:$0xff]  ;;  %v358_v40 = vld [vmem:[%s9520_s1 + $0xab8] sm:$0xff] }
  0x66   :  { %6446 = vmatprep.subr.msk.bf16.mxu0 %vm6921_vm2, %v6444_v63  ;;  %2725 = vmatprep.mubr.f32.mxu0 %v6875_v3  ;;  %v339_v60 = vld [vmem:[%s9520_s1 + $0xa20] sm:$0xff]  ;;  %v78_v63 = vld [vmem:[%s9520_s1 + $0x1f8] sm:$0xff] }
  0x67   :  { %6055 = vmatmul.mubr.msk.f32.vlgmr.msra.gmra.mrb[22].mxu1 %vm553_vm3, %v6960_v25  ;;  %v6510_v8 = vpack.c.bf16 %v211_v0, %v78_v63  ;;  %v485_v63 = vld [vmem:[%s9520_s1 + $0xeb0] sm:$0x7]  ;;  %v88_v0 = vld [vmem:[%s9520_s1 + $0x248] sm:$0xff] }
  0x68   :  { %6453 = vmatpush1.bf16.msra.mxu1 %v6452_v6  ;;  %2796 = vmatprep.mubr.f32.mxu1 %v6875_v3  ;;  %v6502_v6 = vpack.c.bf16 %v208_v62, %v75_v58  ;;  %v6550_v58 = vpack.c.bf16 %v219_v52, %v86_v51  ;;  %v352_v62 = vld [vmem:[%s9520_s1 + $0xa88] sm:$0xff]  ;;  %v493_v51 = vld [vmem:[%s9520_s1 + $0xef0] sm:$0x7] }
  0x69   :  { %6449 = vmatpush1.bf16.msk.msra.mxu0 %vm6921_vm2, %v6447_v7  ;;  %6456 = vmatprep.subr.msk.bf16.mxu1 %vm6921_vm2, %v6454_v9  ;;  %v341_v7 = vld [vmem:[%s9520_s1 + $0xa30] sm:$0xff]  ;;  %v96_v52 = vld [vmem:[%s9520_s1 + $0x288] sm:$0xff] }
  0x6a   :  { %6461 = vmatprep.subr.bf16.mxu0 %v6460_v13  ;;  %v77_v9 = vld [vmem:[%s9520_s1 + $0x1f0] sm:$0xff]  ;;  %v474_v13 = vld [vmem:[%s9520_s1 + $0xe58] sm:$0x7] }
  0x6b   :  { %v6512_v18 = vpack.c.bf16 %v210_v10, %v77_v9  ;;  %v484_v9 = vld [vmem:[%s9520_s1 + $0xea8] sm:$0x7]  ;;  %v6560_v10 = vpack.c.bf16 %v221_v2, %v88_v0  ;;  %v495_v0 = vld [vmem:[%s9520_s1 + $0xf00] sm:$0x7] }
  0x6c   :  { %6058 = vmatmul.mubr.msk.f32.vlgmr.msra.gmra.mrb[24].mxu0 %vm553_vm3, %v6960_v25  ;;  %6459 = vmatpush1.bf16.msk.msra.mxu1 %vm6921_vm2, %v6457_v19  ;;  %v6507_v19 = vpack.c.bf16 %v474_v13, %v341_v7  ;;  %v6554_v7 = vpack.c.bf16 %v485_v63, %v352_v62  ;;  %v90_v13 = vld [vmem:[%s9520_s1 + $0x258] sm:$0xff]  ;;  %v231_v62 = vld [vmem:[%s9520_s1 + $0x6c0] sm:$0xff] }
  0x6d   :  { %6463 = vmatpush1.bf16.msra.mxu0 %v6462_v20  ;;  %6471 = vmatprep.subr.bf16.mxu1 %v6470_v22  ;;  %v79_v20 = vld [vmem:[%s9520_s1 + $0x200] sm:$0xff]  ;;  %v362_v63 = vld [vmem:[%s9520_s1 + $0xad8] sm:$0xff] }
  0x6e   :  { %6466 = vmatprep.subr.msk.bf16.mxu0 %vm6921_vm2, %v6464_v26  ;;  %2867 = vmatprep.mubr.f32.mxu0 %v6875_v3  ;;  %v343_v22 = vld [vmem:[%s9520_s1 + $0xa40] sm:$0xff]  ;;  %v212_v26 = vld [vmem:[%s9520_s1 + $0x628] sm:$0xff] }
  0x6f   :  { %6061 = vmatmul.mubr.msk.f32.vlgmr.msra.gmra.mrb[24].mxu1 %vm553_vm3, %v6960_v25  ;;  %v6517_v31 = vpack.c.bf16 %v476_v23, %v343_v22  ;;  %v222_v22 = vld [vmem:[%s9520_s1 + $0x678] sm:$0xff]  ;;  %v6564_v23 = vpack.c.bf16 %v487_v16, %v354_v15  ;;  %v233_v15 = vld [vmem:[%s9520_s1 + $0x6d0] sm:$0xff] }
  0x70   :  { %6473 = vmatpush1.bf16.msra.mxu1 %v6472_v32  ;;  %2938 = vmatprep.mubr.f32.mxu1 %v6875_v3  ;;  %v6522_v32 = vpack.c.bf16 %v212_v26, %v79_v20  ;;  %v6570_v20 = vpack.c.bf16 %v223_v14, %v90_v13  ;;  %v356_v26 = vld [vmem:[%s9520_s1 + $0xaa8] sm:$0xff]  ;;  %v497_v13 = vld [vmem:[%s9520_s1 + $0xf10] sm:$0x7] }
  0x71   :  { %6469 = vmatpush1.bf16.msk.msra.mxu0 %vm6921_vm2, %v6467_v33  ;;  %6476 = vmatprep.subr.msk.bf16.mxu1 %vm6921_vm2, %v6474_v35  ;;  %v345_v33 = vld [vmem:[%s9520_s1 + $0xa50] sm:$0xff]  ;;  %v100_v14 = vld [vmem:[%s9520_s1 + $0x2a8] sm:$0xff] }
  0x72   :  { %6481 = vmatprep.subr.bf16.mxu0 %v6480_v38  ;;  %v81_v35 = vld [vmem:[%s9520_s1 + $0x210] sm:$0xff]  ;;  %v478_v38 = vld [vmem:[%s9520_s1 + $0xe78] sm:$0x7] }
  0x73   :  { %v6532_v43 = vpack.c.bf16 %v214_v36, %v81_v35  ;;  %v488_v35 = vld [vmem:[%s9520_s1 + $0xec8] sm:$0x7]  ;;  %v6580_v36 = vpack.c.bf16 %v225_v29, %v92_v28  ;;  %v499_v28 = vld [vmem:[%s9520_s1 + $0xf20] sm:$0x7] }
  0x74   :  { %6064 = vmatmul.mubr.msk.f32.vlgmr.msra.gmra.mrb[26].mxu0 %vm553_vm3, %v6960_v25  ;;  %6479 = vmatpush1.bf16.msk.msra.mxu1 %vm6921_vm2, %v6477_v44  ;;  %v472_v25 = vld [vmem:[%s9520_s1 + $0xe48] sm:$0x7]  ;;  %v6527_v44 = vpack.c.bf16 %v478_v38, %v345_v33  ;;  %v6574_v33 = vpack.c.bf16 %v489_v27, %v356_v26  ;;  %v94_v38 = vld [vmem:[%s9520_s1 + $0x278] sm:$0xff]  ;;  %v235_v26 = vld [vmem:[%s9520_s1 + $0x6e0] sm:$0xff] }
  0x75   :  { %6483 = vmatpush1.bf16.msra.mxu0 %v6482_v45  ;;  %6491 = vmatprep.subr.bf16.mxu1 %v6490_v47  ;;  %v6497_v5 = vpack.c.bf16 %v472_v25, %v339_v60  ;;  %v83_v45 = vld [vmem:[%s9520_s1 + $0x220] sm:$0xff]  ;;  %v218_v60 = vld [vmem:[%s9520_s1 + $0x658] sm:$0xff]  ;;  %v6544_v25 = vpack.c.bf16 %v483_v54, %v350_v53  ;;  %v229_v53 = vld [vmem:[%s9520_s1 + $0x6b0] sm:$0xff] }
  0x76   :  { %6486 = vmatprep.subr.msk.bf16.mxu0 %vm6921_vm2, %v6484_v50  ;;  %3009 = vmatprep.mubr.f32.mxu0 %v6875_v3  ;;  %v347_v47 = vld [vmem:[%s9520_s1 + $0xa60] sm:$0xff]  ;;  %v216_v50 = vld [vmem:[%s9520_s1 + $0x648] sm:$0xff]  ;;  %v366_v27 = vld [vmem:[%s9520_s1 + $0xaf8] sm:$0xff] }
  0x77   :  { %6067 = vmatmul.mubr.msk.f32.vlgmr.msra.gmra.mrb[26].mxu1 %vm553_vm3, %v7851_v1  ;;  %v6537_v55 = vpack.c.bf16 %v480_v48, %v347_v47  ;;  %v226_v47 = vld [vmem:[%s9520_s1 + $0x698] sm:$0xff]  ;;  %v6584_v48 = vpack.c.bf16 %v491_v41, %v358_v40  ;;  %v237_v40 = vld [vmem:[%s9520_s1 + $0x6f0] sm:$0xff] }
  0x78   :  { %6493 = vmatpush1.bf16.msra.mxu1 %v6492_v56  ;;  %3080 = vmatprep.mubr.f32.mxu1 %v6875_v3  ;;  %v6542_v56 = vpack.c.bf16 %v216_v50, %v83_v45  ;;  %v6590_v45 = vpack.c.bf16 %v227_v39, %v94_v38  ;;  %v360_v50 = vld [vmem:[%s9520_s1 + $0xac8] sm:$0xff]  ;;  %v501_v38 = vld [vmem:[%s9520_s1 + $0xf30] sm:$0x7] }
  0x79   :  { %6489 = vmatpush1.bf16.msk.msra.mxu0 %vm6921_vm2, %v6487_v57  ;;  %6496 = vmatprep.subr.msk.bf16.mxu1 %vm6921_vm2, %v6494_v59  ;;  %v349_v57 = vld [vmem:[%s9520_s1 + $0xa70] sm:$0xff]  ;;  %v104_v39 = vld [vmem:[%s9520_s1 + $0x2c8] sm:$0xff] }
  0x7a   :  { %6501 = vmatprep.subr.bf16.mxu0 %v6500_v61  ;;  %v85_v59 = vld [vmem:[%s9520_s1 + $0x230] sm:$0xff]  ;;  %v482_v61 = vld [vmem:[%s9520_s1 + $0xe98] sm:$0x7] }
  0x7b   :  { %v6552_v4 = vpack.c.bf16 %v218_v60, %v85_v59  ;;  %v492_v59 = vld [vmem:[%s9520_s1 + $0xee8] sm:$0x7]  ;;  %v6600_v60 = vpack.c.bf16 %v229_v53, %v96_v52  ;;  %v503_v52 = vld [vmem:[%s9520_s1 + $0xf40] sm:$0x7] }
  0x7c   :  { %6070 = vmatmul.mubr.msk.f32.vlgmr.msra.gmra.mrb[28].mxu0 %vm553_vm3, %v7851_v1  ;;  %6499 = vmatpush1.bf16.msk.msra.mxu1 %vm6921_vm2, %v6497_v5  ;;  %v6547_v5 = vpack.c.bf16 %v482_v61, %v349_v57  ;;  %v6594_v57 = vpack.c.bf16 %v493_v51, %v360_v50  ;;  %v98_v61 = vld [vmem:[%s9520_s1 + $0x298] sm:$0xff]  ;;  %v239_v50 = vld [vmem:[%s9520_s1 + $0x700] sm:$0xff] }
  0x7d   :  { %6503 = vmatpush1.bf16.msra.mxu0 %v6502_v6  ;;  %6511 = vmatprep.subr.bf16.mxu1 %v6510_v8  ;;  %v87_v6 = vld [vmem:[%s9520_s1 + $0x240] sm:$0xff]  ;;  %v370_v51 = vld [vmem:[%s9520_s1 + $0xb18] sm:$0xff] }
  0x7e   :  { %6506 = vmatprep.subr.msk.bf16.mxu0 %vm6921_vm2, %v6504_v12  ;;  %3151 = vmatprep.mubr.f32.mxu0 %v6875_v3  ;;  %v351_v8 = vld [vmem:[%s9520_s1 + $0xa80] sm:$0xff]  ;;  %v220_v12 = vld [vmem:[%s9520_s1 + $0x668] sm:$0xff] }
  0x7f   :  { %6073 = vmatmul.mubr.msk.f32.vlgmr.msra.gmra.mrb[28].mxu1 %vm553_vm3, %v7851_v1  ;;  %v6557_v17 = vpack.c.bf16 %v484_v9, %v351_v8  ;;  %v230_v8 = vld [vmem:[%s9520_s1 + $0x6b8] sm:$0xff]  ;;  %v6604_v9 = vpack.c.bf16 %v495_v0, %v362_v63  ;;  %v241_v63 = vld [vmem:[%s9520_s1 + $0x710] sm:$0xff] }
  0x80   :  { %6513 = vmatpush1.bf16.msra.mxu1 %v6512_v18  ;;  %3222 = vmatprep.mubr.f32.mxu1 %v6875_v3  ;;  %v6562_v18 = vpack.c.bf16 %v220_v12, %v87_v6  ;;  %v6610_v6 = vpack.c.bf16 %v231_v62, %v98_v61  ;;  %v364_v12 = vld [vmem:[%s9520_s1 + $0xae8] sm:$0xff]  ;;  %v505_v61 = vld [vmem:[%s9520_s1 + $0xf50] sm:$0x7] }
  0x81   :  { %6509 = vmatpush1.bf16.msk.msra.mxu0 %vm6921_vm2, %v6507_v19  ;;  %6516 = vmatprep.subr.msk.bf16.mxu1 %vm6921_vm2, %v6514_v21  ;;  %v353_v19 = vld [vmem:[%s9520_s1 + $0xa90] sm:$0xff]  ;;  %v108_v62 = vld [vmem:[%s9520_s1 + $0x2e8] sm:$0xff] }
  0x82   :  { %6521 = vmatprep.subr.bf16.mxu0 %v6520_v24  ;;  %v89_v21 = vld [vmem:[%s9520_s1 + $0x250] sm:$0xff]  ;;  %v486_v24 = vld [vmem:[%s9520_s1 + $0xeb8] sm:$0x7] }
  0x83   :  { %v6572_v30 = vpack.c.bf16 %v222_v22, %v89_v21  ;;  %v496_v21 = vld [vmem:[%s9520_s1 + $0xf08] sm:$0x7]  ;;  %v6620_v22 = vpack.c.bf16 %v233_v15, %v100_v14  ;;  %v507_v14 = vld [vmem:[%s9520_s1 + $0xf60] sm:$0x7] }
  0x84   :  { %6076 = vmatmul.mubr.msk.f32.vlgmr.msra.gmra.mrb[30].mxu0 %vm553_vm3, %v7851_v1  ;;  %6519 = vmatpush1.bf16.msk.msra.mxu1 %vm6921_vm2, %v6517_v31  ;;  %v6567_v31 = vpack.c.bf16 %v486_v24, %v353_v19  ;;  %v6614_v19 = vpack.c.bf16 %v497_v13, %v364_v12  ;;  %v102_v24 = vld [vmem:[%s9520_s1 + $0x2b8] sm:$0xff]  ;;  %v243_v12 = vld [vmem:[%s9520_s1 + $0x720] sm:$0xff] }
  0x85   :  { %6523 = vmatpush1.bf16.msra.mxu0 %v6522_v32  ;;  %6531 = vmatprep.subr.bf16.mxu1 %v6530_v34  ;;  %v91_v32 = vld [vmem:[%s9520_s1 + $0x260] sm:$0xff]  ;;  %v374_v13 = vld [vmem:[%s9520_s1 + $0xb38] sm:$0xff] }
  0x86   :  { %6526 = vmatprep.subr.msk.bf16.mxu0 %vm6921_vm2, %v6524_v37  ;;  %3293 = vmatprep.mubr.f32.mxu0 %v6875_v3  ;;  %v355_v34 = vld [vmem:[%s9520_s1 + $0xaa0] sm:$0xff]  ;;  %v224_v37 = vld [vmem:[%s9520_s1 + $0x688] sm:$0xff] }
  0x87   :  { %6079 = vmatmul.mubr.msk.f32.vlgmr.msra.gmra.mrb[30].mxu1 %vm553_vm3, %v7851_v1  ;;  %v6577_v42 = vpack.c.bf16 %v488_v35, %v355_v34  ;;  %v234_v34 = vld [vmem:[%s9520_s1 + $0x6d8] sm:$0xff]  ;;  %v6624_v35 = vpack.c.bf16 %v499_v28, %v366_v27  ;;  %v245_v27 = vld [vmem:[%s9520_s1 + $0x730] sm:$0xff] }
  0x88   :  { %6533 = vmatpush1.bf16.msra.mxu1 %v6532_v43  ;;  %3364 = vmatprep.mubr.f32.mxu1 %v6875_v3  ;;  %v6582_v43 = vpack.c.bf16 %v224_v37, %v91_v32  ;;  %v6630_v32 = vpack.c.bf16 %v235_v26, %v102_v24  ;;  %v368_v37 = vld [vmem:[%s9520_s1 + $0xb08] sm:$0xff]  ;;  %v509_v24 = vld [vmem:[%s9520_s1 + $0xf70] sm:$0x7] }
  0x89   :  { %6529 = vmatpush1.bf16.msk.msra.mxu0 %vm6921_vm2, %v6527_v44  ;;  %6536 = vmatprep.subr.msk.bf16.mxu1 %vm6921_vm2, %v6534_v46  ;;  %v357_v44 = vld [vmem:[%s9520_s1 + $0xab0] sm:$0xff]  ;;  %v112_v26 = vld [vmem:[%s9520_s1 + $0x308] sm:$0xff] }
  0x8a   :  { %6541 = vmatprep.subr.bf16.mxu0 %v6540_v49  ;;  %v93_v46 = vld [vmem:[%s9520_s1 + $0x270] sm:$0xff]  ;;  %v490_v49 = vld [vmem:[%s9520_s1 + $0xed8] sm:$0x7] }
  0x8b   :  { %v6592_v54 = vpack.c.bf16 %v226_v47, %v93_v46  ;;  %v500_v46 = vld [vmem:[%s9520_s1 + $0xf28] sm:$0x7]  ;;  %v6640_v47 = vpack.c.bf16 %v237_v40, %v104_v39  ;;  %v511_v39 = vld [vmem:[%s9520_s1 + $0xf80] sm:$0x7] }
  0x8c   :  { %6082 = vmatmul.mubr.msk.f32.vlgmr.msra.gmra.mrb[32].mxu0 %vm553_vm3, %v7851_v1  ;;  %6539 = vmatpush1.bf16.msk.msra.mxu1 %vm6921_vm2, %v6537_v55  ;;  %v6587_v55 = vpack.c.bf16 %v490_v49, %v357_v44  ;;  %v6634_v44 = vpack.c.bf16 %v501_v38, %v368_v37  ;;  %v106_v49 = vld [vmem:[%s9520_s1 + $0x2d8] sm:$0xff]  ;;  %v247_v37 = vld [vmem:[%s9520_s1 + $0x740] sm:$0xff] }
  0x8d   :  { %6543 = vmatpush1.bf16.msra.mxu0 %v6542_v56  ;;  %6551 = vmatprep.subr.bf16.mxu1 %v6550_v58  ;;  %v95_v56 = vld [vmem:[%s9520_s1 + $0x280] sm:$0xff]  ;;  %v378_v38 = vld [vmem:[%s9520_s1 + $0xb58] sm:$0xff] }
  0x8e   :  { %6546 = vmatprep.subr.msk.bf16.mxu0 %vm6921_vm2, %v6544_v25  ;;  %3435 = vmatprep.mubr.f32.mxu0 %v6875_v3  ;;  %v359_v58 = vld [vmem:[%s9520_s1 + $0xac0] sm:$0xff]  ;;  %v228_v25 = vld [vmem:[%s9520_s1 + $0x6a8] sm:$0xff] }
  0x8f   :  { %6085 = vmatmul.mubr.msk.f32.vlgmr.msra.gmra.mrb[32].mxu1 %vm553_vm3, %v7851_v1  ;;  %v6597_v2 = vpack.c.bf16 %v492_v59, %v359_v58  ;;  %v238_v58 = vld [vmem:[%s9520_s1 + $0x6f8] sm:$0xff]  ;;  %v6644_v59 = vpack.c.bf16 %v503_v52, %v370_v51  ;;  %v249_v51 = vld [vmem:[%s9520_s1 + $0x750] sm:$0xff] }
  0x90   :  { %6553 = vmatpush1.bf16.msra.mxu1 %v6552_v4  ;;  %3506 = vmatprep.mubr.f32.mxu1 %v6875_v3  ;;  %v6602_v4 = vpack.c.bf16 %v228_v25, %v95_v56  ;;  %v6650_v56 = vpack.c.bf16 %v239_v50, %v106_v49  ;;  %v372_v25 = vld [vmem:[%s9520_s1 + $0xb28] sm:$0xff]  ;;  %v513_v49 = vld [vmem:[%s9520_s1 + $0xf90] sm:$0x7] }
  0x91   :  { %6549 = vmatpush1.bf16.msk.msra.mxu0 %vm6921_vm2, %v6547_v5  ;;  %6556 = vmatprep.subr.msk.bf16.mxu1 %vm6921_vm2, %v6554_v7  ;;  %v361_v5 = vld [vmem:[%s9520_s1 + $0xad0] sm:$0xff]  ;;  %v116_v50 = vld [vmem:[%s9520_s1 + $0x328] sm:$0xff] }
  0x92   :  { %6561 = vmatprep.subr.bf16.mxu0 %v6560_v10  ;;  %v97_v7 = vld [vmem:[%s9520_s1 + $0x290] sm:$0xff]  ;;  %v494_v10 = vld [vmem:[%s9520_s1 + $0xef8] sm:$0x7] }
  0x93   :  { %v6612_v16 = vpack.c.bf16 %v230_v8, %v97_v7  ;;  %v504_v7 = vld [vmem:[%s9520_s1 + $0xf48] sm:$0x7]  ;;  %v6660_v8 = vpack.c.bf16 %v241_v63, %v108_v62  ;;  %v515_v62 = vld [vmem:[%s9520_s1 + $0xfa0] sm:$0x7] }
  0x94   :  { %6088 = vmatmul.mubr.msk.f32.vlgmr.msra.gmra.mrb[34].mxu0 %vm553_vm3, %v7851_v1  ;;  %6559 = vmatpush1.bf16.msk.msra.mxu1 %vm6921_vm2, %v6557_v17  ;;  %v6607_v17 = vpack.c.bf16 %v494_v10, %v361_v5  ;;  %v6654_v5 = vpack.c.bf16 %v505_v61, %v372_v25  ;;  %v110_v10 = vld [vmem:[%s9520_s1 + $0x2f8] sm:$0xff]  ;;  %v251_v25 = vld [vmem:[%s9520_s1 + $0x760] sm:$0xff] }
  0x95   :  { %6563 = vmatpush1.bf16.msra.mxu0 %v6562_v18  ;;  %6571 = vmatprep.subr.bf16.mxu1 %v6570_v20  ;;  %v99_v18 = vld [vmem:[%s9520_s1 + $0x2a0] sm:$0xff]  ;;  %v382_v61 = vld [vmem:[%s9520_s1 + $0xb78] sm:$0xff] }
  0x96   :  { %6566 = vmatprep.subr.msk.bf16.mxu0 %vm6921_vm2, %v6564_v23  ;;  %3577 = vmatprep.mubr.f32.mxu0 %v6875_v3  ;;  %v363_v20 = vld [vmem:[%s9520_s1 + $0xae0] sm:$0xff]  ;;  %v232_v23 = vld [vmem:[%s9520_s1 + $0x6c8] sm:$0xff] }
  0x97   :  { %6091 = vmatmul.mubr.msk.f32.vlgmr.msra.gmra.mrb[34].mxu1 %vm553_vm3, %v7851_v1  ;;  %v6617_v29 = vpack.c.bf16 %v496_v21, %v363_v20  ;;  %v242_v20 = vld [vmem:[%s9520_s1 + $0x718] sm:$0xff]  ;;  %v6664_v21 = vpack.c.bf16 %v507_v14, %v374_v13  ;;  %v253_v13 = vld [vmem:[%s9520_s1 + $0x770] sm:$0xff] }
  0x98   :  { %6573 = vmatpush1.bf16.msra.mxu1 %v6572_v30  ;;  %3648 = vmatprep.mubr.f32.mxu1 %v6875_v3  ;;  %v6622_v30 = vpack.c.bf16 %v232_v23, %v99_v18  ;;  %v6670_v18 = vpack.c.bf16 %v243_v12, %v110_v10  ;;  %v376_v23 = vld [vmem:[%s9520_s1 + $0xb48] sm:$0xff]  ;;  %v517_v10 = vld [vmem:[%s9520_s1 + $0xfb0] sm:$0x7] }
  0x99   :  { %6569 = vmatpush1.bf16.msk.msra.mxu0 %vm6921_vm2, %v6567_v31  ;;  %6576 = vmatprep.subr.msk.bf16.mxu1 %vm6921_vm2, %v6574_v33  ;;  %v365_v31 = vld [vmem:[%s9520_s1 + $0xaf0] sm:$0xff]  ;;  %v120_v12 = vld [vmem:[%s9520_s1 + $0x348] sm:$0xff] }
  0x9a   :  { %6581 = vmatprep.subr.bf16.mxu0 %v6580_v36  ;;  %v101_v33 = vld [vmem:[%s9520_s1 + $0x2b0] sm:$0xff]  ;;  %v498_v36 = vld [vmem:[%s9520_s1 + $0xf18] sm:$0x7] }
  0x9b   :  { %v6632_v41 = vpack.c.bf16 %v234_v34, %v101_v33  ;;  %v508_v33 = vld [vmem:[%s9520_s1 + $0xf68] sm:$0x7]  ;;  %v6680_v34 = vpack.c.bf16 %v245_v27, %v112_v26  ;;  %v519_v26 = vld [vmem:[%s9520_s1 + $0xfc0] sm:$0x7] }
  0x9c   :  { %6094 = vmatmul.mubr.msk.f32.vlgmr.msra.gmra.mrb[36].mxu0 %vm553_vm3, %v7851_v1  ;;  %6579 = vmatpush1.bf16.msk.msra.mxu1 %vm6921_vm2, %v6577_v42  ;;  %v6627_v42 = vpack.c.bf16 %v498_v36, %v365_v31  ;;  %v6674_v31 = vpack.c.bf16 %v509_v24, %v376_v23  ;;  %v114_v36 = vld [vmem:[%s9520_s1 + $0x318] sm:$0xff]  ;;  %v255_v23 = vld [vmem:[%s9520_s1 + $0x780] sm:$0xff] }
  0x9d   :  { %6583 = vmatpush1.bf16.msra.mxu0 %v6582_v43  ;;  %6591 = vmatprep.subr.bf16.mxu1 %v6590_v45  ;;  %v103_v43 = vld [vmem:[%s9520_s1 + $0x2c0] sm:$0xff]  ;;  %v386_v24 = vld [vmem:[%s9520_s1 + $0xb98] sm:$0xff] }
  0x9e   :  { %6586 = vmatprep.subr.msk.bf16.mxu0 %vm6921_vm2, %v6584_v48  ;;  %3719 = vmatprep.mubr.f32.mxu0 %v6875_v3  ;;  %v367_v45 = vld [vmem:[%s9520_s1 + $0xb00] sm:$0xff]  ;;  %v236_v48 = vld [vmem:[%s9520_s1 + $0x6e8] sm:$0xff] }
  0x9f   :  { %6097 = vmatmul.mubr.msk.f32.vlgmr.msra.gmra.mrb[36].mxu1 %vm553_vm3, %v7851_v1  ;;  %v6637_v53 = vpack.c.bf16 %v500_v46, %v367_v45  ;;  %v246_v45 = vld [vmem:[%s9520_s1 + $0x738] sm:$0xff]  ;;  %v6684_v46 = vpack.c.bf16 %v511_v39, %v378_v38  ;;  %v257_v38 = vld [vmem:[%s9520_s1 + $0x790] sm:$0xff] }
  0xa0   :  { %6593 = vmatpush1.bf16.msra.mxu1 %v6592_v54  ;;  %3790 = vmatprep.mubr.f32.mxu1 %v6875_v3  ;;  %v6642_v54 = vpack.c.bf16 %v236_v48, %v103_v43  ;;  %v6690_v43 = vpack.c.bf16 %v247_v37, %v114_v36  ;;  %v380_v48 = vld [vmem:[%s9520_s1 + $0xb68] sm:$0xff]  ;;  %v521_v36 = vld [vmem:[%s9520_s1 + $0xfd0] sm:$0x7] }
  0xa1   :  { %6589 = vmatpush1.bf16.msk.msra.mxu0 %vm6921_vm2, %v6587_v55  ;;  %6596 = vmatprep.subr.msk.bf16.mxu1 %vm6921_vm2, %v6594_v57  ;;  %v369_v55 = vld [vmem:[%s9520_s1 + $0xb10] sm:$0xff]  ;;  %v124_v37 = vld [vmem:[%s9520_s1 + $0x368] sm:$0xff] }
  0xa2   :  { %6601 = vmatprep.subr.bf16.mxu0 %v6600_v60  ;;  %v105_v57 = vld [vmem:[%s9520_s1 + $0x2d0] sm:$0xff]  ;;  %v502_v60 = vld [vmem:[%s9520_s1 + $0xf38] sm:$0x7] }
  0xa3   :  { %v6652_v0 = vpack.c.bf16 %v238_v58, %v105_v57  ;;  %v512_v57 = vld [vmem:[%s9520_s1 + $0xf88] sm:$0x7]  ;;  %v6700_v58 = vpack.c.bf16 %v249_v51, %v116_v50  ;;  %v523_v50 = vld [vmem:[%s9520_s1 + $0xfe0] sm:$0x7] }
  0xa4   :  { %6100 = vmatmul.mubr.msk.f32.vlgmr.msra.gmra.mrb[38].mxu0 %vm553_vm3, %v7851_v1  ;;  %6599 = vmatpush1.bf16.msk.msra.mxu1 %vm6921_vm2, %v6597_v2  ;;  %v6647_v2 = vpack.c.bf16 %v502_v60, %v369_v55  ;;  %v6694_v55 = vpack.c.bf16 %v513_v49, %v380_v48  ;;  %v118_v60 = vld [vmem:[%s9520_s1 + $0x338] sm:$0xff]  ;;  %v259_v48 = vld [vmem:[%s9520_s1 + $0x7a0] sm:$0xff] }
  0xa5   :  { %6603 = vmatpush1.bf16.msra.mxu0 %v6602_v4  ;;  %6611 = vmatprep.subr.bf16.mxu1 %v6610_v6  ;;  %v107_v4 = vld [vmem:[%s9520_s1 + $0x2e0] sm:$0xff]  ;;  %v390_v49 = vld [vmem:[%s9520_s1 + $0xbb8] sm:$0xff] }
  0xa6   :  { %6606 = vmatprep.subr.msk.bf16.mxu0 %vm6921_vm2, %v6604_v9  ;;  %3861 = vmatprep.mubr.f32.mxu0 %v6875_v3  ;;  %v371_v6 = vld [vmem:[%s9520_s1 + $0xb20] sm:$0xff]  ;;  %v240_v9 = vld [vmem:[%s9520_s1 + $0x708] sm:$0xff] }
  0xa7   :  { %6103 = vmatmul.mubr.msk.f32.vlgmr.msra.gmra.mrb[38].mxu1 %vm553_vm3, %v7851_v1  ;;  %v6657_v15 = vpack.c.bf16 %v504_v7, %v371_v6  ;;  %v250_v6 = vld [vmem:[%s9520_s1 + $0x758] sm:$0xff]  ;;  %v6704_v7 = vpack.c.bf16 %v515_v62, %v382_v61  ;;  %v261_v61 = vld [vmem:[%s9520_s1 + $0x7b0] sm:$0xff] }
  0xa8   :  { %6613 = vmatpush1.bf16.msra.mxu1 %v6612_v16  ;;  %3932 = vmatprep.mubr.f32.mxu1 %v6875_v3  ;;  %v6662_v16 = vpack.c.bf16 %v240_v9, %v107_v4  ;;  %v6710_v4 = vpack.c.bf16 %v251_v25, %v118_v60  ;;  %v384_v9 = vld [vmem:[%s9520_s1 + $0xb88] sm:$0xff]  ;;  %v525_v60 = vld [vmem:[%s9520_s1 + $0xff0] sm:$0x7] }
  0xa9   :  { %6609 = vmatpush1.bf16.msk.msra.mxu0 %vm6921_vm2, %v6607_v17  ;;  %6616 = vmatprep.subr.msk.bf16.mxu1 %vm6921_vm2, %v6614_v19  ;;  %v373_v17 = vld [vmem:[%s9520_s1 + $0xb30] sm:$0xff]  ;;  %v128_v25 = vld [vmem:[%s9520_s1 + $0x388] sm:$0xff] }
  0xaa   :  { %6621 = vmatprep.subr.bf16.mxu0 %v6620_v22  ;;  %v109_v19 = vld [vmem:[%s9520_s1 + $0x2f0] sm:$0xff]  ;;  %v506_v22 = vld [vmem:[%s9520_s1 + $0xf58] sm:$0x7] }
  0xab   :  { %v6672_v28 = vpack.c.bf16 %v242_v20, %v109_v19  ;;  %v516_v19 = vld [vmem:[%s9520_s1 + $0xfa8] sm:$0x7]  ;;  %v6720_v20 = vpack.c.bf16 %v253_v13, %v120_v12  ;;  %v394_v13 = vld [vmem:[%s9520_s1 + $0xbd8] sm:$0xff] }
  0xac   :  { %6106 = vmatmul.mubr.msk.f32.vlgmr.msra.gmra.mrb[40].mxu0 %vm553_vm3, %v7851_v1  ;;  %6619 = vmatpush1.bf16.msk.msra.mxu1 %vm6921_vm2, %v6617_v29  ;;  %v6667_v29 = vpack.c.bf16 %v506_v22, %v373_v17  ;;  %v6714_v17 = vpack.c.bf16 %v517_v10, %v384_v9  ;;  %v122_v22 = vld [vmem:[%s9520_s1 + $0x358] sm:$0xff]  ;;  %v263_v10 = vld [vmem:[%s9520_s1 + $0x7c0] sm:$0xff] }
  0xad   :  { %6623 = vmatpush1.bf16.msra.mxu0 %v6622_v30  ;;  %6631 = vmatprep.subr.bf16.mxu1 %v6630_v32  ;;  %v111_v30 = vld [vmem:[%s9520_s1 + $0x300] sm:$0xff]  ;;  %v130_v9 = vld [vmem:[%s9520_s1 + $0x398] sm:$0xff] }
  0xae   :  { %6626 = vmatprep.subr.msk.bf16.mxu0 %vm6921_vm2, %v6624_v35  ;;  %4003 = vmatprep.mubr.f32.mxu0 %v6875_v3  ;;  %v375_v32 = vld [vmem:[%s9520_s1 + $0xb40] sm:$0xff]  ;;  %v244_v35 = vld [vmem:[%s9520_s1 + $0x728] sm:$0xff] }
  0xaf   :  { %6109 = vmatmul.mubr.msk.f32.vlgmr.msra.gmra.mrb[40].mxu1 %vm553_vm3, %v7851_v1  ;;  %v6677_v40 = vpack.c.bf16 %v508_v33, %v375_v32  ;;  %v254_v32 = vld [vmem:[%s9520_s1 + $0x778] sm:$0xff]  ;;  %v6724_v33 = vpack.c.bf16 %v519_v26, %v386_v24 }
  0xb0   :  { %6633 = vmatpush1.bf16.msra.mxu1 %v6632_v41  ;;  %4074 = vmatprep.mubr.f32.mxu1 %v6875_v3  ;;  %v6682_v41 = vpack.c.bf16 %v244_v35, %v111_v30  ;;  %v6730_v30 = vpack.c.bf16 %v255_v23, %v122_v22  ;;  %v388_v35 = vld [vmem:[%s9520_s1 + $0xba8] sm:$0xff]  ;;  %v129_v22 = vld [vmem:[%s9520_s1 + $0x390] sm:$0xff]  ;;  %v262_v23 = vld [vmem:[%s9520_s1 + $0x7b8] sm:$0xff] }
  0xb1   :  { %6629 = vmatpush1.bf16.msk.msra.mxu0 %vm6921_vm2, %v6627_v42  ;;  %6636 = vmatprep.subr.msk.bf16.mxu1 %vm6921_vm2, %v6634_v44  ;;  %v377_v42 = vld [vmem:[%s9520_s1 + $0xb50] sm:$0xff] }
  0xb2   :  { %6641 = vmatprep.subr.bf16.mxu0 %v6640_v47  ;;  %v113_v44 = vld [vmem:[%s9520_s1 + $0x310] sm:$0xff]  ;;  %v510_v47 = vld [vmem:[%s9520_s1 + $0xf78] sm:$0x7] }
  0xb3   :  { %v6692_v52 = vpack.c.bf16 %v246_v45, %v113_v44  ;;  %v520_v44 = vld [vmem:[%s9520_s1 + $0xfc8] sm:$0x7]  ;;  %v6740_v45 = vpack.c.bf16 %v257_v38, %v124_v37  ;;  %v6772_v37 = vpack.c.bf16 %v262_v23, %v129_v22  ;;  %v138_v22 = vld [vmem:[%s9520_s1 + $0x3d8] sm:$0xff]  ;;  %v271_v23 = vld [vmem:[%s9520_s1 + $0x800] sm:$0xff] }
  0xb4   :  { %6112 = vmatmul.mubr.msk.f32.vlgmr.msra.gmra.mrb[42].mxu0 %vm553_vm3, %v7851_v1  ;;  %6639 = vmatpush1.bf16.msk.msra.mxu1 %vm6921_vm2, %v6637_v53  ;;  %v6687_v53 = vpack.c.bf16 %v510_v47, %v377_v42  ;;  %v6734_v42 = vpack.c.bf16 %v521_v36, %v388_v35  ;;  %v126_v47 = vld [vmem:[%s9520_s1 + $0x378] sm:$0xff]  ;;  %v265_v35 = vld [vmem:[%s9520_s1 + $0x7d0] sm:$0xff] }
  0xb5   :  { %6643 = vmatpush1.bf16.msra.mxu0 %v6642_v54  ;;  %6651 = vmatprep.subr.bf16.mxu1 %v6650_v56  ;;  %v115_v54 = vld [vmem:[%s9520_s1 + $0x320] sm:$0xff] }
  0xb6   :  { %6646 = vmatprep.subr.msk.bf16.mxu0 %vm6921_vm2, %v6644_v59  ;;  %4145 = vmatprep.mubr.f32.mxu0 %v6875_v3  ;;  %v379_v56 = vld [vmem:[%s9520_s1 + $0xb60] sm:$0xff]  ;;  %v248_v59 = vld [vmem:[%s9520_s1 + $0x748] sm:$0xff] }
  0xb7   :  { %6115 = vmatmul.mubr.msk.f32.vlgmr.msra.gmra.mrb[42].mxu1 %vm553_vm3, %v7851_v1  ;;  %v6697_v63 = vpack.c.bf16 %v512_v57, %v379_v56  ;;  %v258_v56 = vld [vmem:[%s9520_s1 + $0x798] sm:$0xff]  ;;  %v6744_v57 = vpack.c.bf16 %v523_v50, %v390_v49  ;;  %v8739_v49 = vld [vmem:[%s9521_s0] sm:$0xff] }
  0xb8   :  { %6653 = vmatpush1.bf16.msra.mxu1 %v6652_v0  ;;  %4216 = vmatprep.mubr.f32.mxu1 %v6875_v3  ;;  %v6702_v0 = vpack.c.bf16 %v248_v59, %v115_v54  ;;  %v6750_v54 = vpack.c.bf16 %v259_v48, %v126_v47  ;;  %v392_v59 = vld [vmem:[%s9520_s1 + $0xbc8] sm:$0xff]  ;;  %v267_v47 = vld [vmem:[%s9520_s1 + $0x7e0] sm:$0xff]  ;;  %v398_v50 = vld [vmem:[%s9520_s1 + $0xbf8] sm:$0xff] }
  0xb9   :  { %6649 = vmatpush1.bf16.msk.msra.mxu0 %vm6921_vm2, %v6647_v2  ;;  %6656 = vmatprep.subr.msk.bf16.mxu1 %vm6921_vm2, %v6654_v5  ;;  %v381_v2 = vld [vmem:[%s9520_s1 + $0xb70] sm:$0xff] }
  0xba   :  { %6661 = vmatprep.subr.bf16.mxu0 %v6660_v8  ;;  %v117_v5 = vld [vmem:[%s9520_s1 + $0x330] sm:$0xff]  ;;  %v514_v8 = vld [vmem:[%s9520_s1 + $0xf98] sm:$0x7] }
  0xbb   :  { %v6712_v14 = vpack.c.bf16 %v250_v6, %v117_v5  ;;  %v391_v5 = vld [vmem:[%s9520_s1 + $0xbc0] sm:$0xff]  ;;  %v524_v6 = vld [vmem:[%s9520_s1 + $0xfe8] sm:$0x7] }
  0xbc   :  { %6118 = vmatmul.mubr.msk.f32.vlgmr.msra.gmra.mrb[44].mxu0 %vm553_vm3, %v7851_v1  ;;  %6659 = vmatpush1.bf16.msk.msra.mxu1 %vm6921_vm2, %v6657_v15  ;;  %v6707_v15 = vpack.c.bf16 %v514_v8, %v381_v2  ;;  %v127_v2 = vld [vmem:[%s9520_s1 + $0x380] sm:$0xff]  ;;  %v260_v8 = vld [vmem:[%s9520_s1 + $0x7a8] sm:$0xff] }
  0xbd   :  { %6663 = vmatpush1.bf16.msra.mxu0 %v6662_v16  ;;  %6671 = vmatprep.subr.bf16.mxu1 %v6670_v18  ;;  %v119_v16 = vld [vmem:[%s9520_s1 + $0x340] sm:$0xff] }
  0xbe   :  { %6666 = vmatprep.subr.msk.bf16.mxu0 %vm6921_vm2, %v6664_v21  ;;  %4287 = vmatprep.mubr.f32.mxu0 %v6875_v3  ;;  %v383_v18 = vld [vmem:[%s9520_s1 + $0xb80] sm:$0xff]  ;;  %v252_v21 = vld [vmem:[%s9520_s1 + $0x768] sm:$0xff] }
  0xbf   :  { %6121 = vmatmul.mubr.msk.f32.vlgmr.msra.gmra.mrb[44].mxu1 %vm553_vm3, %v7851_v1  ;;  %v6717_v27 = vpack.c.bf16 %v516_v19, %v383_v18  ;;  %v6762_v19 = vpack.c.bf16 %v260_v8, %v127_v2  ;;  %v400_v2 = vld [vmem:[%s9520_s1 + $0xc08] sm:$0xff] }
  0xc0   :  { %6673 = vmatpush1.bf16.msra.mxu1 %v6672_v28  ;;  %4358 = vmatprep.mubr.f32.mxu1 %v6875_v3  ;;  %v6722_v28 = vpack.c.bf16 %v252_v21, %v119_v16  ;;  %v6770_v21 = vpack.c.bf16 %v263_v10, %v130_v9  ;;  %v136_v8 = vld [vmem:[%s9520_s1 + $0x3c8] sm:$0xff]  ;;  %v269_v9 = vld [vmem:[%s9520_s1 + $0x7f0] sm:$0xff] }
  0xc1   :  { %6669 = vmatpush1.bf16.msk.msra.mxu0 %vm6921_vm2, %v6667_v29  ;;  %6676 = vmatprep.subr.msk.bf16.mxu1 %vm6921_vm2, %v6674_v31  ;;  %v385_v29 = vld [vmem:[%s9520_s1 + $0xb90] sm:$0xff] }
  0xc2   :  { %6681 = vmatprep.subr.bf16.mxu0 %v6680_v34  ;;  %v121_v31 = vld [vmem:[%s9520_s1 + $0x350] sm:$0xff]  ;;  %v518_v34 = vld [vmem:[%s9520_s1 + $0xfb8] sm:$0x7] }
  0xc3   :  { %v6732_v39 = vpack.c.bf16 %v254_v32, %v121_v31 }
  0xc4   :  { %6124 = vmatmul.mubr.msk.f32.vlgmr.msra.gmra.mrb[46].mxu0 %vm553_vm3, %v7851_v1  ;;  %6679 = vmatpush1.bf16.msk.msra.mxu1 %vm6921_vm2, %v6677_v40  ;;  %v6727_v40 = vpack.c.bf16 %v518_v34, %v385_v29  ;;  %v396_v29 = vld [vmem:[%s9520_s1 + $0xbe8] sm:$0xff] }
  0xc5   :  { %6683 = vmatpush1.bf16.msra.mxu0 %v6682_v41  ;;  %6691 = vmatprep.subr.bf16.mxu1 %v6690_v43  ;;  %v123_v41 = vld [vmem:[%s9520_s1 + $0x360] sm:$0xff]  ;;  %v132_v34 = vld [vmem:[%s9520_s1 + $0x3a8] sm:$0xff] }
  0xc6   :  { %6686 = vmatprep.subr.msk.bf16.mxu0 %vm6921_vm2, %v6684_v46  ;;  %4429 = vmatprep.mubr.f32.mxu0 %v6875_v3  ;;  %v387_v43 = vld [vmem:[%s9520_s1 + $0xba0] sm:$0xff]  ;;  %v256_v46 = vld [vmem:[%s9520_s1 + $0x788] sm:$0xff] }
  0xc7   :  { %6127 = vmatmul.mubr.msk.f32.vlgmr.msra.gmra.mrb[46].mxu1 %vm553_vm3, %v7851_v1  ;;  %v6737_v51 = vpack.c.bf16 %v520_v44, %v387_v43  ;;  %v6780_v44 = vpack.c.bf16 %v265_v35, %v132_v34  ;;  %v6810_v34 = vpack.c.bf16 %v271_v23, %v138_v22  ;;  %v137_v35 = vld [vmem:[%s9520_s1 + $0x3d0] sm:$0xff] }
  0xc8   :  { %6693 = vmatpush1.bf16.msra.mxu1 %v6692_v52  ;;  %4500 = vmatprep.mubr.f32.mxu1 %v6875_v3  ;;  %v6742_v52 = vpack.c.bf16 %v256_v46, %v123_v41  ;;  %v134_v46 = vld [vmem:[%s9520_s1 + $0x3b8] sm:$0xff]  ;;  %v277_v22 = vld [vmem:[%s9520_s1 + $0x830] sm:$0xff] }
  0xc9   :  { %6689 = vmatpush1.bf16.msk.msra.mxu0 %vm6921_vm2, %v6687_v53  ;;  %6696 = vmatprep.subr.msk.bf16.mxu1 %vm6921_vm2, %v6694_v55  ;;  %v389_v53 = vld [vmem:[%s9520_s1 + $0xbb0] sm:$0xff] }
  0xca   :  { %6701 = vmatprep.subr.bf16.mxu0 %v6700_v58  ;;  %v125_v55 = vld [vmem:[%s9520_s1 + $0x370] sm:$0xff]  ;;  %v522_v58 = vld [vmem:[%s9520_s1 + $0xfd8] sm:$0x7] }
  0xcb   :  { %v6752_v62 = vpack.c.bf16 %v258_v56, %v125_v55 }
  0xcc   :  { %6130 = vmatmul.mubr.msk.f32.vlgmr.msra.gmra.mrb[48].mxu0 %vm553_vm3, %v7851_v1  ;;  %6699 = vmatpush1.bf16.msk.msra.mxu1 %vm6921_vm2, %v6697_v63  ;;  %v8638_v63 = vpop.permute.xlu0 %550 }
  0xcd   :  { %6703 = vmatpush1.bf16.msra.mxu0 %v6702_v0  ;;  %6711 = vmatprep.subr.bf16.mxu1 %v6710_v4  ;;  %v6747_v0 = vpack.c.bf16 %v522_v58, %v389_v53  ;;  %v6754_v4 = vpack.c.bf16 %v525_v60, %v392_v59  ;;  %v6790_v58 = vpack.c.bf16 %v267_v47, %v134_v46  ;;  %v133_v59 = vld [vmem:[%s9520_s1 + $0x3b0] sm:$0xff]  ;;  %v266_v60 = vld [vmem:[%s9520_s1 + $0x7d8] sm:$0xff] }
  0xce   :  { %6706 = vmatprep.subr.msk.bf16.mxu0 %vm6921_vm2, %v6704_v7  ;;  %4571 = vmatprep.mubr.f32.mxu0 %v6875_v3  ;;  %v6760_v7 = vpack.c.bf16 %v261_v61, %v128_v25  ;;  %v273_v46 = vld [vmem:[%s9520_s1 + $0x810] sm:$0xff] }
  0xcf   :  { %6133 = vmatmul.mubr.msk.f32.vlgmr.msra.gmra.mrb[48].mxu1 %vm553_vm3, %v7851_v1 }
  0xd0   :  { %6713 = vmatpush1.bf16.msra.mxu1 %v6712_v14  ;;  %4642 = vmatprep.mubr.f32.mxu1 %v6875_v3  ;;  %v527_v14 = vld [vmem:[%s9520_s1 + $0x1000] sm:$0x7] }
  0xd1   :  { %6709 = vmatpush1.bf16.msk.msra.mxu0 %vm6921_vm2, %v6707_v15  ;;  %6716 = vmatprep.subr.msk.bf16.mxu1 %vm6921_vm2, %v6714_v17  ;;  %v6757_v17 = vpack.c.bf16 %v524_v6, %v391_v5 }
  0xd2   :  { %6721 = vmatprep.subr.bf16.mxu0 %v6720_v20  ;;  %v526_v20 = vld [vmem:[%s9520_s1 + $0xff8] sm:$0x7] }
  0xd4   :  { %6136 = vmatmul.mubr.msk.f32.vlgmr.msra.gmra.mrb[50].mxu0 %vm553_vm3, %v7851_v1  ;;  %6719 = vmatpush1.bf16.msk.msra.mxu1 %vm6921_vm2, %v6717_v27  ;;  %v6764_v27 = vpack.c.bf16 %v527_v14, %v394_v13 }
  0xd5   :  { %6723 = vmatpush1.bf16.msra.mxu0 %v6722_v28  ;;  %6731 = vmatprep.subr.bf16.mxu1 %v6730_v30  ;;  %v393_v28 = vld [vmem:[%s9520_s1 + $0xbd0] sm:$0xff] }
  0xd6   :  { %6726 = vmatprep.subr.msk.bf16.mxu0 %vm6921_vm2, %v6724_v33  ;;  %4713 = vmatprep.mubr.f32.mxu0 %v6875_v3  ;;  %v529_v30 = vld [vmem:[%s9520_s1 + $0x1010] sm:$0x7] }
  0xd7   :  { %6139 = vmatmul.mubr.msk.f32.vlgmr.msra.gmra.mrb[50].mxu1 %vm553_vm3, %v7851_v1  ;;  %v6774_v41 = vpack.c.bf16 %v529_v30, %v396_v29 }
  0xd8   :  { %6733 = vmatpush1.bf16.msra.mxu1 %v6732_v39  ;;  %4784 = vmatprep.mubr.f32.mxu1 %v6875_v3  ;;  %v6767_v39 = vpack.c.bf16 %v526_v20, %v393_v28  ;;  %v6800_v20 = vpack.c.bf16 %v269_v9, %v136_v8  ;;  %v141_v9 = vld [vmem:[%s9520_s1 + $0x3f0] sm:$0xff] }
  0xd9   :  { %6729 = vmatpush1.bf16.msk.msra.mxu0 %vm6921_vm2, %v6727_v40  ;;  %6736 = vmatprep.subr.msk.bf16.mxu1 %vm6921_vm2, %v6734_v42  ;;  %v131_v40 = vld [vmem:[%s9520_s1 + $0x3a0] sm:$0xff]  ;;  %v528_v42 = vld [vmem:[%s9520_s1 + $0x1008] sm:$0x7] }
  0xda   :  { %6741 = vmatprep.subr.bf16.mxu0 %v6740_v45  ;;  %v264_v45 = vld [vmem:[%s9520_s1 + $0x7c8] sm:$0xff] }
  0xdb   :  { %v6782_v56 = vpack.c.bf16 %v264_v45, %v131_v40  ;;  %v401_v40 = vld [vmem:[%s9520_s1 + $0xc10] sm:$0xff]  ;;  %v140_v45 = vld [vmem:[%s9520_s1 + $0x3e8] sm:$0xff] }
  0xdc   :  { %6142 = vmatmul.mubr.msk.f32.vlgmr.msra.gmra.mrb[52].mxu0 %vm553_vm3, %v7851_v1  ;;  %6739 = vmatpush1.bf16.msk.msra.mxu1 %vm6921_vm2, %v6737_v51  ;;  %v531_v51 = vld [vmem:[%s9520_s1 + $0x1020] sm:$0x7] }
  0xdd   :  { %6743 = vmatpush1.bf16.msra.mxu0 %v6742_v52  ;;  %6751 = vmatprep.subr.bf16.mxu1 %v6750_v54 }
  0xde   :  { %6746 = vmatprep.subr.msk.bf16.mxu0 %vm6921_vm2, %v6744_v57  ;;  %4855 = vmatprep.mubr.f32.mxu0 %v6875_v3  ;;  %v530_v57 = vld [vmem:[%s9520_s1 + $0x1018] sm:$0x7] }
  0xdf   :  { %v1023_v12 = vpop.f32.mrb[0].mxu0  ;;  %6145 = vmatmul.mubr.msk.f32.vlgmr.msra.gmra.mrb[52].mxu1 %vm553_vm3, %v7851_v1 }
  0xe0   :  { %v1024_v15 = vadd.f32 %v1023_v12, %v8638_v63  ;;  %v1025_v16 = vpop.f32.mrb[1].mxu0  ;;  %6753 = vmatpush1.bf16.msra.mxu1 %v6752_v62  ;;  %4926 = vmatprep.mubr.f32.mxu1 %v6875_v3  ;;  %v6784_v62 = vpack.c.bf16 %v531_v51, %v398_v50  ;;  %v6792_v12 = vpack.c.bf16 %v266_v60, %v133_v59  ;;  %v142_v59 = vld [vmem:[%s9520_s1 + $0x3f8] sm:$0xff]  ;;  %v275_v60 = vld [vmem:[%s9520_s1 + $0x820] sm:$0xff] }
  0xe1   :  { %v1026_v18 = vadd.f32 %v1025_v16, %v8638_v63  ;;  %6749 = vmatpush1.bf16.msk.msra.mxu0 %vm6921_vm2, %v6747_v0  ;;  %6756 = vmatprep.subr.msk.bf16.mxu1 %vm6921_vm2, %v6754_v4  ;;  %v397_v0 = vld [vmem:[%s9520_s1 + $0xbf0] sm:$0xff]  ;;  %v6830_v8 = vpack.c.bf16 %v275_v60, %v142_v59 }
  0xe2   :  { %v5713_v24 = vmax.f32 %v1024_v15, 0.0  ;;  %6761 = vmatprep.subr.bf16.mxu0 %v6760_v7  ;;  %v1094_v26 = vpop.f32.mrb[0].mxu1  ;;  %v533_v4 = vld [vmem:[%s9520_s1 + $0x1030] sm:$0x7]  ;;  %v6787_v14 = vpack.c.bf16 %v530_v57, %v397_v0  ;;  %v135_v15 = vld [vmem:[%s9520_s1 + $0x3c0] sm:$0xff]  ;;  %v6820_v57 = vpack.c.bf16 %v273_v46, %v140_v45 }
  0xe3   :  { %v5714_v31 = vmax.f32 %v1026_v18, 0.0  ;;  %v1095_v32 = vadd.f32 %v1094_v26, %v8638_v63  ;;  %v1096_v33 = vpop.f32.mrb[1].mxu1  ;;  %v6794_v16 = vpack.c.bf16 %v533_v4, %v400_v2  ;;  %v532_v18 = vld [vmem:[%s9520_s1 + $0x1028] sm:$0x7]  ;;  %v402_v26 = vld [vmem:[%s9520_s1 + $0xc18] sm:$0xff]  ;;  %v145_v46 = vld [vmem:[%s9520_s1 + $0x410] sm:$0xff] }
  0xe4   :  { %5846 = vst [vmem:[%s9523_s3] sm:$0xff] %v5713_v24  ;;  %6148 = vmatmul.mubr.msk.f32.vlgmr.msra.gmra.mrb[54].mxu0 %vm553_vm3, %v7851_v1  ;;  %v1097_v36 = vadd.f32 %v1096_v33, %v8638_v63  ;;  %6759 = vmatpush1.bf16.msk.msra.mxu1 %vm6921_vm2, %v6757_v17  ;;  %v395_v1 = vld [vmem:[%s9520_s1 + $0xbe0] sm:$0xff]  ;;  %v534_v33 = vld [vmem:[%s9520_s1 + $0x1038] sm:$0x7] }
  0xe5   :  { %5847 = vst [vmem:[%s9523_s3 + $0x8] sm:$0xff] %v5714_v31  ;;  %6763 = vmatpush1.bf16.msra.mxu0 %v6762_v19  ;;  %v5715_v38 = vmax.f32 %v1095_v32, 0.0  ;;  %6771 = vmatprep.subr.bf16.mxu1 %v6770_v21  ;;  %v6777_v54 = vpack.c.bf16 %v528_v42, %v395_v1  ;;  %v399_v17 = vld [vmem:[%s9520_s1 + $0xc00] sm:$0xff]  ;;  %v268_v21 = vld [vmem:[%s9520_s1 + $0x7e8] sm:$0xff]  ;;  %v537_v1 = vld [vmem:[%s9520_s1 + $0x1050] sm:$0x7]  ;;  %v6807_v51 = vpack.c.bf16 %v534_v33, %v401_v40 }
  0xe6   :  { %v5716_v43 = vmax.f32 %v1097_v36, 0.0  ;;  %6766 = vmatprep.subr.msk.bf16.mxu0 %vm6921_vm2, %v6764_v27  ;;  %4997 = vmatprep.mubr.f32.mxu0 %v6875_v3  ;;  %v535_v27 = vld [vmem:[%s9520_s1 + $0x1040] sm:$0x7]  ;;  %v6797_v30 = vpack.c.bf16 %v532_v18, %v399_v17  ;;  %v6802_v32 = vpack.c.bf16 %v268_v21, %v135_v15  ;;  %v270_v36 = vld [vmem:[%s9520_s1 + $0x7f8] sm:$0xff]  ;;  %v405_v15 = vld [vmem:[%s9520_s1 + $0xc30] sm:$0xff] }
  0xe7   :  { %5848 = vst [vmem:[%s9523_s3 + $0x10] sm:$0xff] %v5715_v38  ;;  %v1165_v48 = vpop.f32.mrb[2].mxu0  ;;  %6151 = vmatmul.mubr.msk.f32.vlgmr.msra.gmra.mrb[54].mxu1 %vm553_vm3, %v8739_v49  ;;  %v541_v17 = vld [vmem:[%s9520_s1 + $0x1070] sm:$0x7]  ;;  %v144_v21 = vld [vmem:[%s9520_s1 + $0x408] sm:$0xff] }
  0xe8   :  { %5849 = vst [vmem:[%s9523_s3 + $0x18] sm:$0xff] %v5716_v43  ;;  %v1166_v52 = vadd.f32 %v1165_v48, %v8638_v63  ;;  %v1167_v53 = vpop.f32.mrb[3].mxu0  ;;  %6773 = vmatpush1.bf16.msra.mxu1 %v6772_v37  ;;  %5068 = vmatprep.mubr.f32.mxu1 %v6875_v3  ;;  %v6812_v48 = vpack.c.bf16 %v270_v36, %v137_v35  ;;  %v146_v35 = vld [vmem:[%s9520_s1 + $0x418] sm:$0xff]  ;;  %v279_v36 = vld [vmem:[%s9520_s1 + $0x840] sm:$0xff] }
  0xe9   :  { %v1168_v55 = vadd.f32 %v1167_v53, %v8638_v63  ;;  %6769 = vmatpush1.bf16.msk.msra.mxu0 %vm6921_vm2, %v6767_v39  ;;  %6776 = vmatprep.subr.msk.bf16.mxu1 %vm6921_vm2, %v6774_v41  ;;  %v6804_v39 = vpack.c.bf16 %v535_v27, %v402_v26  ;;  %v404_v41 = vld [vmem:[%s9520_s1 + $0xc28] sm:$0xff]  ;;  %v6840_v33 = vpack.c.bf16 %v277_v22, %v144_v21 }
  0xea   :  { %v5717_v25 = vmax.f32 %v1166_v52, 0.0  ;;  %6781 = vmatprep.subr.bf16.mxu0 %v6780_v44  ;;  %v1236_v61 = vpop.f32.mrb[2].mxu1  ;;  %v139_v52 = vld [vmem:[%s9520_s1 + $0x3e0] sm:$0xff]  ;;  %v6814_v53 = vpack.c.bf16 %v537_v1, %v404_v41  ;;  %v6850_v45 = vpack.c.bf16 %v279_v36, %v146_v35 }
  0xeb   :  { %v5718_v5 = vmax.f32 %v1168_v55, 0.0  ;;  %v1237_v6 = vadd.f32 %v1236_v61, %v8638_v63  ;;  %v1238_v7 = vpop.f32.mrb[3].mxu1  ;;  %v536_v55 = vld [vmem:[%s9520_s1 + $0x1048] sm:$0x7]  ;;  %v406_v61 = vld [vmem:[%s9520_s1 + $0xc38] sm:$0xff] }
  0xec   :  { %5850 = vst [vmem:[%s9523_s3 + $0x20] sm:$0xff] %v5717_v25  ;;  %6154 = vmatmul.mubr.msk.f32.vlgmr.msra.gmra.mrb[56].mxu0 %vm553_vm3, %v8739_v49  ;;  %v1239_v10 = vadd.f32 %v1238_v7, %v8638_v63  ;;  %6779 = vmatpush1.bf16.msk.msra.mxu1 %vm6921_vm2, %v6777_v54  ;;  %v403_v54 = vld [vmem:[%s9520_s1 + $0xc20] sm:$0xff]  ;;  %v538_v7 = vld [vmem:[%s9520_s1 + $0x1058] sm:$0x7] }
  0xed   :  { %5851 = vst [vmem:[%s9523_s3 + $0x28] sm:$0xff] %v5718_v5  ;;  %6783 = vmatpush1.bf16.msra.mxu0 %v6782_v56  ;;  %v5719_v13 = vmax.f32 %v1237_v6, 0.0  ;;  %6791 = vmatprep.subr.bf16.mxu1 %v6790_v58  ;;  %v272_v58 = vld [vmem:[%s9520_s1 + $0x808] sm:$0xff]  ;;  %v6817_v4 = vpack.c.bf16 %v536_v55, %v403_v54  ;;  %v6827_v27 = vpack.c.bf16 %v538_v7, %v405_v15  ;;  %v545_v54 = vld [vmem:[%s9520_s1 + $0x1090] sm:$0x7] }
  0xee   :  { %v5720_v19 = vmax.f32 %v1239_v10, 0.0  ;;  %6786 = vmatprep.subr.msk.bf16.mxu0 %vm6921_vm2, %v6784_v62  ;;  %5139 = vmatprep.mubr.f32.mxu0 %v6875_v3  ;;  %v539_v62 = vld [vmem:[%s9520_s1 + $0x1060] sm:$0x7]  ;;  %v6822_v6 = vpack.c.bf16 %v272_v58, %v139_v52  ;;  %v274_v10 = vld [vmem:[%s9520_s1 + $0x818] sm:$0xff]  ;;  %v409_v52 = vld [vmem:[%s9520_s1 + $0xc50] sm:$0xff] }
  0xef   :  { %5852 = vst [vmem:[%s9523_s3 + $0x30] sm:$0xff] %v5719_v13  ;;  %v1307_v24 = vpop.f32.mrb[4].mxu0  ;;  %6157 = vmatmul.mubr.msk.f32.vlgmr.msra.gmra.mrb[56].mxu1 %vm553_vm3, %v8739_v49 }
  0xf0   :  { %5853 = vst [vmem:[%s9523_s3 + $0x38] sm:$0xff] %v5720_v19  ;;  %v1308_v28 = vadd.f32 %v1307_v24, %v8638_v63  ;;  %v1309_v29 = vpop.f32.mrb[5].mxu0  ;;  %6793 = vmatpush1.bf16.msra.mxu1 %v6792_v12  ;;  %5210 = vmatprep.mubr.f32.mxu1 %v6875_v3  ;;  %v6832_v24 = vpack.c.bf16 %v274_v10, %v141_v9 }
  0xf1   :  { %v1310_v31 = vadd.f32 %v1309_v29, %v8638_v63  ;;  %6789 = vmatpush1.bf16.msk.msra.mxu0 %vm6921_vm2, %v6787_v14  ;;  %6796 = vmatprep.subr.msk.bf16.mxu1 %vm6921_vm2, %v6794_v16  ;;  %v6824_v14 = vpack.c.bf16 %v539_v62, %v406_v61  ;;  %v408_v16 = vld [vmem:[%s9520_s1 + $0xc48] sm:$0xff]  ;;  %v411_v62 = vld [vmem:[%s9520_s1 + $0xc60] sm:$0xff] }
  0xf2   :  { %v5721_v37 = vmax.f32 %v1308_v28, 0.0  ;;  %6801 = vmatprep.subr.bf16.mxu0 %v6800_v20  ;;  %v1378_v38 = vpop.f32.mrb[4].mxu1  ;;  %v143_v28 = vld [vmem:[%s9520_s1 + $0x400] sm:$0xff]  ;;  %v6834_v29 = vpack.c.bf16 %v541_v17, %v408_v16  ;;  %v413_v16 = vld [vmem:[%s9520_s1 + $0xc70] sm:$0xff]  ;;  %v546_v17 = vld [vmem:[%s9520_s1 + $0x1098] sm:$0x7] }
  0xf3   :  { %v5722_v42 = vmax.f32 %v1310_v31, 0.0  ;;  %v1379_v43 = vadd.f32 %v1378_v38, %v8638_v63  ;;  %v1380_v44 = vpop.f32.mrb[5].mxu1  ;;  %v540_v31 = vld [vmem:[%s9520_s1 + $0x1068] sm:$0x7]  ;;  %v410_v38 = vld [vmem:[%s9520_s1 + $0xc58] sm:$0xff] }
  0xf4   :  { %5854 = vst [vmem:[%s9523_s3 + $0x40] sm:$0xff] %v5721_v37  ;;  %6160 = vmatmul.mubr.msk.f32.vlgmr.msra.gmra.mrb[58].mxu0 %vm553_vm3, %v8739_v49  ;;  %v1381_v47 = vadd.f32 %v1380_v44, %v8638_v63  ;;  %6799 = vmatpush1.bf16.msk.msra.mxu1 %vm6921_vm2, %v6797_v30  ;;  %v407_v30 = vld [vmem:[%s9520_s1 + $0xc40] sm:$0xff]  ;;  %v542_v44 = vld [vmem:[%s9520_s1 + $0x1078] sm:$0x7] }
  0xf5   :  { %5855 = vst [vmem:[%s9523_s3 + $0x48] sm:$0xff] %v5722_v42  ;;  %6803 = vmatpush1.bf16.msra.mxu0 %v6802_v32  ;;  %v5723_v50 = vmax.f32 %v1379_v43, 0.0  ;;  %6811 = vmatprep.subr.bf16.mxu1 %v6810_v34  ;;  %v276_v34 = vld [vmem:[%s9520_s1 + $0x828] sm:$0xff]  ;;  %v6837_v1 = vpack.c.bf16 %v540_v31, %v407_v30 }
  0xf6   :  { %v5724_v56 = vmax.f32 %v1381_v47, 0.0  ;;  %6806 = vmatprep.subr.msk.bf16.mxu0 %vm6921_vm2, %v6804_v39  ;;  %5281 = vmatprep.mubr.f32.mxu0 %v6875_v3  ;;  %v543_v39 = vld [vmem:[%s9520_s1 + $0x1080] sm:$0x7]  ;;  %v6842_v43 = vpack.c.bf16 %v276_v34, %v143_v28  ;;  %v278_v47 = vld [vmem:[%s9520_s1 + $0x838] sm:$0xff] }
  0xf7   :  { %5856 = vst [vmem:[%s9523_s3 + $0x50] sm:$0xff] %v5723_v50  ;;  %v1449_v25 = vpop.f32.mrb[6].mxu0  ;;  %6163 = vmatmul.mubr.msk.f32.vlgmr.msra.gmra.mrb[58].mxu1 %vm553_vm3, %v8739_v49  ;;  %v6852_v59 = vpack.c.bf16 %v278_v47, %v145_v46 }
  0xf8   :  { %5857 = vst [vmem:[%s9523_s3 + $0x58] sm:$0xff] %v5724_v56  ;;  %v1450_v0 = vadd.f32 %v1449_v25, %v8638_v63  ;;  %v1451_v2 = vpop.f32.mrb[7].mxu0  ;;  %6813 = vmatpush1.bf16.msra.mxu1 %v6812_v48  ;;  %5352 = vmatprep.mubr.f32.mxu1 %v6875_v3  ;;  %v6847_v25 = vpack.c.bf16 %v542_v44, %v409_v52 }
  0xf9   :  { %v1452_v5 = vadd.f32 %v1451_v2, %v8638_v63  ;;  %6809 = vmatpush1.bf16.msk.msra.mxu0 %vm6921_vm2, %v6807_v51  ;;  %6816 = vmatprep.subr.msk.bf16.mxu1 %vm6921_vm2, %v6814_v53  ;;  %v6844_v51 = vpack.c.bf16 %v543_v39, %v410_v38  ;;  %v412_v53 = vld [vmem:[%s9520_s1 + $0xc68] sm:$0xff] }
  0xfa   :  { %v5725_v12 = vmax.f32 %v1450_v0, 0.0  ;;  %6821 = vmatprep.subr.bf16.mxu0 %v6820_v57  ;;  %v1520_v13 = vpop.f32.mrb[6].mxu1  ;;  %v6854_v61 = vpack.c.bf16 %v545_v54, %v412_v53  ;;  %v544_v0 = vld [vmem:[%s9520_s1 + $0x1088] sm:$0x7] }
  0xfb   :  { %v5726_v18 = vmax.f32 %v1452_v5, 0.0  ;;  %v1521_v19 = vadd.f32 %v1520_v13, %v8638_v63  ;;  %v1522_v20 = vpop.f32.mrb[7].mxu1  ;;  %v280_v5 = vld [vmem:[%s9520_s1 + $0x848] sm:$0xff]  ;;  %v6857_v9 = vpack.c.bf16 %v544_v0, %v411_v62 }
  0xfc   :  { %5858 = vst [vmem:[%s9523_s3 + $0x60] sm:$0xff] %v5725_v12  ;;  %6166 = vmatmul.mubr.msk.f32.vlgmr.msra.gmra.mrb[60].mxu0 %vm553_vm3, %v8739_v49  ;;  %v1523_v23 = vadd.f32 %v1522_v20, %v8638_v63  ;;  %6819 = vmatpush1.bf16.msk.msra.mxu1 %vm6921_vm2, %v6817_v4  ;;  %v147_v4 = vld [vmem:[%s9520_s1 + $0x420] sm:$0xff] }
  0xfd   :  { %5859 = vst [vmem:[%s9523_s3 + $0x68] sm:$0xff] %v5726_v18  ;;  %6823 = vmatpush1.bf16.msra.mxu0 %v6822_v6  ;;  %v5727_v26 = vmax.f32 %v1521_v19, 0.0  ;;  %6831 = vmatprep.subr.bf16.mxu1 %v6830_v8  ;;  %v6861_v12 = vpack.c.bf16 %v280_v5, %v147_v4 }
  0xfe   :  { %v5728_v32 = vmax.f32 %v1523_v23, 0.0  ;;  %6826 = vmatprep.subr.msk.bf16.mxu0 %vm6921_vm2, %v6824_v14  ;;  %5423 = vmatprep.mubr.f32.mxu0 %v6875_v3  ;;  %v6878_v14 = vmov 0.0|0.0   ;;  %v6864_v23 = vpack.c.bf16 %v546_v17, %v413_v16 }
  0xff   :  { %5860 = vst [vmem:[%s9523_s3 + $0x70] sm:$0xff] %v5727_v26  ;;  %v1591_v37 = vpop.f32.mrb[8].mxu0  ;;  %6169 = vmatmul.mubr.msk.f32.vlgmr.msra.gmra.mrb[60].mxu1 %vm553_vm3, %v8739_v49 }
 0x100   :  { %5861 = vst [vmem:[%s9523_s3 + $0x78] sm:$0xff] %v5728_v32  ;;  %v1592_v40 = vadd.f32 %v1591_v37, %v8638_v63  ;;  %v1593_v41 = vpop.f32.mrb[9].mxu0  ;;  %6833 = vmatpush1.bf16.msra.mxu1 %v6832_v24  ;;  %5494 = vmatprep.mubr.f32.mxu1 %v6875_v3 }
 0x101   :  { %v1594_v42 = vadd.f32 %v1593_v41, %v8638_v63  ;;  %6829 = vmatpush1.bf16.msk.msra.mxu0 %vm6921_vm2, %v6827_v27  ;;  %6836 = vmatprep.subr.msk.bf16.mxu1 %vm6921_vm2, %v6834_v29 }
 0x102   :  { %v5729_v48 = vmax.f32 %v1592_v40, 0.0  ;;  %6841 = vmatprep.subr.bf16.mxu0 %v6840_v33  ;;  %v1662_v50 = vpop.f32.mrb[8].mxu1 }
 0x103   :  { %v5730_v55 = vmax.f32 %v1594_v42, 0.0  ;;  %v1663_v56 = vadd.f32 %v1662_v50, %v8638_v63  ;;  %v1664_v57 = vpop.f32.mrb[9].mxu1 }
 0x104   :  { %5862 = vst [vmem:[%s9523_s3 + $0x80] sm:$0xff] %v5729_v48  ;;  %6172 = vmatmul.mubr.msk.f32.vlgmr.msra.gmra.mrb[62].mxu0 %vm553_vm3, %v8739_v49  ;;  %v1665_v58 = vadd.f32 %v1664_v57, %v8638_v63  ;;  %6839 = vmatpush1.bf16.msk.msra.mxu1 %vm6921_vm2, %v6837_v1 }
 0x105   :  { %5863 = vst [vmem:[%s9523_s3 + $0x88] sm:$0xff] %v5730_v55  ;;  %6843 = vmatpush1.bf16.msra.mxu0 %v6842_v43  ;;  %v5731_v60 = vmax.f32 %v1663_v56, 0.0  ;;  %6851 = vmatprep.subr.bf16.mxu1 %v6850_v45 }
 0x106   :  { %v5732_v2 = vmax.f32 %v1665_v58, 0.0  ;;  %6846 = vmatprep.subr.msk.bf16.mxu0 %vm6921_vm2, %v6844_v51  ;;  %5565 = vmatprep.mubr.f32.mxu0 %v6875_v3 }
 0x107   :  { %5864 = vst [vmem:[%s9523_s3 + $0x90] sm:$0xff] %v5731_v60  ;;  %v1733_v6 = vpop.f32.mrb[10].mxu0  ;;  %6175 = vmatmul.mubr.msk.f32.vlgmr.msra.gmra.mrb[62].mxu1 %vm553_vm3, %v8739_v49 }
 0x108   :  { %5865 = vst [vmem:[%s9523_s3 + $0x98] sm:$0xff] %v5732_v2  ;;  %v1734_v7 = vadd.f32 %v1733_v6, %v8638_v63  ;;  %v1735_v8 = vpop.f32.mrb[11].mxu0  ;;  %6853 = vmatpush1.bf16.msra.mxu1 %v6852_v59  ;;  %5636 = vmatprep.mubr.f32.mxu1 %v6875_v3 }
 0x109   :  { %v1736_v10 = vadd.f32 %v1735_v8, %v8638_v63  ;;  %6849 = vmatpush1.bf16.msk.msra.mxu0 %vm6921_vm2, %v6847_v25  ;;  %6856 = vmatprep.subr.msk.bf16.mxu1 %vm6921_vm2, %v6854_v61 }
 0x10a   :  { %v5733_v13 = vmax.f32 %v1734_v7, 0.0  ;;  %6860 = vmatprep.subr.bf16.mxu0 %v6878_v14  ;;  %v1804_v15 = vpop.f32.mrb[10].mxu1 }
 0x10b   :  { %v5734_v18 = vmax.f32 %v1736_v10, 0.0  ;;  %v1805_v19 = vadd.f32 %v1804_v15, %v8638_v63  ;;  %v1806_v20 = vpop.f32.mrb[11].mxu1 }
 0x10c   :  { %5866 = vst [vmem:[%s9523_s3 + $0xa0] sm:$0xff] %v5733_v13  ;;  %6178 = vmatmul.mubr.msk.f32.vlgmr.msra.gmra.mrb[64].mxu0 %vm553_vm3, %v8739_v49  ;;  %v1807_v21 = vadd.f32 %v1806_v20, %v8638_v63  ;;  %6859 = vmatpush1.bf16.msk.msra.mxu1 %vm6921_vm2, %v6857_v9 }
 0x10d   :  { %5867 = vst [vmem:[%s9523_s3 + $0xa8] sm:$0xff] %v5734_v18  ;;  %6862 = vmatpush3.bf16.msra.mxu0 %v6861_v12  ;;  %v5735_v22 = vmax.f32 %v1805_v19, 0.0  ;;  %6197 = vmatprep.mubr.msk.f32.mxu0 %vm6879_vm4, %v6875_v3 }
 0x10e   :  { %v5736_v24 = vmax.f32 %v1807_v21, 0.0  ;;  %6863 = vmatprep.subr.bf16.mxu0 %v6878_v14 }
 0x10f   :  { %5868 = vst [vmem:[%s9523_s3 + $0xb0] sm:$0xff] %v5735_v22  ;;  %v1875_v26 = vpop.f32.mrb[12].mxu0  ;;  %6181 = vmatmul.mubr.msk.f32.vlgmr.msra.gmra.mrb[64].mxu1 %vm553_vm3, %v8739_v49 }
 0x110   :  { %5869 = vst [vmem:[%s9523_s3 + $0xb8] sm:$0xff] %v5736_v24  ;;  %v1876_v27 = vadd.f32 %v1875_v26, %v8638_v63  ;;  %v1877_v28 = vpop.f32.mrb[13].mxu0 }
 0x111   :  { %v1878_v29 = vadd.f32 %v1877_v28, %v8638_v63  ;;  %6866 = vmatpush3.bf16.msk.msra.mxu0 %vm6921_vm2, %v6864_v23 }
 0x112   :  { %v5737_v3 = vmax.f32 %v1876_v27, 0.0  ;;  %v1946_v30 = vpop.f32.mrb[12].mxu1 }
 0x113   :  { %v5738_v31 = vmax.f32 %v1878_v29, 0.0  ;;  %v1947_v32 = vadd.f32 %v1946_v30, %v8638_v63  ;;  %v1948_v33 = vpop.f32.mrb[13].mxu1 }
 0x114   :  { %5870 = vst [vmem:[%s9523_s3 + $0xc0] sm:$0xff] %v5737_v3  ;;  %6198 = vmatmul.mubr.msk.f32.vlgmr.msra.gmra.mrb[66].mxu0 %vm553_vm3, %v8739_v49  ;;  %v1949_v34 = vadd.f32 %v1948_v33, %v8638_v63 }
 0x115   :  { %5871 = vst [vmem:[%s9523_s3 + $0xc8] sm:$0xff] %v5738_v31  ;;  %v5739_v11 = vmax.f32 %v1947_v32, 0.0 }
 0x116   :  { %v5740_v35 = vmax.f32 %v1949_v34, 0.0 }
 0x117   :  { %5872 = vst [vmem:[%s9523_s3 + $0xd0] sm:$0xff] %v5739_v11  ;;  %v2017_v36 = vpop.f32.mrb[14].mxu0 }
 0x118   :  { %5873 = vst [vmem:[%s9523_s3 + $0xd8] sm:$0xff] %v5740_v35  ;;  %v2018_v37 = vadd.f32 %v2017_v36, %v8638_v63  ;;  %v2019_v49 = vpop.f32.mrb[15].mxu0 }
 0x119   :  { %v2020_v38 = vadd.f32 %v2019_v49, %v8638_v63 }
 0x11a   :  { %v5741_v39 = vmax.f32 %v2018_v37, 0.0  ;;  %v2088_v40 = vpop.f32.mrb[14].mxu1 }
 0x11b   :  { %v5742_v41 = vmax.f32 %v2020_v38, 0.0  ;;  %v2089_v1 = vadd.f32 %v2088_v40, %v8638_v63  ;;  %v2090_v42 = vpop.f32.mrb[15].mxu1 }
 0x11c   :  { %5874 = vst [vmem:[%s9523_s3 + $0xe0] sm:$0xff] %v5741_v39  ;;  %v2091_v43 = vadd.f32 %v2090_v42, %v8638_v63 }
 0x11d   :  { %5875 = vst [vmem:[%s9523_s3 + $0xe8] sm:$0xff] %v5742_v41  ;;  %v5743_v44 = vmax.f32 %v2089_v1, 0.0 }
 0x11e   :  { %v5744_v45 = vmax.f32 %v2091_v43, 0.0 }
 0x11f   :  { %5876 = vst [vmem:[%s9523_s3 + $0xf0] sm:$0xff] %v5743_v44  ;;  %v2159_v46 = vpop.f32.mrb[16].mxu0 }
 0x120   :  { %5877 = vst [vmem:[%s9523_s3 + $0xf8] sm:$0xff] %v5744_v45  ;;  %v2160_v47 = vadd.f32 %v2159_v46, %v8638_v63  ;;  %v2161_v48 = vpop.f32.mrb[17].mxu0 }
 0x121   :  { %v2162_v50 = vadd.f32 %v2161_v48, %v8638_v63 }
 0x122   :  { %v5745_v51 = vmax.f32 %v2160_v47, 0.0  ;;  %v2230_v52 = vpop.f32.mrb[16].mxu1 }
 0x123   :  { %v5746_v53 = vmax.f32 %v2162_v50, 0.0  ;;  %v2231_v54 = vadd.f32 %v2230_v52, %v8638_v63  ;;  %v2232_v55 = vpop.f32.mrb[17].mxu1 }
 0x124   :  { %5878 = vst [vmem:[%s9523_s3 + $0x100] sm:$0xff] %v5745_v51  ;;  %v2233_v56 = vadd.f32 %v2232_v55, %v8638_v63 }
 0x125   :  { %5879 = vst [vmem:[%s9523_s3 + $0x108] sm:$0xff] %v5746_v53  ;;  %v5747_v57 = vmax.f32 %v2231_v54, 0.0 }
 0x126   :  { %v5748_v58 = vmax.f32 %v2233_v56, 0.0 }
 0x127   :  { %5880 = vst [vmem:[%s9523_s3 + $0x110] sm:$0xff] %v5747_v57  ;;  %v2301_v59 = vpop.f32.mrb[18].mxu0 }
 0x128   :  { %5881 = vst [vmem:[%s9523_s3 + $0x118] sm:$0xff] %v5748_v58  ;;  %v2302_v60 = vadd.f32 %v2301_v59, %v8638_v63  ;;  %v2303_v25 = vpop.f32.mrb[19].mxu0 }
 0x129   :  { %v2304_v61 = vadd.f32 %v2303_v25, %v8638_v63 }
 0x12a   :  { %v5749_v62 = vmax.f32 %v2302_v60, 0.0  ;;  %v2372_v0 = vpop.f32.mrb[18].mxu1 }
 0x12b   :  { %v5750_v2 = vmax.f32 %v2304_v61, 0.0  ;;  %v2373_v4 = vadd.f32 %v2372_v0, %v8638_v63  ;;  %v2374_v5 = vpop.f32.mrb[19].mxu1 }
 0x12c   :  { %5882 = vst [vmem:[%s9523_s3 + $0x120] sm:$0xff] %v5749_v62  ;;  %v2375_v6 = vadd.f32 %v2374_v5, %v8638_v63 }
 0x12d   :  { %5883 = vst [vmem:[%s9523_s3 + $0x128] sm:$0xff] %v5750_v2  ;;  %v5751_v7 = vmax.f32 %v2373_v4, 0.0 }
 0x12e   :  { %v5752_v8 = vmax.f32 %v2375_v6, 0.0 }
 0x12f   :  { %5884 = vst [vmem:[%s9523_s3 + $0x130] sm:$0xff] %v5751_v7  ;;  %v2443_v9 = vpop.f32.mrb[20].mxu0 }
 0x130   :  { %5885 = vst [vmem:[%s9523_s3 + $0x138] sm:$0xff] %v5752_v8  ;;  %v2444_v10 = vadd.f32 %v2443_v9, %v8638_v63  ;;  %v2445_v12 = vpop.f32.mrb[21].mxu0 }
 0x131   :  { %v2446_v13 = vadd.f32 %v2445_v12, %v8638_v63 }
 0x132   :  { %v5753_v14 = vmax.f32 %v2444_v10, 0.0  ;;  %v2514_v15 = vpop.f32.mrb[20].mxu1 }
 0x133   :  { %v5754_v16 = vmax.f32 %v2446_v13, 0.0  ;;  %v2515_v17 = vadd.f32 %v2514_v15, %v8638_v63  ;;  %v2516_v18 = vpop.f32.mrb[21].mxu1 }
 0x134   :  { %5886 = vst [vmem:[%s9523_s3 + $0x140] sm:$0xff] %v5753_v14  ;;  %v2517_v19 = vadd.f32 %v2516_v18, %v8638_v63 }
 0x135   :  { %5887 = vst [vmem:[%s9523_s3 + $0x148] sm:$0xff] %v5754_v16  ;;  %v5755_v20 = vmax.f32 %v2515_v17, 0.0 }
 0x136   :  { %v5756_v21 = vmax.f32 %v2517_v19, 0.0 }
 0x137   :  { %5888 = vst [vmem:[%s9523_s3 + $0x150] sm:$0xff] %v5755_v20  ;;  %v2585_v22 = vpop.f32.mrb[22].mxu0 }
 0x138   :  { %5889 = vst [vmem:[%s9523_s3 + $0x158] sm:$0xff] %v5756_v21  ;;  %v2586_v23 = vadd.f32 %v2585_v22, %v8638_v63  ;;  %v2587_v24 = vpop.f32.mrb[23].mxu0 }
 0x139   :  { %v2588_v26 = vadd.f32 %v2587_v24, %v8638_v63 }
 0x13a   :  { %v5757_v27 = vmax.f32 %v2586_v23, 0.0  ;;  %v2656_v28 = vpop.f32.mrb[22].mxu1 }
 0x13b   :  { %v5758_v29 = vmax.f32 %v2588_v26, 0.0  ;;  %v2657_v3 = vadd.f32 %v2656_v28, %v8638_v63  ;;  %v2658_v30 = vpop.f32.mrb[23].mxu1 }
 0x13c   :  { %5890 = vst [vmem:[%s9523_s3 + $0x160] sm:$0xff] %v5757_v27  ;;  %v2659_v31 = vadd.f32 %v2658_v30, %v8638_v63 }
 0x13d   :  { %5891 = vst [vmem:[%s9523_s3 + $0x168] sm:$0xff] %v5758_v29  ;;  %v5759_v32 = vmax.f32 %v2657_v3, 0.0 }
 0x13e   :  { %v5760_v33 = vmax.f32 %v2659_v31, 0.0 }
 0x13f   :  { %5892 = vst [vmem:[%s9523_s3 + $0x170] sm:$0xff] %v5759_v32  ;;  %v2727_v34 = vpop.f32.mrb[24].mxu0 }
 0x140   :  { %5893 = vst [vmem:[%s9523_s3 + $0x178] sm:$0xff] %v5760_v33  ;;  %v2728_v11 = vadd.f32 %v2727_v34, %v8638_v63  ;;  %v2729_v35 = vpop.f32.mrb[25].mxu0 }
 0x141   :  { %v2730_v36 = vadd.f32 %v2729_v35, %v8638_v63 }
 0x142   :  { %v5761_v37 = vmax.f32 %v2728_v11, 0.0  ;;  %v2798_v49 = vpop.f32.mrb[24].mxu1 }
 0x143   :  { %v5762_v38 = vmax.f32 %v2730_v36, 0.0  ;;  %v2799_v39 = vadd.f32 %v2798_v49, %v8638_v63  ;;  %v2800_v40 = vpop.f32.mrb[25].mxu1 }
 0x144   :  { %5894 = vst [vmem:[%s9523_s3 + $0x180] sm:$0xff] %v5761_v37  ;;  %v2801_v41 = vadd.f32 %v2800_v40, %v8638_v63 }
 0x145   :  { %5895 = vst [vmem:[%s9523_s3 + $0x188] sm:$0xff] %v5762_v38  ;;  %v5763_v1 = vmax.f32 %v2799_v39, 0.0 }
 0x146   :  { %v5764_v42 = vmax.f32 %v2801_v41, 0.0 }
 0x147   :  { %5896 = vst [vmem:[%s9523_s3 + $0x190] sm:$0xff] %v5763_v1  ;;  %v2869_v43 = vpop.f32.mrb[26].mxu0 }
 0x148   :  { %5897 = vst [vmem:[%s9523_s3 + $0x198] sm:$0xff] %v5764_v42  ;;  %v2870_v44 = vadd.f32 %v2869_v43, %v8638_v63  ;;  %v2871_v45 = vpop.f32.mrb[27].mxu0 }
 0x149   :  { %v2872_v46 = vadd.f32 %v2871_v45, %v8638_v63 }
 0x14a   :  { %v5765_v47 = vmax.f32 %v2870_v44, 0.0  ;;  %v2940_v48 = vpop.f32.mrb[26].mxu1 }
 0x14b   :  { %v5766_v50 = vmax.f32 %v2872_v46, 0.0  ;;  %v2941_v51 = vadd.f32 %v2940_v48, %v8638_v63  ;;  %v2942_v52 = vpop.f32.mrb[27].mxu1 }
 0x14c   :  { %5898 = vst [vmem:[%s9523_s3 + $0x1a0] sm:$0xff] %v5765_v47  ;;  %v2943_v53 = vadd.f32 %v2942_v52, %v8638_v63 }
 0x14d   :  { %5899 = vst [vmem:[%s9523_s3 + $0x1a8] sm:$0xff] %v5766_v50  ;;  %v5767_v54 = vmax.f32 %v2941_v51, 0.0 }
 0x14e   :  { %v5768_v55 = vmax.f32 %v2943_v53, 0.0 }
 0x14f   :  { %5900 = vst [vmem:[%s9523_s3 + $0x1b0] sm:$0xff] %v5767_v54  ;;  %v3011_v56 = vpop.f32.mrb[28].mxu0 }
 0x150   :  { %5901 = vst [vmem:[%s9523_s3 + $0x1b8] sm:$0xff] %v5768_v55  ;;  %v3012_v57 = vadd.f32 %v3011_v56, %v8638_v63  ;;  %v3013_v58 = vpop.f32.mrb[29].mxu0 }
 0x151   :  { %v3014_v59 = vadd.f32 %v3013_v58, %v8638_v63 }
 0x152   :  { %v5769_v60 = vmax.f32 %v3012_v57, 0.0  ;;  %v3082_v25 = vpop.f32.mrb[28].mxu1 }
 0x153   :  { %v5770_v61 = vmax.f32 %v3014_v59, 0.0  ;;  %v3083_v62 = vadd.f32 %v3082_v25, %v8638_v63  ;;  %v3084_v0 = vpop.f32.mrb[29].mxu1 }
 0x154   :  { %5902 = vst [vmem:[%s9523_s3 + $0x1c0] sm:$0xff] %v5769_v60  ;;  %v3085_v2 = vadd.f32 %v3084_v0, %v8638_v63 }
 0x155   :  { %5903 = vst [vmem:[%s9523_s3 + $0x1c8] sm:$0xff] %v5770_v61  ;;  %v5771_v4 = vmax.f32 %v3083_v62, 0.0 }
 0x156   :  { %v5772_v5 = vmax.f32 %v3085_v2, 0.0 }
 0x157   :  { %5904 = vst [vmem:[%s9523_s3 + $0x1d0] sm:$0xff] %v5771_v4  ;;  %v3153_v6 = vpop.f32.mrb[30].mxu0 }
 0x158   :  { %5905 = vst [vmem:[%s9523_s3 + $0x1d8] sm:$0xff] %v5772_v5  ;;  %v3154_v7 = vadd.f32 %v3153_v6, %v8638_v63  ;;  %v3155_v8 = vpop.f32.mrb[31].mxu0 }
 0x159   :  { %v3156_v9 = vadd.f32 %v3155_v8, %v8638_v63 }
 0x15a   :  { %v5773_v10 = vmax.f32 %v3154_v7, 0.0  ;;  %v3224_v12 = vpop.f32.mrb[30].mxu1 }
 0x15b   :  { %v5774_v13 = vmax.f32 %v3156_v9, 0.0  ;;  %v3225_v14 = vadd.f32 %v3224_v12, %v8638_v63  ;;  %v3226_v15 = vpop.f32.mrb[31].mxu1 }
 0x15c   :  { %5906 = vst [vmem:[%s9523_s3 + $0x1e0] sm:$0xff] %v5773_v10  ;;  %v3227_v16 = vadd.f32 %v3226_v15, %v8638_v63 }
 0x15d   :  { %5907 = vst [vmem:[%s9523_s3 + $0x1e8] sm:$0xff] %v5774_v13  ;;  %v5775_v17 = vmax.f32 %v3225_v14, 0.0 }
 0x15e   :  { %v5776_v18 = vmax.f32 %v3227_v16, 0.0 }
 0x15f   :  { %5908 = vst [vmem:[%s9523_s3 + $0x1f0] sm:$0xff] %v5775_v17  ;;  %v3295_v19 = vpop.f32.mrb[32].mxu0 }
 0x160   :  { %5909 = vst [vmem:[%s9523_s3 + $0x1f8] sm:$0xff] %v5776_v18  ;;  %v3296_v20 = vadd.f32 %v3295_v19, %v8638_v63  ;;  %v3297_v21 = vpop.f32.mrb[33].mxu0 }
 0x161   :  { %v3298_v22 = vadd.f32 %v3297_v21, %v8638_v63 }
 0x162   :  { %v5777_v23 = vmax.f32 %v3296_v20, 0.0  ;;  %v3366_v24 = vpop.f32.mrb[32].mxu1 }
 0x163   :  { %v5778_v26 = vmax.f32 %v3298_v22, 0.0  ;;  %v3367_v27 = vadd.f32 %v3366_v24, %v8638_v63  ;;  %v3368_v28 = vpop.f32.mrb[33].mxu1 }
 0x164   :  { %5910 = vst [vmem:[%s9523_s3 + $0x200] sm:$0xff] %v5777_v23  ;;  %v3369_v29 = vadd.f32 %v3368_v28, %v8638_v63 }
 0x165   :  { %5911 = vst [vmem:[%s9523_s3 + $0x208] sm:$0xff] %v5778_v26  ;;  %v5779_v3 = vmax.f32 %v3367_v27, 0.0 }
 0x166   :  { %v5780_v30 = vmax.f32 %v3369_v29, 0.0 }
 0x167   :  { %5912 = vst [vmem:[%s9523_s3 + $0x210] sm:$0xff] %v5779_v3  ;;  %v3437_v31 = vpop.f32.mrb[34].mxu0 }
 0x168   :  { %5913 = vst [vmem:[%s9523_s3 + $0x218] sm:$0xff] %v5780_v30  ;;  %v3438_v32 = vadd.f32 %v3437_v31, %v8638_v63  ;;  %v3439_v33 = vpop.f32.mrb[35].mxu0 }
 0x169   :  { %v3440_v34 = vadd.f32 %v3439_v33, %v8638_v63 }
 0x16a   :  { %v5781_v11 = vmax.f32 %v3438_v32, 0.0  ;;  %v3508_v35 = vpop.f32.mrb[34].mxu1 }
 0x16b   :  { %v5782_v36 = vmax.f32 %v3440_v34, 0.0  ;;  %v3509_v37 = vadd.f32 %v3508_v35, %v8638_v63  ;;  %v3510_v49 = vpop.f32.mrb[35].mxu1 }
 0x16c   :  { %5914 = vst [vmem:[%s9523_s3 + $0x220] sm:$0xff] %v5781_v11  ;;  %v3511_v38 = vadd.f32 %v3510_v49, %v8638_v63 }
 0x16d   :  { %5915 = vst [vmem:[%s9523_s3 + $0x228] sm:$0xff] %v5782_v36  ;;  %v5783_v39 = vmax.f32 %v3509_v37, 0.0 }
 0x16e   :  { %v5784_v40 = vmax.f32 %v3511_v38, 0.0 }
 0x16f   :  { %5916 = vst [vmem:[%s9523_s3 + $0x230] sm:$0xff] %v5783_v39  ;;  %v3579_v41 = vpop.f32.mrb[36].mxu0 }
 0x170   :  { %5917 = vst [vmem:[%s9523_s3 + $0x238] sm:$0xff] %v5784_v40  ;;  %v3580_v1 = vadd.f32 %v3579_v41, %v8638_v63  ;;  %v3581_v42 = vpop.f32.mrb[37].mxu0 }
 0x171   :  { %v3582_v43 = vadd.f32 %v3581_v42, %v8638_v63 }
 0x172   :  { %v5785_v44 = vmax.f32 %v3580_v1, 0.0  ;;  %v3650_v45 = vpop.f32.mrb[36].mxu1 }
 0x173   :  { %v5786_v46 = vmax.f32 %v3582_v43, 0.0  ;;  %v3651_v47 = vadd.f32 %v3650_v45, %v8638_v63  ;;  %v3652_v48 = vpop.f32.mrb[37].mxu1 }
 0x174   :  { %5918 = vst [vmem:[%s9523_s3 + $0x240] sm:$0xff] %v5785_v44  ;;  %v3653_v50 = vadd.f32 %v3652_v48, %v8638_v63 }
 0x175   :  { %5919 = vst [vmem:[%s9523_s3 + $0x248] sm:$0xff] %v5786_v46  ;;  %v5787_v51 = vmax.f32 %v3651_v47, 0.0 }
 0x176   :  { %v5788_v52 = vmax.f32 %v3653_v50, 0.0 }
 0x177   :  { %5920 = vst [vmem:[%s9523_s3 + $0x250] sm:$0xff] %v5787_v51  ;;  %v3721_v53 = vpop.f32.mrb[38].mxu0 }
 0x178   :  { %5921 = vst [vmem:[%s9523_s3 + $0x258] sm:$0xff] %v5788_v52  ;;  %v3722_v54 = vadd.f32 %v3721_v53, %v8638_v63  ;;  %v3723_v55 = vpop.f32.mrb[39].mxu0 }
 0x179   :  { %v3724_v56 = vadd.f32 %v3723_v55, %v8638_v63 }
 0x17a   :  { %v5789_v57 = vmax.f32 %v3722_v54, 0.0  ;;  %v3792_v58 = vpop.f32.mrb[38].mxu1 }
 0x17b   :  { %v5790_v59 = vmax.f32 %v3724_v56, 0.0  ;;  %v3793_v60 = vadd.f32 %v3792_v58, %v8638_v63  ;;  %v3794_v25 = vpop.f32.mrb[39].mxu1 }
 0x17c   :  { %5922 = vst [vmem:[%s9523_s3 + $0x260] sm:$0xff] %v5789_v57  ;;  %v3795_v61 = vadd.f32 %v3794_v25, %v8638_v63 }
 0x17d   :  { %5923 = vst [vmem:[%s9523_s3 + $0x268] sm:$0xff] %v5790_v59  ;;  %v5791_v62 = vmax.f32 %v3793_v60, 0.0 }
 0x17e   :  { %v5792_v0 = vmax.f32 %v3795_v61, 0.0 }
 0x17f   :  { %5924 = vst [vmem:[%s9523_s3 + $0x270] sm:$0xff] %v5791_v62  ;;  %v3863_v2 = vpop.f32.mrb[40].mxu0 }
 0x180   :  { %5925 = vst [vmem:[%s9523_s3 + $0x278] sm:$0xff] %v5792_v0  ;;  %v3864_v4 = vadd.f32 %v3863_v2, %v8638_v63  ;;  %v3865_v5 = vpop.f32.mrb[41].mxu0 }
 0x181   :  { %v3866_v6 = vadd.f32 %v3865_v5, %v8638_v63 }
 0x182   :  { %v5793_v7 = vmax.f32 %v3864_v4, 0.0  ;;  %v3934_v8 = vpop.f32.mrb[40].mxu1 }
 0x183   :  { %v5794_v9 = vmax.f32 %v3866_v6, 0.0  ;;  %v3935_v10 = vadd.f32 %v3934_v8, %v8638_v63  ;;  %v3936_v12 = vpop.f32.mrb[41].mxu1 }
 0x184   :  { %5926 = vst [vmem:[%s9523_s3 + $0x280] sm:$0xff] %v5793_v7  ;;  %v3937_v13 = vadd.f32 %v3936_v12, %v8638_v63 }
 0x185   :  { %5927 = vst [vmem:[%s9523_s3 + $0x288] sm:$0xff] %v5794_v9  ;;  %v5795_v14 = vmax.f32 %v3935_v10, 0.0 }
 0x186   :  { %v5796_v15 = vmax.f32 %v3937_v13, 0.0 }
 0x187   :  { %5928 = vst [vmem:[%s9523_s3 + $0x290] sm:$0xff] %v5795_v14  ;;  %v4005_v16 = vpop.f32.mrb[42].mxu0 }
 0x188   :  { %5929 = vst [vmem:[%s9523_s3 + $0x298] sm:$0xff] %v5796_v15  ;;  %v4006_v17 = vadd.f32 %v4005_v16, %v8638_v63  ;;  %v4007_v18 = vpop.f32.mrb[43].mxu0 }
 0x189   :  { %v4008_v19 = vadd.f32 %v4007_v18, %v8638_v63 }
 0x18a   :  { %v5797_v20 = vmax.f32 %v4006_v17, 0.0  ;;  %v4076_v21 = vpop.f32.mrb[42].mxu1 }
 0x18b   :  { %v5798_v22 = vmax.f32 %v4008_v19, 0.0  ;;  %v4077_v23 = vadd.f32 %v4076_v21, %v8638_v63  ;;  %v4078_v24 = vpop.f32.mrb[43].mxu1 }
 0x18c   :  { %5930 = vst [vmem:[%s9523_s3 + $0x2a0] sm:$0xff] %v5797_v20  ;;  %v4079_v26 = vadd.f32 %v4078_v24, %v8638_v63 }
 0x18d   :  { %5931 = vst [vmem:[%s9523_s3 + $0x2a8] sm:$0xff] %v5798_v22  ;;  %v5799_v27 = vmax.f32 %v4077_v23, 0.0 }
 0x18e   :  { %v5800_v28 = vmax.f32 %v4079_v26, 0.0 }
 0x18f   :  { %5932 = vst [vmem:[%s9523_s3 + $0x2b0] sm:$0xff] %v5799_v27  ;;  %v4147_v29 = vpop.f32.mrb[44].mxu0 }
 0x190   :  { %5933 = vst [vmem:[%s9523_s3 + $0x2b8] sm:$0xff] %v5800_v28  ;;  %v4148_v3 = vadd.f32 %v4147_v29, %v8638_v63  ;;  %v4149_v30 = vpop.f32.mrb[45].mxu0 }
 0x191   :  { %v4150_v31 = vadd.f32 %v4149_v30, %v8638_v63 }
 0x192   :  { %v5801_v32 = vmax.f32 %v4148_v3, 0.0  ;;  %v4218_v33 = vpop.f32.mrb[44].mxu1 }
 0x193   :  { %v5802_v34 = vmax.f32 %v4150_v31, 0.0  ;;  %v4219_v11 = vadd.f32 %v4218_v33, %v8638_v63  ;;  %v4220_v35 = vpop.f32.mrb[45].mxu1 }
 0x194   :  { %5934 = vst [vmem:[%s9523_s3 + $0x2c0] sm:$0xff] %v5801_v32  ;;  %v4221_v36 = vadd.f32 %v4220_v35, %v8638_v63 }
 0x195   :  { %5935 = vst [vmem:[%s9523_s3 + $0x2c8] sm:$0xff] %v5802_v34  ;;  %v5803_v37 = vmax.f32 %v4219_v11, 0.0 }
 0x196   :  { %v5804_v49 = vmax.f32 %v4221_v36, 0.0 }
 0x197   :  { %5936 = vst [vmem:[%s9523_s3 + $0x2d0] sm:$0xff] %v5803_v37  ;;  %v4289_v38 = vpop.f32.mrb[46].mxu0 }
 0x198   :  { %5937 = vst [vmem:[%s9523_s3 + $0x2d8] sm:$0xff] %v5804_v49  ;;  %v4290_v39 = vadd.f32 %v4289_v38, %v8638_v63  ;;  %v4291_v40 = vpop.f32.mrb[47].mxu0 }
 0x199   :  { %v4292_v41 = vadd.f32 %v4291_v40, %v8638_v63 }
 0x19a   :  { %v5805_v1 = vmax.f32 %v4290_v39, 0.0  ;;  %v4360_v42 = vpop.f32.mrb[46].mxu1 }
 0x19b   :  { %v5806_v43 = vmax.f32 %v4292_v41, 0.0  ;;  %v4361_v44 = vadd.f32 %v4360_v42, %v8638_v63  ;;  %v4362_v45 = vpop.f32.mrb[47].mxu1 }
 0x19c   :  { %5938 = vst [vmem:[%s9523_s3 + $0x2e0] sm:$0xff] %v5805_v1  ;;  %v4363_v46 = vadd.f32 %v4362_v45, %v8638_v63 }
 0x19d   :  { %5939 = vst [vmem:[%s9523_s3 + $0x2e8] sm:$0xff] %v5806_v43  ;;  %v5807_v47 = vmax.f32 %v4361_v44, 0.0 }
 0x19e   :  { %v5808_v48 = vmax.f32 %v4363_v46, 0.0 }
 0x19f   :  { %5940 = vst [vmem:[%s9523_s3 + $0x2f0] sm:$0xff] %v5807_v47  ;;  %v4431_v50 = vpop.f32.mrb[48].mxu0 }
 0x1a0   :  { %5941 = vst [vmem:[%s9523_s3 + $0x2f8] sm:$0xff] %v5808_v48  ;;  %v4432_v51 = vadd.f32 %v4431_v50, %v8638_v63  ;;  %v4433_v52 = vpop.f32.mrb[49].mxu0 }
 0x1a1   :  { %v4434_v53 = vadd.f32 %v4433_v52, %v8638_v63 }
 0x1a2   :  { %v5809_v54 = vmax.f32 %v4432_v51, 0.0  ;;  %v4502_v55 = vpop.f32.mrb[48].mxu1 }
 0x1a3   :  { %v5810_v56 = vmax.f32 %v4434_v53, 0.0  ;;  %v4503_v57 = vadd.f32 %v4502_v55, %v8638_v63  ;;  %v4504_v58 = vpop.f32.mrb[49].mxu1 }
 0x1a4   :  { %5942 = vst [vmem:[%s9523_s3 + $0x300] sm:$0xff] %v5809_v54  ;;  %v4505_v59 = vadd.f32 %v4504_v58, %v8638_v63 }
 0x1a5   :  { %5943 = vst [vmem:[%s9523_s3 + $0x308] sm:$0xff] %v5810_v56  ;;  %v5811_v60 = vmax.f32 %v4503_v57, 0.0 }
 0x1a6   :  { %v5812_v25 = vmax.f32 %v4505_v59, 0.0 }
 0x1a7   :  { %5944 = vst [vmem:[%s9523_s3 + $0x310] sm:$0xff] %v5811_v60  ;;  %v4573_v61 = vpop.f32.mrb[50].mxu0 }
 0x1a8   :  { %5945 = vst [vmem:[%s9523_s3 + $0x318] sm:$0xff] %v5812_v25  ;;  %v4574_v62 = vadd.f32 %v4573_v61, %v8638_v63  ;;  %v4575_v0 = vpop.f32.mrb[51].mxu0 }
 0x1a9   :  { %v4576_v2 = vadd.f32 %v4575_v0, %v8638_v63 }
 0x1aa   :  { %v5813_v4 = vmax.f32 %v4574_v62, 0.0  ;;  %v4644_v5 = vpop.f32.mrb[50].mxu1 }
 0x1ab   :  { %v5814_v6 = vmax.f32 %v4576_v2, 0.0  ;;  %v4645_v7 = vadd.f32 %v4644_v5, %v8638_v63  ;;  %v4646_v8 = vpop.f32.mrb[51].mxu1 }
 0x1ac   :  { %5946 = vst [vmem:[%s9523_s3 + $0x320] sm:$0xff] %v5813_v4  ;;  %v4647_v9 = vadd.f32 %v4646_v8, %v8638_v63 }
 0x1ad   :  { %5947 = vst [vmem:[%s9523_s3 + $0x328] sm:$0xff] %v5814_v6  ;;  %v5815_v10 = vmax.f32 %v4645_v7, 0.0 }
 0x1ae   :  { %v5816_v12 = vmax.f32 %v4647_v9, 0.0 }
 0x1af   :  { %5948 = vst [vmem:[%s9523_s3 + $0x330] sm:$0xff] %v5815_v10  ;;  %v4715_v13 = vpop.f32.mrb[52].mxu0 }
 0x1b0   :  { %5949 = vst [vmem:[%s9523_s3 + $0x338] sm:$0xff] %v5816_v12  ;;  %v4716_v14 = vadd.f32 %v4715_v13, %v8638_v63  ;;  %v4717_v15 = vpop.f32.mrb[53].mxu0 }
 0x1b1   :  { %v4718_v16 = vadd.f32 %v4717_v15, %v8638_v63 }
 0x1b2   :  { %v5817_v17 = vmax.f32 %v4716_v14, 0.0  ;;  %v4786_v18 = vpop.f32.mrb[52].mxu1 }
 0x1b3   :  { %v5818_v19 = vmax.f32 %v4718_v16, 0.0  ;;  %v4787_v20 = vadd.f32 %v4786_v18, %v8638_v63  ;;  %v4788_v21 = vpop.f32.mrb[53].mxu1 }
 0x1b4   :  { %5950 = vst [vmem:[%s9523_s3 + $0x340] sm:$0xff] %v5817_v17  ;;  %v4789_v22 = vadd.f32 %v4788_v21, %v8638_v63 }
 0x1b5   :  { %5951 = vst [vmem:[%s9523_s3 + $0x348] sm:$0xff] %v5818_v19  ;;  %v5819_v23 = vmax.f32 %v4787_v20, 0.0 }
 0x1b6   :  { %v5820_v24 = vmax.f32 %v4789_v22, 0.0 }
 0x1b7   :  { %5952 = vst [vmem:[%s9523_s3 + $0x350] sm:$0xff] %v5819_v23  ;;  %v4857_v26 = vpop.f32.mrb[54].mxu0 }
 0x1b8   :  { %5953 = vst [vmem:[%s9523_s3 + $0x358] sm:$0xff] %v5820_v24  ;;  %v4858_v27 = vadd.f32 %v4857_v26, %v8638_v63  ;;  %v4859_v28 = vpop.f32.mrb[55].mxu0 }
 0x1b9   :  { %v4860_v29 = vadd.f32 %v4859_v28, %v8638_v63 }
 0x1ba   :  { %v5821_v3 = vmax.f32 %v4858_v27, 0.0  ;;  %v4928_v30 = vpop.f32.mrb[54].mxu1 }
 0x1bb   :  { %v5822_v31 = vmax.f32 %v4860_v29, 0.0  ;;  %v4929_v32 = vadd.f32 %v4928_v30, %v8638_v63  ;;  %v4930_v33 = vpop.f32.mrb[55].mxu1 }
 0x1bc   :  { %5954 = vst [vmem:[%s9523_s3 + $0x360] sm:$0xff] %v5821_v3  ;;  %v4931_v34 = vadd.f32 %v4930_v33, %v8638_v63 }
 0x1bd   :  { %5955 = vst [vmem:[%s9523_s3 + $0x368] sm:$0xff] %v5822_v31  ;;  %v5823_v11 = vmax.f32 %v4929_v32, 0.0 }
 0x1be   :  { %v5824_v35 = vmax.f32 %v4931_v34, 0.0 }
 0x1bf   :  { %5956 = vst [vmem:[%s9523_s3 + $0x370] sm:$0xff] %v5823_v11  ;;  %v4999_v36 = vpop.f32.mrb[56].mxu0 }
 0x1c0   :  { %5957 = vst [vmem:[%s9523_s3 + $0x378] sm:$0xff] %v5824_v35  ;;  %v5000_v37 = vadd.f32 %v4999_v36, %v8638_v63  ;;  %v5001_v49 = vpop.f32.mrb[57].mxu0 }
 0x1c1   :  { %v5002_v38 = vadd.f32 %v5001_v49, %v8638_v63 }
 0x1c2   :  { %v5825_v39 = vmax.f32 %v5000_v37, 0.0  ;;  %v5070_v40 = vpop.f32.mrb[56].mxu1 }
 0x1c3   :  { %v5826_v41 = vmax.f32 %v5002_v38, 0.0  ;;  %v5071_v1 = vadd.f32 %v5070_v40, %v8638_v63  ;;  %v5072_v42 = vpop.f32.mrb[57].mxu1 }
 0x1c4   :  { %5958 = vst [vmem:[%s9523_s3 + $0x380] sm:$0xff] %v5825_v39  ;;  %v5073_v43 = vadd.f32 %v5072_v42, %v8638_v63 }
 0x1c5   :  { %5959 = vst [vmem:[%s9523_s3 + $0x388] sm:$0xff] %v5826_v41  ;;  %v5827_v44 = vmax.f32 %v5071_v1, 0.0 }
 0x1c6   :  { %v5828_v45 = vmax.f32 %v5073_v43, 0.0 }
 0x1c7   :  { %5960 = vst [vmem:[%s9523_s3 + $0x390] sm:$0xff] %v5827_v44  ;;  %v5141_v46 = vpop.f32.mrb[58].mxu0 }
 0x1c8   :  { %5961 = vst [vmem:[%s9523_s3 + $0x398] sm:$0xff] %v5828_v45  ;;  %v5142_v47 = vadd.f32 %v5141_v46, %v8638_v63  ;;  %v5143_v48 = vpop.f32.mrb[59].mxu0 }
 0x1c9   :  { %v5144_v50 = vadd.f32 %v5143_v48, %v8638_v63 }
 0x1ca   :  { %v5829_v51 = vmax.f32 %v5142_v47, 0.0  ;;  %v5212_v52 = vpop.f32.mrb[58].mxu1 }
 0x1cb   :  { %v5830_v53 = vmax.f32 %v5144_v50, 0.0  ;;  %v5213_v54 = vadd.f32 %v5212_v52, %v8638_v63  ;;  %v5214_v55 = vpop.f32.mrb[59].mxu1 }
 0x1cc   :  { %5962 = vst [vmem:[%s9523_s3 + $0x3a0] sm:$0xff] %v5829_v51  ;;  %v5215_v56 = vadd.f32 %v5214_v55, %v8638_v63 }
 0x1cd   :  { %5963 = vst [vmem:[%s9523_s3 + $0x3a8] sm:$0xff] %v5830_v53  ;;  %v5831_v57 = vmax.f32 %v5213_v54, 0.0 }
 0x1ce   :  { %v5832_v58 = vmax.f32 %v5215_v56, 0.0 }
 0x1cf   :  { %5964 = vst [vmem:[%s9523_s3 + $0x3b0] sm:$0xff] %v5831_v57  ;;  %v5283_v59 = vpop.f32.mrb[60].mxu0 }
 0x1d0   :  { %5965 = vst [vmem:[%s9523_s3 + $0x3b8] sm:$0xff] %v5832_v58  ;;  %v5284_v60 = vadd.f32 %v5283_v59, %v8638_v63  ;;  %v5285_v25 = vpop.f32.mrb[61].mxu0 }
 0x1d1   :  { %v5286_v61 = vadd.f32 %v5285_v25, %v8638_v63 }
 0x1d2   :  { %v5833_v62 = vmax.f32 %v5284_v60, 0.0  ;;  %v5354_v0 = vpop.f32.mrb[60].mxu1 }
 0x1d3   :  { %v5834_v2 = vmax.f32 %v5286_v61, 0.0  ;;  %v5355_v4 = vadd.f32 %v5354_v0, %v8638_v63  ;;  %v5356_v5 = vpop.f32.mrb[61].mxu1 }
 0x1d4   :  { %5966 = vst [vmem:[%s9523_s3 + $0x3c0] sm:$0xff] %v5833_v62  ;;  %v5357_v6 = vadd.f32 %v5356_v5, %v8638_v63 }
 0x1d5   :  { %5967 = vst [vmem:[%s9523_s3 + $0x3c8] sm:$0xff] %v5834_v2  ;;  %v5835_v7 = vmax.f32 %v5355_v4, 0.0 }
 0x1d6   :  { %v5836_v8 = vmax.f32 %v5357_v6, 0.0 }
 0x1d7   :  { %5968 = vst [vmem:[%s9523_s3 + $0x3d0] sm:$0xff] %v5835_v7  ;;  %v5425_v9 = vpop.f32.mrb[62].mxu0 }
 0x1d8   :  { %5969 = vst [vmem:[%s9523_s3 + $0x3d8] sm:$0xff] %v5836_v8  ;;  %v5426_v10 = vadd.f32 %v5425_v9, %v8638_v63  ;;  %v5427_v12 = vpop.f32.mrb[63].mxu0 }
 0x1d9   :  { %v5428_v13 = vadd.f32 %v5427_v12, %v8638_v63 }
 0x1da   :  { %v5837_v14 = vmax.f32 %v5426_v10, 0.0  ;;  %v5496_v15 = vpop.f32.mrb[62].mxu1 }
 0x1db   :  { %v5838_v16 = vmax.f32 %v5428_v13, 0.0  ;;  %v5497_v17 = vadd.f32 %v5496_v15, %v8638_v63  ;;  %v5498_v18 = vpop.f32.mrb[63].mxu1 }
 0x1dc   :  { %5970 = vst [vmem:[%s9523_s3 + $0x3e0] sm:$0xff] %v5837_v14  ;;  %v5499_v19 = vadd.f32 %v5498_v18, %v8638_v63 }
 0x1dd   :  { %5971 = vst [vmem:[%s9523_s3 + $0x3e8] sm:$0xff] %v5838_v16  ;;  %v5839_v20 = vmax.f32 %v5497_v17, 0.0 }
 0x1de   :  { %v5840_v21 = vmax.f32 %v5499_v19, 0.0 }
 0x1df   :  { %5972 = vst [vmem:[%s9523_s3 + $0x3f0] sm:$0xff] %v5839_v20  ;;  %v5567_v22 = vpop.f32.mrb[64].mxu0 }
 0x1e0   :  { %5973 = vst [vmem:[%s9523_s3 + $0x3f8] sm:$0xff] %v5840_v21  ;;  %v5568_v23 = vadd.f32 %v5567_v22, %v8638_v63  ;;  %v5569_v24 = vpop.f32.mrb[65].mxu0 }
 0x1e1   :  { %v5570_v26 = vadd.f32 %v5569_v24, %v8638_v63 }
 0x1e2   :  { %v5841_v27 = vmax.f32 %v5568_v23, 0.0  ;;  %v5638_v28 = vpop.f32.mrb[64].mxu1 }
 0x1e3   :  { %v5842_v29 = vmax.f32 %v5570_v26, 0.0  ;;  %v5639_v3 = vadd.f32 %v5638_v28, %v8638_v63  ;;  %v5640_v30 = vpop.f32.mrb[65].mxu1 }
 0x1e4   :  { %5974 = vst [vmem:[%s9523_s3 + $0x400] sm:$0xff] %v5841_v27  ;;  %v5641_v31 = vadd.f32 %v5640_v30, %v8638_v63 }
 0x1e5   :  { %5975 = vst [vmem:[%s9523_s3 + $0x408] sm:$0xff] %v5842_v29  ;;  %v5843_v32 = vmax.f32 %v5639_v3, 0.0 }
 0x1e6   :  { %v5844_v33 = vmax.f32 %v5641_v31, 0.0 }
 0x1e7   :  { %5976 = vst [vmem:[%s9523_s3 + $0x410] sm:$0xff] %v5843_v32  ;;  %v5709_v34 = vpop.f32.mrb[66].mxu0 }
 0x1e8   :  { %5977 = vst [vmem:[%s9523_s3 + $0x418] sm:$0xff] %v5844_v33  ;;  %v5710_v11 = vadd.f32 %v5709_v34, %v8638_v63  ;;  %v6199_v35 = vpop.f32.mrb[67].mxu0 }
 0x1ea   :  { %v5845_v36 = vmax.f32 %v5710_v11, 0.0 }
 0x1ec   :  { %5979 = vst.msk [vmem:[%s9523_s3 + $0x420] sm:$0xff] %vm5978_vm5, %v5845_v36 }

// kernel: _forward_probs.6
= control target key start
LH: loop header
LB: loop body
LE: loop exit
PB: predicated region body
PF: predicated region fallthrough
CT: control target
= control target key end

     0   :  { %v2623_v3 = vmov 0.0   ;;  %vm316_vm0 = vcmask 588800   ;;  %vm1661_vm1 = vcmask 277504   ;;  %s4729_s1 = inlined_call_operand.vmem [shape: f32[72,4130], index: 1, kind: input, shape index: {}]   ;;  %s4730_s0 = inlined_call_operand.vmem [shape: f32[16,72], index: 0, kind: input, shape index: {}]   ;;  %s4731_s2 = inlined_call_operand.vmem [shape: f32[16,1], index: 2, kind: input, shape index: {}]   ;;  %s4732_s3 = inlined_call_operand.vmem [shape: f32[16,1], index: 3, kind: input, shape index: {}]   ;;  %s4733_s4 = inlined_call_operand.vmem [shape: f32[16,4130], index: 4, kind: output, shape index: {}]  }
   0x1   :  { %v20_v0 = vld [vmem:[%s4729_s1 + $0x8] sm:$0xff]  ;;  %v53_v1 = vld [vmem:[%s4729_s1 + $0x110] sm:$0xff]  ;;  %v19_v2 = vld [vmem:[%s4729_s1] sm:$0xff]  ;;  %387 = vmatprep.mubr.f32.mxu0 %v2623_v3  ;;  %464 = vmatprep.mubr.f32.mxu1 %v2623_v3 }
   0x2   :  { %v2341_v4 = vpack.c.bf16 %v53_v1, %v20_v0  ;;  %v52_v5 = vld [vmem:[%s4729_s1 + $0x108] sm:$0xff]  ;;  %v22_v6 = vld [vmem:[%s4729_s1 + $0x18] sm:$0xff]  ;;  %v55_v7 = vld [vmem:[%s4729_s1 + $0x120] sm:$0xff] }
   0x3   :  { %v2343_v8 = vpack.c.bf16 %v52_v5, %v19_v2  ;;  %v2357_v9 = vpack.c.bf16 %v55_v7, %v22_v6  ;;  %v86_v10 = vld [vmem:[%s4729_s1 + $0x218] sm:$0xff]  ;;  %v119_v11 = vld [vmem:[%s4729_s1 + $0x320] sm:$0xff]  ;;  %v21_v12 = vld [vmem:[%s4729_s1 + $0x10] sm:$0xff] }
   0x4   :  { %2342 = vmatprep.subr.bf16.mxu0 %v2341_v4  ;;  %v2345_v13 = vpack.c.bf16 %v119_v11, %v86_v10  ;;  %v54_v14 = vld [vmem:[%s4729_s1 + $0x118] sm:$0xff]  ;;  %v85_v15 = vld [vmem:[%s4729_s1 + $0x210] sm:$0xff]  ;;  %v88_v19 = vld [vmem:[%s4729_s1 + $0x228] sm:$0xff] }
   0x5   :  { %v118_v16 = vld [vmem:[%s4729_s1 + $0x318] sm:$0xff]  ;;  %2344 = vmatpush1.bf16.msra.mxu0 %v2343_v8  ;;  %2358 = vmatprep.subr.bf16.mxu1 %v2357_v9  ;;  %v2359_v17 = vpack.c.bf16 %v54_v14, %v21_v12  ;;  %v121_v20 = vld [vmem:[%s4729_s1 + $0x330] sm:$0xff]  ;;  %v152_v21 = vld [vmem:[%s4729_s1 + $0x428] sm:$0xff] }
   0x6   :  { %v2347_v18 = vpack.c.bf16 %v118_v16, %v85_v15  ;;  %2346 = vmatprep.subr.bf16.mxu0 %v2345_v13  ;;  %v2361_v22 = vpack.c.bf16 %v121_v20, %v88_v19  ;;  %v185_v23 = vld [vmem:[%s4729_s1 + $0x530] sm:$0xff]  ;;  %v87_v24 = vld [vmem:[%s4729_s1 + $0x220] sm:$0xff]  ;;  %v120_v25 = vld [vmem:[%s4729_s1 + $0x328] sm:$0xff] }
   0x7   :  { %2360 = vmatpush1.bf16.msra.mxu1 %v2359_v17  ;;  %v2349_v26 = vpack.c.bf16 %v185_v23, %v152_v21  ;;  %v2363_v27 = vpack.c.bf16 %v120_v25, %v87_v24  ;;  %v151_v28 = vld [vmem:[%s4729_s1 + $0x420] sm:$0xff]  ;;  %v184_v29 = vld [vmem:[%s4729_s1 + $0x528] sm:$0xff]  ;;  %v154_v30 = vld [vmem:[%s4729_s1 + $0x438] sm:$0xff] }
   0x8   :  { %2362 = vmatprep.subr.bf16.mxu1 %v2361_v22  ;;  %v187_v31 = vld [vmem:[%s4729_s1 + $0x540] sm:$0xff]  ;;  %v218_v32 = vld [vmem:[%s4729_s1 + $0x638] sm:$0xff]  ;;  %v2351_v34 = vpack.c.bf16 %v184_v29, %v151_v28  ;;  %v153_v36 = vld [vmem:[%s4729_s1 + $0x430] sm:$0xff] }
   0x9   :  { %v251_v33 = vld [vmem:[%s4729_s1 + $0x740] sm:$0xff]  ;;  %2348 = vmatpush1.bf16.msra.mxu0 %v2347_v18  ;;  %v2365_v35 = vpack.c.bf16 %v187_v31, %v154_v30  ;;  %v186_v37 = vld [vmem:[%s4729_s1 + $0x538] sm:$0xff]  ;;  %v217_v38 = vld [vmem:[%s4729_s1 + $0x630] sm:$0xff] }
   0xa   :  { %2350 = vmatprep.subr.bf16.mxu0 %v2349_v26  ;;  %v2353_v39 = vpack.c.bf16 %v251_v33, %v218_v32  ;;  %v250_v40 = vld [vmem:[%s4729_s1 + $0x738] sm:$0xff]  ;;  %v220_v41 = vld [vmem:[%s4729_s1 + $0x648] sm:$0xff]  ;;  %v253_v42 = vld [vmem:[%s4729_s1 + $0x750] sm:$0xff]  ;;  %v2367_v43 = vpack.c.bf16 %v186_v37, %v153_v36 }
   0xb   :  { %2364 = vmatpush1.bf16.msra.mxu1 %v2363_v27  ;;  %v2369_v44 = vpack.c.bf16 %v253_v42, %v220_v41  ;;  %v219_v45 = vld [vmem:[%s4729_s1 + $0x640] sm:$0xff]  ;;  %v252_v46 = vld [vmem:[%s4729_s1 + $0x748] sm:$0xff]  ;;  %v2355_v47 = vpack.c.bf16 %v250_v40, %v217_v38  ;;  %v57_v51 = vld [vmem:[%s4729_s1 + $0x130] sm:$0xff] }
   0xc   :  { %2366 = vmatprep.subr.bf16.mxu1 %v2365_v35  ;;  %v284_v48 = vld [vmem:[%s4729_s1 + $0x848] sm:$0xff]  ;;  %v2371_v49 = vpack.c.bf16 %v252_v46, %v219_v45  ;;  %v283_v52 = vld [vmem:[%s4729_s1 + $0x840] sm:$0xff]  ;;  %v286_v56 = vld [vmem:[%s4729_s1 + $0x858] sm:$0xff] }
   0xd   :  { %2352 = vmatpush1.bf16.msra.mxu0 %v2351_v34  ;;  %v24_v50 = vld [vmem:[%s4729_s1 + $0x28] sm:$0xff]  ;;  %v23_v53 = vld [vmem:[%s4729_s1 + $0x20] sm:$0xff]  ;;  %v90_v57 = vld [vmem:[%s4729_s1 + $0x238] sm:$0xff] }
   0xe   :  { %2354 = vmatprep.subr.bf16.mxu0 %v2353_v39  ;;  %v56_v54 = vld [vmem:[%s4729_s1 + $0x128] sm:$0xff]  ;;  %v2769_v55 = vld [vmem:[%s4730_s0] sm:$0xff]  ;;  %v2373_v59 = vpack.c.bf16 %v57_v51, %v24_v50  ;;  %v285_v60 = vld [vmem:[%s4729_s1 + $0x850] sm:$0xff] }
   0xf   :  { %2368 = vmatpush1.bf16.msra.mxu1 %v2367_v43  ;;  %v123_v58 = vld [vmem:[%s4729_s1 + $0x340] sm:$0xff]  ;;  %v26_v61 = vld [vmem:[%s4729_s1 + $0x38] sm:$0xff]  ;;  %v2375_v63 = vpack.c.bf16 %v56_v54, %v23_v53  ;;  %v89_v0 = vld [vmem:[%s4729_s1 + $0x230] sm:$0xff] }
  0x10   :  { %2370 = vmatprep.subr.bf16.mxu1 %v2369_v44  ;;  %v59_v62 = vld [vmem:[%s4729_s1 + $0x140] sm:$0xff]  ;;  %v25_v1 = vld [vmem:[%s4729_s1 + $0x30] sm:$0xff]  ;;  %v58_v2 = vld [vmem:[%s4729_s1 + $0x138] sm:$0xff]  ;;  %v2377_v4 = vpack.c.bf16 %v123_v58, %v90_v57 }
  0x11   :  { %2356 = vmatpush1.bf16.msra.mxu0 %v2355_v47  ;;  %v122_v5 = vld [vmem:[%s4729_s1 + $0x338] sm:$0xff]  ;;  %v92_v6 = vld [vmem:[%s4729_s1 + $0x248] sm:$0xff]  ;;  %v125_v7 = vld [vmem:[%s4729_s1 + $0x350] sm:$0xff]  ;;  %v2389_v8 = vpack.c.bf16 %v59_v62, %v26_v61  ;;  %v2391_v11 = vpack.c.bf16 %v58_v2, %v25_v1 }
  0x12   :  { %339 = vmatprep.subr.mxu0 %v284_v48  ;;  %v156_v9 = vld [vmem:[%s4729_s1 + $0x448] sm:$0xff]  ;;  %v189_v10 = vld [vmem:[%s4729_s1 + $0x550] sm:$0xff]  ;;  %v155_v12 = vld [vmem:[%s4729_s1 + $0x440] sm:$0xff]  ;;  %v2379_v13 = vpack.c.bf16 %v122_v5, %v89_v0  ;;  %v2393_v14 = vpack.c.bf16 %v125_v7, %v92_v6 }
  0x13   :  { %2372 = vmatpush1.bf16.msra.mxu1 %v2371_v49  ;;  %v91_v15 = vld [vmem:[%s4729_s1 + $0x240] sm:$0xff]  ;;  %v124_v16 = vld [vmem:[%s4729_s1 + $0x348] sm:$0xff]  ;;  %v2381_v18 = vpack.c.bf16 %v189_v10, %v156_v9  ;;  %v158_v20 = vld [vmem:[%s4729_s1 + $0x458] sm:$0xff] }
  0x14   :  { %416 = vmatprep.subr.mxu1 %v286_v56  ;;  %v2827_v17 = vld [vmem:[%s4730_s0 + $0x8] sm:$0xff]  ;;  %v191_v21 = vld [vmem:[%s4729_s1 + $0x560] sm:$0xff]  ;;  %v222_v22 = vld [vmem:[%s4729_s1 + $0x658] sm:$0xff]  ;;  %v2395_v24 = vpack.c.bf16 %v124_v16, %v91_v15 }
  0x15   :  { %340 = vmatpush1.msra.mxu0 %v283_v52  ;;  %v188_v19 = vld [vmem:[%s4729_s1 + $0x548] sm:$0xff]  ;;  %v255_v23 = vld [vmem:[%s4729_s1 + $0x760] sm:$0xff]  ;;  %v2397_v26 = vpack.c.bf16 %v191_v21, %v158_v20  ;;  %v221_v27 = vld [vmem:[%s4729_s1 + $0x650] sm:$0xff] }
  0x16   :  { %2275 = vmatmul.mubr.msk.f32.vlgmr.msra.gmra.mrb[0].mxu0 %vm316_vm0, %v2769_v55  ;;  %2374 = vmatprep.subr.bf16.mxu0 %v2373_v59  ;;  %v2383_v25 = vpack.c.bf16 %v188_v19, %v155_v12  ;;  %v157_v28 = vld [vmem:[%s4729_s1 + $0x450] sm:$0xff]  ;;  %v190_v29 = vld [vmem:[%s4729_s1 + $0x558] sm:$0xff]  ;;  %v2385_v30 = vpack.c.bf16 %v255_v23, %v222_v22  ;;  %v224_v32 = vld [vmem:[%s4729_s1 + $0x668] sm:$0xff] }
  0x17   :  { %2376 = vmatpush1.bf16.msra.mxu0 %v2375_v63  ;;  %417 = vmatpush1.msra.mxu1 %v285_v60  ;;  %v254_v31 = vld [vmem:[%s4729_s1 + $0x758] sm:$0xff]  ;;  %v257_v33 = vld [vmem:[%s4729_s1 + $0x770] sm:$0xff]  ;;  %v2399_v34 = vpack.c.bf16 %v190_v29, %v157_v28  ;;  %v223_v37 = vld [vmem:[%s4729_s1 + $0x660] sm:$0xff] }
  0x18   :  { %2277 = vmatmul.mubr.msk.f32.vlgmr.msra.gmra.mrb[0].mxu1 %vm316_vm0, %v2769_v55  ;;  %2378 = vmatprep.subr.bf16.mxu0 %v2377_v4  ;;  %v2387_v35 = vpack.c.bf16 %v254_v31, %v221_v27  ;;  %v2401_v36 = vpack.c.bf16 %v257_v33, %v224_v32  ;;  %v256_v38 = vld [vmem:[%s4729_s1 + $0x768] sm:$0xff]  ;;  %v61_v41 = vld [vmem:[%s4729_s1 + $0x150] sm:$0xff]  ;;  %v27_v43 = vld [vmem:[%s4729_s1 + $0x40] sm:$0xff] }
  0x19   :  { %2390 = vmatprep.subr.bf16.mxu1 %v2389_v8  ;;  %393 = vmatprep.mubr.f32.mxu0 %v2623_v3  ;;  %v288_v39 = vld [vmem:[%s4729_s1 + $0x868] sm:$0xff]  ;;  %v2403_v42 = vpack.c.bf16 %v256_v38, %v223_v37  ;;  %v287_v45 = vld [vmem:[%s4729_s1 + $0x860] sm:$0xff]  ;;  %v94_v46 = vld [vmem:[%s4729_s1 + $0x258] sm:$0xff] }
  0x1a   :  { %2392 = vmatpush1.bf16.msra.mxu1 %v2391_v11  ;;  %2276 = vmatmul.mubr.msk.f32.gmra.mrb[2].mxu0 %vm316_vm0, %v2827_v17  ;;  %v28_v40 = vld [vmem:[%s4729_s1 + $0x48] sm:$0xff]  ;;  %v127_v47 = vld [vmem:[%s4729_s1 + $0x360] sm:$0xff]  ;;  %v290_v49 = vld [vmem:[%s4729_s1 + $0x878] sm:$0xff] }
  0x1b   :  { %2380 = vmatpush1.bf16.msra.mxu0 %v2379_v13  ;;  %2394 = vmatprep.subr.bf16.mxu1 %v2393_v14  ;;  %v60_v44 = vld [vmem:[%s4729_s1 + $0x148] sm:$0xff]  ;;  %v2405_v48 = vpack.c.bf16 %v61_v41, %v28_v40  ;;  %v30_v50 = vld [vmem:[%s4729_s1 + $0x58] sm:$0xff]  ;;  %v63_v51 = vld [vmem:[%s4729_s1 + $0x160] sm:$0xff]  ;;  %v2409_v57 = vpack.c.bf16 %v127_v47, %v94_v46 }
  0x1c   :  { %2382 = vmatprep.subr.bf16.mxu0 %v2381_v18  ;;  %470 = vmatprep.mubr.f32.mxu1 %v2623_v3  ;;  %v2407_v52 = vpack.c.bf16 %v60_v44, %v27_v43  ;;  %v289_v53 = vld [vmem:[%s4729_s1 + $0x870] sm:$0xff]  ;;  %v62_v56 = vld [vmem:[%s4729_s1 + $0x158] sm:$0xff]  ;;  %v160_v60 = vld [vmem:[%s4729_s1 + $0x468] sm:$0xff]  ;;  %v2421_v61 = vpack.c.bf16 %v63_v51, %v30_v50 }
  0x1d   :  { %2278 = vmatmul.mubr.msk.f32.gmra.mrb[2].mxu1 %vm316_vm0, %v2827_v17  ;;  %541 = vmatprep.mubr.f32.mxu0 %v2623_v3  ;;  %v29_v54 = vld [vmem:[%s4729_s1 + $0x50] sm:$0xff]  ;;  %v126_v59 = vld [vmem:[%s4729_s1 + $0x358] sm:$0xff]  ;;  %v96_v63 = vld [vmem:[%s4729_s1 + $0x268] sm:$0xff] }
  0x1e   :  { %2396 = vmatpush1.bf16.msra.mxu1 %v2395_v24  ;;  %618 = vmatprep.mubr.f32.mxu1 %v2623_v3  ;;  %v93_v58 = vld [vmem:[%s4729_s1 + $0x250] sm:$0xff]  ;;  %v2423_v1 = vpack.c.bf16 %v62_v56, %v29_v54  ;;  %v159_v4 = vld [vmem:[%s4729_s1 + $0x460] sm:$0xff]  ;;  %v128_v6 = vld [vmem:[%s4729_s1 + $0x368] sm:$0xff] }
  0x1f   :  { %2384 = vmatpush1.bf16.msra.mxu0 %v2383_v25  ;;  %2398 = vmatprep.subr.bf16.mxu1 %v2397_v26  ;;  %v193_v62 = vld [vmem:[%s4729_s1 + $0x570] sm:$0xff]  ;;  %v2411_v2 = vpack.c.bf16 %v126_v59, %v93_v58  ;;  %v95_v5 = vld [vmem:[%s4729_s1 + $0x260] sm:$0xff]  ;;  %v192_v9 = vld [vmem:[%s4729_s1 + $0x568] sm:$0xff] }
  0x20   :  { %2386 = vmatprep.subr.bf16.mxu0 %v2385_v30  ;;  %v129_v0 = vld [vmem:[%s4729_s1 + $0x370] sm:$0xff]  ;;  %v2413_v7 = vpack.c.bf16 %v193_v62, %v160_v60  ;;  %v162_v10 = vld [vmem:[%s4729_s1 + $0x478] sm:$0xff]  ;;  %v195_v11 = vld [vmem:[%s4729_s1 + $0x580] sm:$0xff]  ;;  %v2427_v14 = vpack.c.bf16 %v128_v6, %v95_v5  ;;  %v2415_v15 = vpack.c.bf16 %v192_v9, %v159_v4 }
  0x21   :  { %v2425_v8 = vpack.c.bf16 %v129_v0, %v96_v63  ;;  %v226_v12 = vld [vmem:[%s4729_s1 + $0x678] sm:$0xff]  ;;  %v259_v13 = vld [vmem:[%s4729_s1 + $0x780] sm:$0xff]  ;;  %v2429_v16 = vpack.c.bf16 %v195_v11, %v162_v10  ;;  %v225_v18 = vld [vmem:[%s4729_s1 + $0x670] sm:$0xff] }
  0x22   :  { %2400 = vmatpush1.bf16.msra.mxu1 %v2399_v34  ;;  %v161_v19 = vld [vmem:[%s4729_s1 + $0x470] sm:$0xff]  ;;  %v194_v20 = vld [vmem:[%s4729_s1 + $0x578] sm:$0xff]  ;;  %v2417_v21 = vpack.c.bf16 %v259_v13, %v226_v12  ;;  %v228_v23 = vld [vmem:[%s4729_s1 + $0x688] sm:$0xff] }
  0x23   :  { %2388 = vmatpush1.bf16.msra.mxu0 %v2387_v35  ;;  %2402 = vmatprep.subr.bf16.mxu1 %v2401_v36  ;;  %v258_v22 = vld [vmem:[%s4729_s1 + $0x778] sm:$0xff]  ;;  %v261_v24 = vld [vmem:[%s4729_s1 + $0x790] sm:$0xff]  ;;  %v2431_v25 = vpack.c.bf16 %v194_v20, %v161_v19  ;;  %v227_v28 = vld [vmem:[%s4729_s1 + $0x680] sm:$0xff] }
  0x24   :  { %493 = vmatprep.subr.mxu0 %v288_v39  ;;  %v2419_v26 = vpack.c.bf16 %v258_v22, %v225_v18  ;;  %v2433_v27 = vpack.c.bf16 %v261_v24, %v228_v23  ;;  %v260_v29 = vld [vmem:[%s4729_s1 + $0x788] sm:$0xff]  ;;  %v65_v32 = vld [vmem:[%s4729_s1 + $0x170] sm:$0xff]  ;;  %v31_v34 = vld [vmem:[%s4729_s1 + $0x60] sm:$0xff] }
  0x25   :  { %v292_v30 = vld [vmem:[%s4729_s1 + $0x888] sm:$0xff]  ;;  %v2435_v33 = vpack.c.bf16 %v260_v29, %v227_v28  ;;  %v291_v36 = vld [vmem:[%s4729_s1 + $0x880] sm:$0xff]  ;;  %v98_v37 = vld [vmem:[%s4729_s1 + $0x278] sm:$0xff] }
  0x26   :  { %2404 = vmatpush1.bf16.msra.mxu1 %v2403_v42  ;;  %v32_v31 = vld [vmem:[%s4729_s1 + $0x68] sm:$0xff]  ;;  %v131_v38 = vld [vmem:[%s4729_s1 + $0x380] sm:$0xff]  ;;  %v294_v40 = vld [vmem:[%s4729_s1 + $0x898] sm:$0xff] }
  0x27   :  { %494 = vmatpush1.msra.mxu0 %v287_v45  ;;  %570 = vmatprep.subr.mxu1 %v290_v49  ;;  %v64_v35 = vld [vmem:[%s4729_s1 + $0x168] sm:$0xff]  ;;  %v2437_v39 = vpack.c.bf16 %v65_v32, %v32_v31  ;;  %v34_v41 = vld [vmem:[%s4729_s1 + $0x78] sm:$0xff]  ;;  %v67_v42 = vld [vmem:[%s4729_s1 + $0x180] sm:$0xff]  ;;  %v2441_v47 = vpack.c.bf16 %v131_v38, %v98_v37 }
  0x28   :  { %2279 = vmatmul.mubr.msk.f32.vlgmr.msra.gmra.mrb[4].mxu0 %vm316_vm0, %v2769_v55  ;;  %2406 = vmatprep.subr.bf16.mxu0 %v2405_v48  ;;  %v2439_v43 = vpack.c.bf16 %v64_v35, %v31_v34  ;;  %v293_v44 = vld [vmem:[%s4729_s1 + $0x890] sm:$0xff]  ;;  %v66_v46 = vld [vmem:[%s4729_s1 + $0x178] sm:$0xff]  ;;  %v164_v50 = vld [vmem:[%s4729_s1 + $0x488] sm:$0xff]  ;;  %v2453_v51 = vpack.c.bf16 %v67_v42, %v34_v41 }
  0x29   :  { %2408 = vmatpush1.bf16.msra.mxu0 %v2407_v52  ;;  %547 = vmatprep.mubr.f32.mxu0 %v2623_v3  ;;  %v33_v45 = vld [vmem:[%s4729_s1 + $0x70] sm:$0xff]  ;;  %v130_v49 = vld [vmem:[%s4729_s1 + $0x378] sm:$0xff]  ;;  %v163_v58 = vld [vmem:[%s4729_s1 + $0x480] sm:$0xff] }
  0x2a   :  { %571 = vmatpush1.msra.mxu1 %v289_v53  ;;  %2410 = vmatprep.subr.bf16.mxu0 %v2409_v57  ;;  %v97_v48 = vld [vmem:[%s4729_s1 + $0x270] sm:$0xff]  ;;  %v100_v53 = vld [vmem:[%s4729_s1 + $0x288] sm:$0xff]  ;;  %v2455_v56 = vpack.c.bf16 %v66_v46, %v33_v45  ;;  %v99_v59 = vld [vmem:[%s4729_s1 + $0x280] sm:$0xff] }
  0x2b   :  { %2281 = vmatmul.mubr.msk.f32.vlgmr.msra.gmra.mrb[4].mxu1 %vm316_vm0, %v2769_v55  ;;  %2422 = vmatprep.subr.bf16.mxu1 %v2421_v61  ;;  %v197_v52 = vld [vmem:[%s4729_s1 + $0x590] sm:$0xff]  ;;  %v2443_v57 = vpack.c.bf16 %v130_v49, %v97_v48  ;;  %v132_v60 = vld [vmem:[%s4729_s1 + $0x388] sm:$0xff]  ;;  %v166_v0 = vld [vmem:[%s4729_s1 + $0x498] sm:$0xff] }
  0x2c   :  { %2280 = vmatmul.mubr.msk.f32.gmra.mrb[6].mxu0 %vm316_vm0, %v2827_v17  ;;  %2424 = vmatpush1.bf16.msra.mxu1 %v2423_v1  ;;  %v133_v54 = vld [vmem:[%s4729_s1 + $0x390] sm:$0xff]  ;;  %v2445_v61 = vpack.c.bf16 %v197_v52, %v164_v50  ;;  %v196_v63 = vld [vmem:[%s4729_s1 + $0x588] sm:$0xff]  ;;  %v199_v1 = vld [vmem:[%s4729_s1 + $0x5a0] sm:$0xff]  ;;  %v2459_v5 = vpack.c.bf16 %v132_v60, %v99_v59 }
  0x2d   :  { %2412 = vmatpush1.bf16.msra.mxu0 %v2411_v2  ;;  %624 = vmatprep.mubr.f32.mxu1 %v2623_v3  ;;  %v2457_v62 = vpack.c.bf16 %v133_v54, %v100_v53  ;;  %v230_v2 = vld [vmem:[%s4729_s1 + $0x698] sm:$0xff]  ;;  %v263_v4 = vld [vmem:[%s4729_s1 + $0x7a0] sm:$0xff]  ;;  %v2447_v6 = vpack.c.bf16 %v196_v63, %v163_v58  ;;  %v165_v9 = vld [vmem:[%s4729_s1 + $0x490] sm:$0xff] }
  0x2e   :  { %2414 = vmatprep.subr.bf16.mxu0 %v2413_v7  ;;  %2426 = vmatprep.subr.bf16.mxu1 %v2425_v8  ;;  %v2461_v7 = vpack.c.bf16 %v199_v1, %v166_v0  ;;  %v229_v8 = vld [vmem:[%s4729_s1 + $0x690] sm:$0xff]  ;;  %v198_v10 = vld [vmem:[%s4729_s1 + $0x598] sm:$0xff]  ;;  %v2449_v11 = vpack.c.bf16 %v263_v4, %v230_v2  ;;  %v232_v13 = vld [vmem:[%s4729_s1 + $0x6a8] sm:$0xff] }
  0x2f   :  { %2282 = vmatmul.mubr.msk.f32.gmra.mrb[6].mxu1 %vm316_vm0, %v2827_v17  ;;  %695 = vmatprep.mubr.f32.mxu0 %v2623_v3  ;;  %v262_v12 = vld [vmem:[%s4729_s1 + $0x798] sm:$0xff]  ;;  %v231_v19 = vld [vmem:[%s4729_s1 + $0x6a0] sm:$0xff]  ;;  %v264_v20 = vld [vmem:[%s4729_s1 + $0x7a8] sm:$0xff] }
  0x30   :  { %2428 = vmatpush1.bf16.msra.mxu1 %v2427_v14  ;;  %772 = vmatprep.mubr.f32.mxu1 %v2623_v3  ;;  %v265_v14 = vld [vmem:[%s4729_s1 + $0x7b0] sm:$0xff]  ;;  %v36_v22 = vld [vmem:[%s4729_s1 + $0x88] sm:$0xff]  ;;  %v2467_v24 = vpack.c.bf16 %v264_v20, %v231_v19  ;;  %v102_v28 = vld [vmem:[%s4729_s1 + $0x298] sm:$0xff] }
  0x31   :  { %2416 = vmatpush1.bf16.msra.mxu0 %v2415_v15  ;;  %2430 = vmatprep.subr.bf16.mxu1 %v2429_v16  ;;  %v2463_v15 = vpack.c.bf16 %v198_v10, %v165_v9  ;;  %v2451_v16 = vpack.c.bf16 %v262_v12, %v229_v8  ;;  %v2465_v18 = vpack.c.bf16 %v265_v14, %v232_v13  ;;  %v69_v23 = vld [vmem:[%s4729_s1 + $0x190] sm:$0xff]  ;;  %v135_v29 = vld [vmem:[%s4729_s1 + $0x3a0] sm:$0xff]  ;;  %v298_v31 = vld [vmem:[%s4729_s1 + $0x8b8] sm:$0xff] }
  0x32   :  { %2418 = vmatprep.subr.bf16.mxu0 %v2417_v21  ;;  %v296_v21 = vld [vmem:[%s4729_s1 + $0x8a8] sm:$0xff]  ;;  %v38_v32 = vld [vmem:[%s4729_s1 + $0x98] sm:$0xff]  ;;  %v297_v35 = vld [vmem:[%s4729_s1 + $0x8b0] sm:$0xff]  ;;  %v2473_v38 = vpack.c.bf16 %v135_v29, %v102_v28 }
  0x33   :  { %v70_v37 = vld [vmem:[%s4729_s1 + $0x198] sm:$0xff]  ;;  %v168_v41 = vld [vmem:[%s4729_s1 + $0x4a8] sm:$0xff]  ;;  %v137_v45 = vld [vmem:[%s4729_s1 + $0x3b0] sm:$0xff] }
  0x34   :  { %2432 = vmatpush1.bf16.msra.mxu1 %v2431_v25  ;;  %v35_v25 = vld [vmem:[%s4729_s1 + $0x80] sm:$0xff]  ;;  %v136_v50 = vld [vmem:[%s4729_s1 + $0x3a8] sm:$0xff]  ;;  %v170_v54 = vld [vmem:[%s4729_s1 + $0x4b8] sm:$0xff] }
  0x35   :  { %2420 = vmatpush1.bf16.msra.mxu0 %v2419_v26  ;;  %2434 = vmatprep.subr.bf16.mxu1 %v2433_v27  ;;  %v68_v26 = vld [vmem:[%s4729_s1 + $0x188] sm:$0xff]  ;;  %v295_v27 = vld [vmem:[%s4729_s1 + $0x8a0] sm:$0xff]  ;;  %v169_v63 = vld [vmem:[%s4729_s1 + $0x4b0] sm:$0xff] }
  0x36   :  { %647 = vmatprep.subr.mxu0 %v292_v30  ;;  %v2469_v30 = vpack.c.bf16 %v69_v23, %v36_v22  ;;  %v2471_v34 = vpack.c.bf16 %v68_v26, %v35_v25  ;;  %v167_v48 = vld [vmem:[%s4729_s1 + $0x4a0] sm:$0xff]  ;;  %v200_v53 = vld [vmem:[%s4729_s1 + $0x5a8] sm:$0xff]  ;;  %v202_v0 = vld [vmem:[%s4729_s1 + $0x5b8] sm:$0xff] }
  0x37   :  { %v103_v49 = vld [vmem:[%s4729_s1 + $0x2a0] sm:$0xff]  ;;  %v2479_v60 = vpack.c.bf16 %v200_v53, %v167_v48  ;;  %v266_v2 = vld [vmem:[%s4729_s1 + $0x7b8] sm:$0xff]  ;;  %v236_v4 = vld [vmem:[%s4729_s1 + $0x6c8] sm:$0xff] }
  0x38   :  { %2436 = vmatpush1.bf16.msra.mxu1 %v2435_v33  ;;  %v71_v33 = vld [vmem:[%s4729_s1 + $0x1a0] sm:$0xff]  ;;  %v2491_v59 = vpack.c.bf16 %v136_v50, %v103_v49  ;;  %v268_v10 = vld [vmem:[%s4729_s1 + $0x7c8] sm:$0xff]  ;;  %v73_v13 = vld [vmem:[%s4729_s1 + $0x1b0] sm:$0xff] }
  0x39   :  { %648 = vmatpush1.msra.mxu0 %v291_v36  ;;  %724 = vmatprep.subr.mxu1 %v294_v40  ;;  %v37_v36 = vld [vmem:[%s4729_s1 + $0x90] sm:$0xff]  ;;  %v134_v40 = vld [vmem:[%s4729_s1 + $0x398] sm:$0xff]  ;;  %v2485_v42 = vpack.c.bf16 %v71_v33, %v38_v32  ;;  %v267_v58 = vld [vmem:[%s4729_s1 + $0x7c0] sm:$0xff] }
  0x3a   :  { %2283 = vmatmul.mubr.msk.f32.vlgmr.msra.gmra.mrb[8].mxu0 %vm316_vm0, %v2769_v55  ;;  %2438 = vmatprep.subr.bf16.mxu0 %v2437_v39  ;;  %v101_v39 = vld [vmem:[%s4729_s1 + $0x290] sm:$0xff]  ;;  %v2487_v46 = vpack.c.bf16 %v70_v37, %v37_v36  ;;  %v235_v9 = vld [vmem:[%s4729_s1 + $0x6c0] sm:$0xff]  ;;  %v40_v12 = vld [vmem:[%s4729_s1 + $0xa8] sm:$0xff] }
  0x3b   :  { %2440 = vmatpush1.bf16.msra.mxu0 %v2439_v43  ;;  %701 = vmatprep.mubr.f32.mxu0 %v2623_v3  ;;  %v201_v43 = vld [vmem:[%s4729_s1 + $0x5b0] sm:$0xff]  ;;  %v2499_v14 = vpack.c.bf16 %v268_v10, %v235_v9  ;;  %v106_v19 = vld [vmem:[%s4729_s1 + $0x2b8] sm:$0xff]  ;;  %v139_v20 = vld [vmem:[%s4729_s1 + $0x3c0] sm:$0xff] }
  0x3c   :  { %725 = vmatpush1.msra.mxu1 %v293_v44  ;;  %2442 = vmatprep.subr.bf16.mxu0 %v2441_v47  ;;  %v104_v44 = vld [vmem:[%s4729_s1 + $0x2a8] sm:$0xff]  ;;  %v2475_v47 = vpack.c.bf16 %v134_v40, %v101_v39  ;;  %v302_v22 = vld [vmem:[%s4729_s1 + $0x8d8] sm:$0xff]  ;;  %v301_v26 = vld [vmem:[%s4729_s1 + $0x8d0] sm:$0xff]  ;;  %v2505_v29 = vpack.c.bf16 %v139_v20, %v106_v19 }
  0x3d   :  { %2285 = vmatmul.mubr.msk.f32.vlgmr.msra.gmra.mrb[8].mxu1 %vm316_vm0, %v2769_v55  ;;  %2454 = vmatprep.subr.bf16.mxu1 %v2453_v51  ;;  %v2477_v51 = vpack.c.bf16 %v201_v43, %v168_v41  ;;  %v2489_v52 = vpack.c.bf16 %v137_v45, %v104_v44  ;;  %v42_v23 = vld [vmem:[%s4729_s1 + $0xb8] sm:$0xff]  ;;  %v172_v32 = vld [vmem:[%s4729_s1 + $0x4c8] sm:$0xff]  ;;  %v141_v36 = vld [vmem:[%s4729_s1 + $0x3d0] sm:$0xff] }
  0x3e   :  { %2284 = vmatmul.mubr.msk.f32.gmra.mrb[10].mxu0 %vm316_vm0, %v2827_v17  ;;  %2456 = vmatpush1.bf16.msra.mxu1 %v2455_v56  ;;  %v203_v56 = vld [vmem:[%s4729_s1 + $0x5c0] sm:$0xff]  ;;  %v74_v28 = vld [vmem:[%s4729_s1 + $0x1b8] sm:$0xff]  ;;  %v140_v41 = vld [vmem:[%s4729_s1 + $0x3c8] sm:$0xff] }
  0x3f   :  { %2444 = vmatpush1.bf16.msra.mxu0 %v2443_v57  ;;  %778 = vmatprep.mubr.f32.mxu1 %v2623_v3  ;;  %v234_v57 = vld [vmem:[%s4729_s1 + $0x6b8] sm:$0xff]  ;;  %v171_v39 = vld [vmem:[%s4729_s1 + $0x4c0] sm:$0xff]  ;;  %v204_v44 = vld [vmem:[%s4729_s1 + $0x5c8] sm:$0xff] }
  0x40   :  { %2446 = vmatprep.subr.bf16.mxu0 %v2445_v61  ;;  %2458 = vmatprep.subr.bf16.mxu1 %v2457_v62  ;;  %v2493_v61 = vpack.c.bf16 %v203_v56, %v170_v54  ;;  %v233_v62 = vld [vmem:[%s4729_s1 + $0x6b0] sm:$0xff]  ;;  %v2481_v1 = vpack.c.bf16 %v267_v58, %v234_v57  ;;  %v107_v40 = vld [vmem:[%s4729_s1 + $0x2c0] sm:$0xff]  ;;  %v174_v45 = vld [vmem:[%s4729_s1 + $0x4d8] sm:$0xff]  ;;  %v2511_v50 = vpack.c.bf16 %v204_v44, %v171_v39 }
  0x41   :  { %2286 = vmatmul.mubr.msk.f32.gmra.mrb[10].mxu1 %vm316_vm0, %v2827_v17  ;;  %849 = vmatprep.mubr.f32.mxu0 %v2623_v3  ;;  %v271_v48 = vld [vmem:[%s4729_s1 + $0x7e0] sm:$0xff]  ;;  %v2523_v49 = vpack.c.bf16 %v140_v41, %v107_v40  ;;  %v173_v53 = vld [vmem:[%s4729_s1 + $0x4d0] sm:$0xff]  ;;  %v206_v54 = vld [vmem:[%s4729_s1 + $0x5d8] sm:$0xff] }
  0x42   :  { %2460 = vmatpush1.bf16.msra.mxu1 %v2459_v5  ;;  %926 = vmatprep.mubr.f32.mxu1 %v2623_v3  ;;  %v269_v5 = vld [vmem:[%s4729_s1 + $0x7d0] sm:$0xff]  ;;  %v270_v57 = vld [vmem:[%s4729_s1 + $0x7d8] sm:$0xff]  ;;  %v240_v58 = vld [vmem:[%s4729_s1 + $0x6e8] sm:$0xff] }
  0x43   :  { %2448 = vmatpush1.bf16.msra.mxu0 %v2447_v6  ;;  %2462 = vmatprep.subr.bf16.mxu1 %v2461_v7  ;;  %v2495_v6 = vpack.c.bf16 %v202_v0, %v169_v63  ;;  %v2483_v7 = vpack.c.bf16 %v266_v2, %v233_v62  ;;  %v2497_v8 = vpack.c.bf16 %v269_v5, %v236_v4  ;;  %v239_v63 = vld [vmem:[%s4729_s1 + $0x6e0] sm:$0xff]  ;;  %v272_v0 = vld [vmem:[%s4729_s1 + $0x7e8] sm:$0xff]  ;;  %v77_v4 = vld [vmem:[%s4729_s1 + $0x1d0] sm:$0xff] }
  0x44   :  { %2450 = vmatprep.subr.bf16.mxu0 %v2449_v11  ;;  %v300_v11 = vld [vmem:[%s4729_s1 + $0x8c8] sm:$0xff]  ;;  %v2531_v5 = vpack.c.bf16 %v272_v0, %v239_v63  ;;  %v110_v9 = vld [vmem:[%s4729_s1 + $0x2d8] sm:$0xff]  ;;  %v143_v10 = vld [vmem:[%s4729_s1 + $0x3e0] sm:$0xff] }
  0x45   :  { %v44_v2 = vld [vmem:[%s4729_s1 + $0xc8] sm:$0xff]  ;;  %v78_v19 = vld [vmem:[%s4729_s1 + $0x1d8] sm:$0xff]  ;;  %v2537_v20 = vpack.c.bf16 %v143_v10, %v110_v9  ;;  %v275_v39 = vld [vmem:[%s4729_s1 + $0x800] sm:$0xff] }
  0x46   :  { %2464 = vmatpush1.bf16.msra.mxu1 %v2463_v15  ;;  %v39_v15 = vld [vmem:[%s4729_s1 + $0xa0] sm:$0xff]  ;;  %v177_v44 = vld [vmem:[%s4729_s1 + $0x4f0] sm:$0xff]  ;;  %v114_v63 = vld [vmem:[%s4729_s1 + $0x2f8] sm:$0xff] }
  0x47   :  { %2452 = vmatpush1.bf16.msra.mxu0 %v2451_v16  ;;  %2466 = vmatprep.subr.bf16.mxu1 %v2465_v18  ;;  %v72_v16 = vld [vmem:[%s4729_s1 + $0x1a8] sm:$0xff]  ;;  %v299_v18 = vld [vmem:[%s4729_s1 + $0x8c0] sm:$0xff]  ;;  %v82_v9 = vld [vmem:[%s4729_s1 + $0x1f8] sm:$0xff] }
  0x48   :  { %801 = vmatprep.subr.mxu0 %v296_v21  ;;  %v2501_v21 = vpack.c.bf16 %v73_v13, %v40_v12  ;;  %v2503_v25 = vpack.c.bf16 %v72_v16, %v39_v15  ;;  %v306_v12 = vld [vmem:[%s4729_s1 + $0x8f8] sm:$0xff]  ;;  %v305_v16 = vld [vmem:[%s4729_s1 + $0x8f0] sm:$0xff]  ;;  %v147_v0 = vld [vmem:[%s4729_s1 + $0x400] sm:$0xff] }
  0x49   :  { %v46_v13 = vld [vmem:[%s4729_s1 + $0xd8] sm:$0xff]  ;;  %v2569_v10 = vpack.c.bf16 %v147_v0, %v114_v63  ;;  %v315_v0 = vld [vmem:[%s4729_s1 + $0x940] sm:$0xff] }
  0x4a   :  { %2468 = vmatpush1.bf16.msra.mxu1 %v2467_v24  ;;  %v75_v24 = vld [vmem:[%s4729_s1 + $0x1c0] sm:$0xff] }
  0x4b   :  { %802 = vmatpush1.msra.mxu0 %v295_v27  ;;  %878 = vmatprep.subr.mxu1 %v298_v31  ;;  %v41_v27 = vld [vmem:[%s4729_s1 + $0xb0] sm:$0xff]  ;;  %v138_v31 = vld [vmem:[%s4729_s1 + $0x3b8] sm:$0xff]  ;;  %v2517_v33 = vpack.c.bf16 %v75_v24, %v42_v23  ;;  %v176_v23 = vld [vmem:[%s4729_s1 + $0x4e8] sm:$0xff] }
  0x4c   :  { %2287 = vmatmul.mubr.msk.f32.vlgmr.msra.gmra.mrb[12].mxu0 %vm316_vm0, %v2769_v55  ;;  %2470 = vmatprep.subr.bf16.mxu0 %v2469_v30  ;;  %v105_v30 = vld [vmem:[%s4729_s1 + $0x2b0] sm:$0xff]  ;;  %v2519_v37 = vpack.c.bf16 %v74_v28, %v41_v27 }
  0x4d   :  { %2472 = vmatpush1.bf16.msra.mxu0 %v2471_v34  ;;  %855 = vmatprep.mubr.f32.mxu0 %v2623_v3  ;;  %v205_v34 = vld [vmem:[%s4729_s1 + $0x5d0] sm:$0xff] }
  0x4e   :  { %879 = vmatpush1.msra.mxu1 %v297_v35  ;;  %2474 = vmatprep.subr.bf16.mxu0 %v2473_v38  ;;  %v108_v35 = vld [vmem:[%s4729_s1 + $0x2c8] sm:$0xff]  ;;  %v2507_v38 = vpack.c.bf16 %v138_v31, %v105_v30  ;;  %v145_v27 = vld [vmem:[%s4729_s1 + $0x3f0] sm:$0xff]  ;;  %v175_v30 = vld [vmem:[%s4729_s1 + $0x4e0] sm:$0xff] }
  0x4f   :  { %2289 = vmatmul.mubr.msk.f32.vlgmr.msra.gmra.mrb[12].mxu1 %vm316_vm0, %v2769_v55  ;;  %2486 = vmatprep.subr.bf16.mxu1 %v2485_v42  ;;  %v2509_v42 = vpack.c.bf16 %v205_v34, %v172_v32  ;;  %v2521_v43 = vpack.c.bf16 %v141_v36, %v108_v35  ;;  %v111_v31 = vld [vmem:[%s4729_s1 + $0x2e0] sm:$0xff]  ;;  %v144_v32 = vld [vmem:[%s4729_s1 + $0x3e8] sm:$0xff]  ;;  %v178_v36 = vld [vmem:[%s4729_s1 + $0x4f8] sm:$0xff] }
  0x50   :  { %2288 = vmatmul.mubr.msk.f32.gmra.mrb[14].mxu0 %vm316_vm0, %v2827_v17  ;;  %2488 = vmatpush1.bf16.msra.mxu1 %v2487_v46  ;;  %v207_v46 = vld [vmem:[%s4729_s1 + $0x5e0] sm:$0xff]  ;;  %v208_v35 = vld [vmem:[%s4729_s1 + $0x5e8] sm:$0xff]  ;;  %v2555_v40 = vpack.c.bf16 %v144_v32, %v111_v31 }
  0x51   :  { %2476 = vmatpush1.bf16.msra.mxu0 %v2475_v47  ;;  %932 = vmatprep.mubr.f32.mxu1 %v2623_v3  ;;  %v238_v47 = vld [vmem:[%s4729_s1 + $0x6d8] sm:$0xff]  ;;  %v2543_v41 = vpack.c.bf16 %v208_v35, %v175_v30  ;;  %v279_v30 = vld [vmem:[%s4729_s1 + $0x820] sm:$0xff]  ;;  %v181_v35 = vld [vmem:[%s4729_s1 + $0x510] sm:$0xff] }
  0x52   :  { %2478 = vmatprep.subr.bf16.mxu0 %v2477_v51  ;;  %2490 = vmatprep.subr.bf16.mxu1 %v2489_v52  ;;  %v2525_v51 = vpack.c.bf16 %v207_v46, %v174_v45  ;;  %v237_v52 = vld [vmem:[%s4729_s1 + $0x6d0] sm:$0xff]  ;;  %v2513_v56 = vpack.c.bf16 %v271_v48, %v238_v47  ;;  %v210_v45 = vld [vmem:[%s4729_s1 + $0x5f8] sm:$0xff]  ;;  %v244_v48 = vld [vmem:[%s4729_s1 + $0x708] sm:$0xff] }
  0x53   :  { %2290 = vmatmul.mubr.msk.f32.gmra.mrb[14].mxu1 %vm316_vm0, %v2827_v17  ;;  %1003 = vmatprep.mubr.f32.mxu0 %v2623_v3  ;;  %v274_v47 = vld [vmem:[%s4729_s1 + $0x7f8] sm:$0xff] }
  0x54   :  { %2492 = vmatpush1.bf16.msra.mxu1 %v2491_v59  ;;  %1080 = vmatprep.mubr.f32.mxu1 %v2623_v3  ;;  %v273_v59 = vld [vmem:[%s4729_s1 + $0x7f0] sm:$0xff] }
  0x55   :  { %2480 = vmatpush1.bf16.msra.mxu0 %v2479_v60  ;;  %2494 = vmatprep.subr.bf16.mxu1 %v2493_v61  ;;  %v2527_v60 = vpack.c.bf16 %v206_v54, %v173_v53  ;;  %v2515_v61 = vpack.c.bf16 %v270_v57, %v237_v52  ;;  %v2529_v62 = vpack.c.bf16 %v273_v59, %v240_v58  ;;  %v243_v53 = vld [vmem:[%s4729_s1 + $0x700] sm:$0xff]  ;;  %v276_v54 = vld [vmem:[%s4729_s1 + $0x808] sm:$0xff]  ;;  %v81_v58 = vld [vmem:[%s4729_s1 + $0x1f0] sm:$0xff] }
  0x56   :  { %2482 = vmatprep.subr.bf16.mxu0 %v2481_v1  ;;  %v304_v1 = vld [vmem:[%s4729_s1 + $0x8e8] sm:$0xff]  ;;  %v2563_v59 = vpack.c.bf16 %v276_v54, %v243_v53  ;;  %v314_v53 = vld [vmem:[%s4729_s1 + $0x938] sm:$0xff] }
  0x57   :  { %v48_v57 = vld [vmem:[%s4729_s1 + $0xe8] sm:$0xff] }
  0x58   :  { %2496 = vmatpush1.bf16.msra.mxu1 %v2495_v6  ;;  %v43_v6 = vld [vmem:[%s4729_s1 + $0xc0] sm:$0xff] }
  0x59   :  { %2484 = vmatpush1.bf16.msra.mxu0 %v2483_v7  ;;  %2498 = vmatprep.subr.bf16.mxu1 %v2497_v8  ;;  %v76_v7 = vld [vmem:[%s4729_s1 + $0x1c8] sm:$0xff]  ;;  %v303_v8 = vld [vmem:[%s4729_s1 + $0x8e0] sm:$0xff] }
  0x5a   :  { %955 = vmatprep.subr.mxu0 %v300_v11  ;;  %v2533_v11 = vpack.c.bf16 %v77_v4, %v44_v2  ;;  %v2535_v15 = vpack.c.bf16 %v76_v7, %v43_v6  ;;  %v310_v2 = vld [vmem:[%s4729_s1 + $0x918] sm:$0xff]  ;;  %v309_v7 = vld [vmem:[%s4729_s1 + $0x910] sm:$0xff] }
  0x5b   :  { %v50_v4 = vld [vmem:[%s4729_s1 + $0xf8] sm:$0xff] }
  0x5c   :  { %2500 = vmatpush1.bf16.msra.mxu1 %v2499_v14  ;;  %v79_v14 = vld [vmem:[%s4729_s1 + $0x1e0] sm:$0xff] }
  0x5d   :  { %956 = vmatpush1.msra.mxu0 %v299_v18  ;;  %1032 = vmatprep.subr.mxu1 %v302_v22  ;;  %v45_v18 = vld [vmem:[%s4729_s1 + $0xd0] sm:$0xff]  ;;  %v142_v22 = vld [vmem:[%s4729_s1 + $0x3d8] sm:$0xff]  ;;  %v2549_v24 = vpack.c.bf16 %v79_v14, %v46_v13  ;;  %v180_v13 = vld [vmem:[%s4729_s1 + $0x508] sm:$0xff] }
  0x5e   :  { %2291 = vmatmul.mubr.msk.f32.vlgmr.msra.gmra.mrb[16].mxu0 %vm316_vm0, %v2769_v55  ;;  %2502 = vmatprep.subr.bf16.mxu0 %v2501_v21  ;;  %v109_v21 = vld [vmem:[%s4729_s1 + $0x2d0] sm:$0xff]  ;;  %v2551_v28 = vpack.c.bf16 %v78_v19, %v45_v18 }
  0x5f   :  { %2504 = vmatpush1.bf16.msra.mxu0 %v2503_v25  ;;  %1009 = vmatprep.mubr.f32.mxu0 %v2623_v3  ;;  %v209_v25 = vld [vmem:[%s4729_s1 + $0x5f0] sm:$0xff] }
  0x60   :  { %1033 = vmatpush1.msra.mxu1 %v301_v26  ;;  %2506 = vmatprep.subr.bf16.mxu0 %v2505_v29  ;;  %v112_v26 = vld [vmem:[%s4729_s1 + $0x2e8] sm:$0xff]  ;;  %v2539_v29 = vpack.c.bf16 %v142_v22, %v109_v21  ;;  %v149_v18 = vld [vmem:[%s4729_s1 + $0x410] sm:$0xff]  ;;  %v179_v21 = vld [vmem:[%s4729_s1 + $0x500] sm:$0xff] }
  0x61   :  { %2293 = vmatmul.mubr.msk.f32.vlgmr.msra.gmra.mrb[16].mxu1 %vm316_vm0, %v2769_v55  ;;  %2518 = vmatprep.subr.bf16.mxu1 %v2517_v33  ;;  %v2541_v33 = vpack.c.bf16 %v209_v25, %v176_v23  ;;  %v2553_v34 = vpack.c.bf16 %v145_v27, %v112_v26  ;;  %v115_v22 = vld [vmem:[%s4729_s1 + $0x300] sm:$0xff]  ;;  %v148_v23 = vld [vmem:[%s4729_s1 + $0x408] sm:$0xff]  ;;  %v182_v26 = vld [vmem:[%s4729_s1 + $0x518] sm:$0xff] }
  0x62   :  { %2292 = vmatmul.mubr.msk.f32.gmra.mrb[18].mxu0 %vm316_vm0, %v2827_v17  ;;  %2520 = vmatpush1.bf16.msra.mxu1 %v2519_v37  ;;  %v211_v37 = vld [vmem:[%s4729_s1 + $0x600] sm:$0xff]  ;;  %v212_v25 = vld [vmem:[%s4729_s1 + $0x608] sm:$0xff]  ;;  %v2587_v31 = vpack.c.bf16 %v148_v23, %v115_v22 }
  0x63   :  { %2508 = vmatpush1.bf16.msra.mxu0 %v2507_v38  ;;  %1086 = vmatprep.mubr.f32.mxu1 %v2623_v3  ;;  %v242_v38 = vld [vmem:[%s4729_s1 + $0x6f8] sm:$0xff]  ;;  %v215_v27 = vld [vmem:[%s4729_s1 + $0x620] sm:$0xff]  ;;  %v2575_v32 = vpack.c.bf16 %v212_v25, %v179_v21 }
  0x64   :  { %2510 = vmatprep.subr.bf16.mxu0 %v2509_v42  ;;  %2522 = vmatprep.subr.bf16.mxu1 %v2521_v43  ;;  %v2557_v42 = vpack.c.bf16 %v211_v37, %v178_v36  ;;  %v241_v43 = vld [vmem:[%s4729_s1 + $0x6f0] sm:$0xff]  ;;  %v2545_v46 = vpack.c.bf16 %v275_v39, %v242_v38  ;;  %v214_v36 = vld [vmem:[%s4729_s1 + $0x618] sm:$0xff]  ;;  %v248_v39 = vld [vmem:[%s4729_s1 + $0x728] sm:$0xff] }
  0x65   :  { %2294 = vmatmul.mubr.msk.f32.gmra.mrb[18].mxu1 %vm316_vm0, %v2827_v17  ;;  %1157 = vmatprep.mubr.f32.mxu0 %v2623_v3  ;;  %v278_v38 = vld [vmem:[%s4729_s1 + $0x818] sm:$0xff] }
  0x66   :  { %2524 = vmatpush1.bf16.msra.mxu1 %v2523_v49  ;;  %1234 = vmatprep.mubr.f32.mxu1 %v2623_v3  ;;  %v277_v49 = vld [vmem:[%s4729_s1 + $0x810] sm:$0xff] }
  0x67   :  { %2512 = vmatpush1.bf16.msra.mxu0 %v2511_v50  ;;  %2526 = vmatprep.subr.bf16.mxu1 %v2525_v51  ;;  %v2559_v50 = vpack.c.bf16 %v210_v45, %v177_v44  ;;  %v2547_v51 = vpack.c.bf16 %v274_v47, %v241_v43  ;;  %v2561_v52 = vpack.c.bf16 %v277_v49, %v244_v48  ;;  %v247_v44 = vld [vmem:[%s4729_s1 + $0x720] sm:$0xff]  ;;  %v280_v45 = vld [vmem:[%s4729_s1 + $0x828] sm:$0xff]  ;;  %v117_v49 = vld [vmem:[%s4729_s1 + $0x310] sm:$0xff] }
  0x68   :  { %2514 = vmatprep.subr.bf16.mxu0 %v2513_v56  ;;  %v308_v56 = vld [vmem:[%s4729_s1 + $0x908] sm:$0xff]  ;;  %v2595_v48 = vpack.c.bf16 %v280_v45, %v247_v44 }
  0x69   :  { %v84_v47 = vld [vmem:[%s4729_s1 + $0x208] sm:$0xff] }
  0x6a   :  { %2528 = vmatpush1.bf16.msra.mxu1 %v2527_v60  ;;  %v47_v60 = vld [vmem:[%s4729_s1 + $0xe0] sm:$0xff] }
  0x6b   :  { %2516 = vmatpush1.bf16.msra.mxu0 %v2515_v61  ;;  %2530 = vmatprep.subr.bf16.mxu1 %v2529_v62  ;;  %v80_v61 = vld [vmem:[%s4729_s1 + $0x1e8] sm:$0xff]  ;;  %v307_v62 = vld [vmem:[%s4729_s1 + $0x900] sm:$0xff] }
  0x6c   :  { %1109 = vmatprep.subr.mxu0 %v304_v1  ;;  %v2565_v1 = vpack.c.bf16 %v81_v58, %v48_v57  ;;  %v2567_v6 = vpack.c.bf16 %v80_v61, %v47_v60  ;;  %v183_v57 = vld [vmem:[%s4729_s1 + $0x520] sm:$0xff]  ;;  %v216_v58 = vld [vmem:[%s4729_s1 + $0x628] sm:$0xff]  ;;  %v249_v60 = vld [vmem:[%s4729_s1 + $0x730] sm:$0xff] }
  0x6d   :  { %v282_v61 = vld [vmem:[%s4729_s1 + $0x838] sm:$0xff] }
  0x6e   :  { %2532 = vmatpush1.bf16.msra.mxu1 %v2531_v5  ;;  %v83_v5 = vld [vmem:[%s4729_s1 + $0x200] sm:$0xff]  ;;  %v2609_v63 = vpack.c.bf16 %v282_v61, %v249_v60 }
  0x6f   :  { %1110 = vmatpush1.msra.mxu0 %v303_v8  ;;  %1186 = vmatprep.subr.mxu1 %v306_v12  ;;  %v49_v8 = vld [vmem:[%s4729_s1 + $0xf0] sm:$0xff]  ;;  %v146_v12 = vld [vmem:[%s4729_s1 + $0x3f8] sm:$0xff]  ;;  %v2581_v14 = vpack.c.bf16 %v83_v5, %v50_v4 }
  0x70   :  { %2295 = vmatmul.mubr.msk.f32.vlgmr.msra.gmra.mrb[20].mxu0 %vm316_vm0, %v2769_v55  ;;  %2534 = vmatprep.subr.bf16.mxu0 %v2533_v11  ;;  %v113_v11 = vld [vmem:[%s4729_s1 + $0x2f0] sm:$0xff]  ;;  %v2583_v19 = vpack.c.bf16 %v82_v9, %v49_v8 }
  0x71   :  { %2536 = vmatpush1.bf16.msra.mxu0 %v2535_v15  ;;  %1163 = vmatprep.mubr.f32.mxu0 %v2623_v3  ;;  %v213_v15 = vld [vmem:[%s4729_s1 + $0x610] sm:$0xff] }
  0x72   :  { %1187 = vmatpush1.msra.mxu1 %v305_v16  ;;  %2538 = vmatprep.subr.bf16.mxu0 %v2537_v20  ;;  %v116_v16 = vld [vmem:[%s4729_s1 + $0x308] sm:$0xff]  ;;  %v2571_v20 = vpack.c.bf16 %v146_v12, %v113_v11 }
  0x73   :  { %2297 = vmatmul.mubr.msk.f32.vlgmr.msra.gmra.mrb[20].mxu1 %vm316_vm0, %v2769_v55  ;;  %2550 = vmatprep.subr.bf16.mxu1 %v2549_v24  ;;  %v2585_v24 = vpack.c.bf16 %v149_v18, %v116_v16 }
  0x74   :  { %2296 = vmatmul.mubr.msk.f32.gmra.mrb[22].mxu0 %vm316_vm0, %v2827_v17  ;;  %2552 = vmatpush1.bf16.msra.mxu1 %v2551_v28  ;;  %v3562_v28 = vld [vmem:[%s4730_s0] sm:$0xff] }
  0x75   :  { %2540 = vmatpush1.bf16.msra.mxu0 %v2539_v29  ;;  %1240 = vmatprep.mubr.f32.mxu1 %v2623_v3  ;;  %v246_v29 = vld [vmem:[%s4729_s1 + $0x718] sm:$0xff] }
  0x76   :  { %2542 = vmatprep.subr.bf16.mxu0 %v2541_v33  ;;  %2554 = vmatprep.subr.bf16.mxu1 %v2553_v34  ;;  %v2589_v33 = vpack.c.bf16 %v215_v27, %v182_v26  ;;  %v245_v34 = vld [vmem:[%s4729_s1 + $0x710] sm:$0xff]  ;;  %v2577_v37 = vpack.c.bf16 %v279_v30, %v246_v29 }
  0x77   :  { %2298 = vmatmul.mubr.msk.f32.gmra.mrb[22].mxu1 %vm316_vm0, %v2827_v17  ;;  %1311 = vmatprep.mubr.f32.mxu0 %v2623_v3 }
  0x78   :  { %2556 = vmatpush1.bf16.msra.mxu1 %v2555_v40  ;;  %1388 = vmatprep.mubr.f32.mxu1 %v2623_v3  ;;  %v281_v40 = vld [vmem:[%s4729_s1 + $0x830] sm:$0xff] }
  0x79   :  { %2544 = vmatpush1.bf16.msra.mxu0 %v2543_v41  ;;  %2558 = vmatprep.subr.bf16.mxu1 %v2557_v42  ;;  %v2591_v41 = vpack.c.bf16 %v214_v36, %v181_v35  ;;  %v2579_v42 = vpack.c.bf16 %v278_v38, %v245_v34  ;;  %v2593_v43 = vpack.c.bf16 %v281_v40, %v248_v39 }
  0x7a   :  { %2546 = vmatprep.subr.bf16.mxu0 %v2545_v46  ;;  %v51_v46 = vld [vmem:[%s4729_s1 + $0x100] sm:$0xff] }
  0x7c   :  { %2560 = vmatpush1.bf16.msra.mxu1 %v2559_v50  ;;  %v150_v50 = vld [vmem:[%s4729_s1 + $0x418] sm:$0xff] }
  0x7d   :  { %2548 = vmatpush1.bf16.msra.mxu0 %v2547_v51  ;;  %2562 = vmatprep.subr.bf16.mxu1 %v2561_v52  ;;  %v311_v51 = vld [vmem:[%s4729_s1 + $0x920] sm:$0xff]  ;;  %v2597_v52 = vpack.c.bf16 %v84_v47, %v51_v46  ;;  %v2601_v54 = vpack.c.bf16 %v150_v50, %v117_v49 }
  0x7e   :  { %1263 = vmatprep.subr.mxu0 %v308_v56  ;;  %v313_v56 = vld [vmem:[%s4729_s1 + $0x930] sm:$0xff] }
  0x80   :  { %2564 = vmatpush1.bf16.msra.mxu1 %v2563_v59  ;;  %v2605_v59 = vpack.c.bf16 %v216_v58, %v183_v57 }
  0x81   :  { %1264 = vmatpush1.msra.mxu0 %v307_v62  ;;  %1340 = vmatprep.subr.mxu1 %v310_v2  ;;  %v2622_v62 = vld [vmem:[%s4730_s0 + $0x8] sm:$0xff]  ;;  %v2061_v2 = vld [vmem:[%s4732_s3] sm:$0xff] }
  0x82   :  { %2299 = vmatmul.mubr.msk.f32.vlgmr.msra.gmra.mrb[24].mxu0 %vm316_vm0, %v2769_v55  ;;  %2566 = vmatprep.subr.bf16.mxu0 %v2565_v1  ;;  %v2573_v55 = vpack.c.bf16 %v213_v15, %v180_v13  ;;  %v1984_v1 = vld [vmem:[%s4731_s2 + $0x8] sm:$0xff] }
  0x83   :  { %2568 = vmatpush1.bf16.msra.mxu0 %v2567_v6  ;;  %1317 = vmatprep.mubr.f32.mxu0 %v2623_v3 }
  0x84   :  { %1341 = vmatpush1.msra.mxu1 %v309_v7  ;;  %2570 = vmatprep.subr.bf16.mxu0 %v2569_v10 }
  0x85   :  { %2301 = vmatmul.mubr.msk.f32.vlgmr.msra.gmra.mrb[24].mxu1 %vm316_vm0, %v3562_v28  ;;  %2582 = vmatprep.subr.bf16.mxu1 %v2581_v14 }
  0x86   :  { %2300 = vmatmul.mubr.msk.f32.gmra.mrb[26].mxu0 %vm316_vm0, %v2827_v17  ;;  %2584 = vmatpush1.bf16.msra.mxu1 %v2583_v19 }
  0x87   :  { %2572 = vmatpush1.bf16.msra.mxu0 %v2571_v20  ;;  %1394 = vmatprep.mubr.f32.mxu1 %v2623_v3 }
  0x88   :  { %2574 = vmatprep.subr.bf16.mxu0 %v2573_v55  ;;  %2586 = vmatprep.subr.bf16.mxu1 %v2585_v24 }
  0x89   :  { %2302 = vmatmul.mubr.msk.f32.gmra.mrb[26].mxu1 %vm316_vm0, %v2827_v17  ;;  %1465 = vmatprep.mubr.f32.mxu0 %v2623_v3  ;;  %v312_v17 = vld [vmem:[%s4729_s1 + $0x928] sm:$0xff] }
  0x8a   :  { %2588 = vmatpush1.bf16.msra.mxu1 %v2587_v31  ;;  %1542 = vmatprep.mubr.f32.mxu1 %v2623_v3 }
  0x8b   :  { %2576 = vmatpush1.bf16.msra.mxu0 %v2575_v32  ;;  %2590 = vmatprep.subr.bf16.mxu1 %v2589_v33 }
  0x8c   :  { %2578 = vmatprep.subr.bf16.mxu0 %v2577_v37 }
  0x8e   :  { %2592 = vmatpush1.bf16.msra.mxu1 %v2591_v41 }
  0x8f   :  { %2580 = vmatpush1.bf16.msra.mxu0 %v2579_v42  ;;  %2594 = vmatprep.subr.bf16.mxu1 %v2593_v43 }
  0x90   :  { %1417 = vmatprep.subr.mxu0 %v312_v17 }
  0x92   :  { %2596 = vmatpush1.bf16.msra.mxu1 %v2595_v48 }
  0x93   :  { %1418 = vmatpush1.msra.mxu0 %v311_v51  ;;  %1494 = vmatprep.subr.mxu1 %v314_v53 }
  0x94   :  { %2303 = vmatmul.mubr.msk.f32.vlgmr.msra.gmra.mrb[28].mxu0 %vm316_vm0, %v3562_v28  ;;  %2598 = vmatprep.subr.bf16.mxu0 %v2597_v52 }
  0x95   :  { %2600 = vmatpush3.bf16.msra.mxu0 %v2597_v52  ;;  %1471 = vmatprep.mubr.f32.mxu0 %v2623_v3 }
  0x96   :  { %1495 = vmatpush1.msra.mxu1 %v313_v56  ;;  %2602 = vmatprep.subr.bf16.mxu0 %v2601_v54 }
  0x97   :  { %2305 = vmatmul.mubr.msk.f32.vlgmr.msra.gmra.mrb[28].mxu1 %vm316_vm0, %v3562_v28 }
  0x98   :  { %2304 = vmatmul.mubr.msk.f32.gmra.mrb[30].mxu0 %vm316_vm0, %v2622_v62  ;;  %1548 = vmatprep.mubr.f32.mxu1 %v2623_v3  ;;  %v2624_v3 = vmov 0  }
  0x99   :  { %2604 = vmatpush3.bf16.msra.mxu0 %v2601_v54  ;;  %2338 = vmatprep.mubr.msk.f32.mxu0 %vm316_vm0, %v3562_v28 }
  0x9a   :  { %2606 = vmatprep.subr.bf16.mxu0 %v2605_v59  ;;  %2616 = vset.pattern.permute.xlu1 %v2624_v3 }
  0x9b   :  { %2306 = vmatmul.mubr.msk.f32.gmra.mrb[30].mxu1 %vm316_vm0, %v2622_v62  ;;  %2615 = vset.pattern.permute.xlu0 %v2624_v3 }
  0x9c   :  { %1992 = vperm.xlu1 %2616, %v1984_v1  }
  0x9d   :  { %2608 = vmatpush3.bf16.msra.mxu0 %v2605_v59 }
  0x9e   :  { %2610 = vmatprep.subr.bf16.mxu0 %v2609_v63 }
  0xa0   :  { %2065 = vperm.xlu1 %2616, %v2061_v2  }
  0xa1   :  { %2612 = vmatpush3.bf16.msra.mxu0 %v2609_v63 }
  0xa2   :  { %2336 = vmatprep.subr.mxu0 %v315_v0 }
  0xa5   :  { %2337 = vmatpush3.msra.mxu0 %v315_v0 }
  0xa6   :  { %2339 = vmatmul.mubr.msk.f32.vlgmr.msra.gmra.mrb[32].mxu0 %vm316_vm0, %v2622_v62 }
  0xe9   :  { %v3662_v4 = vpop.f32.mrb[0].mxu0 }
  0xea   :  { %v1703_v5 = vmul.f32 %v3662_v4, %v3662_v4  ;;  %v3666_v6 = vpop.f32.mrb[1].mxu0 }
  0xeb   :  { %v1630_v7 = vadd.f32 %v3666_v6, %v3662_v4  ;;  %v1704_v8 = vmul.f32 %v3666_v6, %v3666_v6  ;;  %v3672_v9 = vpop.f32.mrb[0].mxu1 }
  0xec   :  { %v1705_v10 = vmul.f32 %v3672_v9, %v3672_v9  ;;  %v3676_v11 = vpop.f32.mrb[1].mxu1 }
  0xed   :  { %v1769_v12 = vadd.f32 %v1704_v8, %v1703_v5  ;;  %v1631_v13 = vadd.f32 %v1630_v7, %v3672_v9  ;;  %v1706_v14 = vmul.f32 %v3676_v11, %v3676_v11  ;;  %v3681_v15 = vpop.f32.mrb[2].mxu0 }
  0xee   :  { %v1736_v16 = vmul.f32 %v3681_v15, %v3681_v15  ;;  %v3685_v18 = vpop.f32.mrb[3].mxu0 }
  0xef   :  { %v1770_v19 = vadd.f32 %v1769_v12, %v1705_v10  ;;  %v1632_v20 = vadd.f32 %v1631_v13, %v3676_v11  ;;  %v1666_v21 = vadd.f32 %v3685_v18, %v3681_v15  ;;  %v1737_v22 = vmul.f32 %v3685_v18, %v3685_v18 }
  0xf0   :  { %v3692_v23 = vpop.f32.mrb[2].mxu1 }
  0xf1   :  { %v1771_v55 = vadd.f32 %v1770_v19, %v1706_v14  ;;  %v1804_v24 = vadd.f32 %v1737_v22, %v1736_v16  ;;  %v1667_v25 = vadd.f32 %v1666_v21, %v3692_v23  ;;  %v1738_v26 = vmul.f32 %v3692_v23, %v3692_v23  ;;  %v3697_v27 = vpop.f32.mrb[3].mxu1 }
  0xf2   :  { %v1739_v28 = vmul.f32 %v3697_v27, %v3697_v27 }
  0xf3   :  { %v1805_v29 = vadd.f32 %v1804_v24, %v1738_v26  ;;  %v1668_v30 = vadd.f32 %v1667_v25, %v3697_v27 }
  0xf5   :  { %v1806_v31 = vadd.f32 %v1805_v29, %v1739_v28 }
  0xfb   :  { %v3702_v32 = vpop.f32.mrb[4].mxu0 }
  0xfc   :  { %v1633_v33 = vadd.f32 %v1632_v20, %v3702_v32  ;;  %v1707_v34 = vmul.f32 %v3702_v32, %v3702_v32  ;;  %v3707_v35 = vpop.f32.mrb[5].mxu0 }
  0xfd   :  { %v1708_v36 = vmul.f32 %v3707_v35, %v3707_v35 }
  0xfe   :  { %v1772_v37 = vadd.f32 %v1771_v55, %v1707_v34  ;;  %v1634_v38 = vadd.f32 %v1633_v33, %v3707_v35  ;;  %v3712_v39 = vpop.f32.mrb[4].mxu1 }
  0xff   :  { %4777 = vst [vmem:[#allocation2_spill] sm:$0xff] %v3712_v39  ;;  %v3714_v40 = vpop.f32.mrb[6].mxu0  ;;  %v1709_v41 = vmul.f32 %v3712_v39, %v3712_v39  ;;  %v3718_v42 = vpop.f32.mrb[5].mxu1 }
 0x100   :  { %4778 = vst [vmem:[#allocation3_spill] sm:$0xff] %v3718_v42  ;;  %v1773_v43 = vadd.f32 %v1772_v37, %v1708_v36  ;;  %v1669_v44 = vadd.f32 %v1668_v30, %v3714_v40  ;;  %v1740_v45 = vmul.f32 %v3714_v40, %v3714_v40  ;;  %v1635_v17 = vadd.f32 %v1634_v38, %v3712_v39  ;;  %v3724_v46 = vpop.f32.mrb[7].mxu0 }
 0x101   :  { %v1741_v47 = vmul.f32 %v3724_v46, %v3724_v46  ;;  %v1710_v48 = vmul.f32 %v3718_v42, %v3718_v42 }
 0x102   :  { %v1807_v49 = vadd.f32 %v1806_v31, %v1740_v45  ;;  %v1774_v50 = vadd.f32 %v1773_v43, %v1709_v41  ;;  %v1670_v51 = vadd.f32 %v1669_v44, %v3724_v46  ;;  %v1636_v52 = vadd.f32 %v1635_v17, %v3718_v42  ;;  %v3732_v53 = vpop.f32.mrb[6].mxu1 }
 0x103   :  { %v1742_v54 = vmul.f32 %v3732_v53, %v3732_v53  ;;  %v3736_v56 = vpop.f32.mrb[7].mxu1 }
 0x104   :  { %v1808_v57 = vadd.f32 %v1807_v49, %v1741_v47  ;;  %v1775_v58 = vadd.f32 %v1774_v50, %v1710_v48  ;;  %v1671_v59 = vadd.f32 %v1670_v51, %v3732_v53  ;;  %v1743_v60 = vmul.f32 %v3736_v56, %v3736_v56 }
 0x106   :  { %v1809_v61 = vadd.f32 %v1808_v57, %v1742_v54  ;;  %v1672_v62 = vadd.f32 %v1671_v59, %v3736_v56 }
 0x108   :  { %v1810_v63 = vadd.f32 %v1809_v61, %v1743_v60 }
 0x10d   :  { %v3742_v0 = vpop.f32.mrb[8].mxu0 }
 0x10e   :  { %4779 = vst [vmem:[#allocation4_spill] sm:$0xff] %v3742_v0  ;;  %v1637_v3 = vadd.f32 %v1636_v52, %v3742_v0  ;;  %v1711_v1 = vmul.f32 %v3742_v0, %v3742_v0  ;;  %v3747_v2 = vpop.f32.mrb[9].mxu0 }
 0x10f   :  { %4780 = vst [vmem:[#allocation5_spill] sm:$0xff] %v3747_v2  ;;  %v1712_v5 = vmul.f32 %v3747_v2, %v3747_v2 }
 0x110   :  { %v1776_v7 = vadd.f32 %v1775_v58, %v1711_v1  ;;  %v1638_v8 = vadd.f32 %v1637_v3, %v3747_v2  ;;  %v3752_v10 = vpop.f32.mrb[8].mxu1 }
 0x111   :  { %4781 = vst [vmem:[#allocation6_spill] sm:$0xff] %v3752_v10  ;;  %v3754_v12 = vpop.f32.mrb[10].mxu0  ;;  %v1713_v13 = vmul.f32 %v3752_v10, %v3752_v10  ;;  %v3758_v14 = vpop.f32.mrb[9].mxu1 }
 0x112   :  { %4782 = vst [vmem:[#allocation7_spill] sm:$0xff] %v3758_v14  ;;  %v1777_v16 = vadd.f32 %v1776_v7, %v1712_v5  ;;  %v1673_v19 = vadd.f32 %v1672_v62, %v3754_v12  ;;  %v1744_v20 = vmul.f32 %v3754_v12, %v3754_v12  ;;  %v1639_v21 = vadd.f32 %v1638_v8, %v3752_v10  ;;  %v3764_v22 = vpop.f32.mrb[11].mxu0 }
 0x113   :  { %v1745_v55 = vmul.f32 %v3764_v22, %v3764_v22  ;;  %v1714_v24 = vmul.f32 %v3758_v14, %v3758_v14 }
 0x114   :  { %v1811_v25 = vadd.f32 %v1810_v63, %v1744_v20  ;;  %v1778_v26 = vadd.f32 %v1777_v16, %v1713_v13  ;;  %v1674_v28 = vadd.f32 %v1673_v19, %v3764_v22  ;;  %v1640_v29 = vadd.f32 %v1639_v21, %v3758_v14  ;;  %v3772_v30 = vpop.f32.mrb[10].mxu1 }
 0x115   :  { %v1746_v31 = vmul.f32 %v3772_v30, %v3772_v30  ;;  %v3776_v33 = vpop.f32.mrb[11].mxu1 }
 0x116   :  { %v1812_v34 = vadd.f32 %v1811_v25, %v1745_v55  ;;  %v1779_v36 = vadd.f32 %v1778_v26, %v1714_v24  ;;  %v1675_v37 = vadd.f32 %v1674_v28, %v3772_v30  ;;  %v1747_v38 = vmul.f32 %v3776_v33, %v3776_v33 }
 0x118   :  { %v1813_v41 = vadd.f32 %v1812_v34, %v1746_v31  ;;  %v1676_v43 = vadd.f32 %v1675_v37, %v3776_v33 }
 0x11a   :  { %v1814_v44 = vadd.f32 %v1813_v41, %v1747_v38 }
 0x11f   :  { %v3782_v45 = vpop.f32.mrb[12].mxu0 }
 0x120   :  { %4783 = vst [vmem:[#allocation8_spill] sm:$0xff] %v3782_v45  ;;  %v1641_v17 = vadd.f32 %v1640_v29, %v3782_v45  ;;  %v1715_v47 = vmul.f32 %v3782_v45, %v3782_v45  ;;  %v3787_v48 = vpop.f32.mrb[13].mxu0 }
 0x121   :  { %4784 = vst [vmem:[#allocation9_spill] sm:$0xff] %v3787_v48  ;;  %v1716_v49 = vmul.f32 %v3787_v48, %v3787_v48 }
 0x122   :  { %v1780_v50 = vadd.f32 %v1779_v36, %v1715_v47  ;;  %v1642_v51 = vadd.f32 %v1641_v17, %v3787_v48  ;;  %v3792_v52 = vpop.f32.mrb[12].mxu1 }
 0x123   :  { %4785 = vst [vmem:[#allocation10_spill] sm:$0xff] %v3792_v52  ;;  %v3794_v54 = vpop.f32.mrb[14].mxu0  ;;  %v1717_v57 = vmul.f32 %v3792_v52, %v3792_v52  ;;  %v3798_v58 = vpop.f32.mrb[13].mxu1 }
 0x124   :  { %4786 = vst [vmem:[#allocation11_spill] sm:$0xff] %v3798_v58  ;;  %v1781_v59 = vadd.f32 %v1780_v50, %v1716_v49  ;;  %v1677_v60 = vadd.f32 %v1676_v43, %v3794_v54  ;;  %v1748_v61 = vmul.f32 %v3794_v54, %v3794_v54  ;;  %v1643_v62 = vadd.f32 %v1642_v51, %v3792_v52  ;;  %v3804_v63 = vpop.f32.mrb[15].mxu0 }
 0x125   :  { %v1749_v3 = vmul.f32 %v3804_v63, %v3804_v63  ;;  %v1718_v1 = vmul.f32 %v3798_v58, %v3798_v58 }
 0x126   :  { %v1815_v5 = vadd.f32 %v1814_v44, %v1748_v61  ;;  %v1782_v7 = vadd.f32 %v1781_v59, %v1717_v57  ;;  %v1678_v8 = vadd.f32 %v1677_v60, %v3804_v63  ;;  %v1644_v13 = vadd.f32 %v1643_v62, %v3798_v58  ;;  %v3812_v16 = vpop.f32.mrb[14].mxu1 }
 0x127   :  { %v1750_v19 = vmul.f32 %v3812_v16, %v3812_v16  ;;  %v3816_v20 = vpop.f32.mrb[15].mxu1 }
 0x128   :  { %v1816_v21 = vadd.f32 %v1815_v5, %v1749_v3  ;;  %v1783_v55 = vadd.f32 %v1782_v7, %v1718_v1  ;;  %v1679_v24 = vadd.f32 %v1678_v8, %v3812_v16  ;;  %v1751_v25 = vmul.f32 %v3816_v20, %v3816_v20 }
 0x12a   :  { %v1817_v26 = vadd.f32 %v1816_v21, %v1750_v19  ;;  %v1680_v28 = vadd.f32 %v1679_v24, %v3816_v20 }
 0x12c   :  { %v1818_v29 = vadd.f32 %v1817_v26, %v1751_v25 }
 0x131   :  { %v3822_v31 = vpop.f32.mrb[16].mxu0 }
 0x132   :  { %4787 = vst [vmem:[#allocation12_spill] sm:$0xff] %v3822_v31  ;;  %v1645_v34 = vadd.f32 %v1644_v13, %v3822_v31  ;;  %v1719_v36 = vmul.f32 %v3822_v31, %v3822_v31  ;;  %v3827_v37 = vpop.f32.mrb[17].mxu0 }
 0x133   :  { %4788 = vst [vmem:[#allocation13_spill] sm:$0xff] %v3827_v37  ;;  %v1720_v38 = vmul.f32 %v3827_v37, %v3827_v37 }
 0x134   :  { %v1784_v41 = vadd.f32 %v1783_v55, %v1719_v36  ;;  %v1646_v43 = vadd.f32 %v1645_v34, %v3827_v37  ;;  %v3832_v44 = vpop.f32.mrb[16].mxu1 }
 0x135   :  { %4789 = vst [vmem:[#allocation14_spill] sm:$0xff] %v3832_v44  ;;  %v3834_v17 = vpop.f32.mrb[18].mxu0  ;;  %v1721_v47 = vmul.f32 %v3832_v44, %v3832_v44  ;;  %v3838_v49 = vpop.f32.mrb[17].mxu1 }
 0x136   :  { %4790 = vst [vmem:[#allocation15_spill] sm:$0xff] %v3838_v49  ;;  %v1785_v50 = vadd.f32 %v1784_v41, %v1720_v38  ;;  %v1681_v51 = vadd.f32 %v1680_v28, %v3834_v17  ;;  %v1752_v57 = vmul.f32 %v3834_v17, %v3834_v17  ;;  %v1647_v59 = vadd.f32 %v1646_v43, %v3832_v44  ;;  %v3844_v60 = vpop.f32.mrb[19].mxu0 }
 0x137   :  { %v1753_v61 = vmul.f32 %v3844_v60, %v3844_v60  ;;  %v1722_v62 = vmul.f32 %v3838_v49, %v3838_v49 }
 0x138   :  { %v1819_v3 = vadd.f32 %v1818_v29, %v1752_v57  ;;  %v1786_v1 = vadd.f32 %v1785_v50, %v1721_v47  ;;  %v1682_v5 = vadd.f32 %v1681_v51, %v3844_v60  ;;  %v1648_v7 = vadd.f32 %v1647_v59, %v3838_v49  ;;  %v3852_v8 = vpop.f32.mrb[18].mxu1 }
 0x139   :  { %v1754_v13 = vmul.f32 %v3852_v8, %v3852_v8  ;;  %v3856_v19 = vpop.f32.mrb[19].mxu1 }
 0x13a   :  { %v1820_v21 = vadd.f32 %v1819_v3, %v1753_v61  ;;  %v1787_v55 = vadd.f32 %v1786_v1, %v1722_v62  ;;  %v1683_v24 = vadd.f32 %v1682_v5, %v3852_v8  ;;  %v1755_v25 = vmul.f32 %v3856_v19, %v3856_v19 }
 0x13c   :  { %v1821_v26 = vadd.f32 %v1820_v21, %v1754_v13  ;;  %v1684_v28 = vadd.f32 %v1683_v24, %v3856_v19 }
 0x13e   :  { %v1822_v29 = vadd.f32 %v1821_v26, %v1755_v25 }
 0x143   :  { %v3862_v34 = vpop.f32.mrb[20].mxu0 }
 0x144   :  { %4791 = vst [vmem:[#allocation16_spill] sm:$0xff] %v3862_v34  ;;  %v1649_v36 = vadd.f32 %v1648_v7, %v3862_v34  ;;  %v1723_v38 = vmul.f32 %v3862_v34, %v3862_v34  ;;  %v3867_v41 = vpop.f32.mrb[21].mxu0 }
 0x145   :  { %4792 = vst [vmem:[#allocation17_spill] sm:$0xff] %v3867_v41  ;;  %v1724_v43 = vmul.f32 %v3867_v41, %v3867_v41 }
 0x146   :  { %v1788_v47 = vadd.f32 %v1787_v55, %v1723_v38  ;;  %v1650_v50 = vadd.f32 %v1649_v36, %v3867_v41  ;;  %v3872_v51 = vpop.f32.mrb[20].mxu1 }
 0x147   :  { %4793 = vst [vmem:[#allocation18_spill] sm:$0xff] %v3872_v51  ;;  %v3874_v57 = vpop.f32.mrb[22].mxu0  ;;  %v1725_v59 = vmul.f32 %v3872_v51, %v3872_v51  ;;  %v3878_v61 = vpop.f32.mrb[21].mxu1 }
 0x148   :  { %4794 = vst [vmem:[#allocation19_spill] sm:$0xff] %v3878_v61  ;;  %v1789_v62 = vadd.f32 %v1788_v47, %v1724_v43  ;;  %v1685_v3 = vadd.f32 %v1684_v28, %v3874_v57  ;;  %v1756_v1 = vmul.f32 %v3874_v57, %v3874_v57  ;;  %v1651_v5 = vadd.f32 %v1650_v50, %v3872_v51  ;;  %v3884_v7 = vpop.f32.mrb[23].mxu0 }
 0x149   :  { %v1757_v13 = vmul.f32 %v3884_v7, %v3884_v7  ;;  %v1726_v21 = vmul.f32 %v3878_v61, %v3878_v61 }
 0x14a   :  { %v1823_v55 = vadd.f32 %v1822_v29, %v1756_v1  ;;  %v1790_v24 = vadd.f32 %v1789_v62, %v1725_v59  ;;  %v1686_v25 = vadd.f32 %v1685_v3, %v3884_v7  ;;  %v1652_v26 = vadd.f32 %v1651_v5, %v3878_v61  ;;  %v3892_v28 = vpop.f32.mrb[22].mxu1 }
 0x14b   :  { %v1758_v36 = vmul.f32 %v3892_v28, %v3892_v28  ;;  %v3896_v38 = vpop.f32.mrb[23].mxu1 }
 0x14c   :  { %v1824_v43 = vadd.f32 %v1823_v55, %v1757_v13  ;;  %v1791_v47 = vadd.f32 %v1790_v24, %v1726_v21  ;;  %v1687_v50 = vadd.f32 %v1686_v25, %v3892_v28  ;;  %v1759_v51 = vmul.f32 %v3896_v38, %v3896_v38 }
 0x14e   :  { %v1825_v29 = vadd.f32 %v1824_v43, %v1758_v36  ;;  %v1688_v59 = vadd.f32 %v1687_v50, %v3896_v38 }
 0x150   :  { %v1826_v62 = vadd.f32 %v1825_v29, %v1759_v51 }
 0x155   :  { %v3902_v3 = vpop.f32.mrb[24].mxu0 }
 0x156   :  { %4795 = vst [vmem:[#allocation20_spill] sm:$0xff] %v3902_v3  ;;  %v1653_v1 = vadd.f32 %v1652_v26, %v3902_v3  ;;  %v1727_v5 = vmul.f32 %v3902_v3, %v3902_v3  ;;  %v3907_v61 = vpop.f32.mrb[25].mxu0 }
 0x157   :  { %4796 = vst [vmem:[#allocation21_spill] sm:$0xff] %v3907_v61  ;;  %v1728_v13 = vmul.f32 %v3907_v61, %v3907_v61 }
 0x158   :  { %v1792_v21 = vadd.f32 %v1791_v47, %v1727_v5  ;;  %v1654_v55 = vadd.f32 %v1653_v1, %v3907_v61  ;;  %v3912_v24 = vpop.f32.mrb[24].mxu1 }
 0x159   :  { %4797 = vst [vmem:[#allocation22_spill] sm:$0xff] %v3912_v24  ;;  %v3914_v25 = vpop.f32.mrb[26].mxu0  ;;  %v1729_v51 = vmul.f32 %v3912_v24, %v3912_v24  ;;  %v3918_v36 = vpop.f32.mrb[25].mxu1 }
 0x15a   :  { %4798 = vst [vmem:[#allocation23_spill] sm:$0xff] %v3918_v36  ;;  %v1793_v26 = vadd.f32 %v1792_v21, %v1728_v13  ;;  %v1689_v43 = vadd.f32 %v1688_v59, %v3914_v25  ;;  %v1760_v50 = vmul.f32 %v3914_v25, %v3914_v25  ;;  %v1655_v29 = vadd.f32 %v1654_v55, %v3912_v24  ;;  %v3924_v47 = vpop.f32.mrb[27].mxu0 }
 0x15b   :  { %v1761_v1 = vmul.f32 %v3924_v47, %v3924_v47  ;;  %v1730_v5 = vmul.f32 %v3918_v36, %v3918_v36 }
 0x15c   :  { %v1827_v61 = vadd.f32 %v1826_v62, %v1760_v50  ;;  %v1794_v3 = vadd.f32 %v1793_v26, %v1729_v51  ;;  %v1690_v41 = vadd.f32 %v1689_v43, %v3924_v47  ;;  %v1656_v13 = vadd.f32 %v1655_v29, %v3918_v36  ;;  %v3932_v59 = vpop.f32.mrb[26].mxu1 }
 0x15d   :  { %v1762_v21 = vmul.f32 %v3932_v59, %v3932_v59  ;;  %v3936_v55 = vpop.f32.mrb[27].mxu1 }
 0x15e   :  { %v1828_v24 = vadd.f32 %v1827_v61, %v1761_v1  ;;  %v1795_v34 = vadd.f32 %v1794_v3, %v1730_v5  ;;  %v1691_v49 = vadd.f32 %v1690_v41, %v3932_v59  ;;  %v1763_v44 = vmul.f32 %v3936_v55, %v3936_v55 }
 0x160   :  { %v1829_v62 = vadd.f32 %v1828_v24, %v1762_v21  ;;  %v1692_v51 = vadd.f32 %v1691_v49, %v3936_v55 }
 0x162   :  { %v1830_v26 = vadd.f32 %v1829_v62, %v1763_v44 }
 0x167   :  { %v3942_v43 = vpop.f32.mrb[28].mxu0 }
 0x168   :  { %4799 = vst [vmem:[#allocation24_spill] sm:$0xff] %v3942_v43  ;;  %v1657_v50 = vadd.f32 %v1656_v13, %v3942_v43  ;;  %v1731_v29 = vmul.f32 %v3942_v43, %v3942_v43  ;;  %v3947_v36 = vpop.f32.mrb[29].mxu0 }
 0x169   :  { %4800 = vst [vmem:[#allocation25_spill] sm:$0xff] %v3947_v36  ;;  %v1732_v61 = vmul.f32 %v3947_v36, %v3947_v36 }
 0x16a   :  { %v1796_v41 = vadd.f32 %v1795_v34, %v1731_v29  ;;  %v1658_v3 = vadd.f32 %v1657_v50, %v3947_v36  ;;  %v3952_v1 = vpop.f32.mrb[28].mxu1 }
 0x16b   :  { %4801 = vst [vmem:[#allocation26_spill] sm:$0xff] %v3952_v1  ;;  %v3954_v24 = vpop.f32.mrb[30].mxu0  ;;  %v1733_v44 = vmul.f32 %v3952_v1, %v3952_v1  ;;  %v3958_v49 = vpop.f32.mrb[29].mxu1 }
 0x16c   :  { %v1797_v5 = vadd.f32 %v1796_v41, %v1732_v61  ;;  %v1693_v13 = vadd.f32 %v1692_v51, %v3954_v24  ;;  %v1764_v21 = vmul.f32 %v3954_v24, %v3954_v24  ;;  %v1659_v62 = vadd.f32 %v1658_v3, %v3952_v1  ;;  %v3964_v34 = vpop.f32.mrb[31].mxu0 }
 0x16d   :  { %v1765_v50 = vmul.f32 %v3964_v34, %v3964_v34  ;;  %v1734_v29 = vmul.f32 %v3958_v49, %v3958_v49 }
 0x16e   :  { %v1831_v36 = vadd.f32 %v1830_v26, %v1764_v21  ;;  %v1694_v43 = vadd.f32 %v1693_v13, %v3964_v34  ;;  %v3971_v37 = vpop.f32.mrb[30].mxu1  ;;  %v1660_v51 = vadd.f32 %v1659_v62, %v3958_v49  ;;  %v1798_v61 = vadd.f32 %v1797_v5, %v1733_v44 }
 0x16f   :  { %v1766_v41 = vmul.f32 %v3971_v37, %v3971_v37  ;;  %v3976_v3 = vpop.f32.mrb[31].mxu1 }
 0x170   :  { %v1832_v1 = vadd.f32 %v1831_v36, %v1765_v50  ;;  %v1695_v31 = vadd.f32 %v1694_v43, %v3971_v37  ;;  %v1767_v58 = vmul.f32 %v3976_v3, %v3976_v3  ;;  %v1799_v52 = vadd.f32 %v1798_v61, %v1734_v29 }
 0x172   :  { %v1696_v26 = vadd.f32 %v1695_v31, %v3976_v3  ;;  %v1833_v13 = vadd.f32 %v1832_v1, %v1766_v41  ;;  %v2062_v41 = vld [vmem:[%s4732_s3 + $0x8] sm:$0xff] }
 0x174   :  { %v1834_v21 = vadd.f32 %v1833_v13, %v1767_v58  ;;  %v4002_v13 = vpop.permute.xlu1 %1992 }
 0x179   :  { %v3982_v48 = vpop.f32.mrb[32].mxu0 }
 0x17a   :  { %v1768_v44 = vmul.f32 %v3982_v48, %v3982_v48  ;;  %v3986_v5 = vpop.f32.mrb[33].mxu0  ;;  %v1697_v36 = vsel %vm1661_vm1, %v3982_v48, 0.0 }
 0x17b   :  { %v1662_v43 = vsel %vm1661_vm1, %v3986_v5, 0.0  ;;  %v1735_v62 = vmul.f32 %v3986_v5, %v3986_v5  ;;  %v1698_v31 = vadd.f32 %v1697_v36, %v1696_v26  ;;  %v1983_v26 = vld [vmem:[%s4731_s2] sm:$0xff] }
 0x17c   :  { %v1835_v58 = vsel %vm1661_vm1, %v1768_v44, 0.0  ;;  %v1663_v1 = vadd.f32 %v1662_v43, %v1660_v51  ;;  %v4004_v51 = vpop.permute.xlu1 %2065 }
 0x17d   :  { %1699 = vadd.xlane.f32.xlu0 %v1698_v31  ;;  %v1836_v50 = vadd.f32 %v1835_v58, %v1834_v21  ;;  %v1800_v29 = vsel %vm1661_vm1, %v1735_v62, 0.0  ;;  %4802 = vst [vmem:[#allocation27_spill] sm:$0xff] %v4004_v51 }
 0x17e   :  { %v1801_v61 = vadd.f32 %v1800_v29, %v1799_v52 }
 0x17f   :  { %1837 = vadd.xlane.f32.xlu1 %v1836_v50 }
 0x181   :  { %1664 = vadd.xlane.f32.xlu0 %v1663_v1 }
 0x183   :  { %1802 = vadd.xlane.f32.xlu1 %v1801_v61 }
 0x194   :  { %2070 = vperm.xlu1 %2616, %v2062_v41  }
 0x197   :  { %1987 = vperm.xlu0 %2615, %v1983_v26  }
 0x20a   :  { %v1700_v21 = vpop.xlane.xlu0 %1699 }
 0x20b   :  { %v4006_v44 = vmul.f32 0.00024213074, %v1700_v21 }
 0x20c   :  { %v1838_v52 = vpop.xlane.xlu1 %1837 }
 0x20d   :  { %v1840_v36 = vmul.f32 0.00024213074, %v1838_v52  ;;  %v1842_v43 = vmul.f32 %v4006_v44, %v4006_v44 }
 0x20e   :  { %v1665_v58 = vpop.xlane.xlu0 %1664 }
 0x20f   :  { %v1844_v41 = vsub.f32 %v1840_v36, %v1842_v43  ;;  %v4022_v26 = vmul.f32 0.00024213074, %v1665_v58  ;;  %v4824_v36 = vsub.f32 %v3714_v40, %v4006_v44  ;;  %v4829_v40 = vsub.f32 %v3764_v22, %v4006_v44 }
 0x210   :  { %v1803_v31 = vpop.xlane.xlu1 %1802  ;;  %v4834_v22 = vsub.f32 %v3812_v16, %v4006_v44  ;;  %v4839_v16 = vsub.f32 %v3856_v19, %v4006_v44  ;;  %v4844_v19 = vsub.f32 %v3914_v25, %v4006_v44  ;;  %v4849_v25 = vsub.f32 %v3964_v34, %v4006_v44 }
 0x211   :  { %v1846_v43 = vmax.f32 %v1844_v41, 0.0  ;;  %v1839_v58 = vmul.f32 0.00024213074, %v1803_v31  ;;  %v1841_v21 = vmul.f32 %v4022_v26, %v4022_v26 }
 0x213   :  { %v1914_v41 = vadd.f32 1e-05, %v1846_v43  ;;  %v1843_v31 = vsub.f32 %v1839_v58, %v1841_v21  ;;  %v4821_v43 = vsub.f32 %v3685_v18, %v4006_v44  ;;  %v4822_v58 = vsub.f32 %v3692_v23, %v4006_v44 }
 0x214   :  { %v4826_v18 = vsub.f32 %v3732_v53, %v4006_v44  ;;  %v4827_v23 = vsub.f32 %v3736_v56, %v4006_v44  ;;  %v4831_v53 = vsub.f32 %v3776_v33, %v4006_v44  ;;  %v4832_v56 = vsub.f32 %v3794_v54, %v4006_v44 }
 0x215   :  { %2617 = vrsqrt.f32 %v1914_v41  ;;  %v1845_v21 = vmax.f32 %v1843_v31, 0.0  ;;  %v4836_v33 = vsub.f32 %v3834_v17, %v4006_v44  ;;  %v4837_v54 = vsub.f32 %v3844_v60, %v4006_v44 }
 0x216   :  { %v4841_v17 = vsub.f32 %v3884_v7, %v4006_v44  ;;  %v4842_v60 = vsub.f32 %v3892_v28, %v4006_v44  ;;  %v4846_v7 = vsub.f32 %v3932_v59, %v4006_v44  ;;  %v4847_v28 = vsub.f32 %v3936_v55, %v4006_v44 }
 0x217   :  { %v1913_v41 = vadd.f32 1e-05, %v1845_v21  ;;  %v4823_v21 = vsub.f32 %v3697_v27, %v4006_v44  ;;  %v4828_v27 = vsub.f32 %v3754_v12, %v4006_v44  ;;  %v4833_v12 = vsub.f32 %v3804_v63, %v4006_v44 }
 0x218   :  { %v4838_v63 = vsub.f32 %v3852_v8, %v4006_v44  ;;  %v4843_v8 = vsub.f32 %v3896_v38, %v4006_v44  ;;  %v4848_v38 = vsub.f32 %v3954_v24, %v4006_v44  ;;  %v4851_v59 = vsub.f32 %v3976_v3, %v4006_v44 }
 0x219   :  { %2619 = vrsqrt.f32 %v1913_v41  ;;  %v4820_v41 = vsub.f32 %v3681_v15, %v4006_v44  ;;  %v4825_v15 = vsub.f32 %v3724_v46, %v4006_v44  ;;  %v4830_v46 = vsub.f32 %v3772_v30, %v4006_v44 }
 0x21a   :  { %v4835_v30 = vsub.f32 %v3816_v20, %v4006_v44  ;;  %v4840_v20 = vsub.f32 %v3874_v57, %v4006_v44  ;;  %v4845_v57 = vsub.f32 %v3924_v47, %v4006_v44  ;;  %v4850_v47 = vsub.f32 %v3971_v37, %v4006_v44 }
 0x21b   :  { %v4852_v55 = vsub.f32 %v3982_v48, %v4006_v44 }
 0x21f   :  { %v2618_v14 = vpop.eup %2617 }
 0x220   :  { %v1950_v31 = vmul.f32 %v2618_v14, %v4820_v41  ;;  %v1951_v51 = vmul.f32 %v2618_v14, %v4821_v43  ;;  %v1952_v45 = vmul.f32 %v2618_v14, %v4822_v58  ;;  %v1953_v1 = vmul.f32 %v2618_v14, %v4823_v21 }
 0x221   :  { %v1954_v52 = vmul.f32 %v2618_v14, %v4824_v36  ;;  %v1955_v41 = vmul.f32 %v2618_v14, %v4825_v15  ;;  %v1956_v43 = vmul.f32 %v2618_v14, %v4826_v18  ;;  %v1957_v58 = vmul.f32 %v2618_v14, %v4827_v23 }
 0x222   :  { %v1958_v21 = vmul.f32 %v2618_v14, %v4828_v27  ;;  %v1959_v36 = vmul.f32 %v2618_v14, %v4829_v40  ;;  %v1960_v15 = vmul.f32 %v2618_v14, %v4830_v46  ;;  %v1961_v18 = vmul.f32 %v2618_v14, %v4831_v53 }
 0x223   :  { %v4176_v29 = vpop.eup %2619  ;;  %v1962_v23 = vmul.f32 %v2618_v14, %v4832_v56  ;;  %v1963_v27 = vmul.f32 %v2618_v14, %v4833_v12  ;;  %v1964_v40 = vmul.f32 %v2618_v14, %v4834_v22  ;;  %v1965_v46 = vmul.f32 %v2618_v14, %v4835_v30 }
 0x224   :  { %v1966_v53 = vmul.f32 %v2618_v14, %v4836_v33  ;;  %v1967_v56 = vmul.f32 %v2618_v14, %v4837_v54  ;;  %v1968_v12 = vmul.f32 %v2618_v14, %v4838_v63  ;;  %v1969_v22 = vmul.f32 %v2618_v14, %v4839_v16 }
 0x225   :  { %v1970_v30 = vmul.f32 %v2618_v14, %v4840_v20  ;;  %v1971_v33 = vmul.f32 %v2618_v14, %v4841_v17  ;;  %v1972_v54 = vmul.f32 %v2618_v14, %v4842_v60  ;;  %v1973_v63 = vmul.f32 %v2618_v14, %v4843_v8 }
 0x226   :  { %v1974_v16 = vmul.f32 %v2618_v14, %v4844_v19  ;;  %v1975_v20 = vmul.f32 %v2618_v14, %v4845_v57  ;;  %v1976_v17 = vmul.f32 %v2618_v14, %v4846_v7  ;;  %v1977_v60 = vmul.f32 %v2618_v14, %v4847_v28 }
 0x227   :  { %v1978_v8 = vmul.f32 %v2618_v14, %v4848_v38  ;;  %v1979_v19 = vmul.f32 %v2618_v14, %v4849_v25  ;;  %v1980_v57 = vmul.f32 %v2618_v14, %v4850_v47  ;;  %v1981_v7 = vmul.f32 %v2618_v14, %v4851_v59 }
 0x228   :  { %v1982_v28 = vmul.f32 %v2618_v14, %v4852_v55  ;;  %v2028_v50 = vmul.f32 %v4002_v13, %v1950_v31  ;;  %v2029_v24 = vmul.f32 %v4002_v13, %v1951_v51  ;;  %v2030_v38 = vmul.f32 %v4002_v13, %v1952_v45 }
 0x229   :  { %v2031_v34 = vmul.f32 %v4002_v13, %v1953_v1  ;;  %v2032_v25 = vmul.f32 %v4002_v13, %v1954_v52  ;;  %v2033_v37 = vmul.f32 %v4002_v13, %v1955_v41  ;;  %v2034_v47 = vmul.f32 %v4002_v13, %v1956_v43 }
 0x22a   :  { %v2035_v3 = vmul.f32 %v4002_v13, %v1957_v58  ;;  %v2036_v59 = vmul.f32 %v4002_v13, %v1958_v21  ;;  %v2037_v14 = vmul.f32 %v4002_v13, %v1959_v36  ;;  %v2038_v48 = vmul.f32 %v4002_v13, %v1960_v15 }
 0x22b   :  { %v2039_v51 = vmul.f32 %v4002_v13, %v1961_v18  ;;  %v2040_v45 = vmul.f32 %v4002_v13, %v1962_v23  ;;  %v2041_v44 = vmul.f32 %v4002_v13, %v1963_v27  ;;  %v2042_v1 = vmul.f32 %v4002_v13, %v1964_v40 }
 0x22c   :  { %v2043_v52 = vmul.f32 %v4002_v13, %v1965_v46  ;;  %v2044_v31 = vmul.f32 %v4002_v13, %v1966_v53  ;;  %v2045_v41 = vmul.f32 %v4002_v13, %v1967_v56  ;;  %v2046_v43 = vmul.f32 %v4002_v13, %v1968_v12 }
 0x22d   :  { %v2047_v58 = vmul.f32 %v4002_v13, %v1969_v22  ;;  %v2048_v21 = vmul.f32 %v4002_v13, %v1970_v30  ;;  %v2049_v36 = vmul.f32 %v4002_v13, %v1971_v33  ;;  %v2050_v15 = vmul.f32 %v4002_v13, %v1972_v54  ;;  %v2071_v22 = vpop.permute.xlu1 %2070 }
 0x22e   :  { %v2051_v18 = vmul.f32 %v4002_v13, %v1973_v63  ;;  %v2052_v23 = vmul.f32 %v4002_v13, %v1974_v16  ;;  %v2053_v27 = vmul.f32 %v4002_v13, %v1975_v20  ;;  %v2054_v40 = vmul.f32 %v4002_v13, %v1976_v17 }
 0x22f   :  { %v2055_v46 = vmul.f32 %v4002_v13, %v1977_v60  ;;  %v2056_v53 = vmul.f32 %v4002_v13, %v1978_v8  ;;  %v2057_v56 = vmul.f32 %v4002_v13, %v1979_v19  ;;  %v2058_v12 = vmul.f32 %v4002_v13, %v1980_v57 }
 0x230   :  { %v2059_v30 = vmul.f32 %v4002_v13, %v1981_v7  ;;  %v2060_v33 = vmul.f32 %v4002_v13, %v1982_v28  ;;  %v2106_v54 = vadd.f32 %v2071_v22, %v2028_v50  ;;  %v2107_v63 = vadd.f32 %v2071_v22, %v2029_v24 }
 0x231   :  { %v2108_v16 = vadd.f32 %v2071_v22, %v2030_v38  ;;  %v2109_v55 = vadd.f32 %v2071_v22, %v2031_v34  ;;  %v2110_v20 = vadd.f32 %v2071_v22, %v2032_v25  ;;  %v2111_v62 = vadd.f32 %v2071_v22, %v2033_v37 }
 0x232   :  { %v2112_v17 = vadd.f32 %v2071_v22, %v2034_v47  ;;  %v2113_v61 = vadd.f32 %v2071_v22, %v2035_v3  ;;  %v2114_v60 = vadd.f32 %v2071_v22, %v2036_v59  ;;  %v2115_v10 = vadd.f32 %v2071_v22, %v2037_v14 }
 0x233   :  { %v2116_v8 = vadd.f32 %v2071_v22, %v2038_v48  ;;  %v2117_v2 = vadd.f32 %v2071_v22, %v2039_v51  ;;  %v2118_v19 = vadd.f32 %v2071_v22, %v2040_v45  ;;  %v2119_v0 = vadd.f32 %v2071_v22, %v2041_v44 }
 0x234   :  { %v2120_v57 = vadd.f32 %v2071_v22, %v2042_v1  ;;  %v2121_v42 = vadd.f32 %v2071_v22, %v2043_v52  ;;  %v2122_v39 = vadd.f32 %v2071_v22, %v2044_v31  ;;  %v4274_v7 = vadd.f32 %v2071_v22, %v2045_v41 }
 0x235   :  { %v4276_v13 = vadd.f32 %v2071_v22, %v2046_v43  ;;  %v4278_v50 = vadd.f32 %v2071_v22, %v2047_v58  ;;  %v4280_v28 = vadd.f32 %v2071_v22, %v2048_v21  ;;  %v4282_v24 = vadd.f32 %v2071_v22, %v2049_v36 }
 0x236   :  { %v4284_v38 = vadd.f32 %v2071_v22, %v2050_v15  ;;  %v4286_v34 = vadd.f32 %v2071_v22, %v2051_v18  ;;  %v4288_v25 = vadd.f32 %v2071_v22, %v2052_v23  ;;  %v4290_v37 = vadd.f32 %v2071_v22, %v2053_v27 }
 0x237   :  { %v4292_v47 = vadd.f32 %v2071_v22, %v2054_v40  ;;  %v4294_v3 = vadd.f32 %v2071_v22, %v2055_v46  ;;  %v4296_v59 = vadd.f32 %v2071_v22, %v2056_v53  ;;  %v4298_v14 = vadd.f32 %v2071_v22, %v2057_v56 }
 0x238   :  { %v4300_v48 = vadd.f32 %v2071_v22, %v2058_v12  ;;  %v4302_v51 = vadd.f32 %v2071_v22, %v2059_v30  ;;  %v4304_v45 = vadd.f32 %v2071_v22, %v2060_v33  ;;  %v2172_v44 = vmax.f32 %v2106_v54, 0.0 }
 0x239   :  { %v2173_v1 = vmax.f32 %v2107_v63, 0.0  ;;  %v2174_v52 = vmax.f32 %v2108_v16, 0.0  ;;  %v2175_v31 = vmax.f32 %v2109_v55, 0.0  ;;  %v2176_v41 = vmax.f32 %v2110_v20, 0.0 }
 0x23a   :  { %v2177_v43 = vmax.f32 %v2111_v62, 0.0  ;;  %v2178_v58 = vmax.f32 %v2112_v17, 0.0  ;;  %v2179_v21 = vmax.f32 %v2113_v61, 0.0  ;;  %v2180_v36 = vmax.f32 %v2114_v60, 0.0  ;;  %2238 = vst [vmem:[%s4733_s4 + $0x108] sm:$0xff] %v2172_v44  ;;  %v4853_v17 = vld [vmem:[#allocation26_spill] sm:$0xff] }
 0x23b   :  { %v2181_v15 = vmax.f32 %v2115_v10, 0.0  ;;  %v2182_v18 = vmax.f32 %v2116_v8, 0.0  ;;  %v2183_v23 = vmax.f32 %v2117_v2, 0.0  ;;  %v2184_v27 = vmax.f32 %v2118_v19, 0.0  ;;  %2239 = vst [vmem:[%s4733_s4 + $0x110] sm:$0xff] %v2173_v1  ;;  %2240 = vst [vmem:[%s4733_s4 + $0x118] sm:$0xff] %v2174_v52 }
 0x23c   :  { %2241 = vst [vmem:[%s4733_s4 + $0x120] sm:$0xff] %v2175_v31  ;;  %2242 = vst [vmem:[%s4733_s4 + $0x128] sm:$0xff] %v2176_v41  ;;  %v2185_v10 = vmax.f32 %v2119_v0, 0.0  ;;  %v2186_v62 = vmax.f32 %v2120_v57, 0.0  ;;  %v2187_v2 = vmax.f32 %v2121_v42, 0.0  ;;  %v2188_v61 = vmax.f32 %v2122_v39, 0.0 }
 0x23d   :  { %2243 = vst [vmem:[%s4733_s4 + $0x130] sm:$0xff] %v2177_v43  ;;  %2244 = vst [vmem:[%s4733_s4 + $0x138] sm:$0xff] %v2178_v58  ;;  %v2189_v0 = vmax.f32 %v4274_v7, 0.0  ;;  %v2190_v39 = vmax.f32 %v4276_v13, 0.0  ;;  %v2191_v42 = vmax.f32 %v4278_v50, 0.0  ;;  %v2192_v40 = vmax.f32 %v4280_v28, 0.0 }
 0x23e   :  { %2245 = vst [vmem:[%s4733_s4 + $0x140] sm:$0xff] %v2179_v21  ;;  %2246 = vst [vmem:[%s4733_s4 + $0x148] sm:$0xff] %v2180_v36  ;;  %v2193_v46 = vmax.f32 %v4282_v24, 0.0  ;;  %v2194_v53 = vmax.f32 %v4284_v38, 0.0  ;;  %v2195_v56 = vmax.f32 %v4286_v34, 0.0  ;;  %v2196_v12 = vmax.f32 %v4288_v25, 0.0 }
 0x23f   :  { %2247 = vst [vmem:[%s4733_s4 + $0x150] sm:$0xff] %v2181_v15  ;;  %2248 = vst [vmem:[%s4733_s4 + $0x158] sm:$0xff] %v2182_v18  ;;  %v2197_v22 = vmax.f32 %v4290_v37, 0.0  ;;  %v2198_v30 = vmax.f32 %v4292_v47, 0.0  ;;  %v2199_v33 = vmax.f32 %v4294_v3, 0.0  ;;  %v2200_v54 = vmax.f32 %v4296_v59, 0.0 }
 0x240   :  { %2249 = vst [vmem:[%s4733_s4 + $0x160] sm:$0xff] %v2183_v23  ;;  %2250 = vst [vmem:[%s4733_s4 + $0x168] sm:$0xff] %v2184_v27  ;;  %v2201_v63 = vmax.f32 %v4298_v14, 0.0  ;;  %v2202_v16 = vmax.f32 %v4300_v48, 0.0  ;;  %v2203_v55 = vmax.f32 %v4302_v51, 0.0  ;;  %v2204_v20 = vmax.f32 %v4304_v45, 0.0 }
 0x241   :  { %2251 = vst [vmem:[%s4733_s4 + $0x170] sm:$0xff] %v2185_v10  ;;  %2252 = vst [vmem:[%s4733_s4 + $0x178] sm:$0xff] %v2186_v62  ;;  %v1877_v60 = vsub.f32 %v4853_v17, %v4022_v26  ;;  %v1878_v8 = vsub.f32 %v3958_v49, %v4022_v26  ;;  %v1879_v19 = vsub.f32 %v3986_v5, %v4022_v26  ;;  %v4860_v25 = vld [vmem:[#allocation2_spill] sm:$0xff]  ;;  %v4862_v47 = vld [vmem:[#allocation3_spill] sm:$0xff] }
 0x242   :  { %2253 = vst [vmem:[%s4733_s4 + $0x180] sm:$0xff] %v2187_v2  ;;  %2254 = vst [vmem:[%s4733_s4 + $0x188] sm:$0xff] %v2188_v61  ;;  %v4854_v57 = vsub.f32 %v3662_v4, %v4022_v26  ;;  %v4855_v4 = vsub.f32 %v3666_v6, %v4022_v26  ;;  %v4856_v5 = vsub.f32 %v3672_v9, %v4022_v26  ;;  %v4864_v59 = vld [vmem:[#allocation4_spill] sm:$0xff]  ;;  %v4866_v48 = vld [vmem:[#allocation5_spill] sm:$0xff] }
 0x243   :  { %2255 = vst [vmem:[%s4733_s4 + $0x190] sm:$0xff] %v2189_v0  ;;  %2256 = vst [vmem:[%s4733_s4 + $0x198] sm:$0xff] %v2190_v39  ;;  %v4857_v50 = vsub.f32 %v3676_v11, %v4022_v26  ;;  %v4858_v24 = vsub.f32 %v3702_v32, %v4022_v26  ;;  %v4859_v6 = vsub.f32 %v3707_v35, %v4022_v26  ;;  %v4868_v45 = vld [vmem:[#allocation6_spill] sm:$0xff]  ;;  %v4870_v52 = vld [vmem:[#allocation7_spill] sm:$0xff] }
 0x244   :  { %2257 = vst [vmem:[%s4733_s4 + $0x1a0] sm:$0xff] %v2191_v42  ;;  %2258 = vst [vmem:[%s4733_s4 + $0x1a8] sm:$0xff] %v2192_v40  ;;  %v1917_v7 = vmul.f32 %v4176_v29, %v4854_v57  ;;  %v1918_v49 = vmul.f32 %v4176_v29, %v4855_v4  ;;  %v1919_v13 = vmul.f32 %v4176_v29, %v4856_v5  ;;  %v4872_v43 = vld [vmem:[#allocation8_spill] sm:$0xff]  ;;  %v4874_v36 = vld [vmem:[#allocation9_spill] sm:$0xff] }
 0x245   :  { %2259 = vst [vmem:[%s4733_s4 + $0x1b0] sm:$0xff] %v2193_v46  ;;  %2260 = vst [vmem:[%s4733_s4 + $0x1b8] sm:$0xff] %v2194_v53  ;;  %v1920_v28 = vmul.f32 %v4176_v29, %v4857_v50  ;;  %v1921_v38 = vmul.f32 %v4176_v29, %v4858_v24  ;;  %v1922_v34 = vmul.f32 %v4176_v29, %v4859_v6  ;;  %v4876_v23 = vld [vmem:[#allocation10_spill] sm:$0xff]  ;;  %v4878_v62 = vld [vmem:[#allocation11_spill] sm:$0xff] }
 0x246   :  { %2261 = vst [vmem:[%s4733_s4 + $0x1c0] sm:$0xff] %v2195_v56  ;;  %2262 = vst [vmem:[%s4733_s4 + $0x1c8] sm:$0xff] %v2196_v12  ;;  %v4861_v9 = vsub.f32 %v4860_v25, %v4022_v26  ;;  %v4863_v11 = vsub.f32 %v4862_v47, %v4022_v26  ;;  %v4865_v32 = vsub.f32 %v4864_v59, %v4022_v26  ;;  %v4880_v0 = vld [vmem:[#allocation12_spill] sm:$0xff]  ;;  %v4882_v40 = vld [vmem:[#allocation13_spill] sm:$0xff]  ;;  %v1988_v59 = vpop.permute.xlu0 %1987 }
 0x247   :  { %2263 = vst [vmem:[%s4733_s4 + $0x1d0] sm:$0xff] %v2197_v22  ;;  %2264 = vst [vmem:[%s4733_s4 + $0x1d8] sm:$0xff] %v2198_v30  ;;  %v4867_v35 = vsub.f32 %v4866_v48, %v4022_v26  ;;  %v4869_v44 = vsub.f32 %v4868_v45, %v4022_v26  ;;  %v4871_v31 = vsub.f32 %v4870_v52, %v4022_v26  ;;  %v4884_v56 = vld [vmem:[#allocation14_spill] sm:$0xff]  ;;  %v4886_v30 = vld [vmem:[#allocation15_spill] sm:$0xff] }
 0x248   :  { %2265 = vst [vmem:[%s4733_s4 + $0x1e0] sm:$0xff] %v2199_v33  ;;  %2266 = vst [vmem:[%s4733_s4 + $0x1e8] sm:$0xff] %v2200_v54  ;;  %v1923_v37 = vmul.f32 %v4176_v29, %v4861_v9  ;;  %v1924_v3 = vmul.f32 %v4176_v29, %v4863_v11  ;;  %v1925_v14 = vmul.f32 %v4176_v29, %v4865_v32  ;;  %v4892_v4 = vld [vmem:[#allocation18_spill] sm:$0xff]  ;;  %v4894_v24 = vld [vmem:[#allocation19_spill] sm:$0xff] }
 0x249   :  { %2267 = vst [vmem:[%s4733_s4 + $0x1f0] sm:$0xff] %v2201_v63  ;;  %2268 = vst [vmem:[%s4733_s4 + $0x1f8] sm:$0xff] %v2202_v16  ;;  %v1926_v51 = vmul.f32 %v4176_v29, %v4867_v35  ;;  %v1927_v1 = vmul.f32 %v4176_v29, %v4869_v44  ;;  %v1928_v41 = vmul.f32 %v4176_v29, %v4871_v31  ;;  %v4888_v63 = vld [vmem:[#allocation16_spill] sm:$0xff]  ;;  %v4898_v32 = vld [vmem:[#allocation21_spill] sm:$0xff] }
 0x24a   :  { %2269 = vst [vmem:[%s4733_s4 + $0x200] sm:$0xff] %v2203_v55  ;;  %2270 = vst.msk [vmem:[%s4733_s4 + $0x208] sm:$0xff] %vm1661_vm1, %v2204_v20  ;;  %v4873_v58 = vsub.f32 %v4872_v43, %v4022_v26  ;;  %v4875_v15 = vsub.f32 %v4874_v36, %v4022_v26  ;;  %v4877_v27 = vsub.f32 %v4876_v23, %v4022_v26  ;;  %v4890_v20 = vld [vmem:[#allocation17_spill] sm:$0xff]  ;;  %v4896_v9 = vld [vmem:[#allocation20_spill] sm:$0xff] }
 0x24b   :  { %v4879_v2 = vsub.f32 %v4878_v62, %v4022_v26  ;;  %v4881_v39 = vsub.f32 %v4880_v0, %v4022_v26  ;;  %v4883_v46 = vsub.f32 %v4882_v40, %v4022_v26  ;;  %v4885_v12 = vsub.f32 %v4884_v56, %v4022_v26  ;;  %v4900_v45 = vld [vmem:[#allocation22_spill] sm:$0xff]  ;;  %v4902_v31 = vld [vmem:[#allocation23_spill] sm:$0xff]  ;;  %v4904_v36 = vld [vmem:[#allocation24_spill] sm:$0xff] }
 0x24c   :  { %v1929_v21 = vmul.f32 %v4176_v29, %v4873_v58  ;;  %v1930_v18 = vmul.f32 %v4176_v29, %v4875_v15  ;;  %v1931_v10 = vmul.f32 %v4176_v29, %v4877_v27  ;;  %v4887_v33 = vsub.f32 %v4886_v30, %v4022_v26  ;;  %v4906_v27 = vld [vmem:[#allocation25_spill] sm:$0xff] }
 0x24d   :  { %v1932_v61 = vmul.f32 %v4176_v29, %v4879_v2  ;;  %v1933_v42 = vmul.f32 %v4176_v29, %v4881_v39  ;;  %v1934_v53 = vmul.f32 %v4176_v29, %v4883_v46  ;;  %v1935_v22 = vmul.f32 %v4176_v29, %v4885_v12 }
 0x24e   :  { %v1936_v54 = vmul.f32 %v4176_v29, %v4887_v33  ;;  %v4889_v16 = vsub.f32 %v4888_v63, %v4022_v26  ;;  %v4891_v17 = vsub.f32 %v4890_v20, %v4022_v26  ;;  %v4893_v5 = vsub.f32 %v4892_v4, %v4022_v26 }
 0x24f   :  { %v4895_v6 = vsub.f32 %v4894_v24, %v4022_v26  ;;  %v4897_v47 = vsub.f32 %v4896_v9, %v4022_v26  ;;  %v4899_v48 = vsub.f32 %v4898_v32, %v4022_v26  ;;  %v4901_v44 = vsub.f32 %v4900_v45, %v4022_v26 }
 0x250   :  { %v1937_v55 = vmul.f32 %v4176_v29, %v4889_v16  ;;  %v1938_v57 = vmul.f32 %v4176_v29, %v4891_v17  ;;  %v1939_v50 = vmul.f32 %v4176_v29, %v4893_v5  ;;  %v4903_v43 = vsub.f32 %v4902_v31, %v4022_v26 }
 0x251   :  { %v1940_v25 = vmul.f32 %v4176_v29, %v4895_v6  ;;  %v1941_v11 = vmul.f32 %v4176_v29, %v4897_v47  ;;  %v1942_v35 = vmul.f32 %v4176_v29, %v4899_v48  ;;  %v1943_v52 = vmul.f32 %v4176_v29, %v4901_v44 }
 0x252   :  { %v1944_v58 = vmul.f32 %v4176_v29, %v4903_v43  ;;  %v4905_v15 = vsub.f32 %v4904_v36, %v4022_v26  ;;  %v4907_v62 = vsub.f32 %v4906_v27, %v4022_v26  ;;  %v1947_v0 = vmul.f32 %v4176_v29, %v1877_v60 }
 0x253   :  { %v1948_v39 = vmul.f32 %v4176_v29, %v1878_v8  ;;  %v1949_v40 = vmul.f32 %v4176_v29, %v1879_v19  ;;  %v1995_v46 = vmul.f32 %v1988_v59, %v1917_v7  ;;  %v1996_v56 = vmul.f32 %v1988_v59, %v1918_v49 }
 0x254   :  { %v1945_v23 = vmul.f32 %v4176_v29, %v4905_v15  ;;  %v1946_v2 = vmul.f32 %v4176_v29, %v4907_v62  ;;  %v1997_v12 = vmul.f32 %v1988_v59, %v1919_v13  ;;  %v1998_v30 = vmul.f32 %v1988_v59, %v1920_v28 }
 0x255   :  { %v1999_v33 = vmul.f32 %v1988_v59, %v1921_v38  ;;  %v2000_v63 = vmul.f32 %v1988_v59, %v1922_v34  ;;  %v2001_v16 = vmul.f32 %v1988_v59, %v1923_v37  ;;  %v2002_v20 = vmul.f32 %v1988_v59, %v1924_v3 }
 0x256   :  { %v2003_v17 = vmul.f32 %v1988_v59, %v1925_v14  ;;  %v2004_v4 = vmul.f32 %v1988_v59, %v1926_v51  ;;  %v2005_v5 = vmul.f32 %v1988_v59, %v1927_v1  ;;  %v2006_v26 = vmul.f32 %v1988_v59, %v1928_v41 }
 0x257   :  { %v2007_v24 = vmul.f32 %v1988_v59, %v1929_v21  ;;  %v2008_v6 = vmul.f32 %v1988_v59, %v1930_v18  ;;  %v2009_v9 = vmul.f32 %v1988_v59, %v1931_v10  ;;  %v2010_v60 = vmul.f32 %v1988_v59, %v1932_v61  ;;  %v4908_v21 = vld [vmem:[#allocation27_spill] sm:$0xff] }
 0x258   :  { %v2011_v47 = vmul.f32 %v1988_v59, %v1933_v42  ;;  %v2012_v8 = vmul.f32 %v1988_v59, %v1934_v53  ;;  %v2013_v32 = vmul.f32 %v1988_v59, %v1935_v22  ;;  %v2014_v29 = vmul.f32 %v1988_v59, %v1936_v54 }
 0x259   :  { %v2015_v19 = vmul.f32 %v1988_v59, %v1937_v55  ;;  %v2016_v7 = vmul.f32 %v1988_v59, %v1938_v57  ;;  %v2017_v49 = vmul.f32 %v1988_v59, %v1939_v50  ;;  %v2018_v13 = vmul.f32 %v1988_v59, %v1940_v25 }
 0x25a   :  { %v2019_v28 = vmul.f32 %v1988_v59, %v1941_v11  ;;  %v2020_v38 = vmul.f32 %v1988_v59, %v1942_v35  ;;  %v2021_v34 = vmul.f32 %v1988_v59, %v1943_v52  ;;  %v2022_v37 = vmul.f32 %v1988_v59, %v1944_v58 }
 0x25b   :  { %v2023_v3 = vmul.f32 %v1988_v59, %v1945_v23  ;;  %v2024_v14 = vmul.f32 %v1988_v59, %v1946_v2  ;;  %v2025_v51 = vmul.f32 %v1988_v59, %v1947_v0  ;;  %v2026_v1 = vmul.f32 %v1988_v59, %v1948_v39 }
 0x25c   :  { %v2027_v41 = vmul.f32 %v1988_v59, %v1949_v40  ;;  %v2073_v18 = vadd.f32 %v4908_v21, %v1995_v46  ;;  %v2074_v10 = vadd.f32 %v4908_v21, %v1996_v56  ;;  %v2075_v61 = vadd.f32 %v4908_v21, %v1997_v12 }
 0x25d   :  { %v2076_v42 = vadd.f32 %v4908_v21, %v1998_v30  ;;  %v2077_v53 = vadd.f32 %v4908_v21, %v1999_v33  ;;  %v2078_v22 = vadd.f32 %v4908_v21, %v2000_v63  ;;  %v2079_v54 = vadd.f32 %v4908_v21, %v2001_v16 }
 0x25e   :  { %v2080_v55 = vadd.f32 %v4908_v21, %v2002_v20  ;;  %v2081_v57 = vadd.f32 %v4908_v21, %v2003_v17  ;;  %v2082_v50 = vadd.f32 %v4908_v21, %v2004_v4  ;;  %v2083_v25 = vadd.f32 %v4908_v21, %v2005_v5 }
 0x25f   :  { %v2084_v11 = vadd.f32 %v4908_v21, %v2006_v26  ;;  %v2085_v59 = vadd.f32 %v4908_v21, %v2007_v24  ;;  %v2086_v48 = vadd.f32 %v4908_v21, %v2008_v6  ;;  %v2087_v35 = vadd.f32 %v4908_v21, %v2009_v9 }
 0x260   :  { %v2088_v45 = vadd.f32 %v4908_v21, %v2010_v60  ;;  %v2089_v44 = vadd.f32 %v4908_v21, %v2011_v47  ;;  %v2090_v52 = vadd.f32 %v4908_v21, %v2012_v8  ;;  %v4570_v31 = vadd.f32 %v4908_v21, %v2013_v32 }
 0x261   :  { %v4573_v43 = vadd.f32 %v4908_v21, %v2014_v29  ;;  %v4576_v58 = vadd.f32 %v4908_v21, %v2015_v19  ;;  %v4579_v36 = vadd.f32 %v4908_v21, %v2016_v7  ;;  %v4582_v15 = vadd.f32 %v4908_v21, %v2017_v49 }
 0x262   :  { %v4585_v23 = vadd.f32 %v4908_v21, %v2018_v13  ;;  %v4588_v27 = vadd.f32 %v4908_v21, %v2019_v28  ;;  %v4591_v62 = vadd.f32 %v4908_v21, %v2020_v38  ;;  %v4594_v2 = vadd.f32 %v4908_v21, %v2021_v34 }
 0x263   :  { %v4597_v0 = vadd.f32 %v4908_v21, %v2022_v37  ;;  %v4600_v39 = vadd.f32 %v4908_v21, %v2023_v3  ;;  %v4603_v40 = vadd.f32 %v4908_v21, %v2024_v14  ;;  %v4606_v46 = vadd.f32 %v4908_v21, %v2025_v51 }
 0x264   :  { %v4609_v56 = vadd.f32 %v4908_v21, %v2026_v1  ;;  %v4612_v12 = vadd.f32 %v4908_v21, %v2027_v41  ;;  %v2139_v30 = vmax.f32 %v2073_v18, 0.0  ;;  %v2140_v33 = vmax.f32 %v2074_v10, 0.0 }
 0x265   :  { %v2141_v63 = vmax.f32 %v2075_v61, 0.0  ;;  %v2142_v16 = vmax.f32 %v2076_v42, 0.0  ;;  %v2143_v20 = vmax.f32 %v2077_v53, 0.0  ;;  %v2144_v17 = vmax.f32 %v2078_v22, 0.0 }
 0x266   :  { %v2145_v4 = vmax.f32 %v2079_v54, 0.0  ;;  %v2146_v5 = vmax.f32 %v2080_v55, 0.0  ;;  %v2147_v26 = vmax.f32 %v2081_v57, 0.0  ;;  %v2148_v24 = vmax.f32 %v2082_v50, 0.0  ;;  %2205 = vst [vmem:[%s4733_s4] sm:$0xff] %v2139_v30  ;;  %2206 = vst [vmem:[%s4733_s4 + $0x8] sm:$0xff] %v2140_v33 }
 0x267   :  { %v2149_v6 = vmax.f32 %v2083_v25, 0.0  ;;  %v2150_v9 = vmax.f32 %v2084_v11, 0.0  ;;  %v2151_v60 = vmax.f32 %v2085_v59, 0.0  ;;  %v2152_v47 = vmax.f32 %v2086_v48, 0.0  ;;  %2207 = vst [vmem:[%s4733_s4 + $0x10] sm:$0xff] %v2141_v63  ;;  %2208 = vst [vmem:[%s4733_s4 + $0x18] sm:$0xff] %v2142_v16 }
 0x268   :  { %2209 = vst [vmem:[%s4733_s4 + $0x20] sm:$0xff] %v2143_v20  ;;  %2210 = vst [vmem:[%s4733_s4 + $0x28] sm:$0xff] %v2144_v17  ;;  %v2153_v8 = vmax.f32 %v2087_v35, 0.0  ;;  %v2154_v32 = vmax.f32 %v2088_v45, 0.0  ;;  %v2155_v29 = vmax.f32 %v2089_v44, 0.0  ;;  %v2156_v19 = vmax.f32 %v2090_v52, 0.0 }
 0x269   :  { %2211 = vst [vmem:[%s4733_s4 + $0x30] sm:$0xff] %v2145_v4  ;;  %2212 = vst [vmem:[%s4733_s4 + $0x38] sm:$0xff] %v2146_v5  ;;  %v2157_v7 = vmax.f32 %v4570_v31, 0.0  ;;  %v2158_v49 = vmax.f32 %v4573_v43, 0.0  ;;  %v2159_v13 = vmax.f32 %v4576_v58, 0.0  ;;  %v2160_v28 = vmax.f32 %v4579_v36, 0.0 }
 0x26a   :  { %2213 = vst [vmem:[%s4733_s4 + $0x40] sm:$0xff] %v2147_v26  ;;  %2214 = vst [vmem:[%s4733_s4 + $0x48] sm:$0xff] %v2148_v24  ;;  %v2161_v38 = vmax.f32 %v4582_v15, 0.0  ;;  %v2162_v34 = vmax.f32 %v4585_v23, 0.0  ;;  %v2163_v37 = vmax.f32 %v4588_v27, 0.0  ;;  %v2164_v3 = vmax.f32 %v4591_v62, 0.0 }
 0x26b   :  { %2215 = vst [vmem:[%s4733_s4 + $0x50] sm:$0xff] %v2149_v6  ;;  %2216 = vst [vmem:[%s4733_s4 + $0x58] sm:$0xff] %v2150_v9  ;;  %v2165_v14 = vmax.f32 %v4594_v2, 0.0  ;;  %v2166_v51 = vmax.f32 %v4597_v0, 0.0  ;;  %v2167_v1 = vmax.f32 %v4600_v39, 0.0  ;;  %v2168_v41 = vmax.f32 %v4603_v40, 0.0 }
 0x26c   :  { %2217 = vst [vmem:[%s4733_s4 + $0x60] sm:$0xff] %v2151_v60  ;;  %2218 = vst [vmem:[%s4733_s4 + $0x68] sm:$0xff] %v2152_v47  ;;  %v2169_v21 = vmax.f32 %v4606_v46, 0.0  ;;  %v2170_v18 = vmax.f32 %v4609_v56, 0.0  ;;  %v2171_v10 = vmax.f32 %v4612_v12, 0.0 }
 0x26d   :  { %2219 = vst [vmem:[%s4733_s4 + $0x70] sm:$0xff] %v2153_v8  ;;  %2220 = vst [vmem:[%s4733_s4 + $0x78] sm:$0xff] %v2154_v32 }
 0x26e   :  { %2221 = vst [vmem:[%s4733_s4 + $0x80] sm:$0xff] %v2155_v29  ;;  %2222 = vst [vmem:[%s4733_s4 + $0x88] sm:$0xff] %v2156_v19 }
 0x26f   :  { %2223 = vst [vmem:[%s4733_s4 + $0x90] sm:$0xff] %v2157_v7  ;;  %2224 = vst [vmem:[%s4733_s4 + $0x98] sm:$0xff] %v2158_v49 }
 0x270   :  { %2225 = vst [vmem:[%s4733_s4 + $0xa0] sm:$0xff] %v2159_v13  ;;  %2226 = vst [vmem:[%s4733_s4 + $0xa8] sm:$0xff] %v2160_v28 }
 0x271   :  { %2227 = vst [vmem:[%s4733_s4 + $0xb0] sm:$0xff] %v2161_v38  ;;  %2228 = vst [vmem:[%s4733_s4 + $0xb8] sm:$0xff] %v2162_v34 }
 0x272   :  { %2229 = vst [vmem:[%s4733_s4 + $0xc0] sm:$0xff] %v2163_v37  ;;  %2230 = vst [vmem:[%s4733_s4 + $0xc8] sm:$0xff] %v2164_v3 }
 0x273   :  { %2231 = vst [vmem:[%s4733_s4 + $0xd0] sm:$0xff] %v2165_v14  ;;  %2232 = vst [vmem:[%s4733_s4 + $0xd8] sm:$0xff] %v2166_v51 }
 0x274   :  { %2233 = vst [vmem:[%s4733_s4 + $0xe0] sm:$0xff] %v2167_v1  ;;  %2234 = vst [vmem:[%s4733_s4 + $0xe8] sm:$0xff] %v2168_v41 }
 0x275   :  { %2235 = vst [vmem:[%s4733_s4 + $0xf0] sm:$0xff] %v2169_v21  ;;  %2236 = vst [vmem:[%s4733_s4 + $0xf8] sm:$0xff] %v2170_v18 }
 0x276   :  { %2237 = vst.msk [vmem:[%s4733_s4 + $0x100] sm:$0xff] %vm1661_vm1, %v2171_v10 }

// kernel: _forward_probs.7
= control target key start
LH: loop header
LB: loop body
LE: loop exit
PB: predicated region body
PF: predicated region fallthrough
CT: control target
= control target key end

     0   :  { %v791_v3 = vmov 0   ;;  %vm190_vm0 = vcmask 130048   ;;  %vm598_vm1 = vcmask 736256   ;;  %s1484_s1 = inlined_call_operand.vmem [shape: f32[144,986], index: 1, kind: input, shape index: {}]   ;;  %s1485_s0 = inlined_call_operand.vmem [shape: f32[32,144], index: 0, kind: input, shape index: {}]   ;;  %s1486_s2 = inlined_call_operand.vmem [shape: f32[32,1], index: 2, kind: input, shape index: {}]   ;;  %s1487_s3 = inlined_call_operand.vmem [shape: f32[32,986], index: 3, kind: output, shape index: {}]  }
   0x1   :  { %v23_v0 = vld [vmem:[%s1484_s1 + $0x8] sm:$0xff]  ;;  %v25_v2 = vld [vmem:[%s1484_s1 + $0x18] sm:$0xff]  ;;  %789 = vset.pattern.permute.xlu0 %v791_v3  ;;  %790 = vset.pattern.permute.xlu1 %v791_v3  ;;  %v22_v6 = vld [vmem:[%s1484_s1] sm:$0xff] }
   0x2   :  { %v31_v1 = vld [vmem:[%s1484_s1 + $0x48] sm:$0xff]  ;;  %v33_v5 = vld [vmem:[%s1484_s1 + $0x58] sm:$0xff]  ;;  %v30_v7 = vld [vmem:[%s1484_s1 + $0x40] sm:$0xff] }
   0x3   :  { %v644_v4 = vpack.c.bf16 %v31_v1, %v23_v0  ;;  %v680_v8 = vpack.c.bf16 %v33_v5, %v25_v2  ;;  %v646_v9 = vpack.c.bf16 %v30_v7, %v22_v6  ;;  %v24_v10 = vld [vmem:[%s1484_s1 + $0x10] sm:$0xff]  ;;  %v39_v12 = vld [vmem:[%s1484_s1 + $0x88] sm:$0xff]  ;;  %v41_v15 = vld [vmem:[%s1484_s1 + $0x98] sm:$0xff] }
   0x4   :  { %v32_v11 = vld [vmem:[%s1484_s1 + $0x50] sm:$0xff]  ;;  %v47_v14 = vld [vmem:[%s1484_s1 + $0xc8] sm:$0xff]  ;;  %v49_v16 = vld [vmem:[%s1484_s1 + $0xd8] sm:$0xff] }
   0x5   :  { %645 = vmatprep.subr.bf16.mxu0 %v644_v4  ;;  %v682_v13 = vpack.c.bf16 %v32_v11, %v24_v10  ;;  %681 = vmatprep.subr.bf16.mxu1 %v680_v8  ;;  %v648_v17 = vpack.c.bf16 %v47_v14, %v39_v12  ;;  %v684_v18 = vpack.c.bf16 %v49_v16, %v41_v15  ;;  %v38_v19 = vld [vmem:[%s1484_s1 + $0x80] sm:$0xff]  ;;  %v40_v21 = vld [vmem:[%s1484_s1 + $0x90] sm:$0xff]  ;;  %v55_v24 = vld [vmem:[%s1484_s1 + $0x108] sm:$0xff] }
   0x6   :  { %647 = vmatpush1.bf16.msra.mxu0 %v646_v9  ;;  %v46_v20 = vld [vmem:[%s1484_s1 + $0xc0] sm:$0xff]  ;;  %v48_v23 = vld [vmem:[%s1484_s1 + $0xd0] sm:$0xff]  ;;  %v63_v25 = vld [vmem:[%s1484_s1 + $0x148] sm:$0xff] }
   0x7   :  { %683 = vmatpush1.bf16.msra.mxu1 %v682_v13  ;;  %v650_v22 = vpack.c.bf16 %v46_v20, %v38_v19  ;;  %649 = vmatprep.subr.bf16.mxu0 %v648_v17  ;;  %v686_v26 = vpack.c.bf16 %v48_v23, %v40_v21  ;;  %v652_v27 = vpack.c.bf16 %v63_v25, %v55_v24  ;;  %v57_v28 = vld [vmem:[%s1484_s1 + $0x118] sm:$0xff]  ;;  %v54_v30 = vld [vmem:[%s1484_s1 + $0x100] sm:$0xff]  ;;  %v56_v33 = vld [vmem:[%s1484_s1 + $0x110] sm:$0xff] }
   0x8   :  { %685 = vmatprep.subr.bf16.mxu1 %v684_v18  ;;  %v65_v29 = vld [vmem:[%s1484_s1 + $0x158] sm:$0xff]  ;;  %v62_v32 = vld [vmem:[%s1484_s1 + $0x140] sm:$0xff]  ;;  %v64_v34 = vld [vmem:[%s1484_s1 + $0x150] sm:$0xff] }
   0x9   :  { %v688_v31 = vpack.c.bf16 %v65_v29, %v57_v28  ;;  %v654_v35 = vpack.c.bf16 %v62_v32, %v54_v30  ;;  %v71_v36 = vld [vmem:[%s1484_s1 + $0x188] sm:$0xff]  ;;  %v73_v38 = vld [vmem:[%s1484_s1 + $0x198] sm:$0xff]  ;;  %v690_v39 = vpack.c.bf16 %v64_v34, %v56_v33  ;;  %v70_v42 = vld [vmem:[%s1484_s1 + $0x180] sm:$0xff] }
   0xa   :  { %651 = vmatpush1.bf16.msra.mxu0 %v650_v22  ;;  %v79_v37 = vld [vmem:[%s1484_s1 + $0x1c8] sm:$0xff]  ;;  %v81_v41 = vld [vmem:[%s1484_s1 + $0x1d8] sm:$0xff]  ;;  %v78_v43 = vld [vmem:[%s1484_s1 + $0x1c0] sm:$0xff] }
   0xb   :  { %687 = vmatpush1.bf16.msra.mxu1 %v686_v26  ;;  %653 = vmatprep.subr.bf16.mxu0 %v652_v27  ;;  %v656_v40 = vpack.c.bf16 %v79_v37, %v71_v36  ;;  %v692_v44 = vpack.c.bf16 %v81_v41, %v73_v38  ;;  %v72_v45 = vld [vmem:[%s1484_s1 + $0x190] sm:$0xff]  ;;  %v87_v47 = vld [vmem:[%s1484_s1 + $0x208] sm:$0xff]  ;;  %v89_v49 = vld [vmem:[%s1484_s1 + $0x218] sm:$0xff]  ;;  %v658_v51 = vpack.c.bf16 %v78_v43, %v70_v42 }
   0xc   :  { %689 = vmatprep.subr.bf16.mxu1 %v688_v31  ;;  %v80_v46 = vld [vmem:[%s1484_s1 + $0x1d0] sm:$0xff]  ;;  %v95_v48 = vld [vmem:[%s1484_s1 + $0x248] sm:$0xff]  ;;  %v97_v50 = vld [vmem:[%s1484_s1 + $0x258] sm:$0xff] }
   0xd   :  { %v694_v52 = vpack.c.bf16 %v80_v46, %v72_v45  ;;  %v660_v53 = vpack.c.bf16 %v95_v48, %v87_v47  ;;  %v86_v54 = vld [vmem:[%s1484_s1 + $0x200] sm:$0xff]  ;;  %v88_v56 = vld [vmem:[%s1484_s1 + $0x210] sm:$0xff]  ;;  %v696_v57 = vpack.c.bf16 %v97_v50, %v89_v49  ;;  %v103_v59 = vld [vmem:[%s1484_s1 + $0x288] sm:$0xff] }
   0xe   :  { %655 = vmatpush1.bf16.msra.mxu0 %v654_v35  ;;  %v94_v55 = vld [vmem:[%s1484_s1 + $0x240] sm:$0xff]  ;;  %v96_v58 = vld [vmem:[%s1484_s1 + $0x250] sm:$0xff]  ;;  %v111_v60 = vld [vmem:[%s1484_s1 + $0x2c8] sm:$0xff] }
   0xf   :  { %691 = vmatpush1.bf16.msra.mxu1 %v690_v39  ;;  %657 = vmatprep.subr.bf16.mxu0 %v656_v40  ;;  %v105_v61 = vld [vmem:[%s1484_s1 + $0x298] sm:$0xff]  ;;  %v662_v63 = vpack.c.bf16 %v94_v55, %v86_v54  ;;  %v698_v0 = vpack.c.bf16 %v96_v58, %v88_v56  ;;  %v664_v1 = vpack.c.bf16 %v111_v60, %v103_v59  ;;  %v102_v2 = vld [vmem:[%s1484_s1 + $0x280] sm:$0xff]  ;;  %v104_v4 = vld [vmem:[%s1484_s1 + $0x290] sm:$0xff] }
  0x10   :  { %693 = vmatprep.subr.bf16.mxu1 %v692_v44  ;;  %v113_v62 = vld [vmem:[%s1484_s1 + $0x2d8] sm:$0xff]  ;;  %v110_v3 = vld [vmem:[%s1484_s1 + $0x2c0] sm:$0xff]  ;;  %v112_v6 = vld [vmem:[%s1484_s1 + $0x2d0] sm:$0xff] }
  0x11   :  { %v700_v5 = vpack.c.bf16 %v113_v62, %v105_v61  ;;  %v119_v7 = vld [vmem:[%s1484_s1 + $0x308] sm:$0xff]  ;;  %v121_v9 = vld [vmem:[%s1484_s1 + $0x318] sm:$0xff]  ;;  %v666_v11 = vpack.c.bf16 %v110_v3, %v102_v2  ;;  %v702_v12 = vpack.c.bf16 %v112_v6, %v104_v4  ;;  %v118_v14 = vld [vmem:[%s1484_s1 + $0x300] sm:$0xff] }
  0x12   :  { %659 = vmatpush1.bf16.msra.mxu0 %v658_v51  ;;  %v127_v8 = vld [vmem:[%s1484_s1 + $0x348] sm:$0xff]  ;;  %v129_v10 = vld [vmem:[%s1484_s1 + $0x358] sm:$0xff]  ;;  %v126_v15 = vld [vmem:[%s1484_s1 + $0x340] sm:$0xff] }
  0x13   :  { %695 = vmatpush1.bf16.msra.mxu1 %v694_v52  ;;  %661 = vmatprep.subr.bf16.mxu0 %v660_v53  ;;  %v668_v13 = vpack.c.bf16 %v127_v8, %v119_v7  ;;  %v120_v16 = vld [vmem:[%s1484_s1 + $0x310] sm:$0xff]  ;;  %v704_v17 = vpack.c.bf16 %v129_v10, %v121_v9  ;;  %v135_v19 = vld [vmem:[%s1484_s1 + $0x388] sm:$0xff]  ;;  %v137_v21 = vld [vmem:[%s1484_s1 + $0x398] sm:$0xff]  ;;  %v670_v23 = vpack.c.bf16 %v126_v15, %v118_v14 }
  0x14   :  { %697 = vmatprep.subr.bf16.mxu1 %v696_v57  ;;  %v128_v18 = vld [vmem:[%s1484_s1 + $0x350] sm:$0xff]  ;;  %v143_v20 = vld [vmem:[%s1484_s1 + $0x3c8] sm:$0xff]  ;;  %v145_v22 = vld [vmem:[%s1484_s1 + $0x3d8] sm:$0xff] }
  0x15   :  { %v995_v24 = vld [vmem:[%s1485_s0 + $0x8] sm:$0xff]  ;;  %v706_v25 = vpack.c.bf16 %v128_v18, %v120_v16  ;;  %v672_v26 = vpack.c.bf16 %v143_v20, %v135_v19  ;;  %v134_v27 = vld [vmem:[%s1484_s1 + $0x380] sm:$0xff]  ;;  %v136_v29 = vld [vmem:[%s1484_s1 + $0x390] sm:$0xff]  ;;  %v708_v30 = vpack.c.bf16 %v145_v22, %v137_v21 }
  0x16   :  { %663 = vmatpush1.bf16.msra.mxu0 %v662_v63  ;;  %v142_v28 = vld [vmem:[%s1484_s1 + $0x3c0] sm:$0xff]  ;;  %v144_v31 = vld [vmem:[%s1484_s1 + $0x3d0] sm:$0xff]  ;;  %v151_v32 = vld [vmem:[%s1484_s1 + $0x408] sm:$0xff]  ;;  %628 = vmatprep.mubr.msk.f32.mxu0 %vm190_vm0, %v995_v24 }
  0x17   :  { %699 = vmatpush1.bf16.msra.mxu1 %v698_v0  ;;  %665 = vmatprep.subr.bf16.mxu0 %v664_v1  ;;  %v159_v33 = vld [vmem:[%s1484_s1 + $0x448] sm:$0xff]  ;;  %v153_v34 = vld [vmem:[%s1484_s1 + $0x418] sm:$0xff]  ;;  %v674_v36 = vpack.c.bf16 %v142_v28, %v134_v27  ;;  %v710_v37 = vpack.c.bf16 %v144_v31, %v136_v29  ;;  %v150_v39 = vld [vmem:[%s1484_s1 + $0x400] sm:$0xff] }
  0x18   :  { %701 = vmatprep.subr.bf16.mxu1 %v700_v5  ;;  %v161_v35 = vld [vmem:[%s1484_s1 + $0x458] sm:$0xff]  ;;  %632 = vmatprep.mubr.msk.f32.mxu1 %vm190_vm0, %v995_v24  ;;  %v676_v38 = vpack.c.bf16 %v159_v33, %v151_v32  ;;  %v158_v40 = vld [vmem:[%s1484_s1 + $0x440] sm:$0xff]  ;;  %v152_v41 = vld [vmem:[%s1484_s1 + $0x410] sm:$0xff] }
  0x19   :  { %v712_v42 = vpack.c.bf16 %v161_v35, %v153_v34  ;;  %v160_v43 = vld [vmem:[%s1484_s1 + $0x450] sm:$0xff]  ;;  %v27_v44 = vld [vmem:[%s1484_s1 + $0x28] sm:$0xff]  ;;  %v29_v46 = vld [vmem:[%s1484_s1 + $0x38] sm:$0xff]  ;;  %v678_v48 = vpack.c.bf16 %v158_v40, %v150_v39 }
  0x1a   :  { %667 = vmatpush1.bf16.msra.mxu0 %v666_v11  ;;  %v35_v45 = vld [vmem:[%s1484_s1 + $0x68] sm:$0xff]  ;;  %v37_v47 = vld [vmem:[%s1484_s1 + $0x78] sm:$0xff]  ;;  %v714_v49 = vpack.c.bf16 %v160_v43, %v152_v41  ;;  %v26_v51 = vld [vmem:[%s1484_s1 + $0x20] sm:$0xff] }
  0x1b   :  { %703 = vmatpush1.bf16.msra.mxu1 %v702_v12  ;;  %669 = vmatprep.subr.bf16.mxu0 %v668_v13  ;;  %v716_v50 = vpack.c.bf16 %v35_v45, %v27_v44  ;;  %v34_v52 = vld [vmem:[%s1484_s1 + $0x60] sm:$0xff]  ;;  %v28_v53 = vld [vmem:[%s1484_s1 + $0x30] sm:$0xff]  ;;  %v752_v54 = vpack.c.bf16 %v37_v47, %v29_v46  ;;  %v43_v56 = vld [vmem:[%s1484_s1 + $0xa8] sm:$0xff] }
  0x1c   :  { %705 = vmatprep.subr.bf16.mxu1 %v704_v17  ;;  %v36_v55 = vld [vmem:[%s1484_s1 + $0x70] sm:$0xff]  ;;  %v51_v57 = vld [vmem:[%s1484_s1 + $0xe8] sm:$0xff]  ;;  %v45_v58 = vld [vmem:[%s1484_s1 + $0xb8] sm:$0xff]  ;;  %v718_v61 = vpack.c.bf16 %v34_v52, %v26_v51 }
  0x1d   :  { %v53_v59 = vld [vmem:[%s1484_s1 + $0xf8] sm:$0xff]  ;;  %v1076_v60 = vld [vmem:[%s1485_s0] sm:$0xff]  ;;  %v754_v62 = vpack.c.bf16 %v36_v55, %v28_v53  ;;  %v720_v63 = vpack.c.bf16 %v51_v57, %v43_v56  ;;  %v44_v2 = vld [vmem:[%s1484_s1 + $0xb0] sm:$0xff] }
  0x1e   :  { %671 = vmatpush1.bf16.msra.mxu0 %v670_v23  ;;  %v42_v0 = vld [vmem:[%s1484_s1 + $0xa0] sm:$0xff]  ;;  %v756_v3 = vpack.c.bf16 %v53_v59, %v45_v58  ;;  %v52_v4 = vld [vmem:[%s1484_s1 + $0xf0] sm:$0xff]  ;;  %v59_v5 = vld [vmem:[%s1484_s1 + $0x128] sm:$0xff] }
  0x1f   :  { %707 = vmatpush1.bf16.msra.mxu1 %v706_v25  ;;  %673 = vmatprep.subr.bf16.mxu0 %v672_v26  ;;  %v50_v1 = vld [vmem:[%s1484_s1 + $0xe0] sm:$0xff]  ;;  %v67_v6 = vld [vmem:[%s1484_s1 + $0x168] sm:$0xff]  ;;  %v61_v7 = vld [vmem:[%s1484_s1 + $0x138] sm:$0xff]  ;;  %v758_v12 = vpack.c.bf16 %v52_v4, %v44_v2 }
  0x20   :  { %709 = vmatprep.subr.bf16.mxu1 %v708_v30  ;;  %v69_v8 = vld [vmem:[%s1484_s1 + $0x178] sm:$0xff]  ;;  %v722_v9 = vpack.c.bf16 %v50_v1, %v42_v0  ;;  %v58_v10 = vld [vmem:[%s1484_s1 + $0x120] sm:$0xff]  ;;  %v724_v13 = vpack.c.bf16 %v67_v6, %v59_v5  ;;  %v60_v15 = vld [vmem:[%s1484_s1 + $0x130] sm:$0xff] }
  0x21   :  { %v1110_v11 = vld [vmem:[%s1485_s0 + $0x18] sm:$0xff]  ;;  %v66_v14 = vld [vmem:[%s1484_s1 + $0x160] sm:$0xff]  ;;  %v1121_v16 = vld [vmem:[%s1485_s0 + $0x10] sm:$0xff]  ;;  %v760_v17 = vpack.c.bf16 %v69_v8, %v61_v7 }
  0x22   :  { %675 = vmatpush1.bf16.msra.mxu0 %v674_v36  ;;  %v68_v18 = vld [vmem:[%s1484_s1 + $0x170] sm:$0xff]  ;;  %v75_v19 = vld [vmem:[%s1484_s1 + $0x1a8] sm:$0xff]  ;;  %v77_v21 = vld [vmem:[%s1484_s1 + $0x1b8] sm:$0xff]  ;;  %v726_v23 = vpack.c.bf16 %v66_v14, %v58_v10 }
  0x23   :  { %711 = vmatpush1.bf16.msra.mxu1 %v710_v37  ;;  %677 = vmatprep.subr.bf16.mxu0 %v676_v38  ;;  %v83_v20 = vld [vmem:[%s1484_s1 + $0x1e8] sm:$0xff]  ;;  %v85_v22 = vld [vmem:[%s1484_s1 + $0x1f8] sm:$0xff]  ;;  %v1152_v26 = vld [vmem:[%s1485_s0 + $0x20] sm:$0xff]  ;;  %v762_v27 = vpack.c.bf16 %v68_v18, %v60_v15 }
  0x24   :  { %713 = vmatprep.subr.bf16.mxu1 %v712_v42  ;;  %v1147_v25 = vld [vmem:[%s1485_s0 + $0x28] sm:$0xff]  ;;  %v728_v28 = vpack.c.bf16 %v83_v20, %v75_v19  ;;  %v74_v29 = vld [vmem:[%s1484_s1 + $0x1a0] sm:$0xff]  ;;  %v76_v31 = vld [vmem:[%s1484_s1 + $0x1b0] sm:$0xff]  ;;  %v764_v32 = vpack.c.bf16 %v85_v22, %v77_v21 }
  0x25   :  { %v82_v30 = vld [vmem:[%s1484_s1 + $0x1e0] sm:$0xff]  ;;  %v84_v33 = vld [vmem:[%s1484_s1 + $0x1f0] sm:$0xff]  ;;  %v91_v34 = vld [vmem:[%s1484_s1 + $0x228] sm:$0xff] }
  0x26   :  { %679 = vmatpush1.bf16.msra.mxu0 %v678_v48  ;;  %v99_v35 = vld [vmem:[%s1484_s1 + $0x268] sm:$0xff]  ;;  %v93_v36 = vld [vmem:[%s1484_s1 + $0x238] sm:$0xff]  ;;  %v730_v39 = vpack.c.bf16 %v82_v30, %v74_v29  ;;  %v1192_v40 = vld [vmem:[%s1485_s0 + $0x30] sm:$0xff]  ;;  %v766_v41 = vpack.c.bf16 %v84_v33, %v76_v31 }
  0x27   :  { %715 = vmatpush1.bf16.msra.mxu1 %v714_v49  ;;  %717 = vmatprep.subr.bf16.mxu0 %v716_v50  ;;  %v101_v37 = vld [vmem:[%s1484_s1 + $0x278] sm:$0xff]  ;;  %v732_v42 = vpack.c.bf16 %v99_v35, %v91_v34  ;;  %v90_v43 = vld [vmem:[%s1484_s1 + $0x220] sm:$0xff]  ;;  %v92_v45 = vld [vmem:[%s1484_s1 + $0x230] sm:$0xff] }
  0x28   :  { %753 = vmatprep.subr.bf16.mxu1 %v752_v54  ;;  %v1186_v38 = vld [vmem:[%s1485_s0 + $0x38] sm:$0xff]  ;;  %v98_v44 = vld [vmem:[%s1484_s1 + $0x260] sm:$0xff]  ;;  %v768_v46 = vpack.c.bf16 %v101_v37, %v93_v36  ;;  %v100_v47 = vld [vmem:[%s1484_s1 + $0x270] sm:$0xff] }
  0x29   :  { %268 = vmatmul.mubr.f32.vlgmr.msra.gmra.mrb[0].mxu0 %v1076_v60  ;;  %v107_v48 = vld [vmem:[%s1484_s1 + $0x2a8] sm:$0xff]  ;;  %v109_v50 = vld [vmem:[%s1484_s1 + $0x2b8] sm:$0xff]  ;;  %v734_v52 = vpack.c.bf16 %v98_v44, %v90_v43  ;;  %v106_v53 = vld [vmem:[%s1484_s1 + $0x2a0] sm:$0xff]  ;;  %v770_v55 = vpack.c.bf16 %v100_v47, %v92_v45 }
  0x2a   :  { %357 = vmatmul.mubr.f32.vlgmr.msra.gmra.mrb[0].mxu1 %v1076_v60  ;;  %719 = vmatpush1.bf16.msra.mxu0 %v718_v61  ;;  %v115_v49 = vld [vmem:[%s1484_s1 + $0x2e8] sm:$0xff]  ;;  %v117_v51 = vld [vmem:[%s1484_s1 + $0x2f8] sm:$0xff]  ;;  %v166_v54 = vld [vmem:[%s1486_s2] sm:$0xff] }
  0x2b   :  { %755 = vmatpush1.bf16.msra.mxu1 %v754_v62  ;;  %721 = vmatprep.subr.bf16.mxu0 %v720_v63  ;;  %v736_v56 = vpack.c.bf16 %v115_v49, %v107_v48  ;;  %v114_v57 = vld [vmem:[%s1484_s1 + $0x2e0] sm:$0xff]  ;;  %v108_v58 = vld [vmem:[%s1484_s1 + $0x2b0] sm:$0xff]  ;;  %v772_v61 = vpack.c.bf16 %v117_v51, %v109_v50  ;;  %v123_v63 = vld [vmem:[%s1484_s1 + $0x328] sm:$0xff] }
  0x2c   :  { %757 = vmatprep.subr.bf16.mxu1 %v756_v3  ;;  %629 = vmatprep.mubr.msk.f32.mxu0 %vm190_vm0, %v1110_v11  ;;  %v168_v59 = vld [vmem:[%s1486_s2 + $0x10] sm:$0xff]  ;;  %v131_v0 = vld [vmem:[%s1484_s1 + $0x368] sm:$0xff]  ;;  %v125_v1 = vld [vmem:[%s1484_s1 + $0x338] sm:$0xff]  ;;  %v738_v3 = vpack.c.bf16 %v114_v57, %v106_v53 }
  0x2d   :  { %633 = vmatprep.mubr.msk.f32.mxu1 %vm190_vm0, %v1110_v11  ;;  %274 = vmatmul.mubr.f32.gmra.mrb[2].mxu0 %v1121_v16  ;;  %v116_v62 = vld [vmem:[%s1484_s1 + $0x2f0] sm:$0xff]  ;;  %v133_v2 = vld [vmem:[%s1484_s1 + $0x378] sm:$0xff]  ;;  %v122_v4 = vld [vmem:[%s1484_s1 + $0x320] sm:$0xff]  ;;  %v740_v7 = vpack.c.bf16 %v131_v0, %v123_v63 }
  0x2e   :  { %723 = vmatpush1.bf16.msra.mxu0 %v722_v9  ;;  %363 = vmatmul.mubr.f32.gmra.mrb[2].mxu1 %v1121_v16  ;;  %v167_v5 = vld [vmem:[%s1486_s2 + $0x8] sm:$0xff]  ;;  %v774_v6 = vpack.c.bf16 %v116_v62, %v108_v58  ;;  %v124_v8 = vld [vmem:[%s1484_s1 + $0x330] sm:$0xff]  ;;  %v169_v9 = vld [vmem:[%s1486_s2 + $0x18] sm:$0xff]  ;;  %v776_v10 = vpack.c.bf16 %v133_v2, %v125_v1 }
  0x2f   :  { %759 = vmatpush1.bf16.msra.mxu1 %v758_v12  ;;  %725 = vmatprep.subr.bf16.mxu0 %v724_v13  ;;  %v132_v12 = vld [vmem:[%s1484_s1 + $0x370] sm:$0xff]  ;;  %v139_v13 = vld [vmem:[%s1484_s1 + $0x3a8] sm:$0xff]  ;;  %v141_v15 = vld [vmem:[%s1484_s1 + $0x3b8] sm:$0xff] }
  0x30   :  { %761 = vmatprep.subr.bf16.mxu1 %v760_v17  ;;  %630 = vmatprep.mubr.msk.f32.mxu0 %vm190_vm0, %v1147_v25  ;;  %v147_v14 = vld [vmem:[%s1484_s1 + $0x3e8] sm:$0xff]  ;;  %v149_v17 = vld [vmem:[%s1484_s1 + $0x3f8] sm:$0xff]  ;;  %v778_v19 = vpack.c.bf16 %v132_v12, %v124_v8  ;;  %v138_v21 = vld [vmem:[%s1484_s1 + $0x3a0] sm:$0xff] }
  0x31   :  { %634 = vmatprep.mubr.msk.f32.mxu1 %vm190_vm0, %v1147_v25  ;;  %280 = vmatmul.mubr.f32.gmra.mrb[4].mxu0 %v1152_v26  ;;  %v744_v20 = vpack.c.bf16 %v147_v14, %v139_v13  ;;  %v146_v22 = vld [vmem:[%s1484_s1 + $0x3e0] sm:$0xff]  ;;  %v155_v29 = vld [vmem:[%s1484_s1 + $0x428] sm:$0xff]  ;;  %v157_v31 = vld [vmem:[%s1484_s1 + $0x438] sm:$0xff] }
  0x32   :  { %727 = vmatpush1.bf16.msra.mxu0 %v726_v23  ;;  %369 = vmatmul.mubr.f32.gmra.mrb[4].mxu1 %v1152_v26  ;;  %v140_v23 = vld [vmem:[%s1484_s1 + $0x3b0] sm:$0xff]  ;;  %v163_v30 = vld [vmem:[%s1484_s1 + $0x468] sm:$0xff]  ;;  %v746_v33 = vpack.c.bf16 %v146_v22, %v138_v21  ;;  %v154_v36 = vld [vmem:[%s1484_s1 + $0x420] sm:$0xff] }
  0x33   :  { %763 = vmatpush1.bf16.msra.mxu1 %v762_v27  ;;  %729 = vmatprep.subr.bf16.mxu0 %v728_v28  ;;  %v780_v27 = vpack.c.bf16 %v149_v17, %v141_v15  ;;  %v148_v28 = vld [vmem:[%s1484_s1 + $0x3f0] sm:$0xff]  ;;  %v748_v35 = vpack.c.bf16 %v163_v30, %v155_v29  ;;  %v162_v37 = vld [vmem:[%s1484_s1 + $0x460] sm:$0xff] }
  0x34   :  { %765 = vmatprep.subr.bf16.mxu1 %v764_v32  ;;  %631 = vmatprep.mubr.msk.f32.mxu0 %vm190_vm0, %v1186_v38  ;;  %v165_v32 = vld [vmem:[%s1484_s1 + $0x478] sm:$0xff]  ;;  %v782_v34 = vpack.c.bf16 %v148_v28, %v140_v23  ;;  %v750_v43 = vpack.c.bf16 %v162_v37, %v154_v36 }
  0x35   :  { %635 = vmatprep.mubr.msk.f32.mxu1 %vm190_vm0, %v1186_v38  ;;  %286 = vmatmul.mubr.f32.gmra.mrb[6].mxu0 %v1192_v40 }
  0x36   :  { %731 = vmatpush1.bf16.msra.mxu0 %v730_v39  ;;  %375 = vmatmul.mubr.f32.gmra.mrb[6].mxu1 %v1192_v40  ;;  %v784_v39 = vpack.c.bf16 %v165_v32, %v157_v31 }
  0x37   :  { %767 = vmatpush1.bf16.msra.mxu1 %v766_v41  ;;  %733 = vmatprep.subr.bf16.mxu0 %v732_v42  ;;  %v156_v41 = vld [vmem:[%s1484_s1 + $0x430] sm:$0xff] }
  0x38   :  { %769 = vmatprep.subr.bf16.mxu1 %v768_v46  ;;  %636 = vmatprep.mubr.msk.f32.mxu0 %vm190_vm0, %v995_v24  ;;  %v164_v42 = vld [vmem:[%s1484_s1 + $0x470] sm:$0xff] }
  0x39   :  { %640 = vmatprep.mubr.msk.f32.mxu1 %vm190_vm0, %v995_v24  ;;  %172 = vperm.xlu0 %789, %v166_v54   ;;  %v130_v24 = vld [vmem:[%s1484_s1 + $0x360] sm:$0xff]  ;;  %v786_v44 = vpack.c.bf16 %v164_v42, %v156_v41 }
  0x3a   :  { %735 = vmatpush1.bf16.msra.mxu0 %v734_v52  ;;  %182 = vperm.xlu1 %790, %v168_v59   ;;  %v742_v18 = vpack.c.bf16 %v130_v24, %v122_v4 }
  0x3b   :  { %771 = vmatpush1.bf16.msra.mxu1 %v770_v55  ;;  %737 = vmatprep.subr.bf16.mxu0 %v736_v56 }
  0x3c   :  { %773 = vmatprep.subr.bf16.mxu1 %v772_v61 }
  0x3d   :  { %177 = vperm.xlu0 %789, %v167_v5  }
  0x3e   :  { %739 = vmatpush1.bf16.msra.mxu0 %v738_v3  ;;  %187 = vperm.xlu1 %790, %v169_v9  }
  0x3f   :  { %775 = vmatpush1.bf16.msra.mxu1 %v774_v6  ;;  %741 = vmatprep.subr.bf16.mxu0 %v740_v7 }
  0x40   :  { %777 = vmatprep.subr.bf16.mxu1 %v776_v10 }
  0x42   :  { %743 = vmatpush1.bf16.msra.mxu0 %v742_v18 }
  0x43   :  { %779 = vmatpush1.bf16.msra.mxu1 %v778_v19  ;;  %745 = vmatprep.subr.bf16.mxu0 %v744_v20 }
  0x44   :  { %781 = vmatprep.subr.bf16.mxu1 %v780_v27 }
  0x46   :  { %747 = vmatpush1.bf16.msra.mxu0 %v746_v33 }
  0x47   :  { %783 = vmatpush1.bf16.msra.mxu1 %v782_v34  ;;  %749 = vmatprep.subr.bf16.mxu0 %v748_v35 }
  0x48   :  { %785 = vmatprep.subr.bf16.mxu1 %v784_v39 }
  0x4a   :  { %751 = vmatpush1.bf16.msra.mxu0 %v750_v43 }
  0x4b   :  { %787 = vmatpush1.bf16.msra.mxu1 %v786_v44 }
  0x4d   :  { %446 = vmatmul.mubr.f32.vlgmr.msra.gmra.mrb[8].mxu0 %v1076_v60 }
  0x4e   :  { %535 = vmatmul.mubr.f32.vlgmr.msra.gmra.mrb[8].mxu1 %v1076_v60  ;;  %637 = vmatprep.mubr.msk.f32.mxu0 %vm190_vm0, %v1110_v11 }
  0x4f   :  { %641 = vmatprep.mubr.msk.f32.mxu1 %vm190_vm0, %v1110_v11 }
  0x51   :  { %452 = vmatmul.mubr.f32.gmra.mrb[10].mxu0 %v1121_v16 }
  0x52   :  { %541 = vmatmul.mubr.f32.gmra.mrb[10].mxu1 %v1121_v16  ;;  %638 = vmatprep.mubr.msk.f32.mxu0 %vm190_vm0, %v1147_v25 }
  0x53   :  { %642 = vmatprep.mubr.msk.f32.mxu1 %vm190_vm0, %v1147_v25 }
  0x55   :  { %458 = vmatmul.mubr.f32.gmra.mrb[12].mxu0 %v1152_v26 }
  0x56   :  { %547 = vmatmul.mubr.f32.gmra.mrb[12].mxu1 %v1152_v26  ;;  %639 = vmatprep.mubr.msk.f32.mxu0 %vm190_vm0, %v1186_v38 }
  0x57   :  { %643 = vmatprep.mubr.msk.f32.mxu1 %vm190_vm0, %v1186_v38 }
  0x59   :  { %464 = vmatmul.mubr.f32.gmra.mrb[14].mxu0 %v1192_v40 }
  0x5a   :  { %553 = vmatmul.mubr.f32.gmra.mrb[14].mxu1 %v1192_v40 }
  0xb8   :  { %v1344_v60 = vpop.permute.xlu0 %172 }
  0xb9   :  { %v1352_v52 = vpop.permute.xlu1 %182 }
  0xbc   :  { %v1349_v48 = vpop.permute.xlu0 %177 }
  0xbd   :  { %v1382_v8 = vpop.permute.xlu1 %187 }
  0xfc   :  { %v269_v11 = vpop.f32.mrb[0].mxu0 }
  0xfd   :  { %v358_v16 = vpop.f32.mrb[0].mxu1  ;;  %v270_v25 = vadd.f32 %v269_v11, %v1344_v60  ;;  %v271_v45 = vpop.f32.mrb[1].mxu0 }
  0xfe   :  { %v359_v46 = vadd.f32 %v358_v16, %v1344_v60  ;;  %v272_v26 = vadd.f32 %v271_v45, %v1344_v60  ;;  %v360_v47 = vpop.f32.mrb[1].mxu1 }
  0xff   :  { %v559_v49 = vmax.f32 %v270_v25, 0.0  ;;  %v361_v38 = vadd.f32 %v360_v47, %v1344_v60 }
 0x100   :  { %v561_v50 = vmax.f32 %v359_v46, 0.0  ;;  %v560_v51 = vmax.f32 %v272_v26, 0.0  ;;  %v275_v40 = vpop.f32.mrb[2].mxu0 }
 0x101   :  { %591 = vst [vmem:[%s1487_s3] sm:$0xff] %v559_v49  ;;  %v562_v53 = vmax.f32 %v361_v38, 0.0  ;;  %v364_v54 = vpop.f32.mrb[2].mxu1  ;;  %v276_v55 = vadd.f32 %v275_v40, %v1349_v48  ;;  %v277_v56 = vpop.f32.mrb[3].mxu0 }
 0x102   :  { %593 = vst [vmem:[%s1487_s3 + $0x10] sm:$0xff] %v561_v50  ;;  %592 = vst [vmem:[%s1487_s3 + $0x8] sm:$0xff] %v560_v51  ;;  %v365_v57 = vadd.f32 %v364_v54, %v1349_v48  ;;  %v278_v58 = vadd.f32 %v277_v56, %v1349_v48  ;;  %v366_v59 = vpop.f32.mrb[3].mxu1 }
 0x103   :  { %594 = vst [vmem:[%s1487_s3 + $0x18] sm:$0xff] %v562_v53  ;;  %v567_v61 = vmax.f32 %v276_v55, 0.0  ;;  %v367_v62 = vadd.f32 %v366_v59, %v1349_v48 }
 0x104   :  { %v569_v63 = vmax.f32 %v365_v57, 0.0  ;;  %v568_v0 = vmax.f32 %v278_v58, 0.0  ;;  %v281_v1 = vpop.f32.mrb[4].mxu0 }
 0x105   :  { %600 = vst [vmem:[%s1487_s3 + $0x40] sm:$0xff] %v567_v61  ;;  %v570_v2 = vmax.f32 %v367_v62, 0.0  ;;  %v370_v3 = vpop.f32.mrb[4].mxu1  ;;  %v282_v4 = vadd.f32 %v281_v1, %v1352_v52  ;;  %v283_v5 = vpop.f32.mrb[5].mxu0 }
 0x106   :  { %602 = vst [vmem:[%s1487_s3 + $0x50] sm:$0xff] %v569_v63  ;;  %601 = vst [vmem:[%s1487_s3 + $0x48] sm:$0xff] %v568_v0  ;;  %v371_v6 = vadd.f32 %v370_v3, %v1352_v52  ;;  %v284_v7 = vadd.f32 %v283_v5, %v1352_v52  ;;  %v372_v24 = vpop.f32.mrb[5].mxu1 }
 0x107   :  { %603 = vst [vmem:[%s1487_s3 + $0x58] sm:$0xff] %v570_v2  ;;  %v575_v9 = vmax.f32 %v282_v4, 0.0  ;;  %v373_v10 = vadd.f32 %v372_v24, %v1352_v52 }
 0x108   :  { %v577_v12 = vmax.f32 %v371_v6, 0.0  ;;  %v576_v13 = vmax.f32 %v284_v7, 0.0  ;;  %v287_v14 = vpop.f32.mrb[6].mxu0 }
 0x109   :  { %608 = vst [vmem:[%s1487_s3 + $0x80] sm:$0xff] %v575_v9  ;;  %v578_v15 = vmax.f32 %v373_v10, 0.0  ;;  %v376_v17 = vpop.f32.mrb[6].mxu1  ;;  %v288_v18 = vadd.f32 %v287_v14, %v1382_v8  ;;  %v289_v19 = vpop.f32.mrb[7].mxu0 }
 0x10a   :  { %610 = vst [vmem:[%s1487_s3 + $0x90] sm:$0xff] %v577_v12  ;;  %609 = vst [vmem:[%s1487_s3 + $0x88] sm:$0xff] %v576_v13  ;;  %v377_v20 = vadd.f32 %v376_v17, %v1382_v8  ;;  %v290_v21 = vadd.f32 %v289_v19, %v1382_v8  ;;  %v378_v22 = vpop.f32.mrb[7].mxu1 }
 0x10b   :  { %611 = vst [vmem:[%s1487_s3 + $0x98] sm:$0xff] %v578_v15  ;;  %v583_v23 = vmax.f32 %v288_v18, 0.0  ;;  %v379_v27 = vadd.f32 %v378_v22, %v1382_v8 }
 0x10c   :  { %v585_v28 = vmax.f32 %v377_v20, 0.0  ;;  %v584_v29 = vmax.f32 %v290_v21, 0.0 }
 0x10d   :  { %616 = vst [vmem:[%s1487_s3 + $0xc0] sm:$0xff] %v583_v23  ;;  %v586_v30 = vmax.f32 %v379_v27, 0.0 }
 0x10e   :  { %618 = vst [vmem:[%s1487_s3 + $0xd0] sm:$0xff] %v585_v28  ;;  %617 = vst [vmem:[%s1487_s3 + $0xc8] sm:$0xff] %v584_v29 }
 0x10f   :  { %619 = vst [vmem:[%s1487_s3 + $0xd8] sm:$0xff] %v586_v30 }
 0x120   :  { %v447_v31 = vpop.f32.mrb[8].mxu0 }
 0x121   :  { %v448_v32 = vadd.f32 %v447_v31, %v1344_v60  ;;  %v536_v33 = vpop.f32.mrb[8].mxu1  ;;  %v449_v34 = vpop.f32.mrb[9].mxu0 }
 0x122   :  { %v537_v35 = vadd.f32 %v536_v33, %v1344_v60  ;;  %v450_v36 = vadd.f32 %v449_v34, %v1344_v60  ;;  %v538_v37 = vpop.f32.mrb[9].mxu1 }
 0x123   :  { %v563_v39 = vmax.f32 %v448_v32, 0.0  ;;  %v539_v41 = vadd.f32 %v538_v37, %v1344_v60 }
 0x124   :  { %v565_v42 = vmax.f32 %v537_v35, 0.0  ;;  %v564_v43 = vmax.f32 %v450_v36, 0.0  ;;  %v453_v44 = vpop.f32.mrb[10].mxu0 }
 0x125   :  { %595 = vst [vmem:[%s1487_s3 + $0x20] sm:$0xff] %v563_v39  ;;  %v566_v11 = vmax.f32 %v539_v41, 0.0  ;;  %v454_v16 = vadd.f32 %v453_v44, %v1349_v48  ;;  %v542_v25 = vpop.f32.mrb[10].mxu1  ;;  %v455_v45 = vpop.f32.mrb[11].mxu0 }
 0x126   :  { %597 = vst [vmem:[%s1487_s3 + $0x30] sm:$0xff] %v565_v42  ;;  %596 = vst [vmem:[%s1487_s3 + $0x28] sm:$0xff] %v564_v43  ;;  %v543_v60 = vadd.f32 %v542_v25, %v1349_v48  ;;  %v456_v46 = vadd.f32 %v455_v45, %v1349_v48  ;;  %v544_v26 = vpop.f32.mrb[11].mxu1 }
 0x127   :  { %599 = vst.msk [vmem:[%s1487_s3 + $0x38] sm:$0xff] %vm598_vm1, %v566_v11  ;;  %v571_v47 = vmax.f32 %v454_v16, 0.0  ;;  %v545_v49 = vadd.f32 %v544_v26, %v1349_v48 }
 0x128   :  { %v573_v38 = vmax.f32 %v543_v60, 0.0  ;;  %v572_v50 = vmax.f32 %v456_v46, 0.0  ;;  %v459_v51 = vpop.f32.mrb[12].mxu0 }
 0x129   :  { %604 = vst [vmem:[%s1487_s3 + $0x60] sm:$0xff] %v571_v47  ;;  %v574_v40 = vmax.f32 %v545_v49, 0.0  ;;  %v460_v53 = vadd.f32 %v459_v51, %v1352_v52  ;;  %v548_v54 = vpop.f32.mrb[12].mxu1  ;;  %v461_v55 = vpop.f32.mrb[13].mxu0 }
 0x12a   :  { %606 = vst [vmem:[%s1487_s3 + $0x70] sm:$0xff] %v573_v38  ;;  %605 = vst [vmem:[%s1487_s3 + $0x68] sm:$0xff] %v572_v50  ;;  %v549_v48 = vadd.f32 %v548_v54, %v1352_v52  ;;  %v462_v56 = vadd.f32 %v461_v55, %v1352_v52  ;;  %v550_v57 = vpop.f32.mrb[13].mxu1 }
 0x12b   :  { %607 = vst.msk [vmem:[%s1487_s3 + $0x78] sm:$0xff] %vm598_vm1, %v574_v40  ;;  %v579_v58 = vmax.f32 %v460_v53, 0.0  ;;  %v551_v59 = vadd.f32 %v550_v57, %v1352_v52 }
 0x12c   :  { %v581_v61 = vmax.f32 %v549_v48, 0.0  ;;  %v580_v62 = vmax.f32 %v462_v56, 0.0  ;;  %v465_v63 = vpop.f32.mrb[14].mxu0 }
 0x12d   :  { %612 = vst [vmem:[%s1487_s3 + $0xa0] sm:$0xff] %v579_v58  ;;  %v582_v0 = vmax.f32 %v551_v59, 0.0  ;;  %v466_v1 = vadd.f32 %v465_v63, %v1382_v8  ;;  %v554_v2 = vpop.f32.mrb[14].mxu1  ;;  %v467_v3 = vpop.f32.mrb[15].mxu0 }
 0x12e   :  { %614 = vst [vmem:[%s1487_s3 + $0xb0] sm:$0xff] %v581_v61  ;;  %613 = vst [vmem:[%s1487_s3 + $0xa8] sm:$0xff] %v580_v62  ;;  %v555_v52 = vadd.f32 %v554_v2, %v1382_v8  ;;  %v468_v4 = vadd.f32 %v467_v3, %v1382_v8  ;;  %v556_v5 = vpop.f32.mrb[15].mxu1 }
 0x12f   :  { %615 = vst.msk [vmem:[%s1487_s3 + $0xb8] sm:$0xff] %vm598_vm1, %v582_v0  ;;  %v587_v6 = vmax.f32 %v466_v1, 0.0  ;;  %v557_v7 = vadd.f32 %v556_v5, %v1382_v8 }
 0x130   :  { %v589_v24 = vmax.f32 %v555_v52, 0.0  ;;  %v588_v9 = vmax.f32 %v468_v4, 0.0 }
 0x131   :  { %620 = vst [vmem:[%s1487_s3 + $0xe0] sm:$0xff] %v587_v6  ;;  %v590_v10 = vmax.f32 %v557_v7, 0.0 }
 0x132   :  { %622 = vst [vmem:[%s1487_s3 + $0xf0] sm:$0xff] %v589_v24  ;;  %621 = vst [vmem:[%s1487_s3 + $0xe8] sm:$0xff] %v588_v9 }
 0x133   :  { %623 = vst.msk [vmem:[%s1487_s3 + $0xf8] sm:$0xff] %vm598_vm1, %v590_v10 }

// kernel: _forward_probs.8
= control target key start
LH: loop header
LB: loop body
LE: loop exit
PB: predicated region body
PF: predicated region fallthrough
CT: control target
= control target key end

     0   :  { %v557_v3 = vmov 0.0   ;;  %vm101_vm0 = vcmask 261120   ;;  %vm292_vm1 = vcmask 785408   ;;  %s952_s1 = inlined_call_operand.vmem [shape: f32[288,224], index: 1, kind: input, shape index: {}]   ;;  %s953_s0 = inlined_call_operand.vmem [shape: f32[32,288], index: 0, kind: input, shape index: {}]   ;;  %s954_s2 = inlined_call_operand.vmem [shape: f32[32,1], index: 2, kind: input, shape index: {}]   ;;  %s955_s3 = inlined_call_operand.vmem [shape: f32[32,1], index: 3, kind: input, shape index: {}]   ;;  %s956_s4 = inlined_call_operand.vmem [shape: f32[32,224], index: 4, kind: output, shape index: {}]  }
   0x1   :  { %v30_v0 = vld [vmem:[%s952_s1 + $0x8] sm:$0xff]  ;;  %v32_v1 = vld [vmem:[%s952_s1 + $0x18] sm:$0xff]  ;;  %v29_v2 = vld [vmem:[%s952_s1] sm:$0xff]  ;;  %267 = vmatprep.mubr.f32.mxu0 %v557_v3 }
   0x2   :  { %v465_v4 = vpack.c.bf16 %v32_v1, %v30_v0  ;;  %v31_v5 = vld [vmem:[%s952_s1 + $0x10] sm:$0xff]  ;;  %v34_v6 = vld [vmem:[%s952_s1 + $0x28] sm:$0xff]  ;;  %v36_v7 = vld [vmem:[%s952_s1 + $0x38] sm:$0xff] }
   0x3   :  { %v467_v8 = vpack.c.bf16 %v31_v5, %v29_v2  ;;  %v469_v9 = vpack.c.bf16 %v36_v7, %v34_v6  ;;  %v33_v10 = vld [vmem:[%s952_s1 + $0x20] sm:$0xff]  ;;  %v35_v11 = vld [vmem:[%s952_s1 + $0x30] sm:$0xff]  ;;  %v38_v12 = vld [vmem:[%s952_s1 + $0x48] sm:$0xff] }
   0x4   :  { %466 = vmatprep.subr.bf16.mxu1 %v465_v4  ;;  %v40_v13 = vld [vmem:[%s952_s1 + $0x58] sm:$0xff]  ;;  %v471_v14 = vpack.c.bf16 %v35_v11, %v33_v10  ;;  %v37_v16 = vld [vmem:[%s952_s1 + $0x40] sm:$0xff]  ;;  %v39_v17 = vld [vmem:[%s952_s1 + $0x50] sm:$0xff] }
   0x5   :  { %468 = vmatpush1.bf16.msra.mxu1 %v467_v8  ;;  %v473_v15 = vpack.c.bf16 %v40_v13, %v38_v12  ;;  %v42_v18 = vld [vmem:[%s952_s1 + $0x68] sm:$0xff]  ;;  %v44_v19 = vld [vmem:[%s952_s1 + $0x78] sm:$0xff]  ;;  %v475_v20 = vpack.c.bf16 %v39_v17, %v37_v16  ;;  %v41_v22 = vld [vmem:[%s952_s1 + $0x60] sm:$0xff] }
   0x6   :  { %470 = vmatprep.subr.bf16.mxu1 %v469_v9  ;;  %v477_v21 = vpack.c.bf16 %v44_v19, %v42_v18  ;;  %v43_v23 = vld [vmem:[%s952_s1 + $0x70] sm:$0xff]  ;;  %v46_v24 = vld [vmem:[%s952_s1 + $0x88] sm:$0xff]  ;;  %v48_v25 = vld [vmem:[%s952_s1 + $0x98] sm:$0xff] }
   0x7   :  { %v479_v26 = vpack.c.bf16 %v43_v23, %v41_v22  ;;  %v481_v27 = vpack.c.bf16 %v48_v25, %v46_v24  ;;  %v45_v28 = vld [vmem:[%s952_s1 + $0x80] sm:$0xff]  ;;  %v47_v29 = vld [vmem:[%s952_s1 + $0x90] sm:$0xff]  ;;  %v50_v30 = vld [vmem:[%s952_s1 + $0xa8] sm:$0xff] }
   0x8   :  { %v52_v31 = vld [vmem:[%s952_s1 + $0xb8] sm:$0xff]  ;;  %v483_v32 = vpack.c.bf16 %v47_v29, %v45_v28  ;;  %v49_v34 = vld [vmem:[%s952_s1 + $0xa0] sm:$0xff]  ;;  %v51_v35 = vld [vmem:[%s952_s1 + $0xb0] sm:$0xff] }
   0x9   :  { %472 = vmatpush1.bf16.msra.mxu1 %v471_v14  ;;  %v485_v33 = vpack.c.bf16 %v52_v31, %v50_v30  ;;  %v54_v36 = vld [vmem:[%s952_s1 + $0xc8] sm:$0xff]  ;;  %v56_v37 = vld [vmem:[%s952_s1 + $0xd8] sm:$0xff]  ;;  %v487_v40 = vpack.c.bf16 %v51_v35, %v49_v34  ;;  %v53_v41 = vld [vmem:[%s952_s1 + $0xc0] sm:$0xff] }
   0xa   :  { %474 = vmatprep.subr.bf16.mxu1 %v473_v15  ;;  %v94_v38 = vld [vmem:[%s952_s1 + $0x208] sm:$0xff]  ;;  %v96_v39 = vld [vmem:[%s952_s1 + $0x218] sm:$0xff]  ;;  %v93_v43 = vld [vmem:[%s952_s1 + $0x200] sm:$0xff]  ;;  %v489_v45 = vpack.c.bf16 %v56_v37, %v54_v36 }
   0xb   :  { %v529_v42 = vpack.c.bf16 %v96_v39, %v94_v38  ;;  %v95_v44 = vld [vmem:[%s952_s1 + $0x210] sm:$0xff]  ;;  %v98_v48 = vld [vmem:[%s952_s1 + $0x228] sm:$0xff]  ;;  %v100_v49 = vld [vmem:[%s952_s1 + $0x238] sm:$0xff] }
   0xc   :  { %v55_v46 = vld [vmem:[%s952_s1 + $0xd0] sm:$0xff]  ;;  %v531_v47 = vpack.c.bf16 %v95_v44, %v93_v43  ;;  %v58_v50 = vld [vmem:[%s952_s1 + $0xe8] sm:$0xff]  ;;  %v60_v51 = vld [vmem:[%s952_s1 + $0xf8] sm:$0xff]  ;;  %v533_v52 = vpack.c.bf16 %v100_v49, %v98_v48 }
   0xd   :  { %476 = vmatpush1.bf16.msra.mxu1 %v475_v20  ;;  %530 = vmatprep.subr.bf16.mxu0 %v529_v42  ;;  %v97_v53 = vld [vmem:[%s952_s1 + $0x220] sm:$0xff]  ;;  %v99_v54 = vld [vmem:[%s952_s1 + $0x230] sm:$0xff]  ;;  %v491_v55 = vpack.c.bf16 %v55_v46, %v53_v41  ;;  %v18_v57 = vld [vmem:[%s953_s0 + $0x8] sm:$0xff]  ;;  %v493_v58 = vpack.c.bf16 %v60_v51, %v58_v50 }
   0xe   :  { %478 = vmatprep.subr.bf16.mxu1 %v477_v21  ;;  %532 = vmatpush1.bf16.msra.mxu0 %v531_v47  ;;  %v535_v56 = vpack.c.bf16 %v99_v54, %v97_v53  ;;  %v57_v59 = vld [vmem:[%s952_s1 + $0xe0] sm:$0xff]  ;;  %v59_v60 = vld [vmem:[%s952_s1 + $0xf0] sm:$0xff]  ;;  %v62_v61 = vld [vmem:[%s952_s1 + $0x108] sm:$0xff] }
   0xf   :  { %534 = vmatprep.subr.bf16.mxu0 %v533_v52  ;;  %178 = vmatprep.mubr.f32.mxu1 %v18_v57  ;;  %v64_v62 = vld [vmem:[%s952_s1 + $0x118] sm:$0xff]  ;;  %v19_v63 = vld [vmem:[%s953_s0 + $0x10] sm:$0xff]  ;;  %v495_v0 = vpack.c.bf16 %v59_v60, %v57_v59  ;;  %v61_v2 = vld [vmem:[%s952_s1 + $0x100] sm:$0xff]  ;;  %v558_v57 = vmov 0  }
  0x10   :  { %v497_v1 = vpack.c.bf16 %v64_v62, %v62_v61  ;;  %v63_v4 = vld [vmem:[%s952_s1 + $0x110] sm:$0xff]  ;;  %v66_v5 = vld [vmem:[%s952_s1 + $0x128] sm:$0xff]  ;;  %v68_v6 = vld [vmem:[%s952_s1 + $0x138] sm:$0xff]  ;;  %548 = vset.pattern.permute.xlu1 %v558_v57  ;;  %547 = vset.pattern.permute.xlu0 %v558_v57 }
  0x11   :  { %480 = vmatpush1.bf16.msra.mxu1 %v479_v26  ;;  %v22_v7 = vld [vmem:[%s953_s0 + $0x28] sm:$0xff]  ;;  %v499_v8 = vpack.c.bf16 %v63_v4, %v61_v2  ;;  %v501_v9 = vpack.c.bf16 %v68_v6, %v66_v5  ;;  %v65_v10 = vld [vmem:[%s952_s1 + $0x120] sm:$0xff]  ;;  %v67_v11 = vld [vmem:[%s952_s1 + $0x130] sm:$0xff] }
  0x12   :  { %482 = vmatprep.subr.bf16.mxu1 %v481_v27  ;;  %536 = vmatpush1.bf16.msra.mxu0 %v535_v56  ;;  %v70_v12 = vld [vmem:[%s952_s1 + $0x148] sm:$0xff]  ;;  %v72_v13 = vld [vmem:[%s952_s1 + $0x158] sm:$0xff]  ;;  %v25_v14 = vld [vmem:[%s953_s0 + $0x40] sm:$0xff]  ;;  %v503_v15 = vpack.c.bf16 %v67_v11, %v65_v10 }
  0x13   :  { %v505_v16 = vpack.c.bf16 %v72_v13, %v70_v12  ;;  %v69_v17 = vld [vmem:[%s952_s1 + $0x140] sm:$0xff]  ;;  %v71_v18 = vld [vmem:[%s952_s1 + $0x150] sm:$0xff]  ;;  %v74_v19 = vld [vmem:[%s952_s1 + $0x168] sm:$0xff] }
  0x14   :  { %v76_v20 = vld [vmem:[%s952_s1 + $0x178] sm:$0xff]  ;;  %v507_v22 = vpack.c.bf16 %v71_v18, %v69_v17  ;;  %v73_v24 = vld [vmem:[%s952_s1 + $0x160] sm:$0xff]  ;;  %v75_v25 = vld [vmem:[%s952_s1 + $0x170] sm:$0xff] }
  0x15   :  { %484 = vmatpush1.bf16.msra.mxu1 %v483_v32  ;;  %461 = vmatmul.mubr.msk.f32.vlgmr.msra.gmra.mrb[0].mxu0 %vm101_vm0, %v19_v63  ;;  %v28_v21 = vld [vmem:[%s953_s0 + $0x58] sm:$0xff]  ;;  %v509_v23 = vpack.c.bf16 %v76_v20, %v74_v19  ;;  %v511_v27 = vpack.c.bf16 %v75_v25, %v73_v24  ;;  %v77_v29 = vld [vmem:[%s952_s1 + $0x180] sm:$0xff]  ;;  %v79_v30 = vld [vmem:[%s952_s1 + $0x190] sm:$0xff] }
  0x16   :  { %486 = vmatprep.subr.bf16.mxu1 %v485_v33  ;;  %273 = vmatprep.mubr.f32.mxu0 %v557_v3  ;;  %v80_v26 = vld [vmem:[%s952_s1 + $0x198] sm:$0xff]  ;;  %v82_v31 = vld [vmem:[%s952_s1 + $0x1a8] sm:$0xff]  ;;  %v515_v33 = vpack.c.bf16 %v79_v30, %v77_v29  ;;  %v81_v35 = vld [vmem:[%s952_s1 + $0x1a0] sm:$0xff] }
  0x17   :  { %v84_v32 = vld [vmem:[%s952_s1 + $0x1b8] sm:$0xff]  ;;  %v83_v36 = vld [vmem:[%s952_s1 + $0x1b0] sm:$0xff]  ;;  %v86_v37 = vld [vmem:[%s952_s1 + $0x1c8] sm:$0xff] }
  0x18   :  { %v517_v34 = vpack.c.bf16 %v84_v32, %v82_v31  ;;  %v88_v38 = vld [vmem:[%s952_s1 + $0x1d8] sm:$0xff]  ;;  %v519_v39 = vpack.c.bf16 %v83_v36, %v81_v35  ;;  %v85_v41 = vld [vmem:[%s952_s1 + $0x1c0] sm:$0xff]  ;;  %v87_v42 = vld [vmem:[%s952_s1 + $0x1d0] sm:$0xff] }
  0x19   :  { %488 = vmatpush1.bf16.msra.mxu1 %v487_v40  ;;  %462 = vmatmul.mubr.msk.f32.gmra.mrb[2].mxu0 %vm101_vm0, %v22_v7  ;;  %v521_v40 = vpack.c.bf16 %v88_v38, %v86_v37  ;;  %v90_v43 = vld [vmem:[%s952_s1 + $0x1e8] sm:$0xff]  ;;  %v92_v44 = vld [vmem:[%s952_s1 + $0x1f8] sm:$0xff]  ;;  %v89_v47 = vld [vmem:[%s952_s1 + $0x1e0] sm:$0xff] }
  0x1a   :  { %490 = vmatprep.subr.bf16.mxu1 %v489_v45  ;;  %279 = vmatprep.mubr.f32.mxu0 %v557_v3  ;;  %v523_v45 = vpack.c.bf16 %v87_v42, %v85_v41  ;;  %v525_v46 = vpack.c.bf16 %v92_v44, %v90_v43  ;;  %v91_v48 = vld [vmem:[%s952_s1 + $0x1f0] sm:$0xff]  ;;  %v17_v50 = vld [vmem:[%s953_s0] sm:$0xff]  ;;  %v20_v52 = vld [vmem:[%s953_s0 + $0x18] sm:$0xff] }
  0x1b   :  { %v527_v49 = vpack.c.bf16 %v91_v48, %v89_v47  ;;  %v21_v51 = vld [vmem:[%s953_s0 + $0x20] sm:$0xff]  ;;  %v24_v53 = vld [vmem:[%s953_s0 + $0x38] sm:$0xff]  ;;  %v23_v54 = vld [vmem:[%s953_s0 + $0x30] sm:$0xff] }
  0x1c   :  { %v26_v56 = vld [vmem:[%s953_s0 + $0x48] sm:$0xff]  ;;  %v379_v37 = vld [vmem:[%s954_s2 + $0x10] sm:$0xff]  ;;  %v377_v38 = vld [vmem:[%s954_s2] sm:$0xff] }
  0x1d   :  { %492 = vmatpush1.bf16.msra.mxu1 %v491_v55  ;;  %463 = vmatmul.mubr.msk.f32.gmra.mrb[4].mxu0 %vm101_vm0, %v25_v14  ;;  %v27_v55 = vld [vmem:[%s953_s0 + $0x50] sm:$0xff]  ;;  %v378_v36 = vld [vmem:[%s954_s2 + $0x8] sm:$0xff] }
  0x1e   :  { %494 = vmatprep.subr.bf16.mxu1 %v493_v58  ;;  %285 = vmatprep.mubr.f32.mxu0 %v557_v3  ;;  %v78_v3 = vld [vmem:[%s952_s1 + $0x188] sm:$0xff]  ;;  %v411_v42 = vld [vmem:[%s955_s3 + $0x10] sm:$0xff] }
  0x1f   :  { %v513_v28 = vpack.c.bf16 %v80_v26, %v78_v3  ;;  %v410_v41 = vld [vmem:[%s955_s3 + $0x8] sm:$0xff] }
  0x21   :  { %496 = vmatpush1.bf16.msra.mxu1 %v495_v0  ;;  %464 = vmatmul.mubr.msk.f32.gmra.mrb[6].mxu0 %vm101_vm0, %v28_v21 }
  0x22   :  { %498 = vmatprep.subr.bf16.mxu1 %v497_v1 }
  0x25   :  { %500 = vmatpush1.bf16.msra.mxu1 %v499_v8 }
  0x26   :  { %502 = vmatprep.subr.bf16.mxu1 %v501_v9 }
  0x29   :  { %504 = vmatpush1.bf16.msra.mxu1 %v503_v15 }
  0x2a   :  { %506 = vmatprep.subr.bf16.mxu1 %v505_v16 }
  0x2d   :  { %508 = vmatpush1.bf16.msra.mxu1 %v507_v22 }
  0x2e   :  { %510 = vmatprep.subr.bf16.mxu1 %v509_v23 }
  0x31   :  { %512 = vmatpush1.bf16.msra.mxu1 %v511_v27 }
  0x32   :  { %514 = vmatprep.subr.bf16.mxu1 %v513_v28 }
  0x35   :  { %516 = vmatpush1.bf16.msra.mxu1 %v515_v33 }
  0x36   :  { %518 = vmatprep.subr.bf16.mxu1 %v517_v34 }
  0x39   :  { %520 = vmatpush1.bf16.msra.mxu1 %v519_v39  ;;  %v380_v39 = vld [vmem:[%s954_s2 + $0x18] sm:$0xff] }
  0x3a   :  { %522 = vmatprep.subr.bf16.mxu1 %v521_v40  ;;  %v409_v40 = vld [vmem:[%s955_s3] sm:$0xff] }
  0x3d   :  { %524 = vmatpush1.bf16.msra.mxu1 %v523_v45 }
  0x3e   :  { %526 = vmatprep.subr.bf16.mxu1 %v525_v46 }
  0x41   :  { %528 = vmatpush1.bf16.msra.mxu1 %v527_v49  ;;  %v412_v49 = vld [vmem:[%s955_s3 + $0x18] sm:$0xff] }
  0x44   :  { %179 = vmatmul.mubr.f32.vlgmr.msra.gmra.mrb[0].mxu1 %v17_v50 }
  0x45   :  { %184 = vmatprep.mubr.f32.mxu1 %v21_v51 }
  0x48   :  { %185 = vmatmul.mubr.f32.gmra.mrb[2].mxu1 %v20_v52 }
  0x49   :  { %190 = vmatprep.mubr.f32.mxu1 %v24_v53 }
  0x4c   :  { %191 = vmatmul.mubr.f32.gmra.mrb[4].mxu1 %v23_v54 }
  0x4d   :  { %196 = vmatprep.mubr.f32.mxu1 %v27_v55 }
  0x50   :  { %197 = vmatmul.mubr.f32.gmra.mrb[6].mxu1 %v26_v56 }
  0xe8   :  { %v269_v58 = vpop.f32.mrb[0].mxu0 }
  0xe9   :  { %v271_v59 = vpop.f32.mrb[1].mxu0 }
  0xec   :  { %v275_v60 = vpop.f32.mrb[2].mxu0 }
  0xed   :  { %v277_v61 = vpop.f32.mrb[3].mxu0 }
  0xf0   :  { %v281_v62 = vpop.f32.mrb[4].mxu0 }
  0xf1   :  { %v283_v63 = vpop.f32.mrb[5].mxu0 }
  0xf4   :  { %v287_v0 = vpop.f32.mrb[6].mxu0 }
  0xf5   :  { %v289_v1 = vpop.f32.mrb[7].mxu0 }
 0x117   :  { %v180_v2 = vpop.f32.mrb[0].mxu1 }
 0x118   :  { %v844_v4 = vadd.f32 %v269_v58, %v180_v2  ;;  %v182_v5 = vpop.f32.mrb[1].mxu1 }
 0x119   :  { %v846_v6 = vadd.f32 %v271_v59, %v182_v5 }
 0x11a   :  { %v313_v15 = vmul.f32 %v844_v4, %v844_v4 }
 0x11b   :  { %v186_v7 = vpop.f32.mrb[2].mxu1  ;;  %v293_v8 = vsel %vm292_vm1, %v846_v6, 0.0  ;;  %v314_v9 = vmul.f32 %v846_v6, %v846_v6 }
 0x11c   :  { %v852_v10 = vadd.f32 %v275_v60, %v186_v7  ;;  %v188_v11 = vpop.f32.mrb[3].mxu1  ;;  %v294_v12 = vadd.f32 %v293_v8, %v844_v4 }
 0x11d   :  { %v855_v13 = vadd.f32 %v277_v61, %v188_v11  ;;  %v321_v14 = vsel %vm292_vm1, %v314_v9, 0.0 }
 0x11e   :  { %295 = vadd.xlane.f32.xlu0 %v294_v12  ;;  %v322_v20 = vadd.f32 %v321_v14, %v313_v15  ;;  %v315_v21 = vmul.f32 %v852_v10, %v852_v10 }
 0x11f   :  { %v192_v16 = vpop.f32.mrb[4].mxu1  ;;  %v316_v17 = vmul.f32 %v855_v13, %v855_v13  ;;  %v297_v24 = vsel %vm292_vm1, %v855_v13, 0.0 }
 0x120   :  { %v862_v18 = vadd.f32 %v281_v62, %v192_v16  ;;  %v194_v19 = vpop.f32.mrb[5].mxu1  ;;  %v298_v28 = vadd.f32 %v297_v24, %v852_v10 }
 0x121   :  { %v866_v22 = vadd.f32 %v283_v63, %v194_v19  ;;  %v325_v23 = vsel %vm292_vm1, %v316_v17, 0.0 }
 0x122   :  { %323 = vadd.xlane.f32.xlu0 %v322_v20  ;;  %v326_v25 = vadd.f32 %v325_v23, %v315_v21  ;;  %v317_v29 = vmul.f32 %v862_v18, %v862_v18 }
 0x123   :  { %v301_v3 = vsel %vm292_vm1, %v866_v22, 0.0  ;;  %v318_v26 = vmul.f32 %v866_v22, %v866_v22  ;;  %v198_v27 = vpop.f32.mrb[6].mxu1 }
 0x124   :  { %327 = vadd.xlane.f32.xlu1 %v326_v25  ;;  %v878_v30 = vadd.f32 %v287_v0, %v198_v27  ;;  %v200_v31 = vpop.f32.mrb[7].mxu1  ;;  %v302_v34 = vadd.f32 %v301_v3, %v862_v18 }
 0x125   :  { %v329_v32 = vsel %vm292_vm1, %v318_v26, 0.0  ;;  %v881_v33 = vadd.f32 %v289_v1, %v200_v31 }
 0x126   :  { %299 = vadd.xlane.f32.xlu0 %v298_v28  ;;  %v330_v35 = vadd.f32 %v329_v32, %v317_v29  ;;  %v319_v46 = vmul.f32 %v878_v30, %v878_v30 }
 0x127   :  { %v305_v43 = vsel %vm292_vm1, %v881_v33, 0.0  ;;  %v320_v44 = vmul.f32 %v881_v33, %v881_v33 }
 0x128   :  { %303 = vadd.xlane.f32.xlu1 %v302_v34  ;;  %v306_v45 = vadd.f32 %v305_v43, %v878_v30 }
 0x129   :  { %v333_v47 = vsel %vm292_vm1, %v320_v44, 0.0 }
 0x12a   :  { %331 = vadd.xlane.f32.xlu0 %v330_v35  ;;  %v334_v48 = vadd.f32 %v333_v47, %v319_v46 }
 0x139   :  { %388 = vperm.xlu1 %548, %v378_v36  }
 0x13d   :  { %393 = vperm.xlu1 %548, %v379_v37  }
 0x140   :  { %383 = vperm.xlu0 %547, %v377_v38  }
 0x141   :  { %398 = vperm.xlu1 %548, %v380_v39  }
 0x145   :  { %415 = vperm.xlu1 %548, %v409_v40  }
 0x149   :  { %420 = vperm.xlu1 %548, %v410_v41  }
 0x14d   :  { %425 = vperm.xlu1 %548, %v411_v42  }
 0x171   :  { %307 = vadd.xlane.f32.xlu1 %v306_v45 }
 0x175   :  { %335 = vadd.xlane.f32.xlu1 %v334_v48 }
 0x186   :  { %430 = vperm.xlu1 %548, %v412_v49  }
 0x1ab   :  { %v296_v50 = vpop.xlane.xlu0 %295 }
 0x1ac   :  { %v309_v51 = vmul.f32 0.004464286, %v296_v50 }
 0x1ae   :  { %v341_v53 = vmul.f32 %v309_v51, %v309_v51  ;;  %v353_v19 = vsub.f32 %v844_v4, %v309_v51  ;;  %v354_v20 = vsub.f32 %v846_v6, %v309_v51 }
 0x1af   :  { %v324_v52 = vpop.xlane.xlu0 %323 }
 0x1b0   :  { %v337_v54 = vmul.f32 0.004464286, %v324_v52 }
 0x1b1   :  { %v328_v55 = vpop.xlane.xlu1 %327 }
 0x1b2   :  { %v345_v56 = vsub.f32 %v337_v54, %v341_v53  ;;  %v338_v62 = vmul.f32 0.004464286, %v328_v55 }
 0x1b3   :  { %v300_v57 = vpop.xlane.xlu0 %299 }
 0x1b4   :  { %v349_v58 = vmax.f32 %v345_v56, 0.0  ;;  %v310_v59 = vmul.f32 0.004464286, %v300_v57 }
 0x1b5   :  { %v304_v60 = vpop.xlane.xlu1 %303 }
 0x1b6   :  { %v361_v61 = vadd.f32 1e-05, %v349_v58  ;;  %v342_v63 = vmul.f32 %v310_v59, %v310_v59  ;;  %v311_v0 = vmul.f32 0.004464286, %v304_v60  ;;  %v355_v28 = vsub.f32 %v852_v10, %v310_v59 }
 0x1b7   :  { %v332_v1 = vpop.xlane.xlu0 %331  ;;  %v356_v29 = vsub.f32 %v855_v13, %v310_v59 }
 0x1b8   :  { %549 = vrsqrt.f32 %v361_v61  ;;  %v346_v2 = vsub.f32 %v338_v62, %v342_v63  ;;  %v339_v5 = vmul.f32 0.004464286, %v332_v1  ;;  %v343_v7 = vmul.f32 %v311_v0, %v311_v0 }
 0x1b9   :  { %v389_v8 = vpop.permute.xlu1 %388  ;;  %v357_v6 = vsub.f32 %v862_v18, %v311_v0  ;;  %v358_v39 = vsub.f32 %v866_v22, %v311_v0 }
 0x1ba   :  { %v350_v9 = vmax.f32 %v346_v2, 0.0  ;;  %v347_v11 = vsub.f32 %v339_v5, %v343_v7 }
 0x1bc   :  { %v362_v12 = vadd.f32 1e-05, %v350_v9  ;;  %v351_v14 = vmax.f32 %v347_v11, 0.0 }
 0x1bd   :  { %v394_v15 = vpop.permute.xlu1 %393 }
 0x1be   :  { %551 = vrsqrt.f32 %v362_v12  ;;  %v363_v16 = vadd.f32 1e-05, %v351_v14 }
 0x1bf   :  { %v384_v23 = vpop.permute.xlu0 %383 }
 0x1c0   :  { %553 = vrsqrt.f32 %v363_v16 }
 0x1c1   :  { %v399_v17 = vpop.permute.xlu1 %398 }
 0x1c2   :  { %v550_v21 = vpop.eup %549 }
 0x1c3   :  { %v369_v24 = vmul.f32 %v550_v21, %v353_v19  ;;  %v370_v25 = vmul.f32 %v550_v21, %v354_v20 }
 0x1c5   :  { %v401_v3 = vmul.f32 %v384_v23, %v369_v24  ;;  %v402_v26 = vmul.f32 %v384_v23, %v370_v25  ;;  %v416_v27 = vpop.permute.xlu1 %415 }
 0x1c7   :  { %v433_v31 = vadd.f32 %v416_v27, %v401_v3  ;;  %v434_v32 = vadd.f32 %v416_v27, %v402_v26 }
 0x1c8   :  { %v552_v34 = vpop.eup %551 }
 0x1c9   :  { %v371_v35 = vmul.f32 %v552_v34, %v355_v28  ;;  %v372_v36 = vmul.f32 %v552_v34, %v356_v29  ;;  %v441_v37 = vmax.f32 %v433_v31, 0.0  ;;  %v442_v4 = vmax.f32 %v434_v32, 0.0  ;;  %v421_v38 = vpop.permute.xlu1 %420 }
 0x1ca   :  { %v554_v40 = vpop.eup %553 }
 0x1cb   :  { %v403_v41 = vmul.f32 %v389_v8, %v371_v35  ;;  %v404_v42 = vmul.f32 %v389_v8, %v372_v36  ;;  %449 = vst [vmem:[%s956_s4] sm:$0xff] %v441_v37  ;;  %450 = vst.msk [vmem:[%s956_s4 + $0x8] sm:$0xff] %vm292_vm1, %v442_v4  ;;  %v373_v10 = vmul.f32 %v554_v40, %v357_v6 }
 0x1cc   :  { %v374_v13 = vmul.f32 %v554_v40, %v358_v39 }
 0x1cd   :  { %v435_v43 = vadd.f32 %v421_v38, %v403_v41  ;;  %v436_v44 = vadd.f32 %v421_v38, %v404_v42  ;;  %v426_v45 = vpop.permute.xlu1 %425  ;;  %v405_v18 = vmul.f32 %v394_v15, %v373_v10 }
 0x1ce   :  { %v406_v46 = vmul.f32 %v394_v15, %v374_v13 }
 0x1cf   :  { %v443_v22 = vmax.f32 %v435_v43, 0.0  ;;  %v444_v47 = vmax.f32 %v436_v44, 0.0  ;;  %v437_v48 = vadd.f32 %v426_v45, %v405_v18 }
 0x1d0   :  { %v438_v49 = vadd.f32 %v426_v45, %v406_v46 }
 0x1d1   :  { %451 = vst [vmem:[%s956_s4 + $0x10] sm:$0xff] %v443_v22  ;;  %452 = vst.msk [vmem:[%s956_s4 + $0x18] sm:$0xff] %vm292_vm1, %v444_v47  ;;  %v445_v50 = vmax.f32 %v437_v48, 0.0 }
 0x1d2   :  { %v446_v51 = vmax.f32 %v438_v49, 0.0 }
 0x1d3   :  { %453 = vst [vmem:[%s956_s4 + $0x20] sm:$0xff] %v445_v50 }
 0x1d4   :  { %454 = vst.msk [vmem:[%s956_s4 + $0x28] sm:$0xff] %vm292_vm1, %v446_v51 }
 0x1fe   :  { %v308_v52 = vpop.xlane.xlu1 %307 }
 0x1ff   :  { %v312_v53 = vmul.f32 0.004464286, %v308_v52 }
 0x201   :  { %v344_v55 = vmul.f32 %v312_v53, %v312_v53  ;;  %v359_v60 = vsub.f32 %v878_v30, %v312_v53  ;;  %v360_v61 = vsub.f32 %v881_v33, %v312_v53 }
 0x202   :  { %v336_v54 = vpop.xlane.xlu1 %335 }
 0x203   :  { %v340_v56 = vmul.f32 0.004464286, %v336_v54 }
 0x205   :  { %v348_v57 = vsub.f32 %v340_v56, %v344_v55 }
 0x206   :  { %v431_v5 = vpop.permute.xlu1 %430 }
 0x207   :  { %v352_v58 = vmax.f32 %v348_v57, 0.0 }
 0x209   :  { %v364_v59 = vadd.f32 1e-05, %v352_v58 }
 0x20b   :  { %555 = vrsqrt.f32 %v364_v59 }
 0x215   :  { %v556_v62 = vpop.eup %555 }
 0x216   :  { %v375_v63 = vmul.f32 %v556_v62, %v359_v60  ;;  %v376_v0 = vmul.f32 %v556_v62, %v360_v61 }
 0x218   :  { %v407_v1 = vmul.f32 %v399_v17, %v375_v63  ;;  %v408_v2 = vmul.f32 %v399_v17, %v376_v0 }
 0x21a   :  { %v439_v7 = vadd.f32 %v431_v5, %v407_v1  ;;  %v440_v8 = vadd.f32 %v431_v5, %v408_v2 }
 0x21c   :  { %v447_v9 = vmax.f32 %v439_v7, 0.0  ;;  %v448_v11 = vmax.f32 %v440_v8, 0.0 }
 0x21e   :  { %455 = vst [vmem:[%s956_s4 + $0x30] sm:$0xff] %v447_v9  ;;  %456 = vst.msk [vmem:[%s956_s4 + $0x38] sm:$0xff] %vm292_vm1, %v448_v11 }

// kernel: _forward_probs.9
= control target key start
LH: loop header
LB: loop body
LE: loop exit
PB: predicated region body
PF: predicated region fallthrough
CT: control target
= control target key end

     0   :  { %s2278_s0 = inlined_call_operand.vmem [shape: f32[16,800], index: 0, kind: input, shape index: {}]   ;;  %s2279_s1 = inlined_call_operand.vmem [shape: f32[800,32], index: 1, kind: input, shape index: {}]   ;;  %s2280_s2 = inlined_call_operand.vmem [shape: f32[1,32], index: 2, kind: input, shape index: {}]   ;;  %s2281_s3 = inlined_call_operand.vmem [shape: f32[8,32,32], index: 3, kind: input, shape index: {}]   ;;  %s2282_s4 = inlined_call_operand.vmem [shape: f32[1,32], index: 4, kind: input, shape index: {}]   ;;  %s2283_s5 = inlined_call_operand.vmem [shape: f32[32,7], index: 5, kind: input, shape index: {}]   ;;  %s2284_s6 = inlined_call_operand.vmem [shape: f32[1,7], index: 6, kind: input, shape index: {}]   ;;  %s2285_s7 = inlined_call_operand.hbm [shape: f32[2,7], index: 7, kind: output, shape index: {}]  }
   0x1   :  { %v57_v0 = vld [vmem:[%s2279_s1 + $0x80] sm:$0xff]  ;;  %v58_v1 = vld [vmem:[%s2279_s1 + $0x88] sm:$0xff]  ;;  %v59_v11 = vld [vmem:[%s2279_s1 + $0x90] sm:$0xff] }
   0x2   :  { %v41_v2 = vld [vmem:[%s2279_s1] sm:$0xff]  ;;  %v1523_v3 = vpack.c.bf16 %v58_v1, %v57_v0  ;;  %v42_v4 = vld [vmem:[%s2279_s1 + $0x8] sm:$0xff]  ;;  %v60_v13 = vld [vmem:[%s2279_s1 + $0x98] sm:$0xff] }
   0x3   :  { %v89_v5 = vld [vmem:[%s2279_s1 + $0x180] sm:$0xff]  ;;  %v90_v6 = vld [vmem:[%s2279_s1 + $0x188] sm:$0xff]  ;;  %v1525_v7 = vpack.c.bf16 %v42_v4, %v41_v2  ;;  %v43_v14 = vld [vmem:[%s2279_s1 + $0x10] sm:$0xff]  ;;  %v1527_v16 = vpack.c.bf16 %v60_v13, %v59_v11 }
   0x4   :  { %v1555_v8 = vpack.c.bf16 %v90_v6, %v89_v5  ;;  %v73_v9 = vld [vmem:[%s2279_s1 + $0x100] sm:$0xff]  ;;  %v74_v10 = vld [vmem:[%s2279_s1 + $0x108] sm:$0xff]  ;;  %1524 = vmatprep.subr.bf16.mxu0 %v1523_v3  ;;  %v44_v15 = vld [vmem:[%s2279_s1 + $0x18] sm:$0xff] }
   0x5   :  { %v1557_v12 = vpack.c.bf16 %v74_v10, %v73_v9  ;;  %1526 = vmatpush3.bf16.msra.mxu0 %v1525_v7  ;;  %v1529_v17 = vpack.c.bf16 %v44_v15, %v43_v14  ;;  %v91_v18 = vld [vmem:[%s2279_s1 + $0x190] sm:$0xff]  ;;  %v92_v19 = vld [vmem:[%s2279_s1 + $0x198] sm:$0xff]  ;;  %v61_v23 = vld [vmem:[%s2279_s1 + $0xa0] sm:$0xff] }
   0x6   :  { %1556 = vmatprep.subr.bf16.mxu1 %v1555_v8  ;;  %v75_v20 = vld [vmem:[%s2279_s1 + $0x110] sm:$0xff]  ;;  %v1559_v21 = vpack.c.bf16 %v92_v19, %v91_v18  ;;  %v76_v22 = vld [vmem:[%s2279_s1 + $0x118] sm:$0xff]  ;;  %v62_v24 = vld [vmem:[%s2279_s1 + $0xa8] sm:$0xff]  ;;  %1528 = vmatprep.subr.bf16.mxu0 %v1527_v16 }
   0x7   :  { %1558 = vmatpush3.bf16.msra.mxu1 %v1557_v12  ;;  %v1561_v25 = vpack.c.bf16 %v76_v22, %v75_v20  ;;  %v1531_v26 = vpack.c.bf16 %v62_v24, %v61_v23  ;;  %v45_v27 = vld [vmem:[%s2279_s1 + $0x20] sm:$0xff]  ;;  %v46_v28 = vld [vmem:[%s2279_s1 + $0x28] sm:$0xff]  ;;  %v63_v35 = vld [vmem:[%s2279_s1 + $0xb0] sm:$0xff] }
   0x8   :  { %v93_v29 = vld [vmem:[%s2279_s1 + $0x1a0] sm:$0xff]  ;;  %1560 = vmatprep.subr.bf16.mxu1 %v1559_v21  ;;  %v94_v30 = vld [vmem:[%s2279_s1 + $0x1a8] sm:$0xff]  ;;  %v1533_v33 = vpack.c.bf16 %v46_v28, %v45_v27  ;;  %v64_v36 = vld [vmem:[%s2279_s1 + $0xb8] sm:$0xff] }
   0x9   :  { %v77_v31 = vld [vmem:[%s2279_s1 + $0x120] sm:$0xff]  ;;  %v78_v32 = vld [vmem:[%s2279_s1 + $0x128] sm:$0xff]  ;;  %1530 = vmatpush3.bf16.msra.mxu0 %v1529_v17  ;;  %v1563_v34 = vpack.c.bf16 %v94_v30, %v93_v29  ;;  %v47_v37 = vld [vmem:[%s2279_s1 + $0x30] sm:$0xff]  ;;  %v1535_v39 = vpack.c.bf16 %v64_v36, %v63_v35 }
   0xa   :  { %1532 = vmatprep.subr.bf16.mxu0 %v1531_v26  ;;  %v1565_v38 = vpack.c.bf16 %v78_v32, %v77_v31  ;;  %v48_v40 = vld [vmem:[%s2279_s1 + $0x38] sm:$0xff]  ;;  %v95_v41 = vld [vmem:[%s2279_s1 + $0x1b0] sm:$0xff]  ;;  %v65_v46 = vld [vmem:[%s2279_s1 + $0xc0] sm:$0xff] }
   0xb   :  { %1562 = vmatpush3.bf16.msra.mxu1 %v1561_v25  ;;  %v96_v42 = vld [vmem:[%s2279_s1 + $0x1b8] sm:$0xff]  ;;  %v79_v44 = vld [vmem:[%s2279_s1 + $0x130] sm:$0xff]  ;;  %v66_v47 = vld [vmem:[%s2279_s1 + $0xc8] sm:$0xff]  ;;  %v1537_v48 = vpack.c.bf16 %v48_v40, %v47_v37 }
   0xc   :  { %1564 = vmatprep.subr.bf16.mxu1 %v1563_v34  ;;  %v1567_v43 = vpack.c.bf16 %v96_v42, %v95_v41  ;;  %v80_v45 = vld [vmem:[%s2279_s1 + $0x138] sm:$0xff]  ;;  %v97_v49 = vld [vmem:[%s2279_s1 + $0x1c0] sm:$0xff]  ;;  %v98_v50 = vld [vmem:[%s2279_s1 + $0x1c8] sm:$0xff]  ;;  %v1539_v52 = vpack.c.bf16 %v66_v47, %v65_v46 }
   0xd   :  { %1534 = vmatpush3.bf16.msra.mxu0 %v1533_v33  ;;  %v1569_v51 = vpack.c.bf16 %v80_v45, %v79_v44  ;;  %v49_v53 = vld [vmem:[%s2279_s1 + $0x40] sm:$0xff]  ;;  %v50_v54 = vld [vmem:[%s2279_s1 + $0x48] sm:$0xff]  ;;  %v1571_v56 = vpack.c.bf16 %v98_v50, %v97_v49  ;;  %v67_v58 = vld [vmem:[%s2279_s1 + $0xd0] sm:$0xff] }
   0xe   :  { %1536 = vmatprep.subr.bf16.mxu0 %v1535_v39  ;;  %v81_v55 = vld [vmem:[%s2279_s1 + $0x140] sm:$0xff]  ;;  %v82_v57 = vld [vmem:[%s2279_s1 + $0x148] sm:$0xff]  ;;  %v68_v59 = vld [vmem:[%s2279_s1 + $0xd8] sm:$0xff]  ;;  %v1541_v62 = vpack.c.bf16 %v50_v54, %v49_v53 }
   0xf   :  { %1566 = vmatpush3.bf16.msra.mxu1 %v1565_v38  ;;  %v99_v60 = vld [vmem:[%s2279_s1 + $0x1d0] sm:$0xff]  ;;  %v100_v61 = vld [vmem:[%s2279_s1 + $0x1d8] sm:$0xff]  ;;  %v1573_v63 = vpack.c.bf16 %v82_v57, %v81_v55  ;;  %v1543_v0 = vpack.c.bf16 %v68_v59, %v67_v58  ;;  %v69_v6 = vld [vmem:[%s2279_s1 + $0xe0] sm:$0xff] }
  0x10   :  { %1568 = vmatprep.subr.bf16.mxu1 %v1567_v43  ;;  %v51_v1 = vld [vmem:[%s2279_s1 + $0x50] sm:$0xff]  ;;  %v52_v2 = vld [vmem:[%s2279_s1 + $0x58] sm:$0xff]  ;;  %v1575_v4 = vpack.c.bf16 %v100_v61, %v99_v60  ;;  %v70_v7 = vld [vmem:[%s2279_s1 + $0xe8] sm:$0xff] }
  0x11   :  { %1538 = vmatpush3.bf16.msra.mxu0 %v1537_v48  ;;  %v83_v3 = vld [vmem:[%s2279_s1 + $0x150] sm:$0xff]  ;;  %v84_v5 = vld [vmem:[%s2279_s1 + $0x158] sm:$0xff]  ;;  %v101_v8 = vld [vmem:[%s2279_s1 + $0x1e0] sm:$0xff]  ;;  %v1545_v10 = vpack.c.bf16 %v52_v2, %v51_v1  ;;  %v1547_v14 = vpack.c.bf16 %v70_v7, %v69_v6 }
  0x12   :  { %1540 = vmatprep.subr.bf16.mxu0 %v1539_v52  ;;  %v102_v9 = vld [vmem:[%s2279_s1 + $0x1e8] sm:$0xff]  ;;  %v53_v11 = vld [vmem:[%s2279_s1 + $0x60] sm:$0xff]  ;;  %v1577_v13 = vpack.c.bf16 %v84_v5, %v83_v3  ;;  %v71_v19 = vld [vmem:[%s2279_s1 + $0xf0] sm:$0xff] }
  0x13   :  { %1570 = vmatpush3.bf16.msra.mxu1 %v1569_v51  ;;  %v28_v12 = vld [vmem:[%s2278_s0 + $0x8] sm:$0xff]  ;;  %v85_v16 = vld [vmem:[%s2279_s1 + $0x160] sm:$0xff]  ;;  %v1579_v18 = vpack.c.bf16 %v102_v9, %v101_v8  ;;  %v72_v20 = vld [vmem:[%s2279_s1 + $0xf8] sm:$0xff] }
  0x14   :  { %1572 = vmatprep.subr.bf16.mxu1 %v1571_v56  ;;  %v54_v15 = vld [vmem:[%s2279_s1 + $0x68] sm:$0xff]  ;;  %219 = vmatprep.mubr.f32.mxu0 %v28_v12  ;;  %v30_v21 = vld [vmem:[%s2278_s0 + $0x18] sm:$0xff]  ;;  %v103_v22 = vld [vmem:[%s2279_s1 + $0x1f0] sm:$0xff]  ;;  %v1551_v26 = vpack.c.bf16 %v72_v20, %v71_v19 }
  0x15   :  { %1542 = vmatpush3.bf16.msra.mxu0 %v1541_v62  ;;  %v86_v17 = vld [vmem:[%s2279_s1 + $0x168] sm:$0xff]  ;;  %v104_v23 = vld [vmem:[%s2279_s1 + $0x1f8] sm:$0xff]  ;;  %294 = vmatprep.mubr.f32.mxu1 %v30_v21  ;;  %v1549_v24 = vpack.c.bf16 %v54_v15, %v53_v11  ;;  %v55_v27 = vld [vmem:[%s2279_s1 + $0x70] sm:$0xff] }
  0x16   :  { %1544 = vmatprep.subr.bf16.mxu0 %v1543_v0  ;;  %v1581_v25 = vpack.c.bf16 %v86_v17, %v85_v16  ;;  %v56_v28 = vld [vmem:[%s2279_s1 + $0x78] sm:$0xff]  ;;  %v87_v29 = vld [vmem:[%s2279_s1 + $0x170] sm:$0xff]  ;;  %v1583_v30 = vpack.c.bf16 %v104_v23, %v103_v22  ;;  %v121_v32 = vld [vmem:[%s2279_s1 + $0x280] sm:$0xff] }
  0x17   :  { %1574 = vmatpush3.bf16.msra.mxu1 %v1573_v63  ;;  %v88_v31 = vld [vmem:[%s2279_s1 + $0x178] sm:$0xff]  ;;  %v122_v33 = vld [vmem:[%s2279_s1 + $0x288] sm:$0xff]  ;;  %v1553_v34 = vpack.c.bf16 %v56_v28, %v55_v27  ;;  %v105_v37 = vld [vmem:[%s2279_s1 + $0x200] sm:$0xff] }
  0x18   :  { %1576 = vmatprep.subr.bf16.mxu1 %v1575_v4  ;;  %v1585_v35 = vpack.c.bf16 %v88_v31, %v87_v29  ;;  %v1587_v36 = vpack.c.bf16 %v122_v33, %v121_v32  ;;  %v106_v38 = vld [vmem:[%s2279_s1 + $0x208] sm:$0xff]  ;;  %v123_v39 = vld [vmem:[%s2279_s1 + $0x290] sm:$0xff]  ;;  %v124_v40 = vld [vmem:[%s2279_s1 + $0x298] sm:$0xff] }
  0x19   :  { %1546 = vmatpush3.bf16.msra.mxu0 %v1545_v10  ;;  %v27_v41 = vld [vmem:[%s2278_s0] sm:$0xff]  ;;  %v1589_v42 = vpack.c.bf16 %v106_v38, %v105_v37  ;;  %v29_v43 = vld [vmem:[%s2278_s0 + $0x10] sm:$0xff]  ;;  %v1591_v45 = vpack.c.bf16 %v124_v40, %v123_v39  ;;  %v108_v47 = vld [vmem:[%s2279_s1 + $0x218] sm:$0xff] }
  0x1a   :  { %1548 = vmatprep.subr.bf16.mxu0 %v1547_v14  ;;  %v137_v44 = vld [vmem:[%s2279_s1 + $0x300] sm:$0xff]  ;;  %v107_v46 = vld [vmem:[%s2279_s1 + $0x210] sm:$0xff]  ;;  %v138_v48 = vld [vmem:[%s2279_s1 + $0x308] sm:$0xff] }
  0x1b   :  { %1578 = vmatpush3.bf16.msra.mxu1 %v1577_v13  ;;  %v125_v49 = vld [vmem:[%s2279_s1 + $0x2a0] sm:$0xff]  ;;  %v126_v50 = vld [vmem:[%s2279_s1 + $0x2a8] sm:$0xff]  ;;  %v1619_v52 = vpack.c.bf16 %v138_v48, %v137_v44  ;;  %v37_v53 = vld [vmem:[%s2278_s0 + $0x50] sm:$0xff]  ;;  %v1593_v55 = vpack.c.bf16 %v108_v47, %v107_v46 }
  0x1c   :  { %1580 = vmatprep.subr.bf16.mxu1 %v1579_v18  ;;  %v35_v51 = vld [vmem:[%s2278_s0 + $0x40] sm:$0xff]  ;;  %v139_v54 = vld [vmem:[%s2279_s1 + $0x310] sm:$0xff]  ;;  %v34_v57 = vld [vmem:[%s2278_s0 + $0x38] sm:$0xff]  ;;  %v1595_v59 = vpack.c.bf16 %v126_v50, %v125_v49 }
  0x1d   :  { %1550 = vmatpush3.bf16.msra.mxu0 %v1549_v24  ;;  %v109_v56 = vld [vmem:[%s2279_s1 + $0x220] sm:$0xff]  ;;  %v140_v58 = vld [vmem:[%s2279_s1 + $0x318] sm:$0xff]  ;;  %v110_v60 = vld [vmem:[%s2279_s1 + $0x228] sm:$0xff] }
  0x1e   :  { %1552 = vmatprep.subr.bf16.mxu0 %v1551_v26  ;;  %v127_v61 = vld [vmem:[%s2279_s1 + $0x2b0] sm:$0xff]  ;;  %v36_v62 = vld [vmem:[%s2278_s0 + $0x48] sm:$0xff]  ;;  %v128_v63 = vld [vmem:[%s2279_s1 + $0x2b8] sm:$0xff]  ;;  %v1623_v1 = vpack.c.bf16 %v140_v58, %v139_v54 }
  0x1f   :  { %1582 = vmatpush3.bf16.msra.mxu1 %v1581_v25  ;;  %v32_v0 = vld [vmem:[%s2278_s0 + $0x28] sm:$0xff] }
  0x20   :  { %1584 = vmatprep.subr.bf16.mxu1 %v1583_v30 }
  0x21   :  { %1554 = vmatpush3.bf16.msra.mxu0 %v1553_v34 }
  0x22   :  { %1588 = vmatprep.subr.bf16.mxu0 %v1587_v36 }
  0x23   :  { %1586 = vmatpush3.bf16.msra.mxu1 %v1585_v35 }
  0x24   :  { %220 = vmatmul.mubr.f32.vlgmr.msra.gmra.mrb[0].mxu0 %v27_v41  ;;  %1620 = vmatprep.subr.bf16.mxu1 %v1619_v52 }
  0x25   :  { %1590 = vmatpush3.bf16.msra.mxu0 %v1589_v42  ;;  %224 = vmatprep.mubr.f32.mxu0 %v35_v51 }
  0x26   :  { %295 = vmatmul.mubr.f32.vlgmr.msra.gmra.mrb[0].mxu1 %v29_v43  ;;  %1592 = vmatprep.subr.bf16.mxu0 %v1591_v45 }
  0x27   :  { %299 = vmatprep.mubr.f32.mxu1 %v37_v53 }
  0x28   :  { %12 = vsyncpa [#allocation3], 0  ;;  %225 = vmatmul.mubr.f32.gmra.mrb[2].mxu0 %v34_v57  ;;  %1622 = vmatpush3.bf16.msra.mxu1 %v1619_v52  ;;  %v33_v2 = vld [vmem:[%s2278_s0 + $0x30] sm:$0xff]  ;;  %vm148_vm0 = vcmask 261120   ;;  %v1597_v3 = vpack.c.bf16 %v110_v60, %v109_v56  ;;  %v1599_v4 = vpack.c.bf16 %v128_v63, %v127_v61  ;;  %v112_v6 = vld [vmem:[%s2279_s1 + $0x238] sm:$0xff]  ;;  %v1713_v41 = vmov 0.0|0.0  }
  0x29   :  { %1594 = vmatpush3.bf16.msra.mxu0 %v1593_v55  ;;  %v111_v5 = vld [vmem:[%s2279_s1 + $0x230] sm:$0xff]  ;;  %369 = vmatprep.mubr.f32.mxu0 %v32_v0  ;;  %v129_v7 = vld [vmem:[%s2279_s1 + $0x2c0] sm:$0xff]  ;;  %v130_v8 = vld [vmem:[%s2279_s1 + $0x2c8] sm:$0xff]  ;;  %vm1714_vm1 = vmmov 0   ;;  %v1715_v49 = vmov 0.0   ;;  %vm1179_vm2 = vcmask 50176  }
  0x2a   :  { %300 = vmatmul.mubr.f32.gmra.mrb[2].mxu1 %v36_v62  ;;  %1596 = vmatprep.subr.bf16.mxu0 %v1595_v59  ;;  %v40_v9 = vld [vmem:[%s2278_s0 + $0x68] sm:$0xff]  ;;  %v1601_v10 = vpack.c.bf16 %v112_v6, %v111_v5  ;;  %v1603_v11 = vpack.c.bf16 %v130_v8, %v129_v7  ;;  %v113_v12 = vld [vmem:[%s2279_s1 + $0x240] sm:$0xff]  ;;  %v131_v14 = vld [vmem:[%s2279_s1 + $0x2d0] sm:$0xff] }
  0x2b   :  { %1624 = vmatprep.subr.bf16.mxu1 %v1623_v1  ;;  %1421 = vmatprep.mubr.msk.f32.mxu1 %vm148_vm0, %v33_v2  ;;  %v114_v13 = vld [vmem:[%s2279_s1 + $0x248] sm:$0xff]  ;;  %v132_v15 = vld [vmem:[%s2279_s1 + $0x2d8] sm:$0xff]  ;;  %v115_v18 = vld [vmem:[%s2279_s1 + $0x250] sm:$0xff] }
  0x2c   :  { %1626 = vmatpush3.bf16.msra.mxu1 %v1623_v1  ;;  %v1605_v16 = vpack.c.bf16 %v114_v13, %v113_v12  ;;  %v1607_v17 = vpack.c.bf16 %v132_v15, %v131_v14  ;;  %v116_v19 = vld [vmem:[%s2279_s1 + $0x258] sm:$0xff]  ;;  %v133_v20 = vld [vmem:[%s2279_s1 + $0x2e0] sm:$0xff]  ;;  %v134_v21 = vld [vmem:[%s2279_s1 + $0x2e8] sm:$0xff] }
  0x2d   :  { %1598 = vmatpush3.bf16.msra.mxu0 %v1597_v3  ;;  %v1609_v22 = vpack.c.bf16 %v116_v19, %v115_v18  ;;  %v1611_v23 = vpack.c.bf16 %v134_v21, %v133_v20  ;;  %v117_v24 = vld [vmem:[%s2279_s1 + $0x260] sm:$0xff]  ;;  %v118_v25 = vld [vmem:[%s2279_s1 + $0x268] sm:$0xff]  ;;  %v135_v26 = vld [vmem:[%s2279_s1 + $0x2f0] sm:$0xff]  ;;  %1627 = vmatprep.subr.bf16.mxu1 %v1713_v41 }
  0x2e   :  { %1600 = vmatprep.subr.bf16.mxu0 %v1599_v4  ;;  %v136_v27 = vld [vmem:[%s2279_s1 + $0x2f8] sm:$0xff]  ;;  %v1613_v28 = vpack.c.bf16 %v118_v25, %v117_v24  ;;  %v119_v30 = vld [vmem:[%s2279_s1 + $0x270] sm:$0xff]  ;;  %v31_v33 = vld [vmem:[%s2278_s0 + $0x20] sm:$0xff] }
  0x2f   :  { %1422 = vmatmul.mubr.msk.f32.vlgmr.msra.gmra.mrb[4].mxu1 %vm148_vm0, %v40_v9  ;;  %v1615_v29 = vpack.c.bf16 %v136_v27, %v135_v26  ;;  %v120_v31 = vld [vmem:[%s2279_s1 + $0x278] sm:$0xff]  ;;  %v39_v34 = vld [vmem:[%s2278_s0 + $0x60] sm:$0xff]  ;;  %v1210_v37 = vld [vmem:[%s2281_s3 + $0x28] sm:$0xff] }
  0x30   :  { %v1617_v32 = vpack.c.bf16 %v120_v31, %v119_v30  ;;  %v38_v35 = vld [vmem:[%s2278_s0 + $0x58] sm:$0xff]  ;;  %v1209_v36 = vld [vmem:[%s2281_s3 + $0x20] sm:$0xff]  ;;  %v1221_v40 = vld [vmem:[%s2281_s3 + $0x68] sm:$0xff]  ;;  %1432 = vmatprep.mubr.msk.f32.mxu1 %vm1714_vm1, %v1715_v49 }
  0x31   :  { %1602 = vmatpush3.bf16.msra.mxu0 %v1601_v10  ;;  %v1220_v38 = vld [vmem:[%s2281_s3 + $0x60] sm:$0xff]  ;;  %v1628_v39 = vpack.c.bf16 %v1210_v37, %v1209_v36  ;;  %v1211_v43 = vld [vmem:[%s2281_s3 + $0x30] sm:$0xff]  ;;  %v1212_v44 = vld [vmem:[%s2281_s3 + $0x38] sm:$0xff] }
  0x32   :  { %1604 = vmatprep.subr.bf16.mxu0 %v1603_v11  ;;  %v1646_v42 = vpack.c.bf16 %v1221_v40, %v1220_v38  ;;  %v1222_v45 = vld [vmem:[%s2281_s3 + $0x70] sm:$0xff]  ;;  %v1631_v46 = vpack.c.bf16 %v1212_v44, %v1211_v43  ;;  %v1223_v47 = vld [vmem:[%s2281_s3 + $0x78] sm:$0xff]  ;;  %v1206_v51 = vld [vmem:[%s2280_s2] ss:$0 sm:$0xff] }
  0x33   :  { %1629 = vmatpush3.bf16.msra.mxu1 %v1628_v39  ;;  %v1649_v48 = vpack.c.bf16 %v1223_v47, %v1222_v45  ;;  %v457_v11 = vld [vmem:[%s2281_s3] sm:$0xff]  ;;  %v458_v14 = vld [vmem:[%s2281_s3 + $0x8] sm:$0xff]  ;;  %v459_v21 = vld [vmem:[%s2281_s3 + $0x10] sm:$0xff] }
  0x34   :  { %1630 = vmatprep.subr.bf16.mxu1 %v1713_v41  ;;  %v1230_v15 = vld [vmem:[%s2281_s3 + $0xa0] sm:$0xff]  ;;  %v1634_v19 = vpack.c.bf16 %v458_v14, %v457_v11  ;;  %v460_v25 = vld [vmem:[%s2281_s3 + $0x18] sm:$0xff]  ;;  %v1232_v26 = vld [vmem:[%s2281_s3 + $0xb0] sm:$0xff] }
  0x35   :  { %1606 = vmatpush3.bf16.msra.mxu0 %v1605_v16  ;;  %v1231_v16 = vld [vmem:[%s2281_s3 + $0xa8] sm:$0xff]  ;;  %v1233_v27 = vld [vmem:[%s2281_s3 + $0xb8] sm:$0xff]  ;;  %v1215_v30 = vld [vmem:[%s2281_s3 + $0x40] sm:$0xff] }
  0x36   :  { %1608 = vmatprep.subr.bf16.mxu0 %v1607_v17  ;;  %v1658_v20 = vpack.c.bf16 %v1231_v16, %v1230_v15  ;;  %v1217_v37 = vld [vmem:[%s2281_s3 + $0x50] sm:$0xff]  ;;  %v1218_v39 = vld [vmem:[%s2281_s3 + $0x58] sm:$0xff]  ;;  %v1225_v45 = vld [vmem:[%s2281_s3 + $0x80] sm:$0xff] }
  0x37   :  { %1632 = vmatpush3.bf16.msra.mxu1 %v1631_v46  ;;  %v1242_v40 = vld [vmem:[%s2281_s3 + $0xf0] sm:$0xff]  ;;  %v1643_v43 = vpack.c.bf16 %v1218_v39, %v1217_v37  ;;  %v1226_v46 = vld [vmem:[%s2281_s3 + $0x88] sm:$0xff] }
  0x38   :  { %1633 = vmatprep.subr.bf16.mxu1 %v1713_v41  ;;  %v1652_v47 = vpack.c.bf16 %v1226_v46, %v1225_v45 }
  0x39   :  { %1610 = vmatpush3.bf16.msra.mxu0 %v1609_v22 }
  0x3a   :  { %1612 = vmatprep.subr.bf16.mxu0 %v1611_v23 }
  0x3d   :  { %1614 = vmatpush3.bf16.msra.mxu0 %v1613_v28  ;;  %v1637_v28 = vpack.c.bf16 %v460_v25, %v459_v21 }
  0x3e   :  { %1616 = vmatprep.subr.bf16.mxu0 %v1615_v29  ;;  %v1661_v29 = vpack.c.bf16 %v1233_v27, %v1232_v26  ;;  %v1246_v27 = vld [vmem:[%s2284_s6] ss:$0 sm:$0xff] }
  0x41   :  { %1618 = vmatpush3.bf16.msra.mxu0 %v1617_v32  ;;  %v1216_v32 = vld [vmem:[%s2281_s3 + $0x48] sm:$0xff] }
  0x42   :  { %1645 = vmatprep.subr.bf16.mxu0 %v1713_v41 }
  0x44   :  { %370 = vmatmul.mubr.f32.vlgmr.msra.gmra.mrb[4].mxu0 %v31_v33  ;;  %v1240_v33 = vld [vmem:[%s2281_s3 + $0xe0] sm:$0xff] }
  0x45   :  { %374 = vmatprep.mubr.f32.mxu0 %v39_v34  ;;  %1647 = vmatpush3.bf16.msra.mxu0 %v1646_v42  ;;  %v1241_v34 = vld [vmem:[%s2281_s3 + $0xe8] sm:$0xff]  ;;  %v1243_v42 = vld [vmem:[%s2281_s3 + $0xf8] sm:$0xff] }
  0x46   :  { %1648 = vmatprep.subr.bf16.mxu0 %v1713_v41  ;;  %v1670_v36 = vpack.c.bf16 %v1241_v34, %v1240_v33  ;;  %v1673_v44 = vpack.c.bf16 %v1243_v42, %v1242_v40 }
  0x48   :  { %375 = vmatmul.mubr.f32.gmra.mrb[6].mxu0 %v38_v35  ;;  %v1640_v35 = vpack.c.bf16 %v1216_v32, %v1215_v30 }
  0x49   :  { %1650 = vmatpush3.bf16.msra.mxu0 %v1649_v48  ;;  %1465 = vmatprep.mubr.msk.f32.mxu0 %vm1714_vm1, %v1715_v49 }
  0x4a   :  { %1657 = vmatprep.subr.bf16.mxu0 %v1713_v41 }
  0xf7   :  { %v1280_v50 = vpop.f32.mrb[0].mxu0 }
  0xf8   :  { %v1281_v52 = vpop.f32.mrb[1].mxu0 }
  0xf9   :  { %v1318_v53 = vpop.f32.mrb[0].mxu1  ;;  %v1282_v54 = vadd.f32 %v1281_v52, %v1280_v50  ;;  %v1228_v52 = vld [vmem:[%s2281_s3 + $0x98] sm:$0xff] }
  0xfa   :  { %v1319_v55 = vpop.f32.mrb[1].mxu1 }
  0xfb   :  { %v1320_v56 = vadd.f32 %v1319_v55, %v1318_v53  ;;  %v222_v57 = vadd.f32 %v1282_v54, %v1206_v51  ;;  %v1283_v58 = vpop.f32.mrb[2].mxu0  ;;  %v1235_v54 = vld [vmem:[%s2281_s3 + $0xc0] sm:$0xff]  ;;  %v1236_v55 = vld [vmem:[%s2281_s3 + $0xc8] sm:$0xff] }
  0xfc   :  { %v1284_v59 = vpop.f32.mrb[3].mxu0 }
  0xfd   :  { %v1321_v60 = vpop.f32.mrb[2].mxu1  ;;  %v297_v61 = vadd.f32 %v1320_v56, %v222_v57  ;;  %v1285_v62 = vadd.f32 %v1284_v59, %v1283_v58  ;;  %v1664_v56 = vpack.c.bf16 %v1236_v55, %v1235_v54  ;;  %v1237_v57 = vld [vmem:[%s2281_s3 + $0xd0] sm:$0xff]  ;;  %v1238_v58 = vld [vmem:[%s2281_s3 + $0xd8] sm:$0xff] }
  0xfe   :  { %v1322_v63 = vpop.f32.mrb[3].mxu1  ;;  %v1667_v59 = vpack.c.bf16 %v1238_v58, %v1237_v57 }
  0xff   :  { %v1323_v0 = vadd.f32 %v1322_v63, %v1321_v60  ;;  %v227_v1 = vadd.f32 %v1285_v62, %v1206_v51  ;;  %v1227_v51 = vld [vmem:[%s2281_s3 + $0x90] sm:$0xff]  ;;  %v1096_v62 = vld [vmem:[%s2283_s5 + $0x8] sm:$0xff] }
 0x100   :  { %v1655_v53 = vpack.c.bf16 %v1228_v52, %v1227_v51 }
 0x101   :  { %v302_v2 = vadd.f32 %v1323_v0, %v227_v1  ;;  %v1097_v0 = vld [vmem:[%s2283_s5 + $0x10] sm:$0xff] }
 0x102   :  { %v1423_v3 = vpop.f32.mrb[4].mxu1 }
 0x103   :  { %v446_v4 = vpop.f32.mrb[5].mxu1 }
 0x117   :  { %v1356_v5 = vpop.f32.mrb[4].mxu0 }
 0x118   :  { %v1357_v6 = vpop.f32.mrb[5].mxu0 }
 0x119   :  { %v1358_v7 = vadd.f32 %v1357_v6, %v1356_v5 }
 0x11b   :  { %v1359_v8 = vpop.f32.mrb[6].mxu0  ;;  %v372_v9 = vadd.f32 %v1358_v7, %v297_v61  ;;  %v1095_v61 = vld [vmem:[%s2283_s5] sm:$0xff] }
 0x11c   :  { %v1360_v10 = vpop.f32.mrb[7].mxu0  ;;  %v1676_v63 = vpack.c.bf16 %v1096_v62, %v1095_v61 }
 0x11d   :  { %v447_v12 = vadd.f32 %v446_v4, %v372_v9  ;;  %v1361_v13 = vadd.f32 %v1360_v10, %v1359_v8 }
 0x11f   :  { %v455_v17 = vmax.f32 %v447_v12, 0.0  ;;  %v377_v18 = vadd.f32 %v1361_v13, %v302_v2 }
 0x121   :  { %v467_v22 = vrot.slane %v455_v17, 2  ;;  %v696_v23 = vrot.slane %v455_v17, 6  ;;  %v452_v24 = vadd.f32 %v1423_v3, %v377_v18  ;;  %v617_v48 = vrot.slane %v455_v17, 4 }
 0x123   :  { %1433 = vmatmul.mubr.msk.f32.vlgmr.msra.gmra.mrb[6].mxu1 %vm148_vm0, %v467_v22  ;;  %1466 = vmatmul.mubr.msk.f32.vlgmr.msra.gmra.mrb[8].mxu0 %vm148_vm0, %v696_v23  ;;  %v456_v31 = vmax.f32 %v452_v24, 0.0  ;;  %v1245_v23 = vld [vmem:[%s2282_s4] ss:$0 sm:$0xff]  ;;  %s1716_s4 = smov [#allocation2]  }
 0x124   :  { %1635 = vmatpush3.bf16.msra.mxu1 %v1634_v19  ;;  %1659 = vmatpush3.bf16.msra.mxu0 %v1658_v20  ;;  %s1198_s20 = sshll.u32 %s1716_s4, 4  ;;  %s1199_s20 = int_to_ptr.vmem [resolvable:$true] %s1198_s20 }
 0x125   :  { %1636 = vmatprep.subr.bf16.mxu1 %v1713_v41  ;;  %1660 = vmatprep.subr.bf16.mxu0 %v1713_v41  ;;  %v854_v38 = vrot.slane %v456_v31, 2  ;;  %v1012_v50 = vrot.slane %v456_v31, 6  ;;  %v933_v60 = vrot.slane %v456_v31, 4  ;;  %s1689_s6 = scalar_lea.vmem %s1199_s20, 32  ;;  %p1694_p1 = scmp.lt.s32.totalorder %s1199_s20, %s1199_s20 }
 0x126   :  { %1443 = vmatprep.mubr.msk.f32.mxu1 %vm1714_vm1, %v1715_v49  ;;  %1487 = vmatprep.mubr.msk.f32.mxu0 %vm1714_vm1, %v1715_v49  ;;  %p1690_p0 = scmp.ne.s32.totalorder %s1199_s20, %s1689_s6  ;;  %p1695_p2 = scmp.lt.s32.totalorder %s1689_s6, %s1689_s6 }
 0x128   :  { %1638 = vmatpush3.bf16.msra.mxu1 %v1637_v28  ;;  %1662 = vmatpush3.bf16.msra.mxu0 %v1661_v29  ;;  %p1696_p3 = por %p1695_p2, %p1694_p1 }
 0x129   :  { %1639 = vmatprep.subr.bf16.mxu1 %v1713_v41  ;;  %1669 = vmatprep.subr.bf16.mxu0 %v1713_v41 }
 0x12a   :  { %p1697_p4 = pnand %p1696_p3, %p1690_p0 }
 0x12b   :  { %1444 = vmatmul.mubr.msk.f32.vlgmr.msra.gmra.mrb[8].mxu1 %vm148_vm0, %v455_v17  ;;  %1488 = vmatmul.mubr.msk.f32.vlgmr.msra.gmra.mrb[10].mxu0 %vm148_vm0, %v854_v38 }
 0x12c   :  { %1641 = vmatpush3.bf16.msra.mxu1 %v1640_v35  ;;  %1671 = vmatpush3.bf16.msra.mxu0 %v1670_v36 }
 0x12d   :  { %1642 = vmatprep.subr.bf16.mxu1 %v1713_v41  ;;  %1672 = vmatprep.subr.bf16.mxu0 %v1713_v41 }
 0x12e   :  { %1454 = vmatprep.mubr.msk.f32.mxu1 %vm1714_vm1, %v1715_v49  ;;  %1509 = vmatprep.mubr.msk.f32.mxu0 %vm1714_vm1, %v1715_v49 }
 0x130   :  { %1644 = vmatpush3.bf16.msra.mxu1 %v1643_v43  ;;  %1674 = vmatpush3.bf16.msra.mxu0 %v1673_v44 }
 0x131   :  { %1651 = vmatprep.subr.bf16.mxu1 %v1713_v41 }
 0x133   :  { %1455 = vmatmul.mubr.msk.f32.vlgmr.msra.gmra.mrb[10].mxu1 %vm148_vm0, %v617_v48  ;;  %1510 = vmatmul.mubr.msk.f32.vlgmr.msra.gmra.mrb[12].mxu0 %vm148_vm0, %v1012_v50 }
 0x134   :  { %1653 = vmatpush3.bf16.msra.mxu1 %v1652_v47  ;;  %1476 = vmatprep.mubr.msk.f32.mxu1 %vm1714_vm1, %v1715_v49 }
 0x135   :  { %1654 = vmatprep.subr.bf16.mxu1 %v1713_v41 }
 0x138   :  { %1656 = vmatpush3.bf16.msra.mxu1 %v1655_v53 }
 0x139   :  { %1663 = vmatprep.subr.bf16.mxu1 %v1713_v41 }
 0x13b   :  { %1477 = vmatmul.mubr.msk.f32.vlgmr.msra.gmra.mrb[12].mxu1 %vm148_vm0, %v456_v31 }
 0x13c   :  { %1665 = vmatpush3.bf16.msra.mxu1 %v1664_v56  ;;  %1498 = vmatprep.mubr.msk.f32.mxu1 %vm1714_vm1, %v1715_v49 }
 0x13d   :  { %1666 = vmatprep.subr.bf16.mxu1 %v1713_v41 }
 0x140   :  { %1668 = vmatpush3.bf16.msra.mxu1 %v1667_v59 }
 0x141   :  { %1675 = vmatprep.subr.bf16.mxu1 %v1713_v41 }
 0x143   :  { %1499 = vmatmul.mubr.msk.f32.vlgmr.msra.gmra.mrb[14].mxu1 %vm148_vm0, %v933_v60 }
 0x144   :  { %1520 = vmatprep.mubr.msk.f32.mxu1 %vm1714_vm1, %v1715_v49  ;;  %1677 = vmatpush3.bf16.msra.mxu1 %v1676_v63  ;;  %v1098_v49 = vld [vmem:[%s2283_s5 + $0x18] sm:$0xff] }
 0x145   :  { %1678 = vmatprep.subr.bf16.mxu1 %v1713_v41  ;;  %v1679_v1 = vpack.c.bf16 %v1098_v49, %v1097_v0 }
 0x148   :  { %1680 = vmatpush3.bf16.msra.mxu1 %v1679_v1 }
 0x1f6   :  { %v536_v2 = vpop.f32.mrb[6].mxu1  ;;  %v765_v3 = vpop.f32.mrb[8].mxu0 }
 0x1f7   :  { %v1434_v4 = vpop.f32.mrb[7].mxu1  ;;  %v1467_v5 = vpop.f32.mrb[9].mxu0 }
 0x1fe   :  { %v608_v6 = vpop.f32.mrb[8].mxu1  ;;  %v923_v7 = vpop.f32.mrb[10].mxu0 }
 0x1ff   :  { %v609_v8 = vadd.f32 %v608_v6, %v536_v2  ;;  %v1445_v9 = vpop.f32.mrb[9].mxu1  ;;  %v1489_v10 = vpop.f32.mrb[11].mxu0 }
 0x206   :  { %v686_v41 = vpop.f32.mrb[10].mxu1  ;;  %v1081_v11 = vpop.f32.mrb[12].mxu0 }
 0x207   :  { %v690_v12 = vadd.f32 %v686_v41, %v609_v8  ;;  %v1456_v13 = vpop.f32.mrb[11].mxu1  ;;  %v1511_v14 = vpop.f32.mrb[13].mxu0 }
 0x209   :  { %v769_v15 = vadd.f32 %v765_v3, %v690_v12 }
 0x20e   :  { %v844_v16 = vpop.f32.mrb[12].mxu1 }
 0x20f   :  { %v848_v17 = vadd.f32 %v844_v16, %v769_v15  ;;  %v1478_v18 = vpop.f32.mrb[13].mxu1 }
 0x211   :  { %v927_v19 = vadd.f32 %v923_v7, %v848_v17 }
 0x216   :  { %v1002_v20 = vpop.f32.mrb[14].mxu1 }
 0x217   :  { %v1006_v21 = vadd.f32 %v1002_v20, %v927_v19  ;;  %v1500_v22 = vpop.f32.mrb[15].mxu1 }
 0x219   :  { %v1085_v24 = vadd.f32 %v1081_v11, %v1006_v21 }
 0x21b   :  { %v1093_v25 = vadd.f32 %v1245_v23, %v1085_v24 }
 0x21d   :  { %v1094_v26 = vmax.f32 %v1093_v25, 0.0 }
 0x21f   :  { %1521 = vmatmul.mubr.msk.f32.vlgmr.msra.gmra.mrb[16].mxu1 %vm148_vm0, %v1094_v26 }
 0x2f2   :  { %v1175_v28 = vpop.f32.mrb[16].mxu1 }
 0x2f3   :  { %v1176_v29 = vadd.f32 %v1246_v27, %v1175_v28  ;;  %v1522_v30 = vpop.f32.mrb[17].mxu1 }
 0x2f5   :  { %v1180_v31 = vsel %vm1179_vm2, %v1176_v29, -inf }
 0x2f6   :  { %1181 = vmax.xlane.f32.xlu0 %v1180_v31 }
 0x383   :  { %v1182_v32 = vpop.xlane.xlu0 %1181 }
 0x384   :  { %v1183_v33 = vsub.f32 %v1176_v29, %v1182_v32 }
 0x386   :  { %v1184_v34 = vmul.f32 1.442695, %v1183_v33 }
 0x388   :  { %1685 = vpow2.f32 %v1184_v34 }
 0x392   :  { %v1686_v35 = vpop.eup %1685 }
 0x393   :  { %v1186_v36 = vsel %vm1179_vm2, %v1686_v35, 0.0 }
 0x394   :  { %1187 = vadd.xlane.f32.xlu0 %v1186_v36 }
 0x421   :  { %v1188_v37 = vpop.xlane.xlu0 %1187 }
 0x422   :  { %1687 = vrcp.f32 %v1188_v37 }
 0x42c   :  { %v1688_v38 = vpop.eup %1687 }
 0x42d   :  { %v1190_v39 = vmul.f32 %v1688_v38, %v1686_v35 }
 0x42f   :  { %1191 = vst.msk [vmem:[#allocation2] sm:$0x3] %vm1179_vm2, %v1190_v39 }
 0x430   :  { %1700 = shalt.err (!%p1697_p4)
}
 0x431   :  { %s1701_s22 = scalar_lea.hbm %s2285_s7, 32 }
 0x432   :  { %p1702_p5 = scmp.ne.s32.totalorder %s2285_s7, %s1701_s22  ;;  %p1705_p6 = scmp.lt.u32.totalorder %s1701_s22, %s2285_s7 }
 0x434   :  { %p1707_p7 = pnand %p1705_p6, %p1702_p5 }
 0x436   :  { %1710 = shalt.err (!%p1707_p7)
}
 0x437   :  { %1201 = dma.vmem_to_hbm [thread:$0]  %s1199_s20, 32, %s2285_s7, [#allocation3]  }
 0x438   :  { %1711 = dma.done.wait [#allocation3], 32  }
 0x439   :  { %1712 = vsyncadd [#allocation3], 4294967264 }
 0x43a   :  { %1205 = vsyncpa [#allocation3], 1 }

</bundles_post_ra>
